<compile_context>
chip_gen: v7x
topology: tpu7x:2x2x1
jax: 0.10.0
libtpu: 0.0.40
codegen_flags: <defaults>
</compile_context>

<pallas_src>
import functools
import math

import jax
import jax.numpy as jnp
from jax.experimental import pallas as pl
from jax.experimental.pallas import tpu as pltpu

EPS = 1e-6
SCALE = 30.0          # MPNNLayer default scale
TILE_M = 256          # max node-row tile for the fused MPNN kernel (multiple of 8)
TILE_LIN = 1024       # max row tile for the plain linear kernels
ROW_PAD = 128         # node rows are padded so M = B*Np is a multiple of this


# ---------------------------------------------------------------------------
# Small helpers
# ---------------------------------------------------------------------------
def _pick_row_tile(rows, max_tile):
    """Largest multiple-of-8 divisor of `rows` that is <= max_tile, preferring
    >= 2 grid steps so both v7x TensorCores get work. `rows` must be a multiple of 8."""
    assert rows % 8 == 0, rows
    cap = min(max_tile, rows // 2 if rows >= 16 else rows)
    cap = max(8, (cap // 8) * 8)
    tm = cap
    while tm > 8 and rows % tm != 0:
        tm -= 8
    return tm


def _clamp_vmem(est_bytes):
    # Enough headroom for the estimated working set, but well below v7x's 64 MiB
    # physical VMEM so the compiler keeps room for internal scratch.
    return int(min(max(est_bytes, 16 << 20), 48 << 20))


def _normalize(x, gain, bias, H):
    # struct2seq Normalize: unbiased std, eps added to sigma only.
    mu = jnp.mean(x, axis=-1, keepdims=True)
    var = jnp.sum((x - mu) ** 2, axis=-1, keepdims=True) * (1.0 / (H - 1))
    inv = pl.reciprocal(jnp.sqrt(var) + EPS, approx=True)   # EUP slot, ~free
    return gain * (x - mu) * inv + bias


# ---------------------------------------------------------------------------
# Row-tiled linear kernels (W_v, W_e, and W_out + log_softmax head)
# ---------------------------------------------------------------------------
def _linear_kernel(x_ref, w_ref, b_ref, o_ref):
    y = jnp.dot(x_ref[...], w_ref[...], preferred_element_type=jnp.float32) + b_ref[...]
    o_ref[...] = y.astype(o_ref.dtype)


def _logsoftmax_head_kernel(x_ref, w_ref, b_ref, o_ref):
    logits = (jnp.dot(x_ref[...], w_ref[...], preferred_element_type=jnp.float32)
              + b_ref[...])
    m = jnp.max(logits, axis=-1, keepdims=True)
    z = logits - m
    lse = jnp.log(jnp.sum(jnp.exp(z), axis=-1, keepdims=True))
    o_ref[...] = z - lse


def _tiled_rowwise_call(kernel, x, W, b, out_dtype):
    rows, Din = x.shape
    Dout = W.shape[1]
    TR = _pick_row_tile(rows, TILE_LIN)
    out_isz = jnp.dtype(out_dtype).itemsize
    est = (2 * (TR * Din * x.dtype.itemsize + TR * Dout * out_isz)
           + 2 * (int(W.size) * W.dtype.itemsize + int(b.size) * b.dtype.itemsize)
           + (2 << 20))
    return pl.pallas_call(
        kernel,
        out_shape=jax.ShapeDtypeStruct((rows, Dout), out_dtype),
        grid=(rows // TR,),
        in_specs=[
            pl.BlockSpec((TR, Din), lambda i: (i, 0)),
            pl.BlockSpec((Din, Dout), lambda i: (0, 0)),
            pl.BlockSpec((1, Dout), lambda i: (0, 0)),
        ],
        out_specs=pl.BlockSpec((TR, Dout), lambda i: (i, 0)),
        compiler_params=pltpu.CompilerParams(
            dimension_semantics=("parallel",),
            vmem_limit_bytes=_clamp_vmem(est)),
    )(x, W, b)


def pallas_linear(x, W, b, out_dtype=jnp.float32):
    return _tiled_rowwise_call(_linear_kernel, x, W, b, out_dtype)


def pallas_linear_logsoftmax(x, W, b):
    return _tiled_rowwise_call(_logsoftmax_head_kernel, x, W, b, jnp.float32)


# ---------------------------------------------------------------------------
# Fused MPNN layer kernel
#   message MLP (W1 split self/static-edge/neighbor) + optional in-kernel decoder
#   blend + optional attend mask + neighbor sum + Normalize + FFN + Normalize + mask_V
# ---------------------------------------------------------------------------
def _mpnn_fused_kernel(*refs, K, inv_scale, blend, has_attend):
    in_refs, out_ref = refs[:-1], refs[-1]
    it = iter(in_refs)
    hV_ref = next(it)
    hEVa_ref = next(it)
    hVn_ref = next(it)
    mbw_ref = next(it) if blend else None
    fw_ref = next(it) if blend else None
    ma_ref = next(it) if has_attend else None
    mv_ref = next(it)
    (W1s_ref, W1a_ref, W1b_ref, b1_ref,
     W2_ref, b2_ref, W3_ref, b3_ref,
     g1_ref, be1_ref,
     Win_ref, bi_ref, Wff_ref, bff_ref,
     g2_ref, be2_ref) = tuple(it)

    TM, H = hV_ref.shape
    hV = hV_ref[...]                                                   # f32 [TM, H]

    # Self part of W1 (+ bias folded here; broadcast over K later).
    m_self = jnp.dot(hV.astype(jnp.bfloat16), W1s_ref[...],
                     preferred_element_type=jnp.float32) + b1_ref[...]  # [TM, H]

    # Neighbor h_V part; decoder does the backward/forward blend in-kernel.
    hVn = hVn_ref[...]                                                 # bf16 [TM*K, H]
    if blend:
        mbw_b = mbw_ref[...].astype(jnp.bfloat16)                      # {0,1} exact in bf16
        hEVb = (mbw_b[:, :, None] * hVn.reshape(TM, K, H)
                + fw_ref[...].reshape(TM, K, H)).reshape(TM * K, H)
    else:
        hEVb = hVn

    # Message MLP: W3(relu(W2(relu(W1([self ; static ; neighbor]) + b1))))
    m_edge = (jnp.dot(hEVa_ref[...], W1a_ref[...], preferred_element_type=jnp.float32)
              + jnp.dot(hEVb, W1b_ref[...], preferred_element_type=jnp.float32))
    h = jnp.maximum(m_edge.reshape(TM, K, H) + m_self[:, None, :], 0.0).reshape(TM * K, H)
    h = jnp.maximum(
        jnp.dot(h.astype(jnp.bfloat16), W2_ref[...],
                preferred_element_type=jnp.float32) + b2_ref[...], 0.0)
    h = (jnp.dot(h.astype(jnp.bfloat16), W3_ref[...],
                 preferred_element_type=jnp.float32) + b3_ref[...]).reshape(TM, K, H)

    if has_attend:
        h = h * ma_ref[...][:, :, None]
    dh = h.sum(axis=1) * inv_scale                                     # [TM, H]

    x = _normalize(hV + dh, g1_ref[...], be1_ref[...], H)

    # PositionWiseFeedForward
    ff = jnp.maximum(
        jnp.dot(x.astype(jnp.bfloat16), Win_ref[...],
                preferred_element_type=jnp.float32) + bi_ref[...], 0.0)
    ff = (jnp.dot(ff.astype(jnp.bfloat16), Wff_ref[...],
                  preferred_element_type=jnp.float32) + bff_ref[...])

    y = _normalize(x + ff, g2_ref[...], be2_ref[...], H)
    out_ref[...] = mv_ref[...] * y                                     # mask_V


def mpnn_layer_pallas(hV, hEVa, hVn, mv, p, *, K,
                      mask_bw=None, fw_pre=None, mask_attend=None):
    """Fused MPNN layer.

    hV:          [M, H]     f32  node features (residual kept in f32)
    hEVa:        [M*K, Ca]  bf16 "static" edge portion (h_E, or [mask*h_E | mask_bw*h_S_nbr])
    hVn:         [M*K, H]   bf16 raw gathered neighbor h_V
    mv:          [M, 1]     f32  mask_V
    mask_bw:     [M, K]     f32  (decoder only) backward mask for the in-kernel blend
    fw_pre:      [M*K, H]   bf16 (decoder only) mask_fw * gather(h_V_encoder), layer-invariant
    mask_attend: [M, K]     f32  or None (decoder skips the multiply entirely)
    """
    M, H = hV.shape
    Ca = hEVa.shape[1]
    blend = mask_bw is not None
    has_attend = mask_attend is not None
    TM = _pick_row_tile(M, TILE_M)

    row = lambda i: (i, 0)
    full = lambda i: (0, 0)

    in_specs = [pl.BlockSpec((TM, H), row),          # h_V
                pl.BlockSpec((TM * K, Ca), row),     # static edge slab (bf16)
                pl.BlockSpec((TM * K, H), row)]      # gathered neighbor h_V (bf16)
    args = [hV, hEVa, hVn]
    if blend:
        in_specs += [pl.BlockSpec((TM, K), row), pl.BlockSpec((TM * K, H), row)]
        args += [mask_bw, fw_pre]
    if has_attend:
        in_specs.append(pl.BlockSpec((TM, K), row))
        args.append(mask_attend)
    in_specs.append(pl.BlockSpec((TM, 1), row))
    args.append(mv)

    weights = [p["W1_self"], p["W1_a"], p["W1_b"], p["b1"],
               p["W2"], p["b2"], p["W3"], p["b3"],
               p["gain1"], p["bias1"],
               p["W_in"], p["b_in"], p["W_ff"], p["b_ff"],
               p["gain2"], p["bias2"]]
    in_specs += [pl.BlockSpec(w.shape, full) for w in weights]
    args += weights

    # VMEM estimate: double-buffered tiled blocks + weights (+ margin).
    blk = (TM * H * 4 + TM * K * Ca * 2 + TM * K * H * 2 + TM * 4 + TM * H * 4)
    if blend:
        blk += TM * K * 4 + TM * K * H * 2
    if has_attend:
        blk += TM * K * 4
    wbytes = sum(int(w.size) * w.dtype.itemsize for w in weights)
    limit = _clamp_vmem(2 * (blk + wbytes) + (2 << 20))

    return pl.pallas_call(
        functools.partial(_mpnn_fused_kernel, K=K, inv_scale=1.0 / SCALE,
                          blend=blend, has_attend=has_attend),
        out_shape=jax.ShapeDtypeStruct((M, H), jnp.float32),
        grid=(M // TM,),
        in_specs=in_specs,
        out_specs=pl.BlockSpec((TM, H), row),
        compiler_params=pltpu.CompilerParams(
            dimension_semantics=("parallel",),
            vmem_limit_bytes=limit),
    )(*args)


# ---------------------------------------------------------------------------
# Parameter initialization (deterministic, synthetic; matches struct2seq shapes)
# ---------------------------------------------------------------------------
def init_mpnn_params(key, H, num_in):
    ks = jax.random.split(key, 5)
    s = 0.1
    bf = jnp.bfloat16
    Ca = num_in - H                    # width of the "static" edge portion
    W1 = jax.random.normal(ks[0], (H + num_in, H), jnp.float32) * s
    return {
        # W1 split by input-concat layout: [h_V_self(H) | edge_static(Ca) | h_V_neighbor(H)]
        "W1_self": W1[:H].astype(bf),
        "W1_a": W1[H:H + Ca].astype(bf),
        "W1_b": W1[H + Ca:].astype(bf),
        "b1": jnp.zeros((1, H), jnp.float32),
        "W2": (jax.random.normal(ks[1], (H, H), jnp.float32) * s).astype(bf),
        "b2": jnp.zeros((1, H), jnp.float32),
        "W3": (jax.random.normal(ks[2], (H, H), jnp.float32) * s).astype(bf),
        "b3": jnp.zeros((1, H), jnp.float32),
        "gain1": jnp.ones((1, H), jnp.float32),
        "bias1": jnp.zeros((1, H), jnp.float32),
        "W_in": (jax.random.normal(ks[3], (H, 4 * H), jnp.float32) * s).astype(bf),
        "b_in": jnp.zeros((1, 4 * H), jnp.float32),
        "W_ff": (jax.random.normal(ks[4], (4 * H, H), jnp.float32) * s).astype(bf),
        "b_ff": jnp.zeros((1, H), jnp.float32),
        "gain2": jnp.ones((1, H), jnp.float32),
        "bias2": jnp.zeros((1, H), jnp.float32),
    }


def init_params(key, H, vocab, n_enc=3, n_dec=3):
    ks = jax.random.split(key, 4 + n_enc + n_dec)
    s = 0.1
    return {
        "W_v": jax.random.normal(ks[0], (H, H), jnp.float32) * s,
        "b_v": jnp.zeros((1, H), jnp.float32),
        "W_e": jax.random.normal(ks[1], (H, H), jnp.float32) * s,
        "b_e": jnp.zeros((1, H), jnp.float32),
        "W_s": jax.random.normal(ks[2], (vocab, H), jnp.float32) * s,   # embedding
        "W_out": jax.random.normal(ks[3], (H, vocab), jnp.float32) * s,
        "b_out": jnp.zeros((1, vocab), jnp.float32),
        "enc": [init_mpnn_params(ks[4 + i], H, 2 * H) for i in range(n_enc)],
        "dec": [init_mpnn_params(ks[4 + n_enc + i], H, 3 * H) for i in range(n_dec)],
    }


# ---------------------------------------------------------------------------
# Forward pass (== StructGNN_Model.forward, eval mode: dropout = identity)
# ---------------------------------------------------------------------------
def structgnn_forward(params, S, V, E, E_idx, mask):
    B, N, H = V.shape
    K0 = E_idx.shape[-1]
    vocab = params["W_out"].shape[1]
    bf = jnp.bfloat16

    # ---- pad K (neighbor axis) to a sublane multiple of 8 ----
    K = max(8, ((K0 + 7) // 8) * 8)
    if K != K0:
        pk = K - K0
        E = jnp.pad(E, ((0, 0), (0, 0), (0, pk), (0, 0)))
        E_idx = jnp.pad(E_idx, ((0, 0), (0, 0), (0, pk)))
    k_valid = None if K == K0 else (jnp.arange(K) < K0).astype(jnp.float32)

    # ---- pad N so M = B*Np is a multiple of ROW_PAD (zero rows, mask_V = 0) ----
    step = ROW_PAD // math.gcd(B, ROW_PAD)
    Np = ((N + step - 1) // step) * step
    if Np != N:
        pn = Np - N
        V = jnp.pad(V, ((0, 0), (0, pn), (0, 0)))
        E = jnp.pad(E, ((0, 0), (0, pn), (0, 0), (0, 0)))
        E_idx = jnp.pad(E_idx, ((0, 0), (0, pn), (0, 0)))
        S = jnp.pad(S, ((0, 0), (0, pn)))
        mask = jnp.pad(mask, ((0, 0), (0, pn)))
    M = B * Np

    # Flattened absolute neighbor indices for all gathers.
    abs_idx = (jnp.arange(B, dtype=E_idx.dtype)[:, None, None] * Np + E_idx).reshape(M * K)

    mask_flat = mask.reshape(M).astype(jnp.float32)
    mv = mask_flat[:, None]                                              # [M, 1]

    # Initial node / edge projections: h_V = W_v(V), h_E = W_e(E)
    h_V = pallas_linear(V.reshape(M, H), params["W_v"], params["b_v"])   # [M, H]  f32
    h_E = pallas_linear(E.reshape(M * K, H), params["W_e"], params["b_e"],
                        out_dtype=bf)                                    # [M*K,H] bf16

    # Encoder attention mask: mask_i * mask_j -> [M, K] (zero out padded K columns)
    ma_enc = mv * mask_flat[abs_idx].reshape(M, K)
    if k_valid is not None:
        ma_enc = ma_enc * k_valid[None, :]

    # ---- encoder layers ----
    for lp in params["enc"]:
        hVn = jnp.take(h_V.astype(bf), abs_idx, axis=0)                  # bf16 gather
        h_V = mpnn_layer_pallas(h_V, h_E, hVn, mv, lp, K=K, mask_attend=ma_enc)

    # ---- decoder-invariant pieces (built once, bf16) ----
    h_S = params["W_s"][S.reshape(M)].astype(bf)                         # embedding [M, H]
    hS_nbr = jnp.take(h_S, abs_idx, axis=0).reshape(M, K, H)             # gather(h_S)

    ii = jnp.arange(Np, dtype=E_idx.dtype).reshape(1, Np, 1)
    mask_ar = (E_idx < ii).astype(jnp.float32)                           # [B, Np, K]
    mask_bw = (mask[..., None] * mask_ar).reshape(M, K)
    mask_fw = (mask[..., None] * (1.0 - mask_ar)).reshape(M, K)
    if k_valid is not None:
        mask_bw = mask_bw * k_valid[None, :]
        mask_fw = mask_fw * k_valid[None, :]

    # h_ESV blend decomposition:
    #   static slab = [ mask*h_E | mask_bw*gather(h_S) ]          (layer-invariant)
    #   neighbor    = mask_bw*gather(h_V_cur) + fw_pre            (blend done in-kernel)
    #   fw_pre      = mask_fw*gather(h_V_encoder)                 (layer-invariant)
    h_E3 = h_E.reshape(M, K, H)
    chunk0 = mask_flat.astype(bf)[:, None, None] * h_E3
    chunk1 = mask_bw.astype(bf)[:, :, None] * hS_nbr
    hEVa_dec = jnp.concatenate([chunk0, chunk1], axis=-1).reshape(M * K, 2 * H)
    fw_pre = (mask_fw.astype(bf)[:, :, None]
              * jnp.take(h_V.astype(bf), abs_idx, axis=0).reshape(M, K, H)
              ).reshape(M * K, H)

    # Decoder mask_attend is None in the reference; only needed if K was padded.
    dec_ma = None if k_valid is None else jnp.broadcast_to(k_valid[None, :], (M, K))

    # ---- decoder layers ----
    for lp in params["dec"]:
        hVn = jnp.take(h_V.astype(bf), abs_idx, axis=0)                  # bf16 gather
        h_V = mpnn_layer_pallas(h_V, hEVa_dec, hVn, mv, lp, K=K,
                                mask_bw=mask_bw, fw_pre=fw_pre, mask_attend=dec_ma)

    # ---- output head: W_out + log_softmax fused, vocab padded to 128 lanes ----
    Wo, bo = params["W_out"], params["b_out"]
    Vp = ((vocab + 127) // 128) * 128
    if Vp != vocab:
        Wo = jnp.pad(Wo, ((0, 0), (0, Vp - vocab)))
        bo = jnp.pad(bo, ((0, 0), (0, Vp - vocab)), constant_values=-1e9)
    log_probs = pallas_linear_logsoftmax(h_V, Wo, bo)
    log_probs = log_probs.reshape(B, Np, Vp)[:, :N, :vocab]
    return {"log_probs": log_probs}


# ---------------------------------------------------------------------------
if __name__ == "__main__":
    B, N, K, H, VOCAB = 2, 16, 8, 32, 20
    # TODO(synk): real struct2seq runs at H=128; at H=32 most vreg lanes are idle
    #             (padding H or batching feature groups is left for the real config).

    key = jax.random.PRNGKey(0)
    k_param, k_s, k_v, k_e, k_idx, k_mask = jax.random.split(key, 6)

    params = init_params(k_param, H, VOCAB)

    S = jax.random.randint(k_s, (B, N), 0, VOCAB, dtype=jnp.int32)
    V = jax.random.normal(k_v, (B, N, H), jnp.float32)
    E = jax.random.normal(k_e, (B, N, K, H), jnp.float32)
    E_idx = jax.random.randint(k_idx, (B, N, K), 0, N, dtype=jnp.int32)
    mask = (jax.random.uniform(k_mask, (B, N)) > 0.2).astype(jnp.float32)

    fwd = jax.jit(structgnn_forward)
    out = fwd(params, S, V, E, E_idx, mask)
    log_probs = jax.block_until_ready(out["log_probs"])

    assert log_probs.shape == (B, N, VOCAB)
    assert bool(jnp.all(jnp.isfinite(log_probs)))
    print("KERNEL_OK")
</pallas_src>

<mosaic_0001>
module attributes {stable_mosaic.version = 11 : i64} {
  func.func @_linear_kernel(%arg0: i32, %arg1: memref<64x32xf32, #tpu.memory_space<vmem>>, %arg2: memref<32x32xf32, #tpu.memory_space<vmem>>, %arg3: memref<1x32xf32, #tpu.memory_space<vmem>>, %arg4: memref<64x32xf32, #tpu.memory_space<vmem>>) attributes {dimension_semantics = [#tpu.dimension_semantics<parallel>], iteration_bounds = array<i64: 2>, scalar_prefetch = 0 : i64, scratch_operands = 0 : i64, tpu.core_type = #tpu.core_type<tc>, window_params = [{transform_indices = @transform_0, window_bounds = array<i64: 64, 32>}, {pipeline_mode = #tpu.pipeline_mode<synchronous>, transform_indices = @transform_1, window_bounds = array<i64: 32, 32>}, {pipeline_mode = #tpu.pipeline_mode<synchronous>, transform_indices = @transform_2, window_bounds = array<i64: 1, 32>}, {transform_indices = @transform_3, window_bounds = array<i64: 64, 32>}]} {
    %c0 = arith.constant 0 : index
    %c0_0 = arith.constant 0 : index
    %0 = vector.load %arg1[%c0, %c0_0] : memref<64x32xf32, #tpu.memory_space<vmem>>, vector<64x32xf32>
    %c0_1 = arith.constant 0 : index
    %c0_2 = arith.constant 0 : index
    %1 = vector.load %arg2[%c0_1, %c0_2] : memref<32x32xf32, #tpu.memory_space<vmem>>, vector<32x32xf32>
    %cst = arith.constant dense<0.000000e+00> : vector<64x32xf32>
    %2 = tpu.matmul %0, %1, %cst {dimension_numbers = #tpu.dot_dimension_numbers<[1], [0], [0], [1], [0, 0, 1, 1], [], []>} : vector<64x32xf32>, vector<32x32xf32>, vector<64x32xf32> -> vector<64x32xf32>
    %c0_3 = arith.constant 0 : index
    %c0_4 = arith.constant 0 : index
    %3 = vector.load %arg3[%c0_3, %c0_4] : memref<1x32xf32, #tpu.memory_space<vmem>>, vector<1x32xf32>
    %4 = vector.broadcast %3 : vector<1x32xf32> to vector<64x32xf32>
    %5 = arith.addf %2, %4 : vector<64x32xf32>
    %c0_5 = arith.constant 0 : index
    %c0_6 = arith.constant 0 : index
    %6 = vector.load %arg4[%c0_5, %c0_6] : memref<64x32xf32, #tpu.memory_space<vmem>>, vector<64x32xf32>
    tpu.vector_store %arg4[%c0_5, %c0_6], %5 {strides = array<i32>} : memref<64x32xf32, #tpu.memory_space<vmem>>, vector<64x32xf32>,
    return
  }
  func.func @transform_0(%arg0: i32) -> (i32, i32) {
    %c0_i32 = arith.constant 0 : i32
    %c0_i32_0 = arith.constant 0 : i32
    return %arg0, %c0_i32 : i32, i32
  }
  func.func @transform_1(%arg0: i32) -> (i32, i32) {
    %c0_i32 = arith.constant 0 : i32
    %c0_i32_0 = arith.constant 0 : i32
    %c0_i32_1 = arith.constant 0 : i32
    return %c0_i32, %c0_i32_0 : i32, i32
  }
  func.func @transform_2(%arg0: i32) -> (i32, i32) {
    %c0_i32 = arith.constant 0 : i32
    %c0_i32_0 = arith.constant 0 : i32
    %c0_i32_1 = arith.constant 0 : i32
    return %c0_i32, %c0_i32_0 : i32, i32
  }
  func.func @transform_3(%arg0: i32) -> (i32, i32) {
    %c0_i32 = arith.constant 0 : i32
    %c0_i32_0 = arith.constant 0 : i32
    return %arg0, %c0_i32 : i32, i32
  }
}

module attributes {stable_mosaic.version = 11 : i64} {
  func.func @_linear_kernel(%arg0: i32, %arg1: memref<512x32xf32, #tpu.memory_space<vmem>>, %arg2: memref<32x32xf32, #tpu.memory_space<vmem>>, %arg3: memref<1x32xf32, #tpu.memory_space<vmem>>, %arg4: memref<512x32xbf16, #tpu.memory_space<vmem>>) attributes {dimension_semantics = [#tpu.dimension_semantics<parallel>], iteration_bounds = array<i64: 2>, scalar_prefetch = 0 : i64, scratch_operands = 0 : i64, tpu.core_type = #tpu.core_type<tc>, window_params = [{transform_indices = @transform_0, window_bounds = array<i64: 512, 32>}, {pipeline_mode = #tpu.pipeline_mode<synchronous>, transform_indices = @transform_1, window_bounds = array<i64: 32, 32>}, {pipeline_mode = #tpu.pipeline_mode<synchronous>, transform_indices = @transform_2, window_bounds = array<i64: 1, 32>}, {transform_indices = @transform_3, window_bounds = array<i64: 512, 32>}]} {
    %c0 = arith.constant 0 : index
    %c0_0 = arith.constant 0 : index
    %0 = vector.load %arg1[%c0, %c0_0] : memref<512x32xf32, #tpu.memory_space<vmem>>, vector<512x32xf32>
    %c0_1 = arith.constant 0 : index
    %c0_2 = arith.constant 0 : index
    %1 = vector.load %arg2[%c0_1, %c0_2] : memref<32x32xf32, #tpu.memory_space<vmem>>, vector<32x32xf32>
    %cst = arith.constant dense<0.000000e+00> : vector<512x32xf32>
    %2 = tpu.matmul %0, %1, %cst {dimension_numbers = #tpu.dot_dimension_numbers<[1], [0], [0], [1], [0, 0, 1, 1], [], []>} : vector<512x32xf32>, vector<32x32xf32>, vector<512x32xf32> -> vector<512x32xf32>
    %c0_3 = arith.constant 0 : index
    %c0_4 = arith.constant 0 : index
    %3 = vector.load %arg3[%c0_3, %c0_4] : memref<1x32xf32, #tpu.memory_space<vmem>>, vector<1x32xf32>
    %4 = vector.broadcast %3 : vector<1x32xf32> to vector<512x32xf32>
    %5 = arith.addf %2, %4 : vector<512x32xf32>
    %6 = arith.truncf %5 : vector<512x32xf32> to vector<512x32xbf16>
    %c0_5 = arith.constant 0 : index
    %c0_6 = arith.constant 0 : index
    %7 = vector.load %arg4[%c0_5, %c0_6] : memref<512x32xbf16, #tpu.memory_space<vmem>>, vector<512x32xbf16>
    tpu.vector_store %arg4[%c0_5, %c0_6], %6 {strides = array<i32>} : memref<512x32xbf16, #tpu.memory_space<vmem>>, vector<512x32xbf16>,
    return
  }
  func.func @transform_0(%arg0: i32) -> (i32, i32) {
    %c0_i32 = arith.constant 0 : i32
    %c0_i32_0 = arith.constant 0 : i32
    return %arg0, %c0_i32 : i32, i32
  }
  func.func @transform_1(%arg0: i32) -> (i32, i32) {
    %c0_i32 = arith.constant 0 : i32
    %c0_i32_0 = arith.constant 0 : i32
    %c0_i32_1 = arith.constant 0 : i32
    return %c0_i32, %c0_i32_0 : i32, i32
  }
  func.func @transform_2(%arg0: i32) -> (i32, i32) {
    %c0_i32 = arith.constant 0 : i32
    %c0_i32_0 = arith.constant 0 : i32
    %c0_i32_1 = arith.constant 0 : i32
    return %c0_i32, %c0_i32_0 : i32, i32
  }
  func.func @transform_3(%arg0: i32) -> (i32, i32) {
    %c0_i32 = arith.constant 0 : i32
    %c0_i32_0 = arith.constant 0 : i32
    return %arg0, %c0_i32 : i32, i32
  }
}

module attributes {stable_mosaic.version = 11 : i64} {
  func.func @_mpnn_fused_kernel(%arg0: i32, %arg1: memref<64x32xf32, #tpu.memory_space<vmem>>, %arg2: memref<512x32xbf16, #tpu.memory_space<vmem>>, %arg3: memref<512x32xbf16, #tpu.memory_space<vmem>>, %arg4: memref<64x8xf32, #tpu.memory_space<vmem>>, %arg5: memref<64x1xf32, #tpu.memory_space<vmem>>, %arg6: memref<32x32xbf16, #tpu.memory_space<vmem>>, %arg7: memref<32x32xbf16, #tpu.memory_space<vmem>>, %arg8: memref<32x32xbf16, #tpu.memory_space<vmem>>, %arg9: memref<1x32xf32, #tpu.memory_space<vmem>>, %arg10: memref<32x32xbf16, #tpu.memory_space<vmem>>, %arg11: memref<1x32xf32, #tpu.memory_space<vmem>>, %arg12: memref<32x32xbf16, #tpu.memory_space<vmem>>, %arg13: memref<1x32xf32, #tpu.memory_space<vmem>>, %arg14: memref<1x32xf32, #tpu.memory_space<vmem>>, %arg15: memref<1x32xf32, #tpu.memory_space<vmem>>, %arg16: memref<32x128xbf16, #tpu.memory_space<vmem>>, %arg17: memref<1x128xf32, #tpu.memory_space<vmem>>, %arg18: memref<128x32xbf16, #tpu.memory_space<vmem>>, %arg19: memref<1x32xf32, #tpu.memory_space<vmem>>, %arg20: memref<1x32xf32, #tpu.memory_space<vmem>>, %arg21: memref<1x32xf32, #tpu.memory_space<vmem>>, %arg22: memref<64x32xf32, #tpu.memory_space<vmem>>) attributes {dimension_semantics = [#tpu.dimension_semantics<parallel>], iteration_bounds = array<i64: 2>, scalar_prefetch = 0 : i64, scratch_operands = 0 : i64, tpu.core_type = #tpu.core_type<tc>, window_params = [{transform_indices = @transform_0, window_bounds = array<i64: 64, 32>}, {transform_indices = @transform_1, window_bounds = array<i64: 512, 32>}, {transform_indices = @transform_2, window_bounds = array<i64: 512, 32>}, {transform_indices = @transform_3, window_bounds = array<i64: 64, 8>}, {transform_indices = @transform_4, window_bounds = array<i64: 64, 1>}, {pipeline_mode = #tpu.pipeline_mode<synchronous>, transform_indices = @transform_5, window_bounds = array<i64: 32, 32>}, {pipeline_mode = #tpu.pipeline_mode<synchronous>, transform_indices = @transform_6, window_bounds = array<i64: 32, 32>}, {pipeline_mode = #tpu.pipeline_mode<synchronous>, transform_indices = @transform_7, window_bounds = array<i64: 32, 32>}, {pipeline_mode = #tpu.pipeline_mode<synchronous>, transform_indices = @transform_8, window_bounds = array<i64: 1, 32>}, {pipeline_mode = #tpu.pipeline_mode<synchronous>, transform_indices = @transform_9, window_bounds = array<i64: 32, 32>}, {pipeline_mode = #tpu.pipeline_mode<synchronous>, transform_indices = @transform_10, window_bounds = array<i64: 1, 32>}, {pipeline_mode = #tpu.pipeline_mode<synchronous>, transform_indices = @transform_11, window_bounds = array<i64: 32, 32>}, {pipeline_mode = #tpu.pipeline_mode<synchronous>, transform_indices = @transform_12, window_bounds = array<i64: 1, 32>}, {pipeline_mode = #tpu.pipeline_mode<synchronous>, transform_indices = @transform_13, window_bounds = array<i64: 1, 32>}, {pipeline_mode = #tpu.pipeline_mode<synchronous>, transform_indices = @transform_14, window_bounds = array<i64: 1, 32>}, {pipeline_mode = #tpu.pipeline_mode<synchronous>, transform_indices = @transform_15, window_bounds = array<i64: 32, 128>}, {pipeline_mode = #tpu.pipeline_mode<synchronous>, transform_indices = @transform_16, window_bounds = array<i64: 1, 128>}, {pipeline_mode = #tpu.pipeline_mode<synchronous>, transform_indices = @transform_17, window_bounds = array<i64: 128, 32>}, {pipeline_mode = #tpu.pipeline_mode<synchronous>, transform_indices = @transform_18, window_bounds = array<i64: 1, 32>}, {pipeline_mode = #tpu.pipeline_mode<synchronous>, transform_indices = @transform_19, window_bounds = array<i64: 1, 32>}, {pipeline_mode = #tpu.pipeline_mode<synchronous>, transform_indices = @transform_20, window_bounds = array<i64: 1, 32>}, {transform_indices = @transform_21, window_bounds = array<i64: 64, 32>}]} {
    %c0 = arith.constant 0 : index
    %c0_0 = arith.constant 0 : index
    %0 = vector.load %arg1[%c0, %c0_0] : memref<64x32xf32, #tpu.memory_space<vmem>>, vector<64x32xf32>
    %1 = arith.truncf %0 : vector<64x32xf32> to vector<64x32xbf16>
    %c0_1 = arith.constant 0 : index
    %c0_2 = arith.constant 0 : index
    %2 = vector.load %arg6[%c0_1, %c0_2] : memref<32x32xbf16, #tpu.memory_space<vmem>>, vector<32x32xbf16>
    %cst = arith.constant dense<0.000000e+00> : vector<64x32xf32>
    %3 = tpu.matmul %1, %2, %cst {dimension_numbers = #tpu.dot_dimension_numbers<[1], [0], [0], [1], [0, 0, 1, 1], [], []>} : vector<64x32xbf16>, vector<32x32xbf16>, vector<64x32xf32> -> vector<64x32xf32>
    %c0_3 = arith.constant 0 : index
    %c0_4 = arith.constant 0 : index
    %4 = vector.load %arg9[%c0_3, %c0_4] : memref<1x32xf32, #tpu.memory_space<vmem>>, vector<1x32xf32>
    %5 = vector.broadcast %4 : vector<1x32xf32> to vector<64x32xf32>
    %6 = arith.addf %3, %5 : vector<64x32xf32>
    %c0_5 = arith.constant 0 : index
    %c0_6 = arith.constant 0 : index
    %7 = vector.load %arg3[%c0_5, %c0_6] : memref<512x32xbf16, #tpu.memory_space<vmem>>, vector<512x32xbf16>
    %c0_7 = arith.constant 0 : index
    %c0_8 = arith.constant 0 : index
    %8 = vector.load %arg2[%c0_7, %c0_8] : memref<512x32xbf16, #tpu.memory_space<vmem>>, vector<512x32xbf16>
    %c0_9 = arith.constant 0 : index
    %c0_10 = arith.constant 0 : index
    %9 = vector.load %arg7[%c0_9, %c0_10] : memref<32x32xbf16, #tpu.memory_space<vmem>>, vector<32x32xbf16>
    %cst_11 = arith.constant dense<0.000000e+00> : vector<512x32xf32>
    %10 = tpu.matmul %8, %9, %cst_11 {dimension_numbers = #tpu.dot_dimension_numbers<[1], [0], [0], [1], [0, 0, 1, 1], [], []>} : vector<512x32xbf16>, vector<32x32xbf16>, vector<512x32xf32> -> vector<512x32xf32>
    %c0_12 = arith.constant 0 : index
    %c0_13 = arith.constant 0 : index
    %11 = vector.load %arg8[%c0_12, %c0_13] : memref<32x32xbf16, #tpu.memory_space<vmem>>, vector<32x32xbf16>
    %cst_14 = arith.constant dense<0.000000e+00> : vector<512x32xf32>
    %12 = tpu.matmul %7, %11, %cst_14 {dimension_numbers = #tpu.dot_dimension_numbers<[1], [0], [0], [1], [0, 0, 1, 1], [], []>} : vector<512x32xbf16>, vector<32x32xbf16>, vector<512x32xf32> -> vector<512x32xf32>
    %13 = arith.addf %10, %12 : vector<512x32xf32>
    %14 = vector.shape_cast %13 : vector<512x32xf32> to vector<64x8x32xf32>
    %15 = vector.shape_cast %6 : vector<64x32xf32> to vector<64x1x32xf32>
    %16 = vector.broadcast %15 : vector<64x1x32xf32> to vector<64x8x32xf32>
    %17 = arith.addf %14, %16 : vector<64x8x32xf32>
    %cst_15 = arith.constant 0.000000e+00 : f32
    %18 = vector.broadcast %cst_15 : f32 to vector<64x8x32xf32>
    %19 = arith.maximumf %17, %18 : vector<64x8x32xf32>
    %20 = vector.shape_cast %19 : vector<64x8x32xf32> to vector<512x32xf32>
    %21 = arith.truncf %20 : vector<512x32xf32> to vector<512x32xbf16>
    %c0_16 = arith.constant 0 : index
    %c0_17 = arith.constant 0 : index
    %22 = vector.load %arg10[%c0_16, %c0_17] : memref<32x32xbf16, #tpu.memory_space<vmem>>, vector<32x32xbf16>
    %cst_18 = arith.constant dense<0.000000e+00> : vector<512x32xf32>
    %23 = tpu.matmul %21, %22, %cst_18 {dimension_numbers = #tpu.dot_dimension_numbers<[1], [0], [0], [1], [0, 0, 1, 1], [], []>} : vector<512x32xbf16>, vector<32x32xbf16>, vector<512x32xf32> -> vector<512x32xf32>
    %c0_19 = arith.constant 0 : index
    %c0_20 = arith.constant 0 : index
    %24 = vector.load %arg11[%c0_19, %c0_20] : memref<1x32xf32, #tpu.memory_space<vmem>>, vector<1x32xf32>
    %25 = vector.broadcast %24 : vector<1x32xf32> to vector<512x32xf32>
    %26 = arith.addf %23, %25 : vector<512x32xf32>
    %cst_21 = arith.constant 0.000000e+00 : f32
    %27 = vector.broadcast %cst_21 : f32 to vector<512x32xf32>
    %28 = arith.maximumf %26, %27 : vector<512x32xf32>
    %29 = arith.truncf %28 : vector<512x32xf32> to vector<512x32xbf16>
    %c0_22 = arith.constant 0 : index
    %c0_23 = arith.constant 0 : index
    %30 = vector.load %arg12[%c0_22, %c0_23] : memref<32x32xbf16, #tpu.memory_space<vmem>>, vector<32x32xbf16>
    %cst_24 = arith.constant dense<0.000000e+00> : vector<512x32xf32>
    %31 = tpu.matmul %29, %30, %cst_24 {dimension_numbers = #tpu.dot_dimension_numbers<[1], [0], [0], [1], [0, 0, 1, 1], [], []>} : vector<512x32xbf16>, vector<32x32xbf16>, vector<512x32xf32> -> vector<512x32xf32>
    %c0_25 = arith.constant 0 : index
    %c0_26 = arith.constant 0 : index
    %32 = vector.load %arg13[%c0_25, %c0_26] : memref<1x32xf32, #tpu.memory_space<vmem>>, vector<1x32xf32>
    %33 = vector.broadcast %32 : vector<1x32xf32> to vector<512x32xf32>
    %34 = arith.addf %31, %33 : vector<512x32xf32>
    %35 = vector.shape_cast %34 : vector<512x32xf32> to vector<64x8x32xf32>
    %c0_27 = arith.constant 0 : index
    %c0_28 = arith.constant 0 : index
    %36 = vector.load %arg4[%c0_27, %c0_28] : memref<64x8xf32, #tpu.memory_space<vmem>>, vector<64x8xf32>
    %37 = vector.shape_cast %36 : vector<64x8xf32> to vector<64x8x1xf32>
    %38 = vector.broadcast %37 : vector<64x8x1xf32> to vector<64x8x32xf32>
    %39 = arith.mulf %35, %38 : vector<64x8x32xf32>
    %cst_29 = arith.constant dense<0.000000e+00> : vector<64x32xf32>
    %40 = vector.multi_reduction <add>, %39, %cst_29 [1] : vector<64x8x32xf32> to vector<64x32xf32>
    %cst_30 = arith.constant 0.0333333351 : f32
    %41 = vector.broadcast %cst_30 : f32 to vector<64x32xf32>
    %42 = arith.mulf %40, %41 : vector<64x32xf32>
    %43 = arith.addf %0, %42 : vector<64x32xf32>
    %c0_31 = arith.constant 0 : index
    %c0_32 = arith.constant 0 : index
    %44 = vector.load %arg14[%c0_31, %c0_32] : memref<1x32xf32, #tpu.memory_space<vmem>>, vector<1x32xf32>
    %c0_33 = arith.constant 0 : index
    %c0_34 = arith.constant 0 : index
    %45 = vector.load %arg15[%c0_33, %c0_34] : memref<1x32xf32, #tpu.memory_space<vmem>>, vector<1x32xf32>
    %cst_35 = arith.constant dense<0.000000e+00> : vector<64xf32>
    %46 = vector.multi_reduction <add>, %43, %cst_35 [1] : vector<64x32xf32> to vector<64xf32>
    %47 = vector.shape_cast %46 : vector<64xf32> to vector<64x1xf32>
    %cst_36 = arith.constant 3.200000e+01 : f32
    %48 = vector.broadcast %cst_36 : f32 to vector<64x1xf32>
    %49 = arith.divf %47, %48 : vector<64x1xf32>
    %50 = vector.broadcast %49 : vector<64x1xf32> to vector<64x32xf32>
    %51 = arith.subf %43, %50 : vector<64x32xf32>
    %52 = arith.mulf %51, %51 : vector<64x32xf32>
    %cst_37 = arith.constant dense<0.000000e+00> : vector<64xf32>
    %53 = vector.multi_reduction <add>, %52, %cst_37 [1] : vector<64x32xf32> to vector<64xf32>
    %54 = vector.shape_cast %53 : vector<64xf32> to vector<64x1xf32>
    %cst_38 = arith.constant 0.0322580636 : f32
    %55 = vector.broadcast %cst_38 : f32 to vector<64x1xf32>
    %56 = arith.mulf %54, %55 : vector<64x1xf32>
    %57 = math.sqrt %56 : vector<64x1xf32>
    %cst_39 = arith.constant 9.99999997E-7 : f32
    %58 = vector.broadcast %cst_39 : f32 to vector<64x1xf32>
    %59 = arith.addf %57, %58 : vector<64x1xf32>
    %60 = tpu.reciprocal %59 {approx = true} : vector<64x1xf32> -> vector<64x1xf32>
    %61 = vector.broadcast %49 : vector<64x1xf32> to vector<64x32xf32>
    %62 = arith.subf %43, %61 : vector<64x32xf32>
    %63 = vector.broadcast %44 : vector<1x32xf32> to vector<64x32xf32>
    %64 = arith.mulf %63, %62 : vector<64x32xf32>
    %65 = vector.broadcast %60 : vector<64x1xf32> to vector<64x32xf32>
    %66 = arith.mulf %64, %65 : vector<64x32xf32>
    %67 = vector.broadcast %45 : vector<1x32xf32> to vector<64x32xf32>
    %68 = arith.addf %66, %67 : vector<64x32xf32>
    %69 = arith.truncf %68 : vector<64x32xf32> to vector<64x32xbf16>
    %c0_40 = arith.constant 0 : index
    %c0_41 = arith.constant 0 : index
    %70 = vector.load %arg16[%c0_40, %c0_41] : memref<32x128xbf16, #tpu.memory_space<vmem>>, vector<32x128xbf16>
    %cst_42 = arith.constant dense<0.000000e+00> : vector<64x128xf32>
    %71 = tpu.matmul %69, %70, %cst_42 {dimension_numbers = #tpu.dot_dimension_numbers<[1], [0], [0], [1], [0, 0, 1, 1], [], []>} : vector<64x32xbf16>, vector<32x128xbf16>, vector<64x128xf32> -> vector<64x128xf32>
    %c0_43 = arith.constant 0 : index
    %c0_44 = arith.constant 0 : index
    %72 = vector.load %arg17[%c0_43, %c0_44] : memref<1x128xf32, #tpu.memory_space<vmem>>, vector<1x128xf32>
    %73 = vector.broadcast %72 : vector<1x128xf32> to vector<64x128xf32>
    %74 = arith.addf %71, %73 : vector<64x128xf32>
    %cst_45 = arith.constant 0.000000e+00 : f32
    %75 = vector.broadcast %cst_45 : f32 to vector<64x128xf32>
    %76 = arith.maximumf %74, %75 : vector<64x128xf32>
    %77 = arith.truncf %76 : vector<64x128xf32> to vector<64x128xbf16>
    %c0_46 = arith.constant 0 : index
    %c0_47 = arith.constant 0 : index
    %78 = vector.load %arg18[%c0_46, %c0_47] : memref<128x32xbf16, #tpu.memory_space<vmem>>, vector<128x32xbf16>
    %cst_48 = arith.constant dense<0.000000e+00> : vector<64x32xf32>
    %79 = tpu.matmul %77, %78, %cst_48 {dimension_numbers = #tpu.dot_dimension_numbers<[1], [0], [0], [1], [0, 0, 1, 1], [], []>} : vector<64x128xbf16>, vector<128x32xbf16>, vector<64x32xf32> -> vector<64x32xf32>
    %c0_49 = arith.constant 0 : index
    %c0_50 = arith.constant 0 : index
    %80 = vector.load %arg19[%c0_49, %c0_50] : memref<1x32xf32, #tpu.memory_space<vmem>>, vector<1x32xf32>
    %81 = vector.broadcast %80 : vector<1x32xf32> to vector<64x32xf32>
    %82 = arith.addf %79, %81 : vector<64x32xf32>
    %83 = arith.addf %68, %82 : vector<64x32xf32>
    %c0_51 = arith.constant 0 : index
    %c0_52 = arith.constant 0 : index
    %84 = vector.load %arg20[%c0_51, %c0_52] : memref<1x32xf32, #tpu.memory_space<vmem>>, vector<1x32xf32>
    %c0_53 = arith.constant 0 : index
    %c0_54 = arith.constant 0 : index
    %85 = vector.load %arg21[%c0_53, %c0_54] : memref<1x32xf32, #tpu.memory_space<vmem>>, vector<1x32xf32>
    %cst_55 = arith.constant dense<0.000000e+00> : vector<64xf32>
    %86 = vector.multi_reduction <add>, %83, %cst_55 [1] : vector<64x32xf32> to vector<64xf32>
    %87 = vector.shape_cast %86 : vector<64xf32> to vector<64x1xf32>
    %cst_56 = arith.constant 3.200000e+01 : f32
    %88 = vector.broadcast %cst_56 : f32 to vector<64x1xf32>
    %89 = arith.divf %87, %88 : vector<64x1xf32>
    %90 = vector.broadcast %89 : vector<64x1xf32> to vector<64x32xf32>
    %91 = arith.subf %83, %90 : vector<64x32xf32>
    %92 = arith.mulf %91, %91 : vector<64x32xf32>
    %cst_57 = arith.constant dense<0.000000e+00> : vector<64xf32>
    %93 = vector.multi_reduction <add>, %92, %cst_57 [1] : vector<64x32xf32> to vector<64xf32>
    %94 = vector.shape_cast %93 : vector<64xf32> to vector<64x1xf32>
    %cst_58 = arith.constant 0.0322580636 : f32
    %95 = vector.broadcast %cst_58 : f32 to vector<64x1xf32>
    %96 = arith.mulf %94, %95 : vector<64x1xf32>
    %97 = math.sqrt %96 : vector<64x1xf32>
    %cst_59 = arith.constant 9.99999997E-7 : f32
    %98 = vector.broadcast %cst_59 : f32 to vector<64x1xf32>
    %99 = arith.addf %97, %98 : vector<64x1xf32>
    %100 = tpu.reciprocal %99 {approx = true} : vector<64x1xf32> -> vector<64x1xf32>
    %101 = vector.broadcast %89 : vector<64x1xf32> to vector<64x32xf32>
    %102 = arith.subf %83, %101 : vector<64x32xf32>
    %103 = vector.broadcast %84 : vector<1x32xf32> to vector<64x32xf32>
    %104 = arith.mulf %103, %102 : vector<64x32xf32>
    %105 = vector.broadcast %100 : vector<64x1xf32> to vector<64x32xf32>
    %106 = arith.mulf %104, %105 : vector<64x32xf32>
    %107 = vector.broadcast %85 : vector<1x32xf32> to vector<64x32xf32>
    %108 = arith.addf %106, %107 : vector<64x32xf32>
    %c0_60 = arith.constant 0 : index
    %c0_61 = arith.constant 0 : index
    %109 = vector.load %arg5[%c0_60, %c0_61] : memref<64x1xf32, #tpu.memory_space<vmem>>, vector<64x1xf32>
    %110 = vector.broadcast %109 : vector<64x1xf32> to vector<64x32xf32>
    %111 = arith.mulf %110, %108 : vector<64x32xf32>
    %c0_62 = arith.constant 0 : index
    %c0_63 = arith.constant 0 : index
    %112 = vector.load %arg22[%c0_62, %c0_63] : memref<64x32xf32, #tpu.memory_space<vmem>>, vector<64x32xf32>
    tpu.vector_store %arg22[%c0_62, %c0_63], %111 {strides = array<i32>} : memref<64x32xf32, #tpu.memory_space<vmem>>, vector<64x32xf32>,
    return
  }
  func.func @transform_0(%arg0: i32) -> (i32, i32) {
    %c0_i32 = arith.constant 0 : i32
    %c0_i32_0 = arith.constant 0 : i32
    return %arg0, %c0_i32 : i32, i32
  }
  func.func @transform_1(%arg0: i32) -> (i32, i32) {
    %c0_i32 = arith.constant 0 : i32
    %c0_i32_0 = arith.constant 0 : i32
    return %arg0, %c0_i32 : i32, i32
  }
  func.func @transform_2(%arg0: i32) -> (i32, i32) {
    %c0_i32 = arith.constant 0 : i32
    %c0_i32_0 = arith.constant 0 : i32
    return %arg0, %c0_i32 : i32, i32
  }
  func.func @transform_3(%arg0: i32) -> (i32, i32) {
    %c0_i32 = arith.constant 0 : i32
    %c0_i32_0 = arith.constant 0 : i32
    return %arg0, %c0_i32 : i32, i32
  }
  func.func @transform_4(%arg0: i32) -> (i32, i32) {
    %c0_i32 = arith.constant 0 : i32
    %c0_i32_0 = arith.constant 0 : i32
    return %arg0, %c0_i32 : i32, i32
  }
  func.func @transform_5(%arg0: i32) -> (i32, i32) {
    %c0_i32 = arith.constant 0 : i32
    %c0_i32_0 = arith.constant 0 : i32
    %c0_i32_1 = arith.constant 0 : i32
    return %c0_i32, %c0_i32_0 : i32, i32
  }
  func.func @transform_6(%arg0: i32) -> (i32, i32) {
    %c0_i32 = arith.constant 0 : i32
    %c0_i32_0 = arith.constant 0 : i32
    %c0_i32_1 = arith.constant 0 : i32
    return %c0_i32, %c0_i32_0 : i32, i32
  }
  func.func @transform_7(%arg0: i32) -> (i32, i32) {
    %c0_i32 = arith.constant 0 : i32
    %c0_i32_0 = arith.constant 0 : i32
    %c0_i32_1 = arith.constant 0 : i32
    return %c0_i32, %c0_i32_0 : i32, i32
  }
  func.func @transform_8(%arg0: i32) -> (i32, i32) {
    %c0_i32 = arith.constant 0 : i32
    %c0_i32_0 = arith.constant 0 : i32
    %c0_i32_1 = arith.constant 0 : i32
    return %c0_i32, %c0_i32_0 : i32, i32
  }
  func.func @transform_9(%arg0: i32) -> (i32, i32) {
    %c0_i32 = arith.constant 0 : i32
    %c0_i32_0 = arith.constant 0 : i32
    %c0_i32_1 = arith.constant 0 : i32
    return %c0_i32, %c0_i32_0 : i32, i32
  }
  func.func @transform_10(%arg0: i32) -> (i32, i32) {
    %c0_i32 = arith.constant 0 : i32
    %c0_i32_0 = arith.constant 0 : i32
    %c0_i32_1 = arith.constant 0 : i32
    return %c0_i32, %c0_i32_0 : i32, i32
  }
  func.func @transform_11(%arg0: i32) -> (i32, i32) {
    %c0_i32 = arith.constant 0 : i32
    %c0_i32_0 = arith.constant 0 : i32
    %c0_i32_1 = arith.constant 0 : i32
    return %c0_i32, %c0_i32_0 : i32, i32
  }
  func.func @transform_12(%arg0: i32) -> (i32, i32) {
    %c0_i32 = arith.constant 0 : i32
    %c0_i32_0 = arith.constant 0 : i32
    %c0_i32_1 = arith.constant 0 : i32
    return %c0_i32, %c0_i32_0 : i32, i32
  }
  func.func @transform_13(%arg0: i32) -> (i32, i32) {
    %c0_i32 = arith.constant 0 : i32
    %c0_i32_0 = arith.constant 0 : i32
    %c0_i32_1 = arith.constant 0 : i32
    return %c0_i32, %c0_i32_0 : i32, i32
  }
  func.func @transform_14(%arg0: i32) -> (i32, i32) {
    %c0_i32 = arith.constant 0 : i32
    %c0_i32_0 = arith.constant 0 : i32
    %c0_i32_1 = arith.constant 0 : i32
    return %c0_i32, %c0_i32_0 : i32, i32
  }
  func.func @transform_15(%arg0: i32) -> (i32, i32) {
    %c0_i32 = arith.constant 0 : i32
    %c0_i32_0 = arith.constant 0 : i32
    %c0_i32_1 = arith.constant 0 : i32
    return %c0_i32, %c0_i32_0 : i32, i32
  }
  func.func @transform_16(%arg0: i32) -> (i32, i32) {
    %c0_i32 = arith.constant 0 : i32
    %c0_i32_0 = arith.constant 0 : i32
    %c0_i32_1 = arith.constant 0 : i32
    return %c0_i32, %c0_i32_0 : i32, i32
  }
  func.func @transform_17(%arg0: i32) -> (i32, i32) {
    %c0_i32 = arith.constant 0 : i32
    %c0_i32_0 = arith.constant 0 : i32
    %c0_i32_1 = arith.constant 0 : i32
    return %c0_i32, %c0_i32_0 : i32, i32
  }
  func.func @transform_18(%arg0: i32) -> (i32, i32) {
    %c0_i32 = arith.constant 0 : i32
    %c0_i32_0 = arith.constant 0 : i32
    %c0_i32_1 = arith.constant 0 : i32
    return %c0_i32, %c0_i32_0 : i32, i32
  }
  func.func @transform_19(%arg0: i32) -> (i32, i32) {
    %c0_i32 = arith.constant 0 : i32
    %c0_i32_0 = arith.constant 0 : i32
    %c0_i32_1 = arith.constant 0 : i32
    return %c0_i32, %c0_i32_0 : i32, i32
  }
  func.func @transform_20(%arg0: i32) -> (i32, i32) {
    %c0_i32 = arith.constant 0 : i32
    %c0_i32_0 = arith.constant 0 : i32
    %c0_i32_1 = arith.constant 0 : i32
    return %c0_i32, %c0_i32_0 : i32, i32
  }
  func.func @transform_21(%arg0: i32) -> (i32, i32) {
    %c0_i32 = arith.constant 0 : i32
    %c0_i32_0 = arith.constant 0 : i32
    return %arg0, %c0_i32 : i32, i32
  }
}

module attributes {stable_mosaic.version = 11 : i64} {
  func.func @_mpnn_fused_kernel(%arg0: i32, %arg1: memref<64x32xf32, #tpu.memory_space<vmem>>, %arg2: memref<512x64xbf16, #tpu.memory_space<vmem>>, %arg3: memref<512x32xbf16, #tpu.memory_space<vmem>>, %arg4: memref<64x8xf32, #tpu.memory_space<vmem>>, %arg5: memref<512x32xbf16, #tpu.memory_space<vmem>>, %arg6: memref<64x1xf32, #tpu.memory_space<vmem>>, %arg7: memref<32x32xbf16, #tpu.memory_space<vmem>>, %arg8: memref<64x32xbf16, #tpu.memory_space<vmem>>, %arg9: memref<32x32xbf16, #tpu.memory_space<vmem>>, %arg10: memref<1x32xf32, #tpu.memory_space<vmem>>, %arg11: memref<32x32xbf16, #tpu.memory_space<vmem>>, %arg12: memref<1x32xf32, #tpu.memory_space<vmem>>, %arg13: memref<32x32xbf16, #tpu.memory_space<vmem>>, %arg14: memref<1x32xf32, #tpu.memory_space<vmem>>, %arg15: memref<1x32xf32, #tpu.memory_space<vmem>>, %arg16: memref<1x32xf32, #tpu.memory_space<vmem>>, %arg17: memref<32x128xbf16, #tpu.memory_space<vmem>>, %arg18: memref<1x128xf32, #tpu.memory_space<vmem>>, %arg19: memref<128x32xbf16, #tpu.memory_space<vmem>>, %arg20: memref<1x32xf32, #tpu.memory_space<vmem>>, %arg21: memref<1x32xf32, #tpu.memory_space<vmem>>, %arg22: memref<1x32xf32, #tpu.memory_space<vmem>>, %arg23: memref<64x32xf32, #tpu.memory_space<vmem>>) attributes {dimension_semantics = [#tpu.dimension_semantics<parallel>], iteration_bounds = array<i64: 2>, scalar_prefetch = 0 : i64, scratch_operands = 0 : i64, tpu.core_type = #tpu.core_type<tc>, window_params = [{transform_indices = @transform_0, window_bounds = array<i64: 64, 32>}, {transform_indices = @transform_1, window_bounds = array<i64: 512, 64>}, {transform_indices = @transform_2, window_bounds = array<i64: 512, 32>}, {transform_indices = @transform_3, window_bounds = array<i64: 64, 8>}, {transform_indices = @transform_4, window_bounds = array<i64: 512, 32>}, {transform_indices = @transform_5, window_bounds = array<i64: 64, 1>}, {pipeline_mode = #tpu.pipeline_mode<synchronous>, transform_indices = @transform_6, window_bounds = array<i64: 32, 32>}, {pipeline_mode = #tpu.pipeline_mode<synchronous>, transform_indices = @transform_7, window_bounds = array<i64: 64, 32>}, {pipeline_mode = #tpu.pipeline_mode<synchronous>, transform_indices = @transform_8, window_bounds = array<i64: 32, 32>}, {pipeline_mode = #tpu.pipeline_mode<synchronous>, transform_indices = @transform_9, window_bounds = array<i64: 1, 32>}, {pipeline_mode = #tpu.pipeline_mode<synchronous>, transform_indices = @transform_10, window_bounds = array<i64: 32, 32>}, {pipeline_mode = #tpu.pipeline_mode<synchronous>, transform_indices = @transform_11, window_bounds = array<i64: 1, 32>}, {pipeline_mode = #tpu.pipeline_mode<synchronous>, transform_indices = @transform_12, window_bounds = array<i64: 32, 32>}, {pipeline_mode = #tpu.pipeline_mode<synchronous>, transform_indices = @transform_13, window_bounds = array<i64: 1, 32>}, {pipeline_mode = #tpu.pipeline_mode<synchronous>, transform_indices = @transform_14, window_bounds = array<i64: 1, 32>}, {pipeline_mode = #tpu.pipeline_mode<synchronous>, transform_indices = @transform_15, window_bounds = array<i64: 1, 32>}, {pipeline_mode = #tpu.pipeline_mode<synchronous>, transform_indices = @transform_16, window_bounds = array<i64: 32, 128>}, {pipeline_mode = #tpu.pipeline_mode<synchronous>, transform_indices = @transform_17, window_bounds = array<i64: 1, 128>}, {pipeline_mode = #tpu.pipeline_mode<synchronous>, transform_indices = @transform_18, window_bounds = array<i64: 128, 32>}, {pipeline_mode = #tpu.pipeline_mode<synchronous>, transform_indices = @transform_19, window_bounds = array<i64: 1, 32>}, {pipeline_mode = #tpu.pipeline_mode<synchronous>, transform_indices = @transform_20, window_bounds = array<i64: 1, 32>}, {pipeline_mode = #tpu.pipeline_mode<synchronous>, transform_indices = @transform_21, window_bounds = array<i64: 1, 32>}, {transform_indices = @transform_22, window_bounds = array<i64: 64, 32>}]} {
    %c0 = arith.constant 0 : index
    %c0_0 = arith.constant 0 : index
    %0 = vector.load %arg1[%c0, %c0_0] : memref<64x32xf32, #tpu.memory_space<vmem>>, vector<64x32xf32>
    %1 = arith.truncf %0 : vector<64x32xf32> to vector<64x32xbf16>
    %c0_1 = arith.constant 0 : index
    %c0_2 = arith.constant 0 : index
    %2 = vector.load %arg7[%c0_1, %c0_2] : memref<32x32xbf16, #tpu.memory_space<vmem>>, vector<32x32xbf16>
    %cst = arith.constant dense<0.000000e+00> : vector<64x32xf32>
    %3 = tpu.matmul %1, %2, %cst {dimension_numbers = #tpu.dot_dimension_numbers<[1], [0], [0], [1], [0, 0, 1, 1], [], []>} : vector<64x32xbf16>, vector<32x32xbf16>, vector<64x32xf32> -> vector<64x32xf32>
    %c0_3 = arith.constant 0 : index
    %c0_4 = arith.constant 0 : index
    %4 = vector.load %arg10[%c0_3, %c0_4] : memref<1x32xf32, #tpu.memory_space<vmem>>, vector<1x32xf32>
    %5 = vector.broadcast %4 : vector<1x32xf32> to vector<64x32xf32>
    %6 = arith.addf %3, %5 : vector<64x32xf32>
    %c0_5 = arith.constant 0 : index
    %c0_6 = arith.constant 0 : index
    %7 = vector.load %arg3[%c0_5, %c0_6] : memref<512x32xbf16, #tpu.memory_space<vmem>>, vector<512x32xbf16>
    %c0_7 = arith.constant 0 : index
    %c0_8 = arith.constant 0 : index
    %8 = vector.load %arg4[%c0_7, %c0_8] : memref<64x8xf32, #tpu.memory_space<vmem>>, vector<64x8xf32>
    %9 = arith.truncf %8 : vector<64x8xf32> to vector<64x8xbf16>
    %10 = vector.shape_cast %9 : vector<64x8xbf16> to vector<64x8x1xbf16>
    %11 = vector.shape_cast %7 : vector<512x32xbf16> to vector<64x8x32xbf16>
    %12 = vector.broadcast %10 : vector<64x8x1xbf16> to vector<64x8x32xbf16>
    %13 = arith.mulf %12, %11 : vector<64x8x32xbf16>
    %c0_9 = arith.constant 0 : index
    %c0_10 = arith.constant 0 : index
    %14 = vector.load %arg5[%c0_9, %c0_10] : memref<512x32xbf16, #tpu.memory_space<vmem>>, vector<512x32xbf16>
    %15 = vector.shape_cast %14 : vector<512x32xbf16> to vector<64x8x32xbf16>
    %16 = arith.addf %13, %15 : vector<64x8x32xbf16>
    %17 = vector.shape_cast %16 : vector<64x8x32xbf16> to vector<512x32xbf16>
    %c0_11 = arith.constant 0 : index
    %c0_12 = arith.constant 0 : index
    %18 = vector.load %arg2[%c0_11, %c0_12] : memref<512x64xbf16, #tpu.memory_space<vmem>>, vector<512x64xbf16>
    %c0_13 = arith.constant 0 : index
    %c0_14 = arith.constant 0 : index
    %19 = vector.load %arg8[%c0_13, %c0_14] : memref<64x32xbf16, #tpu.memory_space<vmem>>, vector<64x32xbf16>
    %cst_15 = arith.constant dense<0.000000e+00> : vector<512x32xf32>
    %20 = tpu.matmul %18, %19, %cst_15 {dimension_numbers = #tpu.dot_dimension_numbers<[1], [0], [0], [1], [0, 0, 1, 1], [], []>} : vector<512x64xbf16>, vector<64x32xbf16>, vector<512x32xf32> -> vector<512x32xf32>
    %c0_16 = arith.constant 0 : index
    %c0_17 = arith.constant 0 : index
    %21 = vector.load %arg9[%c0_16, %c0_17] : memref<32x32xbf16, #tpu.memory_space<vmem>>, vector<32x32xbf16>
    %cst_18 = arith.constant dense<0.000000e+00> : vector<512x32xf32>
    %22 = tpu.matmul %17, %21, %cst_18 {dimension_numbers = #tpu.dot_dimension_numbers<[1], [0], [0], [1], [0, 0, 1, 1], [], []>} : vector<512x32xbf16>, vector<32x32xbf16>, vector<512x32xf32> -> vector<512x32xf32>
    %23 = arith.addf %20, %22 : vector<512x32xf32>
    %24 = vector.shape_cast %23 : vector<512x32xf32> to vector<64x8x32xf32>
    %25 = vector.shape_cast %6 : vector<64x32xf32> to vector<64x1x32xf32>
    %26 = vector.broadcast %25 : vector<64x1x32xf32> to vector<64x8x32xf32>
    %27 = arith.addf %24, %26 : vector<64x8x32xf32>
    %cst_19 = arith.constant 0.000000e+00 : f32
    %28 = vector.broadcast %cst_19 : f32 to vector<64x8x32xf32>
    %29 = arith.maximumf %27, %28 : vector<64x8x32xf32>
    %30 = vector.shape_cast %29 : vector<64x8x32xf32> to vector<512x32xf32>
    %31 = arith.truncf %30 : vector<512x32xf32> to vector<512x32xbf16>
    %c0_20 = arith.constant 0 : index
    %c0_21 = arith.constant 0 : index
    %32 = vector.load %arg11[%c0_20, %c0_21] : memref<32x32xbf16, #tpu.memory_space<vmem>>, vector<32x32xbf16>
    %cst_22 = arith.constant dense<0.000000e+00> : vector<512x32xf32>
    %33 = tpu.matmul %31, %32, %cst_22 {dimension_numbers = #tpu.dot_dimension_numbers<[1], [0], [0], [1], [0, 0, 1, 1], [], []>} : vector<512x32xbf16>, vector<32x32xbf16>, vector<512x32xf32> -> vector<512x32xf32>
    %c0_23 = arith.constant 0 : index
    %c0_24 = arith.constant 0 : index
    %34 = vector.load %arg12[%c0_23, %c0_24] : memref<1x32xf32, #tpu.memory_space<vmem>>, vector<1x32xf32>
    %35 = vector.broadcast %34 : vector<1x32xf32> to vector<512x32xf32>
    %36 = arith.addf %33, %35 : vector<512x32xf32>
    %cst_25 = arith.constant 0.000000e+00 : f32
    %37 = vector.broadcast %cst_25 : f32 to vector<512x32xf32>
    %38 = arith.maximumf %36, %37 : vector<512x32xf32>
    %39 = arith.truncf %38 : vector<512x32xf32> to vector<512x32xbf16>
    %c0_26 = arith.constant 0 : index
    %c0_27 = arith.constant 0 : index
    %40 = vector.load %arg13[%c0_26, %c0_27] : memref<32x32xbf16, #tpu.memory_space<vmem>>, vector<32x32xbf16>
    %cst_28 = arith.constant dense<0.000000e+00> : vector<512x32xf32>
    %41 = tpu.matmul %39, %40, %cst_28 {dimension_numbers = #tpu.dot_dimension_numbers<[1], [0], [0], [1], [0, 0, 1, 1], [], []>} : vector<512x32xbf16>, vector<32x32xbf16>, vector<512x32xf32> -> vector<512x32xf32>
    %c0_29 = arith.constant 0 : index
    %c0_30 = arith.constant 0 : index
    %42 = vector.load %arg14[%c0_29, %c0_30] : memref<1x32xf32, #tpu.memory_space<vmem>>, vector<1x32xf32>
    %43 = vector.broadcast %42 : vector<1x32xf32> to vector<512x32xf32>
    %44 = arith.addf %41, %43 : vector<512x32xf32>
    %45 = vector.shape_cast %44 : vector<512x32xf32> to vector<64x8x32xf32>
    %cst_31 = arith.constant dense<0.000000e+00> : vector<64x32xf32>
    %46 = vector.multi_reduction <add>, %45, %cst_31 [1] : vector<64x8x32xf32> to vector<64x32xf32>
    %cst_32 = arith.constant 0.0333333351 : f32
    %47 = vector.broadcast %cst_32 : f32 to vector<64x32xf32>
    %48 = arith.mulf %46, %47 : vector<64x32xf32>
    %49 = arith.addf %0, %48 : vector<64x32xf32>
    %c0_33 = arith.constant 0 : index
    %c0_34 = arith.constant 0 : index
    %50 = vector.load %arg15[%c0_33, %c0_34] : memref<1x32xf32, #tpu.memory_space<vmem>>, vector<1x32xf32>
    %c0_35 = arith.constant 0 : index
    %c0_36 = arith.constant 0 : index
    %51 = vector.load %arg16[%c0_35, %c0_36] : memref<1x32xf32, #tpu.memory_space<vmem>>, vector<1x32xf32>
    %cst_37 = arith.constant dense<0.000000e+00> : vector<64xf32>
    %52 = vector.multi_reduction <add>, %49, %cst_37 [1] : vector<64x32xf32> to vector<64xf32>
    %53 = vector.shape_cast %52 : vector<64xf32> to vector<64x1xf32>
    %cst_38 = arith.constant 3.200000e+01 : f32
    %54 = vector.broadcast %cst_38 : f32 to vector<64x1xf32>
    %55 = arith.divf %53, %54 : vector<64x1xf32>
    %56 = vector.broadcast %55 : vector<64x1xf32> to vector<64x32xf32>
    %57 = arith.subf %49, %56 : vector<64x32xf32>
    %58 = arith.mulf %57, %57 : vector<64x32xf32>
    %cst_39 = arith.constant dense<0.000000e+00> : vector<64xf32>
    %59 = vector.multi_reduction <add>, %58, %cst_39 [1] : vector<64x32xf32> to vector<64xf32>
    %60 = vector.shape_cast %59 : vector<64xf32> to vector<64x1xf32>
    %cst_40 = arith.constant 0.0322580636 : f32
    %61 = vector.broadcast %cst_40 : f32 to vector<64x1xf32>
    %62 = arith.mulf %60, %61 : vector<64x1xf32>
    %63 = math.sqrt %62 : vector<64x1xf32>
    %cst_41 = arith.constant 9.99999997E-7 : f32
    %64 = vector.broadcast %cst_41 : f32 to vector<64x1xf32>
    %65 = arith.addf %63, %64 : vector<64x1xf32>
    %66 = tpu.reciprocal %65 {approx = true} : vector<64x1xf32> -> vector<64x1xf32>
    %67 = vector.broadcast %55 : vector<64x1xf32> to vector<64x32xf32>
    %68 = arith.subf %49, %67 : vector<64x32xf32>
    %69 = vector.broadcast %50 : vector<1x32xf32> to vector<64x32xf32>
    %70 = arith.mulf %69, %68 : vector<64x32xf32>
    %71 = vector.broadcast %66 : vector<64x1xf32> to vector<64x32xf32>
    %72 = arith.mulf %70, %71 : vector<64x32xf32>
    %73 = vector.broadcast %51 : vector<1x32xf32> to vector<64x32xf32>
    %74 = arith.addf %72, %73 : vector<64x32xf32>
    %75 = arith.truncf %74 : vector<64x32xf32> to vector<64x32xbf16>
    %c0_42 = arith.constant 0 : index
    %c0_43 = arith.constant 0 : index
    %76 = vector.load %arg17[%c0_42, %c0_43] : memref<32x128xbf16, #tpu.memory_space<vmem>>, vector<32x128xbf16>
    %cst_44 = arith.constant dense<0.000000e+00> : vector<64x128xf32>
    %77 = tpu.matmul %75, %76, %cst_44 {dimension_numbers = #tpu.dot_dimension_numbers<[1], [0], [0], [1], [0, 0, 1, 1], [], []>} : vector<64x32xbf16>, vector<32x128xbf16>, vector<64x128xf32> -> vector<64x128xf32>
    %c0_45 = arith.constant 0 : index
    %c0_46 = arith.constant 0 : index
    %78 = vector.load %arg18[%c0_45, %c0_46] : memref<1x128xf32, #tpu.memory_space<vmem>>, vector<1x128xf32>
    %79 = vector.broadcast %78 : vector<1x128xf32> to vector<64x128xf32>
    %80 = arith.addf %77, %79 : vector<64x128xf32>
    %cst_47 = arith.constant 0.000000e+00 : f32
    %81 = vector.broadcast %cst_47 : f32 to vector<64x128xf32>
    %82 = arith.maximumf %80, %81 : vector<64x128xf32>
    %83 = arith.truncf %82 : vector<64x128xf32> to vector<64x128xbf16>
    %c0_48 = arith.constant 0 : index
    %c0_49 = arith.constant 0 : index
    %84 = vector.load %arg19[%c0_48, %c0_49] : memref<128x32xbf16, #tpu.memory_space<vmem>>, vector<128x32xbf16>
    %cst_50 = arith.constant dense<0.000000e+00> : vector<64x32xf32>
    %85 = tpu.matmul %83, %84, %cst_50 {dimension_numbers = #tpu.dot_dimension_numbers<[1], [0], [0], [1], [0, 0, 1, 1], [], []>} : vector<64x128xbf16>, vector<128x32xbf16>, vector<64x32xf32> -> vector<64x32xf32>
    %c0_51 = arith.constant 0 : index
    %c0_52 = arith.constant 0 : index
    %86 = vector.load %arg20[%c0_51, %c0_52] : memref<1x32xf32, #tpu.memory_space<vmem>>, vector<1x32xf32>
    %87 = vector.broadcast %86 : vector<1x32xf32> to vector<64x32xf32>
    %88 = arith.addf %85, %87 : vector<64x32xf32>
    %89 = arith.addf %74, %88 : vector<64x32xf32>
    %c0_53 = arith.constant 0 : index
    %c0_54 = arith.constant 0 : index
    %90 = vector.load %arg21[%c0_53, %c0_54] : memref<1x32xf32, #tpu.memory_space<vmem>>, vector<1x32xf32>
    %c0_55 = arith.constant 0 : index
    %c0_56 = arith.constant 0 : index
    %91 = vector.load %arg22[%c0_55, %c0_56] : memref<1x32xf32, #tpu.memory_space<vmem>>, vector<1x32xf32>
    %cst_57 = arith.constant dense<0.000000e+00> : vector<64xf32>
    %92 = vector.multi_reduction <add>, %89, %cst_57 [1] : vector<64x32xf32> to vector<64xf32>
    %93 = vector.shape_cast %92 : vector<64xf32> to vector<64x1xf32>
    %cst_58 = arith.constant 3.200000e+01 : f32
    %94 = vector.broadcast %cst_58 : f32 to vector<64x1xf32>
    %95 = arith.divf %93, %94 : vector<64x1xf32>
    %96 = vector.broadcast %95 : vector<64x1xf32> to vector<64x32xf32>
    %97 = arith.subf %89, %96 : vector<64x32xf32>
    %98 = arith.mulf %97, %97 : vector<64x32xf32>
    %cst_59 = arith.constant dense<0.000000e+00> : vector<64xf32>
    %99 = vector.multi_reduction <add>, %98, %cst_59 [1] : vector<64x32xf32> to vector<64xf32>
    %100 = vector.shape_cast %99 : vector<64xf32> to vector<64x1xf32>
    %cst_60 = arith.constant 0.0322580636 : f32
    %101 = vector.broadcast %cst_60 : f32 to vector<64x1xf32>
    %102 = arith.mulf %100, %101 : vector<64x1xf32>
    %103 = math.sqrt %102 : vector<64x1xf32>
    %cst_61 = arith.constant 9.99999997E-7 : f32
    %104 = vector.broadcast %cst_61 : f32 to vector<64x1xf32>
    %105 = arith.addf %103, %104 : vector<64x1xf32>
    %106 = tpu.reciprocal %105 {approx = true} : vector<64x1xf32> -> vector<64x1xf32>
    %107 = vector.broadcast %95 : vector<64x1xf32> to vector<64x32xf32>
    %108 = arith.subf %89, %107 : vector<64x32xf32>
    %109 = vector.broadcast %90 : vector<1x32xf32> to vector<64x32xf32>
    %110 = arith.mulf %109, %108 : vector<64x32xf32>
    %111 = vector.broadcast %106 : vector<64x1xf32> to vector<64x32xf32>
    %112 = arith.mulf %110, %111 : vector<64x32xf32>
    %113 = vector.broadcast %91 : vector<1x32xf32> to vector<64x32xf32>
    %114 = arith.addf %112, %113 : vector<64x32xf32>
    %c0_62 = arith.constant 0 : index
    %c0_63 = arith.constant 0 : index
    %115 = vector.load %arg6[%c0_62, %c0_63] : memref<64x1xf32, #tpu.memory_space<vmem>>, vector<64x1xf32>
    %116 = vector.broadcast %115 : vector<64x1xf32> to vector<64x32xf32>
    %117 = arith.mulf %116, %114 : vector<64x32xf32>
    %c0_64 = arith.constant 0 : index
    %c0_65 = arith.constant 0 : index
    %118 = vector.load %arg23[%c0_64, %c0_65] : memref<64x32xf32, #tpu.memory_space<vmem>>, vector<64x32xf32>
    tpu.vector_store %arg23[%c0_64, %c0_65], %117 {strides = array<i32>} : memref<64x32xf32, #tpu.memory_space<vmem>>, vector<64x32xf32>,
    return
  }
  func.func @transform_0(%arg0: i32) -> (i32, i32) {
    %c0_i32 = arith.constant 0 : i32
    %c0_i32_0 = arith.constant 0 : i32
    return %arg0, %c0_i32 : i32, i32
  }
  func.func @transform_1(%arg0: i32) -> (i32, i32) {
    %c0_i32 = arith.constant 0 : i32
    %c0_i32_0 = arith.constant 0 : i32
    return %arg0, %c0_i32 : i32, i32
  }
  func.func @transform_2(%arg0: i32) -> (i32, i32) {
    %c0_i32 = arith.constant 0 : i32
    %c0_i32_0 = arith.constant 0 : i32
    return %arg0, %c0_i32 : i32, i32
  }
  func.func @transform_3(%arg0: i32) -> (i32, i32) {
    %c0_i32 = arith.constant 0 : i32
    %c0_i32_0 = arith.constant 0 : i32
    return %arg0, %c0_i32 : i32, i32
  }
  func.func @transform_4(%arg0: i32) -> (i32, i32) {
    %c0_i32 = arith.constant 0 : i32
    %c0_i32_0 = arith.constant 0 : i32
    return %arg0, %c0_i32 : i32, i32
  }
  func.func @transform_5(%arg0: i32) -> (i32, i32) {
    %c0_i32 = arith.constant 0 : i32
    %c0_i32_0 = arith.constant 0 : i32
    return %arg0, %c0_i32 : i32, i32
  }
  func.func @transform_6(%arg0: i32) -> (i32, i32) {
    %c0_i32 = arith.constant 0 : i32
    %c0_i32_0 = arith.constant 0 : i32
    %c0_i32_1 = arith.constant 0 : i32
    return %c0_i32, %c0_i32_0 : i32, i32
  }
  func.func @transform_7(%arg0: i32) -> (i32, i32) {
    %c0_i32 = arith.constant 0 : i32
    %c0_i32_0 = arith.constant 0 : i32
    %c0_i32_1 = arith.constant 0 : i32
    return %c0_i32, %c0_i32_0 : i32, i32
  }
  func.func @transform_8(%arg0: i32) -> (i32, i32) {
    %c0_i32 = arith.constant 0 : i32
    %c0_i32_0 = arith.constant 0 : i32
    %c0_i32_1 = arith.constant 0 : i32
    return %c0_i32, %c0_i32_0 : i32, i32
  }
  func.func @transform_9(%arg0: i32) -> (i32, i32) {
    %c0_i32 = arith.constant 0 : i32
    %c0_i32_0 = arith.constant 0 : i32
    %c0_i32_1 = arith.constant 0 : i32
    return %c0_i32, %c0_i32_0 : i32, i32
  }
  func.func @transform_10(%arg0: i32) -> (i32, i32) {
    %c0_i32 = arith.constant 0 : i32
    %c0_i32_0 = arith.constant 0 : i32
    %c0_i32_1 = arith.constant 0 : i32
    return %c0_i32, %c0_i32_0 : i32, i32
  }
  func.func @transform_11(%arg0: i32) -> (i32, i32) {
    %c0_i32 = arith.constant 0 : i32
    %c0_i32_0 = arith.constant 0 : i32
    %c0_i32_1 = arith.constant 0 : i32
    return %c0_i32, %c0_i32_0 : i32, i32
  }
  func.func @transform_12(%arg0: i32) -> (i32, i32) {
    %c0_i32 = arith.constant 0 : i32
    %c0_i32_0 = arith.constant 0 : i32
    %c0_i32_1 = arith.constant 0 : i32
    return %c0_i32, %c0_i32_0 : i32, i32
  }
  func.func @transform_13(%arg0: i32) -> (i32, i32) {
    %c0_i32 = arith.constant 0 : i32
    %c0_i32_0 = arith.constant 0 : i32
    %c0_i32_1 = arith.constant 0 : i32
    return %c0_i32, %c0_i32_0 : i32, i32
  }
  func.func @transform_14(%arg0: i32) -> (i32, i32) {
    %c0_i32 = arith.constant 0 : i32
    %c0_i32_0 = arith.constant 0 : i32
    %c0_i32_1 = arith.constant 0 : i32
    return %c0_i32, %c0_i32_0 : i32, i32
  }
  func.func @transform_15(%arg0: i32) -> (i32, i32) {
    %c0_i32 = arith.constant 0 : i32
    %c0_i32_0 = arith.constant 0 : i32
    %c0_i32_1 = arith.constant 0 : i32
    return %c0_i32, %c0_i32_0 : i32, i32
  }
  func.func @transform_16(%arg0: i32) -> (i32, i32) {
    %c0_i32 = arith.constant 0 : i32
    %c0_i32_0 = arith.constant 0 : i32
    %c0_i32_1 = arith.constant 0 : i32
    return %c0_i32, %c0_i32_0 : i32, i32
  }
  func.func @transform_17(%arg0: i32) -> (i32, i32) {
    %c0_i32 = arith.constant 0 : i32
    %c0_i32_0 = arith.constant 0 : i32
    %c0_i32_1 = arith.constant 0 : i32
    return %c0_i32, %c0_i32_0 : i32, i32
  }
  func.func @transform_18(%arg0: i32) -> (i32, i32) {
    %c0_i32 = arith.constant 0 : i32
    %c0_i32_0 = arith.constant 0 : i32
    %c0_i32_1 = arith.constant 0 : i32
    return %c0_i32, %c0_i32_0 : i32, i32
  }
  func.func @transform_19(%arg0: i32) -> (i32, i32) {
    %c0_i32 = arith.constant 0 : i32
    %c0_i32_0 = arith.constant 0 : i32
    %c0_i32_1 = arith.constant 0 : i32
    return %c0_i32, %c0_i32_0 : i32, i32
  }
  func.func @transform_20(%arg0: i32) -> (i32, i32) {
    %c0_i32 = arith.constant 0 : i32
    %c0_i32_0 = arith.constant 0 : i32
    %c0_i32_1 = arith.constant 0 : i32
    return %c0_i32, %c0_i32_0 : i32, i32
  }
  func.func @transform_21(%arg0: i32) -> (i32, i32) {
    %c0_i32 = arith.constant 0 : i32
    %c0_i32_0 = arith.constant 0 : i32
    %c0_i32_1 = arith.constant 0 : i32
    return %c0_i32, %c0_i32_0 : i32, i32
  }
  func.func @transform_22(%arg0: i32) -> (i32, i32) {
    %c0_i32 = arith.constant 0 : i32
    %c0_i32_0 = arith.constant 0 : i32
    return %arg0, %c0_i32 : i32, i32
  }
}

module attributes {stable_mosaic.version = 11 : i64} {
  func.func @_logsoftmax_head_kernel(%arg0: i32, %arg1: memref<64x32xf32, #tpu.memory_space<vmem>>, %arg2: memref<32x128xf32, #tpu.memory_space<vmem>>, %arg3: memref<1x128xf32, #tpu.memory_space<vmem>>, %arg4: memref<64x128xf32, #tpu.memory_space<vmem>>) attributes {dimension_semantics = [#tpu.dimension_semantics<parallel>], iteration_bounds = array<i64: 2>, scalar_prefetch = 0 : i64, scratch_operands = 0 : i64, tpu.core_type = #tpu.core_type<tc>, window_params = [{transform_indices = @transform_0, window_bounds = array<i64: 64, 32>}, {pipeline_mode = #tpu.pipeline_mode<synchronous>, transform_indices = @transform_1, window_bounds = array<i64: 32, 128>}, {pipeline_mode = #tpu.pipeline_mode<synchronous>, transform_indices = @transform_2, window_bounds = array<i64: 1, 128>}, {transform_indices = @transform_3, window_bounds = array<i64: 64, 128>}]} {
    %c0 = arith.constant 0 : index
    %c0_0 = arith.constant 0 : index
    %0 = vector.load %arg1[%c0, %c0_0] : memref<64x32xf32, #tpu.memory_space<vmem>>, vector<64x32xf32>
    %c0_1 = arith.constant 0 : index
    %c0_2 = arith.constant 0 : index
    %1 = vector.load %arg2[%c0_1, %c0_2] : memref<32x128xf32, #tpu.memory_space<vmem>>, vector<32x128xf32>
    %cst = arith.constant dense<0.000000e+00> : vector<64x128xf32>
    %2 = tpu.matmul %0, %1, %cst {dimension_numbers = #tpu.dot_dimension_numbers<[1], [0], [0], [1], [0, 0, 1, 1], [], []>} : vector<64x32xf32>, vector<32x128xf32>, vector<64x128xf32> -> vector<64x128xf32>
    %c0_3 = arith.constant 0 : index
    %c0_4 = arith.constant 0 : index
    %3 = vector.load %arg3[%c0_3, %c0_4] : memref<1x128xf32, #tpu.memory_space<vmem>>, vector<1x128xf32>
    %4 = vector.broadcast %3 : vector<1x128xf32> to vector<64x128xf32>
    %5 = arith.addf %2, %4 : vector<64x128xf32>
    %cst_5 = arith.constant dense<0xFF800000> : vector<64xf32>
    %6 = vector.multi_reduction <maximumf>, %5, %cst_5 [1] : vector<64x128xf32> to vector<64xf32>
    %7 = vector.shape_cast %6 : vector<64xf32> to vector<64x1xf32>
    %8 = vector.broadcast %7 : vector<64x1xf32> to vector<64x128xf32>
    %9 = arith.subf %5, %8 : vector<64x128xf32>
    %10 = math.exp %9 : vector<64x128xf32>
    %cst_6 = arith.constant dense<0.000000e+00> : vector<64xf32>
    %11 = vector.multi_reduction <add>, %10, %cst_6 [1] : vector<64x128xf32> to vector<64xf32>
    %12 = vector.shape_cast %11 : vector<64xf32> to vector<64x1xf32>
    %13 = math.log %12 : vector<64x1xf32>
    %14 = vector.broadcast %13 : vector<64x1xf32> to vector<64x128xf32>
    %15 = arith.subf %9, %14 : vector<64x128xf32>
    %c0_7 = arith.constant 0 : index
    %c0_8 = arith.constant 0 : index
    %16 = vector.load %arg4[%c0_7, %c0_8] : memref<64x128xf32, #tpu.memory_space<vmem>>, vector<64x128xf32>
    tpu.vector_store %arg4[%c0_7, %c0_8], %15 {strides = array<i32>} : memref<64x128xf32, #tpu.memory_space<vmem>>, vector<64x128xf32>,
    return
  }
  func.func @transform_0(%arg0: i32) -> (i32, i32) {
    %c0_i32 = arith.constant 0 : i32
    %c0_i32_0 = arith.constant 0 : i32
    return %arg0, %c0_i32 : i32, i32
  }
  func.func @transform_1(%arg0: i32) -> (i32, i32) {
    %c0_i32 = arith.constant 0 : i32
    %c0_i32_0 = arith.constant 0 : i32
    %c0_i32_1 = arith.constant 0 : i32
    return %c0_i32, %c0_i32_0 : i32, i32
  }
  func.func @transform_2(%arg0: i32) -> (i32, i32) {
    %c0_i32 = arith.constant 0 : i32
    %c0_i32_0 = arith.constant 0 : i32
    %c0_i32_1 = arith.constant 0 : i32
    return %c0_i32, %c0_i32_0 : i32, i32
  }
  func.func @transform_3(%arg0: i32) -> (i32, i32) {
    %c0_i32 = arith.constant 0 : i32
    %c0_i32_0 = arith.constant 0 : i32
    return %arg0, %c0_i32 : i32, i32
  }
}

</mosaic_0001>

<bundles_post_ra>
// kernel: mul.27
= control target key start
LH: loop header
LB: loop body
LE: loop exit
PB: predicated region body
PF: predicated region fallthrough
CT: control target
= control target key end

     0   :  { %vm7_vm0 = vcmask 523264   ;;  %vm13_vm1 = vcmask 1048064   ;;  %s39_s0 = inlined_call_operand.vmem [shape: f32[2,64], index: 0, kind: input, shape index: {}]   ;;  %s40_s1 = inlined_call_operand.vmem [shape: f32[128], index: 1, kind: output, shape index: {}]  }
   0x1   :  { %v4_v0 = vld [vmem:[%s39_s0] sm:$0x3]  ;;  %s22_s0 = smov 64  }
   0x2   :  { %5 = vst [vmem:[#allocation1] sm:$0x3] %v4_v0 }
   0x9   :  { %v10_v1 = vld [vmem:[#allocation1 + $0x1] sm:$0x1]   ;;  %v6_v2 = vld [vmem:[#allocation1] sm:$0x1]  }
   0xa   :  { %11 = vrot.lane.b32.xlu0 %v10_v1, %s22_s0  ;;  %8 = vst.msk [vmem:[#allocation0] sm:$0x1] %vm7_vm0, %v6_v2  }
  0x7c   :  { %v12_v3 = vpop.permute.xlu0 %11  }
  0x7d   :  { %14 = vst.msk [vmem:[#allocation0] sm:$0x1] %vm13_vm1, %v12_v3  }
  0x84   :  { %v18_v4 = vld [vmem:[#allocation0] sm:$0x1] }
  0x85   :  { %20 = vst [vmem:[%s40_s1] sm:$0x1] %v18_v4 }

// kernel: structgnn_forward.9
= control target key start
LH: loop header
LB: loop body
LE: loop exit
PB: predicated region body
PF: predicated region fallthrough
CT: control target
= control target key end

     0   :  { %s487_s12 = smov 0   ;;  %s535_s0 = inlined_call_operand.vmem [shape: f32[128,32], index: 0, kind: input, shape index: {}]   ;;  %s536_s1 = inlined_call_operand.vmem [shape: f32[32,32], index: 1, kind: input, shape index: {}]   ;;  %s537_s2 = inlined_call_operand.vmem [shape: f32[1,32], index: 2, kind: input, shape index: {}]   ;;  %s538_s3 = inlined_call_operand.vmem [shape: f32[128,32], index: 3, kind: output, shape index: {}]  }
   0x1 LB: > { %s387_s13 = sadd.s32 4294967295, %s465_s12   ;;  %p391_p0 = scmp.ge.s32.totalorder %s465_s12, 1  ;;  %s465_s12 = sphi %s487_s12, %s13_s12  }
   0x2   : > { %p138_p1 = scmp.lt.s32.totalorder %s465_s12, 3 }
   0x4   : > { %p139_p2 = pnand %p391_p0, %p138_p1 }
   0x5   : > { %v182_v0 = vld [vmem:[%s536_s1] sm:$0xff] (!%p139_p2)  ;;  %v183_v1 = vld [vmem:[%s536_s1 + $0x8] sm:$0xff] (!%p139_p2)  ;;  %v184_v2 = vld [vmem:[%s536_s1 + $0x10] sm:$0xff] (!%p139_p2)  ;;  %s392_s20 = sshll.u32 (!%p139_p2), %s387_s13, 3  ;;  %vm193_vm0 = vcmask (!%p139_p2), 261120  }
   0x6   : > { %142 = sbr.rel (%p139_p2) target bundleno = 239 (0xef), region = 32  ;;  %v439_v3 = vpack.c.bf16 (!%p139_p2), %v183_v1, %v182_v0  ;;  %v185_v4 = vld [vmem:[%s536_s1 + $0x18] sm:$0xff] (!%p139_p2)  ;;  %p163_p3 = scmp.lt.s32.totalorder (!%p139_p2), %s392_s20, 15  ;;  %v396_v14 = vld [vmem:[%s537_s2] ss:$0 sm:$0xff] (!%p139_p2) }
   0x7   : > { %v443_v5 = vpack.c.bf16 (!%p139_p2), %v185_v4, %v184_v2 }
   0x8   : > { %440 = vmatprep.subr.bf16.mxu0 (!%p139_p2), %v439_v3  ;;  %447 = vmatprep.subr.bf16.mxu1 (!%p139_p2), %v439_v3 }
   0x9   : > { %442 = vmatpush3.bf16.msra.mxu0 (!%p139_p2), %v439_v3  ;;  %449 = vmatpush3.bf16.msra.mxu1 (!%p139_p2), %v439_v3 }
   0xa   : > { %444 = vmatprep.subr.bf16.mxu0 (!%p139_p2), %v443_v5  ;;  %448 = vmatprep.subr.bf16.mxu1 (!%p139_p2), %v443_v5 }
   0xd   : > { %s540_s20 = smov (!%p163_p3, %s392_s20), 15  ;;  %446 = vmatpush3.bf16.msra.mxu0 %v443_v5  ;;  %450 = vmatpush3.bf16.msra.mxu1 %v443_v5 }
   0xe   : > { %s393_s23 = sshll.u32 %s540_s20, 3 }
   0xf   : > { %s166_s26 = scalar_lea.vmem %s535_s0, %s393_s23  ;;  %s172_s4 = scalar_lea.vmem %s538_s3, %s393_s23 }
  0x10   : > { %v174_v6 = vld [vmem:[%s166_s26] sm:$0xff]  ;;  %v175_v8 = vld [vmem:[%s166_s26 + $0x8] sm:$0xff]  ;;  %v176_v10 = vld [vmem:[%s166_s26 + $0x10] sm:$0xff] }
  0x11   : > { %v178_v7 = vld [vmem:[%s166_s26 + $0x20] sm:$0xff]  ;;  %v179_v9 = vld [vmem:[%s166_s26 + $0x28] sm:$0xff]  ;;  %427 = vmatprep.mubr.msk.f32.mxu0 %vm193_vm0, %v174_v6  ;;  %v180_v11 = vld [vmem:[%s166_s26 + $0x30] sm:$0xff] }
  0x12   : > { %433 = vmatprep.mubr.msk.f32.mxu1 %vm193_vm0, %v178_v7  ;;  %428 = vmatmul.mubr.msk.f32.vlgmr.msra.gmra.mrb[0].mxu0 %vm193_vm0, %v175_v8  ;;  %v177_v12 = vld [vmem:[%s166_s26 + $0x18] sm:$0xff] }
  0x13   : > { %434 = vmatmul.mubr.msk.f32.vlgmr.msra.gmra.mrb[0].mxu1 %vm193_vm0, %v179_v9  ;;  %430 = vmatprep.mubr.msk.f32.mxu0 %vm193_vm0, %v176_v10  ;;  %v181_v13 = vld [vmem:[%s166_s26 + $0x38] sm:$0xff] }
  0x14   : > { %436 = vmatprep.mubr.msk.f32.mxu1 %vm193_vm0, %v180_v11 }
  0x16   : > { %431 = vmatmul.mubr.msk.f32.gmra.mrb[2].mxu0 %vm193_vm0, %v177_v12 }
  0x17   : > { %437 = vmatmul.mubr.msk.f32.gmra.mrb[2].mxu1 %vm193_vm0, %v181_v13 }
  0xe5   : > { %v429_v15 = vpop.f32.mrb[0].mxu0 }
  0xe6   : > { %v435_v16 = vpop.f32.mrb[0].mxu1  ;;  %v290_v17 = vadd.f32 %v429_v15, %v396_v14  ;;  %v284_v19 = vpop.f32.mrb[1].mxu0 }
  0xe7   : > { %v310_v18 = vadd.f32 %v435_v16, %v396_v14  ;;  %v304_v20 = vpop.f32.mrb[1].mxu1  ;;  %v285_v21 = vadd.f32 %v396_v14, %v284_v19 }
  0xe8   : > { %v305_v22 = vadd.f32 %v396_v14, %v304_v20  ;;  %324 = vst.msk [vmem:[%s172_s4 + $0x8] sm:$0xff] %vm193_vm0, %v290_v17 }
  0xe9   : > { %328 = vst.msk [vmem:[%s172_s4 + $0x28] sm:$0xff] %vm193_vm0, %v310_v18  ;;  %323 = vst.msk [vmem:[%s172_s4] sm:$0xff] %vm193_vm0, %v285_v21  ;;  %v432_v23 = vpop.f32.mrb[2].mxu0 }
  0xea   : > { %327 = vst.msk [vmem:[%s172_s4 + $0x20] sm:$0xff] %vm193_vm0, %v305_v22  ;;  %v438_v24 = vpop.f32.mrb[2].mxu1  ;;  %v300_v25 = vadd.f32 %v432_v23, %v396_v14  ;;  %v294_v27 = vpop.f32.mrb[3].mxu0 }
  0xeb   : > { %v320_v26 = vadd.f32 %v438_v24, %v396_v14  ;;  %v314_v28 = vpop.f32.mrb[3].mxu1  ;;  %v295_v29 = vadd.f32 %v396_v14, %v294_v27 }
  0xec   : > { %v315_v30 = vadd.f32 %v396_v14, %v314_v28  ;;  %326 = vst.msk [vmem:[%s172_s4 + $0x18] sm:$0xff] %vm193_vm0, %v300_v25 }
  0xed   : > { %330 = vst.msk [vmem:[%s172_s4 + $0x38] sm:$0xff] %vm193_vm0, %v320_v26  ;;  %325 = vst.msk [vmem:[%s172_s4 + $0x10] sm:$0xff] %vm193_vm0, %v295_v29 }
  0xee   : > { %329 = vst.msk [vmem:[%s172_s4 + $0x30] sm:$0xff] %vm193_vm0, %v315_v30 }
  0xef PF: > { %s13_s12 = sadd.s32 1, %s465_s12  }
  0xf0   : > { %p10_p4 = scmp.ge.s32.totalorder %s13_s12, 4  }
  0xf2   :  { %12 = sbr.rel (!%p10_p4) target bundleno = 1 (0x1), region = 62 }

// kernel: structgnn_forward.10
= control target key start
LH: loop header
LB: loop body
LE: loop exit
PB: predicated region body
PF: predicated region fallthrough
CT: control target
= control target key end

     0   :  { %s1628_s12 = smov 0   ;;  %s1990_s0 = inlined_call_operand.vmem [shape: f32[1024,32], index: 0, kind: input, shape index: {}]   ;;  %s1991_s1 = inlined_call_operand.vmem [shape: f32[32,32], index: 1, kind: input, shape index: {}]   ;;  %s1992_s2 = inlined_call_operand.vmem [shape: f32[1,32], index: 2, kind: input, shape index: {}]   ;;  %s1993_s3 = inlined_call_operand.vmem [shape: bf16[1024,32], index: 3, kind: output, shape index: {}]  }
   0x1 LB: > { %s1204_s13 = sadd.s32 4294967295, %s1606_s12   ;;  %p1208_p0 = scmp.ge.s32.totalorder %s1606_s12, 1  ;;  %s1606_s12 = sphi %s1628_s12, %s13_s12  }
   0x2   : > { %p138_p1 = scmp.lt.s32.totalorder %s1606_s12, 3 }
   0x4   : > { %p139_p2 = pnand %p1208_p0, %p138_p1 }
   0x5   : > { %v238_v0 = vld [vmem:[%s1991_s1] sm:$0xff] (!%p139_p2)  ;;  %v239_v1 = vld [vmem:[%s1991_s1 + $0x8] sm:$0xff] (!%p139_p2)  ;;  %v240_v2 = vld [vmem:[%s1991_s1 + $0x10] sm:$0xff] (!%p139_p2)  ;;  %s1209_s20 = sshll.u32 (!%p139_p2), %s1204_s13, 6  ;;  %vm249_vm0 = vcmask (!%p139_p2), 261120   ;;  %vm1083_vm1 = vcmask (!%p139_p2), 257024  }
   0x6   : > { %142 = sbr.rel (%p139_p2) target bundleno = 297 (0x129), region = 32  ;;  %v1580_v3 = vpack.c.bf16 (!%p139_p2), %v239_v1, %v238_v0  ;;  %v241_v4 = vld [vmem:[%s1991_s1 + $0x18] sm:$0xff] (!%p139_p2)  ;;  %p163_p3 = scmp.lt.s32.totalorder (!%p139_p2), %s1209_s20, 127 }
   0x7   : > { %v1584_v5 = vpack.c.bf16 (!%p139_p2), %v241_v4, %v240_v2 }
   0x8   : > { %1581 = vmatprep.subr.bf16.mxu0 (!%p139_p2), %v1580_v3  ;;  %1588 = vmatprep.subr.bf16.mxu1 (!%p139_p2), %v1580_v3 }
   0x9   : > { %1583 = vmatpush3.bf16.msra.mxu0 (!%p139_p2), %v1580_v3  ;;  %1590 = vmatpush3.bf16.msra.mxu1 (!%p139_p2), %v1580_v3 }
   0xa   : > { %1585 = vmatprep.subr.bf16.mxu0 (!%p139_p2), %v1584_v5  ;;  %1589 = vmatprep.subr.bf16.mxu1 (!%p139_p2), %v1584_v5 }
   0xd   : > { %s1995_s20 = smov (!%p163_p3, %s1209_s20), 127  ;;  %1587 = vmatpush3.bf16.msra.mxu0 %v1584_v5  ;;  %1591 = vmatpush3.bf16.msra.mxu1 %v1584_v5 }
   0xe   : > { %s1210_s23 = sshll.u32 %s1995_s20, 3  ;;  %s1212_s29 = sshll.u32 %s1995_s20, 2 }
   0xf   : > { %s1654_s26 = scalar_lea.vmem %s1990_s0, %s1210_s23  ;;  %s1795_s5 = scalar_lea.vmem %s1993_s3, %s1212_s29 }
  0x10   : > { %v174_v6 = vld [vmem:[%s1654_s26] sm:$0xff]  ;;  %v175_v8 = vld [vmem:[%s1654_s26 + $0x8] sm:$0xff]  ;;  %v176_v10 = vld [vmem:[%s1654_s26 + $0x10] sm:$0xff] }
  0x11   : > { %v206_v7 = vld [vmem:[%s1654_s26 + $0x100] sm:$0xff]  ;;  %v207_v9 = vld [vmem:[%s1654_s26 + $0x108] sm:$0xff]  ;;  %1484 = vmatprep.mubr.msk.f32.mxu0 %vm249_vm0, %v174_v6  ;;  %v208_v11 = vld [vmem:[%s1654_s26 + $0x110] sm:$0xff] }
  0x12   : > { %1532 = vmatprep.mubr.msk.f32.mxu1 %vm249_vm0, %v206_v7  ;;  %1485 = vmatmul.mubr.msk.f32.vlgmr.msra.gmra.mrb[0].mxu0 %vm249_vm0, %v175_v8  ;;  %v177_v12 = vld [vmem:[%s1654_s26 + $0x18] sm:$0xff]  ;;  %v178_v14 = vld [vmem:[%s1654_s26 + $0x20] sm:$0xff]  ;;  %v179_v16 = vld [vmem:[%s1654_s26 + $0x28] sm:$0xff] }
  0x13   : > { %1533 = vmatmul.mubr.msk.f32.vlgmr.msra.gmra.mrb[0].mxu1 %vm249_vm0, %v207_v9  ;;  %1487 = vmatprep.mubr.msk.f32.mxu0 %vm249_vm0, %v176_v10  ;;  %v209_v13 = vld [vmem:[%s1654_s26 + $0x118] sm:$0xff]  ;;  %v210_v15 = vld [vmem:[%s1654_s26 + $0x120] sm:$0xff]  ;;  %v211_v17 = vld [vmem:[%s1654_s26 + $0x128] sm:$0xff] }
  0x14   : > { %1535 = vmatprep.mubr.msk.f32.mxu1 %vm249_vm0, %v208_v11  ;;  %v180_v18 = vld [vmem:[%s1654_s26 + $0x30] sm:$0xff]  ;;  %v181_v20 = vld [vmem:[%s1654_s26 + $0x38] sm:$0xff]  ;;  %v182_v22 = vld [vmem:[%s1654_s26 + $0x40] sm:$0xff] }
  0x15   : > { %v212_v19 = vld [vmem:[%s1654_s26 + $0x130] sm:$0xff]  ;;  %v213_v21 = vld [vmem:[%s1654_s26 + $0x138] sm:$0xff]  ;;  %v214_v23 = vld [vmem:[%s1654_s26 + $0x140] sm:$0xff] }
  0x16   : > { %1488 = vmatmul.mubr.msk.f32.gmra.mrb[2].mxu0 %vm249_vm0, %v177_v12  ;;  %v183_v24 = vld [vmem:[%s1654_s26 + $0x48] sm:$0xff]  ;;  %v184_v26 = vld [vmem:[%s1654_s26 + $0x50] sm:$0xff]  ;;  %v185_v28 = vld [vmem:[%s1654_s26 + $0x58] sm:$0xff] }
  0x17   : > { %1536 = vmatmul.mubr.msk.f32.gmra.mrb[2].mxu1 %vm249_vm0, %v209_v13  ;;  %1490 = vmatprep.mubr.msk.f32.mxu0 %vm249_vm0, %v178_v14  ;;  %v215_v25 = vld [vmem:[%s1654_s26 + $0x148] sm:$0xff]  ;;  %v216_v27 = vld [vmem:[%s1654_s26 + $0x150] sm:$0xff]  ;;  %v217_v29 = vld [vmem:[%s1654_s26 + $0x158] sm:$0xff] }
  0x18   : > { %1538 = vmatprep.mubr.msk.f32.mxu1 %vm249_vm0, %v210_v15  ;;  %v186_v30 = vld [vmem:[%s1654_s26 + $0x60] sm:$0xff]  ;;  %v187_v32 = vld [vmem:[%s1654_s26 + $0x68] sm:$0xff]  ;;  %v188_v34 = vld [vmem:[%s1654_s26 + $0x70] sm:$0xff] }
  0x19   : > { %v218_v31 = vld [vmem:[%s1654_s26 + $0x160] sm:$0xff]  ;;  %v219_v33 = vld [vmem:[%s1654_s26 + $0x168] sm:$0xff]  ;;  %v220_v35 = vld [vmem:[%s1654_s26 + $0x170] sm:$0xff] }
  0x1a   : > { %1491 = vmatmul.mubr.msk.f32.gmra.mrb[4].mxu0 %vm249_vm0, %v179_v16  ;;  %v189_v36 = vld [vmem:[%s1654_s26 + $0x78] sm:$0xff]  ;;  %v190_v38 = vld [vmem:[%s1654_s26 + $0x80] sm:$0xff]  ;;  %v191_v40 = vld [vmem:[%s1654_s26 + $0x88] sm:$0xff] }
  0x1b   : > { %1539 = vmatmul.mubr.msk.f32.gmra.mrb[4].mxu1 %vm249_vm0, %v211_v17  ;;  %1493 = vmatprep.mubr.msk.f32.mxu0 %vm249_vm0, %v180_v18  ;;  %v221_v37 = vld [vmem:[%s1654_s26 + $0x178] sm:$0xff]  ;;  %v222_v39 = vld [vmem:[%s1654_s26 + $0x180] sm:$0xff]  ;;  %v223_v41 = vld [vmem:[%s1654_s26 + $0x188] sm:$0xff] }
  0x1c   : > { %1541 = vmatprep.mubr.msk.f32.mxu1 %vm249_vm0, %v212_v19  ;;  %v192_v42 = vld [vmem:[%s1654_s26 + $0x90] sm:$0xff]  ;;  %v193_v44 = vld [vmem:[%s1654_s26 + $0x98] sm:$0xff]  ;;  %v194_v46 = vld [vmem:[%s1654_s26 + $0xa0] sm:$0xff] }
  0x1d   : > { %v224_v43 = vld [vmem:[%s1654_s26 + $0x190] sm:$0xff]  ;;  %v225_v45 = vld [vmem:[%s1654_s26 + $0x198] sm:$0xff]  ;;  %v226_v47 = vld [vmem:[%s1654_s26 + $0x1a0] sm:$0xff] }
  0x1e   : > { %1494 = vmatmul.mubr.msk.f32.gmra.mrb[6].mxu0 %vm249_vm0, %v181_v20  ;;  %v195_v48 = vld [vmem:[%s1654_s26 + $0xa8] sm:$0xff]  ;;  %v196_v50 = vld [vmem:[%s1654_s26 + $0xb0] sm:$0xff]  ;;  %v197_v52 = vld [vmem:[%s1654_s26 + $0xb8] sm:$0xff] }
  0x1f   : > { %1542 = vmatmul.mubr.msk.f32.gmra.mrb[6].mxu1 %vm249_vm0, %v213_v21  ;;  %1496 = vmatprep.mubr.msk.f32.mxu0 %vm249_vm0, %v182_v22  ;;  %v227_v49 = vld [vmem:[%s1654_s26 + $0x1a8] sm:$0xff]  ;;  %v228_v51 = vld [vmem:[%s1654_s26 + $0x1b0] sm:$0xff]  ;;  %v229_v53 = vld [vmem:[%s1654_s26 + $0x1b8] sm:$0xff] }
  0x20   : > { %1544 = vmatprep.mubr.msk.f32.mxu1 %vm249_vm0, %v214_v23  ;;  %v198_v54 = vld [vmem:[%s1654_s26 + $0xc0] sm:$0xff]  ;;  %v199_v56 = vld [vmem:[%s1654_s26 + $0xc8] sm:$0xff]  ;;  %v200_v58 = vld [vmem:[%s1654_s26 + $0xd0] sm:$0xff] }
  0x21   : > { %v230_v55 = vld [vmem:[%s1654_s26 + $0x1c0] sm:$0xff]  ;;  %v231_v57 = vld [vmem:[%s1654_s26 + $0x1c8] sm:$0xff]  ;;  %v232_v59 = vld [vmem:[%s1654_s26 + $0x1d0] sm:$0xff] }
  0x22   : > { %1497 = vmatmul.mubr.msk.f32.gmra.mrb[8].mxu0 %vm249_vm0, %v183_v24  ;;  %v201_v60 = vld [vmem:[%s1654_s26 + $0xd8] sm:$0xff]  ;;  %v202_v62 = vld [vmem:[%s1654_s26 + $0xe0] sm:$0xff]  ;;  %v203_v0 = vld [vmem:[%s1654_s26 + $0xe8] sm:$0xff] }
  0x23   : > { %1545 = vmatmul.mubr.msk.f32.gmra.mrb[8].mxu1 %vm249_vm0, %v215_v25  ;;  %1499 = vmatprep.mubr.msk.f32.mxu0 %vm249_vm0, %v184_v26  ;;  %v233_v61 = vld [vmem:[%s1654_s26 + $0x1d8] sm:$0xff]  ;;  %v234_v63 = vld [vmem:[%s1654_s26 + $0x1e0] sm:$0xff]  ;;  %v235_v1 = vld [vmem:[%s1654_s26 + $0x1e8] sm:$0xff] }
  0x24   : > { %1547 = vmatprep.mubr.msk.f32.mxu1 %vm249_vm0, %v216_v27  ;;  %v204_v2 = vld [vmem:[%s1654_s26 + $0xf0] sm:$0xff]  ;;  %v205_v4 = vld [vmem:[%s1654_s26 + $0xf8] sm:$0xff]  ;;  %v1787_v6 = vld [vmem:[%s1992_s2] ss:$0 sm:$0xff] }
  0x25   : > { %v236_v3 = vld [vmem:[%s1654_s26 + $0x1f0] sm:$0xff]  ;;  %v237_v5 = vld [vmem:[%s1654_s26 + $0x1f8] sm:$0xff] }
  0x26   : > { %1500 = vmatmul.mubr.msk.f32.gmra.mrb[10].mxu0 %vm249_vm0, %v185_v28 }
  0x27   : > { %1548 = vmatmul.mubr.msk.f32.gmra.mrb[10].mxu1 %vm249_vm0, %v217_v29  ;;  %1502 = vmatprep.mubr.msk.f32.mxu0 %vm249_vm0, %v186_v30 }
  0x28   : > { %1550 = vmatprep.mubr.msk.f32.mxu1 %vm249_vm0, %v218_v31 }
  0x2a   : > { %1503 = vmatmul.mubr.msk.f32.gmra.mrb[12].mxu0 %vm249_vm0, %v187_v32 }
  0x2b   : > { %1551 = vmatmul.mubr.msk.f32.gmra.mrb[12].mxu1 %vm249_vm0, %v219_v33  ;;  %1505 = vmatprep.mubr.msk.f32.mxu0 %vm249_vm0, %v188_v34 }
  0x2c   : > { %1553 = vmatprep.mubr.msk.f32.mxu1 %vm249_vm0, %v220_v35 }
  0x2e   : > { %1506 = vmatmul.mubr.msk.f32.gmra.mrb[14].mxu0 %vm249_vm0, %v189_v36 }
  0x2f   : > { %1554 = vmatmul.mubr.msk.f32.gmra.mrb[14].mxu1 %vm249_vm0, %v221_v37  ;;  %1508 = vmatprep.mubr.msk.f32.mxu0 %vm249_vm0, %v190_v38 }
  0x30   : > { %1556 = vmatprep.mubr.msk.f32.mxu1 %vm249_vm0, %v222_v39 }
  0x32   : > { %1509 = vmatmul.mubr.msk.f32.gmra.mrb[16].mxu0 %vm249_vm0, %v191_v40 }
  0x33   : > { %1557 = vmatmul.mubr.msk.f32.gmra.mrb[16].mxu1 %vm249_vm0, %v223_v41  ;;  %1511 = vmatprep.mubr.msk.f32.mxu0 %vm249_vm0, %v192_v42 }
  0x34   : > { %1559 = vmatprep.mubr.msk.f32.mxu1 %vm249_vm0, %v224_v43 }
  0x36   : > { %1512 = vmatmul.mubr.msk.f32.gmra.mrb[18].mxu0 %vm249_vm0, %v193_v44 }
  0x37   : > { %1560 = vmatmul.mubr.msk.f32.gmra.mrb[18].mxu1 %vm249_vm0, %v225_v45  ;;  %1514 = vmatprep.mubr.msk.f32.mxu0 %vm249_vm0, %v194_v46 }
  0x38   : > { %1562 = vmatprep.mubr.msk.f32.mxu1 %vm249_vm0, %v226_v47 }
  0x3a   : > { %1515 = vmatmul.mubr.msk.f32.gmra.mrb[20].mxu0 %vm249_vm0, %v195_v48 }
  0x3b   : > { %1563 = vmatmul.mubr.msk.f32.gmra.mrb[20].mxu1 %vm249_vm0, %v227_v49  ;;  %1517 = vmatprep.mubr.msk.f32.mxu0 %vm249_vm0, %v196_v50 }
  0x3c   : > { %1565 = vmatprep.mubr.msk.f32.mxu1 %vm249_vm0, %v228_v51 }
  0x3e   : > { %1518 = vmatmul.mubr.msk.f32.gmra.mrb[22].mxu0 %vm249_vm0, %v197_v52 }
  0x3f   : > { %1566 = vmatmul.mubr.msk.f32.gmra.mrb[22].mxu1 %vm249_vm0, %v229_v53  ;;  %1520 = vmatprep.mubr.msk.f32.mxu0 %vm249_vm0, %v198_v54 }
  0x40   : > { %1568 = vmatprep.mubr.msk.f32.mxu1 %vm249_vm0, %v230_v55 }
  0x42   : > { %1521 = vmatmul.mubr.msk.f32.gmra.mrb[24].mxu0 %vm249_vm0, %v199_v56 }
  0x43   : > { %1569 = vmatmul.mubr.msk.f32.gmra.mrb[24].mxu1 %vm249_vm0, %v231_v57  ;;  %1523 = vmatprep.mubr.msk.f32.mxu0 %vm249_vm0, %v200_v58 }
  0x44   : > { %1571 = vmatprep.mubr.msk.f32.mxu1 %vm249_vm0, %v232_v59 }
  0x46   : > { %1524 = vmatmul.mubr.msk.f32.gmra.mrb[26].mxu0 %vm249_vm0, %v201_v60 }
  0x47   : > { %1572 = vmatmul.mubr.msk.f32.gmra.mrb[26].mxu1 %vm249_vm0, %v233_v61  ;;  %1526 = vmatprep.mubr.msk.f32.mxu0 %vm249_vm0, %v202_v62 }
  0x48   : > { %1574 = vmatprep.mubr.msk.f32.mxu1 %vm249_vm0, %v234_v63 }
  0x4a   : > { %1527 = vmatmul.mubr.msk.f32.gmra.mrb[28].mxu0 %vm249_vm0, %v203_v0 }
  0x4b   : > { %1575 = vmatmul.mubr.msk.f32.gmra.mrb[28].mxu1 %vm249_vm0, %v235_v1  ;;  %1529 = vmatprep.mubr.msk.f32.mxu0 %vm249_vm0, %v204_v2 }
  0x4c   : > { %1577 = vmatprep.mubr.msk.f32.mxu1 %vm249_vm0, %v236_v3 }
  0x4e   : > { %1530 = vmatmul.mubr.msk.f32.gmra.mrb[30].mxu0 %vm249_vm0, %v205_v4 }
  0x4f   : > { %1578 = vmatmul.mubr.msk.f32.gmra.mrb[30].mxu1 %vm249_vm0, %v237_v5 }
  0xe5   : > { %v1486_v7 = vpop.f32.mrb[0].mxu0 }
  0xe6   : > { %v1534_v8 = vpop.f32.mrb[0].mxu1  ;;  %v514_v9 = vadd.f32 %v1486_v7, %v1787_v6  ;;  %v508_v11 = vpop.f32.mrb[1].mxu0 }
  0xe7   : > { %v674_v10 = vadd.f32 %v1534_v8, %v1787_v6  ;;  %v668_v12 = vpop.f32.mrb[1].mxu1  ;;  %v509_v13 = vadd.f32 %v1787_v6, %v508_v11 }
  0xe8   : > { %v669_v14 = vadd.f32 %v1787_v6, %v668_v12  ;;  %v1345_v15 = vpack.c.bf16 %v514_v9, %v514_v9 }
  0xe9   : > { %v1377_v16 = vpack.c.bf16 %v674_v10, %v674_v10  ;;  %v1344_v17 = vpack.c.bf16 %v509_v13, %v509_v13  ;;  %v1489_v19 = vpop.f32.mrb[2].mxu0 }
  0xea   : > { %v1376_v18 = vpack.c.bf16 %v669_v14, %v669_v14  ;;  %v1537_v20 = vpop.f32.mrb[2].mxu1  ;;  %1085 = vst.msk [vmem:[%s1795_s5 + $0x4] sm:$0xf] %vm1083_vm1, %v1345_v15  ;;  %v524_v21 = vadd.f32 %v1489_v19, %v1787_v6  ;;  %v518_v23 = vpop.f32.mrb[3].mxu0 }
  0xeb   : > { %1117 = vst.msk [vmem:[%s1795_s5 + $0x84] sm:$0xf] %vm1083_vm1, %v1377_v16  ;;  %v684_v22 = vadd.f32 %v1537_v20, %v1787_v6  ;;  %v678_v24 = vpop.f32.mrb[3].mxu1  ;;  %1084 = vst.msk [vmem:[%s1795_s5] sm:$0xf] %vm1083_vm1, %v1344_v17  ;;  %v519_v25 = vadd.f32 %v1787_v6, %v518_v23 }
  0xec   : > { %1116 = vst.msk [vmem:[%s1795_s5 + $0x80] sm:$0xf] %vm1083_vm1, %v1376_v18  ;;  %v679_v26 = vadd.f32 %v1787_v6, %v678_v24  ;;  %v1347_v27 = vpack.c.bf16 %v524_v21, %v524_v21 }
  0xed   : > { %v1379_v28 = vpack.c.bf16 %v684_v22, %v684_v22  ;;  %v1346_v29 = vpack.c.bf16 %v519_v25, %v519_v25  ;;  %v1492_v31 = vpop.f32.mrb[4].mxu0 }
  0xee   : > { %v1378_v30 = vpack.c.bf16 %v679_v26, %v679_v26  ;;  %v1540_v32 = vpop.f32.mrb[4].mxu1  ;;  %1087 = vst.msk [vmem:[%s1795_s5 + $0xc] sm:$0xf] %vm1083_vm1, %v1347_v27  ;;  %v534_v33 = vadd.f32 %v1492_v31, %v1787_v6  ;;  %v528_v35 = vpop.f32.mrb[5].mxu0 }
  0xef   : > { %1119 = vst.msk [vmem:[%s1795_s5 + $0x8c] sm:$0xf] %vm1083_vm1, %v1379_v28  ;;  %v694_v34 = vadd.f32 %v1540_v32, %v1787_v6  ;;  %v688_v36 = vpop.f32.mrb[5].mxu1  ;;  %1086 = vst.msk [vmem:[%s1795_s5 + $0x8] sm:$0xf] %vm1083_vm1, %v1346_v29  ;;  %v529_v37 = vadd.f32 %v1787_v6, %v528_v35 }
  0xf0   : > { %1118 = vst.msk [vmem:[%s1795_s5 + $0x88] sm:$0xf] %vm1083_vm1, %v1378_v30  ;;  %v689_v38 = vadd.f32 %v1787_v6, %v688_v36  ;;  %v1349_v39 = vpack.c.bf16 %v534_v33, %v534_v33 }
  0xf1   : > { %v1381_v40 = vpack.c.bf16 %v694_v34, %v694_v34  ;;  %v1348_v41 = vpack.c.bf16 %v529_v37, %v529_v37  ;;  %v1495_v43 = vpop.f32.mrb[6].mxu0 }
  0xf2   : > { %v1380_v42 = vpack.c.bf16 %v689_v38, %v689_v38  ;;  %v1543_v44 = vpop.f32.mrb[6].mxu1  ;;  %1089 = vst.msk [vmem:[%s1795_s5 + $0x14] sm:$0xf] %vm1083_vm1, %v1349_v39  ;;  %v544_v45 = vadd.f32 %v1495_v43, %v1787_v6  ;;  %v538_v47 = vpop.f32.mrb[7].mxu0 }
  0xf3   : > { %1121 = vst.msk [vmem:[%s1795_s5 + $0x94] sm:$0xf] %vm1083_vm1, %v1381_v40  ;;  %v704_v46 = vadd.f32 %v1543_v44, %v1787_v6  ;;  %v698_v48 = vpop.f32.mrb[7].mxu1  ;;  %1088 = vst.msk [vmem:[%s1795_s5 + $0x10] sm:$0xf] %vm1083_vm1, %v1348_v41  ;;  %v539_v49 = vadd.f32 %v1787_v6, %v538_v47 }
  0xf4   : > { %1120 = vst.msk [vmem:[%s1795_s5 + $0x90] sm:$0xf] %vm1083_vm1, %v1380_v42  ;;  %v699_v50 = vadd.f32 %v1787_v6, %v698_v48  ;;  %v1351_v51 = vpack.c.bf16 %v544_v45, %v544_v45 }
  0xf5   : > { %v1383_v52 = vpack.c.bf16 %v704_v46, %v704_v46  ;;  %v1350_v53 = vpack.c.bf16 %v539_v49, %v539_v49  ;;  %v1498_v55 = vpop.f32.mrb[8].mxu0 }
  0xf6   : > { %v1382_v54 = vpack.c.bf16 %v699_v50, %v699_v50  ;;  %v1546_v56 = vpop.f32.mrb[8].mxu1  ;;  %1091 = vst.msk [vmem:[%s1795_s5 + $0x1c] sm:$0xf] %vm1083_vm1, %v1351_v51  ;;  %v554_v57 = vadd.f32 %v1498_v55, %v1787_v6  ;;  %v548_v59 = vpop.f32.mrb[9].mxu0 }
  0xf7   : > { %1123 = vst.msk [vmem:[%s1795_s5 + $0x9c] sm:$0xf] %vm1083_vm1, %v1383_v52  ;;  %v714_v58 = vadd.f32 %v1546_v56, %v1787_v6  ;;  %v708_v60 = vpop.f32.mrb[9].mxu1  ;;  %1090 = vst.msk [vmem:[%s1795_s5 + $0x18] sm:$0xf] %vm1083_vm1, %v1350_v53  ;;  %v549_v61 = vadd.f32 %v1787_v6, %v548_v59 }
  0xf8   : > { %1122 = vst.msk [vmem:[%s1795_s5 + $0x98] sm:$0xf] %vm1083_vm1, %v1382_v54  ;;  %v709_v62 = vadd.f32 %v1787_v6, %v708_v60  ;;  %v1353_v63 = vpack.c.bf16 %v554_v57, %v554_v57 }
  0xf9   : > { %v1385_v0 = vpack.c.bf16 %v714_v58, %v714_v58  ;;  %v1352_v1 = vpack.c.bf16 %v549_v61, %v549_v61  ;;  %v1501_v3 = vpop.f32.mrb[10].mxu0 }
  0xfa   : > { %v1384_v2 = vpack.c.bf16 %v709_v62, %v709_v62  ;;  %v1549_v4 = vpop.f32.mrb[10].mxu1  ;;  %1093 = vst.msk [vmem:[%s1795_s5 + $0x24] sm:$0xf] %vm1083_vm1, %v1353_v63  ;;  %v564_v5 = vadd.f32 %v1501_v3, %v1787_v6  ;;  %v558_v8 = vpop.f32.mrb[11].mxu0 }
  0xfb   : > { %1125 = vst.msk [vmem:[%s1795_s5 + $0xa4] sm:$0xf] %vm1083_vm1, %v1385_v0  ;;  %v724_v7 = vadd.f32 %v1549_v4, %v1787_v6  ;;  %v718_v9 = vpop.f32.mrb[11].mxu1  ;;  %1092 = vst.msk [vmem:[%s1795_s5 + $0x20] sm:$0xf] %vm1083_vm1, %v1352_v1  ;;  %v559_v10 = vadd.f32 %v1787_v6, %v558_v8 }
  0xfc   : > { %1124 = vst.msk [vmem:[%s1795_s5 + $0xa0] sm:$0xf] %vm1083_vm1, %v1384_v2  ;;  %v719_v11 = vadd.f32 %v1787_v6, %v718_v9  ;;  %v1355_v12 = vpack.c.bf16 %v564_v5, %v564_v5 }
  0xfd   : > { %v1387_v13 = vpack.c.bf16 %v724_v7, %v724_v7  ;;  %v1354_v14 = vpack.c.bf16 %v559_v10, %v559_v10  ;;  %v1504_v16 = vpop.f32.mrb[12].mxu0 }
  0xfe   : > { %v1386_v15 = vpack.c.bf16 %v719_v11, %v719_v11  ;;  %v1552_v17 = vpop.f32.mrb[12].mxu1  ;;  %1095 = vst.msk [vmem:[%s1795_s5 + $0x2c] sm:$0xf] %vm1083_vm1, %v1355_v12  ;;  %v574_v18 = vadd.f32 %v1504_v16, %v1787_v6  ;;  %v568_v20 = vpop.f32.mrb[13].mxu0 }
  0xff   : > { %1127 = vst.msk [vmem:[%s1795_s5 + $0xac] sm:$0xf] %vm1083_vm1, %v1387_v13  ;;  %v734_v19 = vadd.f32 %v1552_v17, %v1787_v6  ;;  %v728_v21 = vpop.f32.mrb[13].mxu1  ;;  %1094 = vst.msk [vmem:[%s1795_s5 + $0x28] sm:$0xf] %vm1083_vm1, %v1354_v14  ;;  %v569_v22 = vadd.f32 %v1787_v6, %v568_v20 }
 0x100   : > { %1126 = vst.msk [vmem:[%s1795_s5 + $0xa8] sm:$0xf] %vm1083_vm1, %v1386_v15  ;;  %v729_v23 = vadd.f32 %v1787_v6, %v728_v21  ;;  %v1357_v24 = vpack.c.bf16 %v574_v18, %v574_v18 }
 0x101   : > { %v1389_v25 = vpack.c.bf16 %v734_v19, %v734_v19  ;;  %v1356_v26 = vpack.c.bf16 %v569_v22, %v569_v22  ;;  %v1507_v28 = vpop.f32.mrb[14].mxu0 }
 0x102   : > { %v1388_v27 = vpack.c.bf16 %v729_v23, %v729_v23  ;;  %v1555_v29 = vpop.f32.mrb[14].mxu1  ;;  %1097 = vst.msk [vmem:[%s1795_s5 + $0x34] sm:$0xf] %vm1083_vm1, %v1357_v24  ;;  %v584_v30 = vadd.f32 %v1507_v28, %v1787_v6  ;;  %v578_v32 = vpop.f32.mrb[15].mxu0 }
 0x103   : > { %1129 = vst.msk [vmem:[%s1795_s5 + $0xb4] sm:$0xf] %vm1083_vm1, %v1389_v25  ;;  %v744_v31 = vadd.f32 %v1555_v29, %v1787_v6  ;;  %v738_v33 = vpop.f32.mrb[15].mxu1  ;;  %1096 = vst.msk [vmem:[%s1795_s5 + $0x30] sm:$0xf] %vm1083_vm1, %v1356_v26  ;;  %v579_v34 = vadd.f32 %v1787_v6, %v578_v32 }
 0x104   : > { %1128 = vst.msk [vmem:[%s1795_s5 + $0xb0] sm:$0xf] %vm1083_vm1, %v1388_v27  ;;  %v739_v35 = vadd.f32 %v1787_v6, %v738_v33  ;;  %v1359_v36 = vpack.c.bf16 %v584_v30, %v584_v30 }
 0x105   : > { %v1391_v37 = vpack.c.bf16 %v744_v31, %v744_v31  ;;  %v1358_v38 = vpack.c.bf16 %v579_v34, %v579_v34  ;;  %v1510_v40 = vpop.f32.mrb[16].mxu0 }
 0x106   : > { %v1390_v39 = vpack.c.bf16 %v739_v35, %v739_v35  ;;  %v1558_v41 = vpop.f32.mrb[16].mxu1  ;;  %1099 = vst.msk [vmem:[%s1795_s5 + $0x3c] sm:$0xf] %vm1083_vm1, %v1359_v36  ;;  %v594_v42 = vadd.f32 %v1510_v40, %v1787_v6  ;;  %v588_v44 = vpop.f32.mrb[17].mxu0 }
 0x107   : > { %1131 = vst.msk [vmem:[%s1795_s5 + $0xbc] sm:$0xf] %vm1083_vm1, %v1391_v37  ;;  %v754_v43 = vadd.f32 %v1558_v41, %v1787_v6  ;;  %v748_v45 = vpop.f32.mrb[17].mxu1  ;;  %1098 = vst.msk [vmem:[%s1795_s5 + $0x38] sm:$0xf] %vm1083_vm1, %v1358_v38  ;;  %v589_v46 = vadd.f32 %v1787_v6, %v588_v44 }
 0x108   : > { %1130 = vst.msk [vmem:[%s1795_s5 + $0xb8] sm:$0xf] %vm1083_vm1, %v1390_v39  ;;  %v749_v47 = vadd.f32 %v1787_v6, %v748_v45  ;;  %v1361_v48 = vpack.c.bf16 %v594_v42, %v594_v42 }
 0x109   : > { %v1393_v49 = vpack.c.bf16 %v754_v43, %v754_v43  ;;  %v1360_v50 = vpack.c.bf16 %v589_v46, %v589_v46  ;;  %v1513_v52 = vpop.f32.mrb[18].mxu0 }
 0x10a   : > { %v1392_v51 = vpack.c.bf16 %v749_v47, %v749_v47  ;;  %v1561_v53 = vpop.f32.mrb[18].mxu1  ;;  %1101 = vst.msk [vmem:[%s1795_s5 + $0x44] sm:$0xf] %vm1083_vm1, %v1361_v48  ;;  %v604_v54 = vadd.f32 %v1513_v52, %v1787_v6  ;;  %v598_v56 = vpop.f32.mrb[19].mxu0 }
 0x10b   : > { %1133 = vst.msk [vmem:[%s1795_s5 + $0xc4] sm:$0xf] %vm1083_vm1, %v1393_v49  ;;  %v764_v55 = vadd.f32 %v1561_v53, %v1787_v6  ;;  %v758_v57 = vpop.f32.mrb[19].mxu1  ;;  %1100 = vst.msk [vmem:[%s1795_s5 + $0x40] sm:$0xf] %vm1083_vm1, %v1360_v50  ;;  %v599_v58 = vadd.f32 %v1787_v6, %v598_v56 }
 0x10c   : > { %1132 = vst.msk [vmem:[%s1795_s5 + $0xc0] sm:$0xf] %vm1083_vm1, %v1392_v51  ;;  %v759_v59 = vadd.f32 %v1787_v6, %v758_v57  ;;  %v1363_v60 = vpack.c.bf16 %v604_v54, %v604_v54 }
 0x10d   : > { %v1395_v61 = vpack.c.bf16 %v764_v55, %v764_v55  ;;  %v1362_v62 = vpack.c.bf16 %v599_v58, %v599_v58  ;;  %v1516_v0 = vpop.f32.mrb[20].mxu0 }
 0x10e   : > { %v1394_v63 = vpack.c.bf16 %v759_v59, %v759_v59  ;;  %v1564_v1 = vpop.f32.mrb[20].mxu1  ;;  %1103 = vst.msk [vmem:[%s1795_s5 + $0x4c] sm:$0xf] %vm1083_vm1, %v1363_v60  ;;  %v614_v2 = vadd.f32 %v1516_v0, %v1787_v6  ;;  %v608_v4 = vpop.f32.mrb[21].mxu0 }
 0x10f   : > { %1135 = vst.msk [vmem:[%s1795_s5 + $0xcc] sm:$0xf] %vm1083_vm1, %v1395_v61  ;;  %v774_v3 = vadd.f32 %v1564_v1, %v1787_v6  ;;  %v768_v5 = vpop.f32.mrb[21].mxu1  ;;  %1102 = vst.msk [vmem:[%s1795_s5 + $0x48] sm:$0xf] %vm1083_vm1, %v1362_v62  ;;  %v609_v7 = vadd.f32 %v1787_v6, %v608_v4 }
 0x110   : > { %1134 = vst.msk [vmem:[%s1795_s5 + $0xc8] sm:$0xf] %vm1083_vm1, %v1394_v63  ;;  %v769_v8 = vadd.f32 %v1787_v6, %v768_v5  ;;  %v1365_v9 = vpack.c.bf16 %v614_v2, %v614_v2 }
 0x111   : > { %v1397_v10 = vpack.c.bf16 %v774_v3, %v774_v3  ;;  %v1364_v11 = vpack.c.bf16 %v609_v7, %v609_v7  ;;  %v1519_v13 = vpop.f32.mrb[22].mxu0 }
 0x112   : > { %v1396_v12 = vpack.c.bf16 %v769_v8, %v769_v8  ;;  %v1567_v14 = vpop.f32.mrb[22].mxu1  ;;  %1105 = vst.msk [vmem:[%s1795_s5 + $0x54] sm:$0xf] %vm1083_vm1, %v1365_v9  ;;  %v624_v15 = vadd.f32 %v1519_v13, %v1787_v6  ;;  %v618_v17 = vpop.f32.mrb[23].mxu0 }
 0x113   : > { %1137 = vst.msk [vmem:[%s1795_s5 + $0xd4] sm:$0xf] %vm1083_vm1, %v1397_v10  ;;  %v784_v16 = vadd.f32 %v1567_v14, %v1787_v6  ;;  %v778_v18 = vpop.f32.mrb[23].mxu1  ;;  %1104 = vst.msk [vmem:[%s1795_s5 + $0x50] sm:$0xf] %vm1083_vm1, %v1364_v11  ;;  %v619_v19 = vadd.f32 %v1787_v6, %v618_v17 }
 0x114   : > { %1136 = vst.msk [vmem:[%s1795_s5 + $0xd0] sm:$0xf] %vm1083_vm1, %v1396_v12  ;;  %v779_v20 = vadd.f32 %v1787_v6, %v778_v18  ;;  %v1367_v21 = vpack.c.bf16 %v624_v15, %v624_v15 }
 0x115   : > { %v1399_v22 = vpack.c.bf16 %v784_v16, %v784_v16  ;;  %v1366_v23 = vpack.c.bf16 %v619_v19, %v619_v19  ;;  %v1522_v25 = vpop.f32.mrb[24].mxu0 }
 0x116   : > { %v1398_v24 = vpack.c.bf16 %v779_v20, %v779_v20  ;;  %v1570_v26 = vpop.f32.mrb[24].mxu1  ;;  %1107 = vst.msk [vmem:[%s1795_s5 + $0x5c] sm:$0xf] %vm1083_vm1, %v1367_v21  ;;  %v634_v27 = vadd.f32 %v1522_v25, %v1787_v6  ;;  %v628_v29 = vpop.f32.mrb[25].mxu0 }
 0x117   : > { %1139 = vst.msk [vmem:[%s1795_s5 + $0xdc] sm:$0xf] %vm1083_vm1, %v1399_v22  ;;  %v794_v28 = vadd.f32 %v1570_v26, %v1787_v6  ;;  %v788_v30 = vpop.f32.mrb[25].mxu1  ;;  %1106 = vst.msk [vmem:[%s1795_s5 + $0x58] sm:$0xf] %vm1083_vm1, %v1366_v23  ;;  %v629_v31 = vadd.f32 %v1787_v6, %v628_v29 }
 0x118   : > { %1138 = vst.msk [vmem:[%s1795_s5 + $0xd8] sm:$0xf] %vm1083_vm1, %v1398_v24  ;;  %v789_v32 = vadd.f32 %v1787_v6, %v788_v30  ;;  %v1369_v33 = vpack.c.bf16 %v634_v27, %v634_v27 }
 0x119   : > { %v1401_v34 = vpack.c.bf16 %v794_v28, %v794_v28  ;;  %v1368_v35 = vpack.c.bf16 %v629_v31, %v629_v31  ;;  %v1525_v37 = vpop.f32.mrb[26].mxu0 }
 0x11a   : > { %v1400_v36 = vpack.c.bf16 %v789_v32, %v789_v32  ;;  %v1573_v38 = vpop.f32.mrb[26].mxu1  ;;  %1109 = vst.msk [vmem:[%s1795_s5 + $0x64] sm:$0xf] %vm1083_vm1, %v1369_v33  ;;  %v644_v39 = vadd.f32 %v1525_v37, %v1787_v6  ;;  %v638_v41 = vpop.f32.mrb[27].mxu0 }
 0x11b   : > { %1141 = vst.msk [vmem:[%s1795_s5 + $0xe4] sm:$0xf] %vm1083_vm1, %v1401_v34  ;;  %v804_v40 = vadd.f32 %v1573_v38, %v1787_v6  ;;  %v798_v42 = vpop.f32.mrb[27].mxu1  ;;  %1108 = vst.msk [vmem:[%s1795_s5 + $0x60] sm:$0xf] %vm1083_vm1, %v1368_v35  ;;  %v639_v43 = vadd.f32 %v1787_v6, %v638_v41 }
 0x11c   : > { %1140 = vst.msk [vmem:[%s1795_s5 + $0xe0] sm:$0xf] %vm1083_vm1, %v1400_v36  ;;  %v799_v44 = vadd.f32 %v1787_v6, %v798_v42  ;;  %v1371_v45 = vpack.c.bf16 %v644_v39, %v644_v39 }
 0x11d   : > { %v1403_v46 = vpack.c.bf16 %v804_v40, %v804_v40  ;;  %v1370_v47 = vpack.c.bf16 %v639_v43, %v639_v43  ;;  %v1528_v49 = vpop.f32.mrb[28].mxu0 }
 0x11e   : > { %v1402_v48 = vpack.c.bf16 %v799_v44, %v799_v44  ;;  %v1576_v50 = vpop.f32.mrb[28].mxu1  ;;  %1111 = vst.msk [vmem:[%s1795_s5 + $0x6c] sm:$0xf] %vm1083_vm1, %v1371_v45  ;;  %v654_v51 = vadd.f32 %v1528_v49, %v1787_v6  ;;  %v648_v53 = vpop.f32.mrb[29].mxu0 }
 0x11f   : > { %1143 = vst.msk [vmem:[%s1795_s5 + $0xec] sm:$0xf] %vm1083_vm1, %v1403_v46  ;;  %v814_v52 = vadd.f32 %v1576_v50, %v1787_v6  ;;  %v808_v54 = vpop.f32.mrb[29].mxu1  ;;  %1110 = vst.msk [vmem:[%s1795_s5 + $0x68] sm:$0xf] %vm1083_vm1, %v1370_v47  ;;  %v649_v55 = vadd.f32 %v1787_v6, %v648_v53 }
 0x120   : > { %1142 = vst.msk [vmem:[%s1795_s5 + $0xe8] sm:$0xf] %vm1083_vm1, %v1402_v48  ;;  %v809_v56 = vadd.f32 %v1787_v6, %v808_v54  ;;  %v1373_v57 = vpack.c.bf16 %v654_v51, %v654_v51 }
 0x121   : > { %v1405_v58 = vpack.c.bf16 %v814_v52, %v814_v52  ;;  %v1372_v59 = vpack.c.bf16 %v649_v55, %v649_v55  ;;  %v1531_v61 = vpop.f32.mrb[30].mxu0 }
 0x122   : > { %v1404_v60 = vpack.c.bf16 %v809_v56, %v809_v56  ;;  %v1579_v62 = vpop.f32.mrb[30].mxu1  ;;  %1113 = vst.msk [vmem:[%s1795_s5 + $0x74] sm:$0xf] %vm1083_vm1, %v1373_v57  ;;  %v664_v63 = vadd.f32 %v1531_v61, %v1787_v6  ;;  %v658_v1 = vpop.f32.mrb[31].mxu0 }
 0x123   : > { %1145 = vst.msk [vmem:[%s1795_s5 + $0xf4] sm:$0xf] %vm1083_vm1, %v1405_v58  ;;  %v824_v0 = vadd.f32 %v1579_v62, %v1787_v6  ;;  %v818_v2 = vpop.f32.mrb[31].mxu1  ;;  %1112 = vst.msk [vmem:[%s1795_s5 + $0x70] sm:$0xf] %vm1083_vm1, %v1372_v59  ;;  %v659_v3 = vadd.f32 %v1787_v6, %v658_v1 }
 0x124   : > { %1144 = vst.msk [vmem:[%s1795_s5 + $0xf0] sm:$0xf] %vm1083_vm1, %v1404_v60  ;;  %v819_v4 = vadd.f32 %v1787_v6, %v818_v2  ;;  %v1375_v5 = vpack.c.bf16 %v664_v63, %v664_v63 }
 0x125   : > { %v1407_v7 = vpack.c.bf16 %v824_v0, %v824_v0  ;;  %v1374_v8 = vpack.c.bf16 %v659_v3, %v659_v3 }
 0x126   : > { %v1406_v9 = vpack.c.bf16 %v819_v4, %v819_v4  ;;  %1115 = vst.msk [vmem:[%s1795_s5 + $0x7c] sm:$0xf] %vm1083_vm1, %v1375_v5 }
 0x127   : > { %1147 = vst.msk [vmem:[%s1795_s5 + $0xfc] sm:$0xf] %vm1083_vm1, %v1407_v7  ;;  %1114 = vst.msk [vmem:[%s1795_s5 + $0x78] sm:$0xf] %vm1083_vm1, %v1374_v8 }
 0x128   : > { %1146 = vst.msk [vmem:[%s1795_s5 + $0xf8] sm:$0xf] %vm1083_vm1, %v1406_v9 }
 0x129 PF: > { %s13_s12 = sadd.s32 1, %s1606_s12  }
 0x12a   : > { %p10_p4 = scmp.ge.s32.totalorder %s13_s12, 4  }
 0x12c   :  { %12 = sbr.rel (!%p10_p4) target bundleno = 1 (0x1), region = 62 }

// kernel: structgnn_forward.17
= control target key start
LH: loop header
LB: loop body
LE: loop exit
PB: predicated region body
PF: predicated region fallthrough
CT: control target
= control target key end

     0   :  { %s599_s12 = smov 0   ;;  %s688_s0 = inlined_call_operand.vmem [shape: f32[128,32], index: 0, kind: input, shape index: {}]   ;;  %s689_s1 = inlined_call_operand.vmem [shape: f32[32,128], index: 1, kind: input, shape index: {}]   ;;  %s690_s2 = inlined_call_operand.vmem [shape: f32[1,128], index: 2, kind: input, shape index: {}]   ;;  %s691_s3 = inlined_call_operand.vmem [shape: f32[128,128], index: 3, kind: output, shape index: {}]  }
   0x1 LB: > { %s467_s13 = sadd.s32 4294967295, %s577_s12   ;;  %p471_p0 = scmp.ge.s32.totalorder %s577_s12, 1  ;;  %s577_s12 = sphi %s599_s12, %s13_s12  }
   0x2   : > { %p138_p1 = scmp.lt.s32.totalorder %s577_s12, 3 }
   0x4   : > { %p139_p2 = pnand %p471_p0, %p138_p1 }
   0x5   : > { %v182_v0 = vld [vmem:[%s689_s1] sm:$0xff] (!%p139_p2)  ;;  %v183_v1 = vld [vmem:[%s689_s1 + $0x8] sm:$0xff] (!%p139_p2)  ;;  %v184_v2 = vld [vmem:[%s689_s1 + $0x10] sm:$0xff] (!%p139_p2)  ;;  %s472_s20 = sshll.u32 (!%p139_p2), %s467_s13, 3  ;;  %vm193_vm0 = vcmask (!%p139_p2), 261120  }
   0x6   : > { %142 = sbr.rel (%p139_p2) target bundleno = 565 (0x235), region = 32  ;;  %v519_v3 = vpack.c.bf16 (!%p139_p2), %v183_v1, %v182_v0  ;;  %v185_v4 = vld [vmem:[%s689_s1 + $0x18] sm:$0xff] (!%p139_p2)  ;;  %p163_p3 = scmp.lt.s32.totalorder (!%p139_p2), %s472_s20, 15  ;;  %v476_v14 = vld [vmem:[%s690_s2] ss:$0 sm:$0xff] (!%p139_p2) }
   0x7   : > { %v523_v5 = vpack.c.bf16 (!%p139_p2), %v185_v4, %v184_v2 }
   0x8   : > { %520 = vmatprep.subr.bf16.mxu0 (!%p139_p2), %v519_v3  ;;  %527 = vmatprep.subr.bf16.mxu1 (!%p139_p2), %v519_v3 }
   0x9   : > { %522 = vmatpush3.bf16.msra.mxu0 (!%p139_p2), %v519_v3  ;;  %529 = vmatpush3.bf16.msra.mxu1 (!%p139_p2), %v519_v3 }
   0xa   : > { %524 = vmatprep.subr.bf16.mxu0 (!%p139_p2), %v523_v5  ;;  %528 = vmatprep.subr.bf16.mxu1 (!%p139_p2), %v523_v5 }
   0xd   : > { %s693_s20 = smov (!%p163_p3, %s472_s20), 15  ;;  %526 = vmatpush3.bf16.msra.mxu0 %v523_v5  ;;  %530 = vmatpush3.bf16.msra.mxu1 %v523_v5 }
   0xe   : > { %s473_s23 = sshll.u32 %s693_s20, 3 }
   0xf   : > { %s166_s26 = scalar_lea.vmem %s688_s0, %s473_s23  ;;  %s667_s4 = scalar_lea.vmem %s691_s3, %s473_s23 }
  0x10   : > { %v174_v6 = vld [vmem:[%s166_s26] sm:$0xff]  ;;  %v175_v8 = vld [vmem:[%s166_s26 + $0x8] sm:$0xff]  ;;  %v176_v10 = vld [vmem:[%s166_s26 + $0x10] sm:$0xff] }
  0x11   : > { %v178_v7 = vld [vmem:[%s166_s26 + $0x20] sm:$0xff]  ;;  %v179_v9 = vld [vmem:[%s166_s26 + $0x28] sm:$0xff]  ;;  %507 = vmatprep.mubr.msk.f32.mxu0 %vm193_vm0, %v174_v6  ;;  %v180_v11 = vld [vmem:[%s166_s26 + $0x30] sm:$0xff] }
  0x12   : > { %513 = vmatprep.mubr.msk.f32.mxu1 %vm193_vm0, %v178_v7  ;;  %508 = vmatmul.mubr.msk.f32.vlgmr.msra.gmra.mrb[0].mxu0 %vm193_vm0, %v175_v8  ;;  %v177_v12 = vld [vmem:[%s166_s26 + $0x18] sm:$0xff] }
  0x13   : > { %514 = vmatmul.mubr.msk.f32.vlgmr.msra.gmra.mrb[0].mxu1 %vm193_vm0, %v179_v9  ;;  %510 = vmatprep.mubr.msk.f32.mxu0 %vm193_vm0, %v176_v10  ;;  %v181_v13 = vld [vmem:[%s166_s26 + $0x38] sm:$0xff] }
  0x14   : > { %516 = vmatprep.mubr.msk.f32.mxu1 %vm193_vm0, %v180_v11 }
  0x16   : > { %511 = vmatmul.mubr.msk.f32.gmra.mrb[2].mxu0 %vm193_vm0, %v177_v12 }
  0x17   : > { %517 = vmatmul.mubr.msk.f32.gmra.mrb[2].mxu1 %vm193_vm0, %v181_v13 }
  0xe5   : > { %v509_v15 = vpop.f32.mrb[0].mxu0 }
  0xe6   : > { %v515_v16 = vpop.f32.mrb[0].mxu1  ;;  %v290_v17 = vadd.f32 %v509_v15, %v476_v14  ;;  %v284_v19 = vpop.f32.mrb[1].mxu0 }
  0xe7   : > { %v310_v18 = vadd.f32 %v515_v16, %v476_v14  ;;  %v304_v20 = vpop.f32.mrb[1].mxu1  ;;  %v285_v23 = vadd.f32 %v476_v14, %v284_v19 }
  0xe8   : > { %325 = vmax.xlane.f32.xlu0 %v290_v17  ;;  %v305_v28 = vadd.f32 %v476_v14, %v304_v20 }
  0xe9   : > { %333 = vmax.xlane.f32.xlu1 %v310_v18  ;;  %v512_v21 = vpop.f32.mrb[2].mxu0 }
  0xea   : > { %v518_v22 = vpop.f32.mrb[2].mxu1  ;;  %v300_v24 = vadd.f32 %v512_v21, %v476_v14  ;;  %v294_v25 = vpop.f32.mrb[3].mxu0 }
  0xeb   : > { %v314_v26 = vpop.f32.mrb[3].mxu1  ;;  %v295_v27 = vadd.f32 %v476_v14, %v294_v25  ;;  %v320_v29 = vadd.f32 %v518_v22, %v476_v14 }
  0xec   : > { %323 = vmax.xlane.f32.xlu0 %v285_v23  ;;  %v315_v30 = vadd.f32 %v476_v14, %v314_v26 }
  0xed   : > { %329 = vmax.xlane.f32.xlu1 %v300_v24 }
  0xf0   : > { %331 = vmax.xlane.f32.xlu0 %v305_v28 }
  0xf1   : > { %327 = vmax.xlane.f32.xlu1 %v295_v27 }
  0xf4   : > { %335 = vmax.xlane.f32.xlu0 %v315_v30 }
  0xf5   : > { %337 = vmax.xlane.f32.xlu1 %v320_v29 }
 0x175   : > { %v326_v32 = vpop.xlane.xlu0 %325 }
 0x176   : > { %v334_v31 = vpop.xlane.xlu1 %333  ;;  %v640_v34 = vsub.f32 %v290_v17, %v326_v32 }
 0x177   : > { %v638_v33 = vsub.f32 %v310_v18, %v334_v31 }
 0x178   : > { %v349_v35 = vmul.f32 1.442695, %v640_v34 }
 0x179   : > { %v324_v37 = vpop.xlane.xlu0 %323  ;;  %v357_v38 = vmul.f32 1.442695, %v638_v33 }
 0x17a   : > { %v330_v36 = vpop.xlane.xlu1 %329  ;;  %v646_v40 = vsub.f32 %v285_v23, %v324_v37  ;;  %539 = vpow2.f32 %v349_v35 }
 0x17b   : > { %v644_v39 = vsub.f32 %v300_v24, %v330_v36  ;;  %541 = vpow2.f32 %v357_v38 }
 0x17c   : > { %v347_v41 = vmul.f32 1.442695, %v646_v40 }
 0x17d   : > { %v332_v43 = vpop.xlane.xlu0 %331  ;;  %v353_v44 = vmul.f32 1.442695, %v644_v39 }
 0x17e   : > { %v328_v42 = vpop.xlane.xlu1 %327  ;;  %v650_v45 = vsub.f32 %v305_v28, %v332_v43  ;;  %543 = vpow2.f32 %v347_v41 }
 0x17f   : > { %v652_v46 = vsub.f32 %v295_v27, %v328_v42  ;;  %545 = vpow2.f32 %v353_v44 }
 0x180   : > { %v355_v47 = vmul.f32 1.442695, %v650_v45 }
 0x181   : > { %v336_v49 = vpop.xlane.xlu0 %335  ;;  %v351_v51 = vmul.f32 1.442695, %v652_v46 }
 0x182   : > { %v338_v48 = vpop.xlane.xlu1 %337  ;;  %547 = vpow2.f32 %v355_v47  ;;  %v658_v52 = vsub.f32 %v315_v30, %v336_v49 }
 0x183   : > { %v655_v50 = vsub.f32 %v320_v29, %v338_v48 }
 0x184   : > { %v540_v54 = vpop.eup %539  ;;  %v359_v55 = vmul.f32 1.442695, %v658_v52 }
 0x185   : > { %v361_v53 = vmul.f32 1.442695, %v655_v50  ;;  %365 = vadd.xlane.f32.xlu1 %v540_v54  ;;  %v542_v56 = vpop.eup %541 }
 0x187   : > { %549 = vpow2.f32 %v361_v53 }
 0x188   : > { %551 = vpow2.f32 %v351_v51  ;;  %v544_v57 = vpop.eup %543 }
 0x189   : > { %373 = vadd.xlane.f32.xlu1 %v542_v56  ;;  %363 = vadd.xlane.f32.xlu0 %v544_v57  ;;  %553 = vpow2.f32 %v359_v55  ;;  %v546_v58 = vpop.eup %545 }
 0x18c   : > { %v548_v59 = vpop.eup %547 }
 0x18d   : > { %369 = vadd.xlane.f32.xlu1 %v546_v58  ;;  %371 = vadd.xlane.f32.xlu0 %v548_v59 }
 0x191   : > { %v550_v60 = vpop.eup %549 }
 0x192   : > { %v552_v61 = vpop.eup %551  ;;  %377 = vadd.xlane.f32.xlu1 %v550_v60 }
 0x193   : > { %367 = vadd.xlane.f32.xlu0 %v552_v61  ;;  %v554_v62 = vpop.eup %553 }
 0x197   : > { %375 = vadd.xlane.f32.xlu0 %v554_v62 }
 0x212   : > { %v366_v63 = vpop.xlane.xlu1 %365 }
 0x213   : > { %555 = vlog2.f32 %v366_v63 }
 0x216   : > { %v374_v0 = vpop.xlane.xlu1 %373  ;;  %v364_v1 = vpop.xlane.xlu0 %363 }
 0x217   : > { %557 = vlog2.f32 %v374_v0 }
 0x218   : > { %559 = vlog2.f32 %v364_v1 }
 0x21a   : > { %v370_v2 = vpop.xlane.xlu1 %369  ;;  %v372_v3 = vpop.xlane.xlu0 %371 }
 0x21b   : > { %561 = vlog2.f32 %v370_v2 }
 0x21c   : > { %563 = vlog2.f32 %v372_v3 }
 0x21d   : > { %v556_v4 = vpop.eup %555 }
 0x21e   : > { %v382_v5 = vmul.f32 0.6931472, %v556_v4 }
 0x21f   : > { %v378_v6 = vpop.xlane.xlu1 %377 }
 0x220   : > { %v368_v7 = vpop.xlane.xlu0 %367  ;;  %565 = vlog2.f32 %v378_v6  ;;  %v396_v8 = vsub.f32 %v640_v34, %v382_v5 }
 0x221   : > { %567 = vlog2.f32 %v368_v7  ;;  %v558_v9 = vpop.eup %557 }
 0x222   : > { %v560_v10 = vpop.eup %559  ;;  %404 = vst [vmem:[%s667_s4 + $0x8] sm:$0xff] %v396_v8  ;;  %v390_v11 = vmul.f32 0.6931472, %v558_v9 }
 0x223   : > { %v380_v13 = vmul.f32 0.6931472, %v560_v10 }
 0x224   : > { %v376_v12 = vpop.xlane.xlu0 %375  ;;  %v400_v14 = vsub.f32 %v638_v33, %v390_v11 }
 0x225   : > { %569 = vlog2.f32 %v376_v12  ;;  %v562_v15 = vpop.eup %561  ;;  %v395_v16 = vsub.f32 %v646_v40, %v380_v13 }
 0x226   : > { %v564_v17 = vpop.eup %563  ;;  %408 = vst [vmem:[%s667_s4 + $0x28] sm:$0xff] %v400_v14  ;;  %v386_v18 = vmul.f32 0.6931472, %v562_v15 }
 0x227   : > { %403 = vst [vmem:[%s667_s4] sm:$0xff] %v395_v16  ;;  %v388_v19 = vmul.f32 0.6931472, %v564_v17 }
 0x228   : > { %v398_v20 = vsub.f32 %v644_v39, %v386_v18 }
 0x229   : > { %v399_v22 = vsub.f32 %v650_v45, %v388_v19 }
 0x22a   : > { %v566_v21 = vpop.eup %565  ;;  %406 = vst [vmem:[%s667_s4 + $0x18] sm:$0xff] %v398_v20 }
 0x22b   : > { %v568_v23 = vpop.eup %567  ;;  %v394_v24 = vmul.f32 0.6931472, %v566_v21  ;;  %407 = vst [vmem:[%s667_s4 + $0x20] sm:$0xff] %v399_v22 }
 0x22c   : > { %v384_v25 = vmul.f32 0.6931472, %v568_v23 }
 0x22d   : > { %v402_v26 = vsub.f32 %v655_v50, %v394_v24 }
 0x22e   : > { %v397_v28 = vsub.f32 %v652_v46, %v384_v25 }
 0x22f   : > { %v570_v27 = vpop.eup %569  ;;  %410 = vst [vmem:[%s667_s4 + $0x38] sm:$0xff] %v402_v26 }
 0x230   : > { %v392_v29 = vmul.f32 0.6931472, %v570_v27  ;;  %405 = vst [vmem:[%s667_s4 + $0x10] sm:$0xff] %v397_v28 }
 0x232   : > { %v401_v30 = vsub.f32 %v658_v52, %v392_v29 }
 0x234   : > { %409 = vst [vmem:[%s667_s4 + $0x30] sm:$0xff] %v401_v30 }
 0x235 PF: > { %s13_s12 = sadd.s32 1, %s577_s12  }
 0x236   : > { %p10_p4 = scmp.ge.s32.totalorder %s13_s12, 4  }
 0x238   :  { %12 = sbr.rel (!%p10_p4) target bundleno = 1 (0x1), region = 62 }

// kernel: structgnn_forward.11
= control target key start
LH: loop header
LB: loop body
LE: loop exit
PB: predicated region body
PF: predicated region fallthrough
CT: control target
= control target key end

     0   :  { %s8660_s0 = inlined_call_operand.vmem [shape: f32[128,32], index: 0, kind: input, shape index: {}]   ;;  %s8661_s1 = inlined_call_operand.vmem [shape: bf16[1024,32], index: 1, kind: input, shape index: {}]   ;;  %s8662_s2 = inlined_call_operand.vmem [shape: bf16[1024,32], index: 2, kind: input, shape index: {}]   ;;  %s8663_s3 = inlined_call_operand.vmem [shape: f32[128,8], index: 3, kind: input, shape index: {}]   ;;  %s8664_s4 = inlined_call_operand.vmem [shape: f32[128,1], index: 4, kind: input, shape index: {}]   ;;  %s8665_s5 = inlined_call_operand.vmem [shape: bf16[32,32], index: 5, kind: input, shape index: {}]   ;;  %s8666_s6 = inlined_call_operand.vmem [shape: bf16[32,32], index: 6, kind: input, shape index: {}]   ;;  %s8667_s7 = inlined_call_operand.vmem [shape: bf16[32,32], index: 7, kind: input, shape index: {}]   ;;  %s8668_s8 = inlined_call_operand.vmem [shape: f32[1,32], index: 8, kind: input, shape index: {}]   ;;  %s8669_s9 = inlined_call_operand.vmem [shape: bf16[32,32], index: 9, kind: input, shape index: {}]   ;;  %s8670_s10 = inlined_call_operand.vmem [shape: f32[1,32], index: 10, kind: input, shape index: {}]   ;;  %s8671_s11 = inlined_call_operand.vmem [shape: bf16[32,32], index: 11, kind: input, shape index: {}]   ;;  %s8672_s12 = inlined_call_operand.vmem [shape: f32[1,32], index: 12, kind: input, shape index: {}]   ;;  %s8673_s13 = inlined_call_operand.vmem [shape: f32[1,32], index: 13, kind: input, shape index: {}]   ;;  %s8674_s14 = inlined_call_operand.vmem [shape: f32[1,32], index: 14, kind: input, shape index: {}]   ;;  %s8675_s15 = inlined_call_operand.vmem [shape: bf16[32,128], index: 15, kind: input, shape index: {}]   ;;  %s8676_s16 = inlined_call_operand.vmem [shape: f32[1,128], index: 16, kind: input, shape index: {}]   ;;  %s8677_s17 = inlined_call_operand.vmem [shape: bf16[128,32], index: 17, kind: input, shape index: {}]   ;;  %s8678_s18 = inlined_call_operand.vmem [shape: f32[1,32], index: 18, kind: input, shape index: {}]   ;;  %s8679_s19 = inlined_call_operand.vmem [shape: f32[1,32], index: 19, kind: input, shape index: {}]   ;;  %s8680_s20 = inlined_call_operand.vmem [shape: f32[1,32], index: 20, kind: input, shape index: {}]   ;;  %s8681_s21 = inlined_call_operand.vmem [shape: f32[128,32], index: 21, kind: output, shape index: {}]  }
   0x1   :  { %8686 = sst [smem:[#allocation8_spill]] %s8660_s0 }
   0x2   :  { %8687 = sst [smem:[#allocation9_spill]] %s8661_s1 }
   0x3   :  { %8688 = sst [smem:[#allocation10_spill]] %s8662_s2  ;;  %s6973_s2 = smov 0  }
   0x4   :  { %8689 = sst [smem:[#allocation11_spill]] %s8663_s3 }
   0x5   :  { %8690 = sst [smem:[#allocation12_spill]] %s8664_s4 }
   0x6   :  { %8691 = sst [smem:[#allocation13_spill]] %s8665_s5 }
   0x7 LB: > { %s5888_s25 = sadd.s32 4294967295, %s6859_s2   ;;  %p5892_p0 = scmp.ge.s32.totalorder %s6859_s2, 1  ;;  %s6859_s2 = sphi %s6973_s2, %s31_s2  }
   0x8   : > { %p632_p1 = scmp.lt.s32.totalorder %s6859_s2, 3 }
   0xa   : > { %p633_p2 = pnand %p5892_p0, %p632_p1 }
   0xc   : > { %636 = sbr.rel (%p633_p2) target bundleno = 2121 (0x849), region = 104 }
  0x13   : > { %s8692_s3 = sld [smem:[#allocation13_spill]]  ;;  %s5893_s28 = sshll.u32 %s5888_s25, 3  ;;  %v6698_v2 = vld [vmem:[%s8667_s7] sm:$0xff]   ;;  %vm784_vm0 = vcmask 261120   ;;  %v6699_v6 = vld [vmem:[%s8667_s7 + $0x8] sm:$0xff]   ;;  %vm5000_vm1 = vcmask 1041409  }
  0x14   : > { %p713_p3 = scmp.lt.s32.totalorder %s5893_s28, 15  ;;  %s5895_s5 = sshll.u32 %s5888_s25, 6  ;;  %v6702_v17 = vld [vmem:[%s8666_s6] sm:$0xff]   ;;  %v6719_v20 = vld [vmem:[%s8666_s6 + $0x8] sm:$0xff]   ;;  %vm5002_vm2 = vcmask 1042434   ;;  %vm5004_vm3 = vcmask 1043459  }
  0x15   : > { %p719_p4 = scmp.lt.s32.totalorder %s5895_s5, 127  ;;  %s8693_s24 = sld [smem:[#allocation8_spill]]  ;;  %vm5006_vm4 = vcmask 1044484   ;;  %vm5008_vm5 = vcmask 1045509   ;;  %vm5010_vm6 = vcmask 1046534   ;;  %vm5012_vm7 = vcmask 1047559  }
  0x16   : > { %s8712_s28 = smov (!%p713_p3, %s5893_s28), 15  ;;  %s8694_s4 = sld [smem:[#allocation10_spill]] }
  0x17   : > { %s6990_s22 = sshll.u32 %s8712_s28, 3  ;;  %s8714_s5 = smov (!%p719_p4, %s5895_s5), 127 }
  0x18   : > { %s5896_s28 = sshll.u32 %s8714_s5, 2  ;;  %s8695_s0 = sld [smem:[#allocation9_spill]] }
  0x19   : > { %v6696_v0 = vld [vmem:[%s8692_s3] sm:$0xff]   ;;  %v6697_v1 = vld [vmem:[%s8692_s3 + $0x8] sm:$0xff]   ;;  %s8710_s23 = sld [smem:[#allocation12_spill]] }
  0x1a   : > { %6616 = vmatprep.subr.bf16.mxu1 %v6696_v0  ;;  %6296 = vmatprep.subr.bf16.mxu0 %v6696_v0 }
  0x1b   : > { %6618 = vmatpush3.bf16.msra.mxu1 %v6696_v0  ;;  %6297 = vmatpush3.bf16.msra.mxu0 %v6696_v0  ;;  %s6996_s26 = scalar_lea.vmem %s8693_s24, %s6990_s22 }
  0x1c   : > { %6617 = vmatprep.subr.bf16.mxu1 %v6697_v1  ;;  %6298 = vmatprep.subr.bf16.mxu0 %v6697_v1  ;;  %v753_v3 = vld [vmem:[%s6996_s26 + $0x20] sm:$0xff]  ;;  %v754_v4 = vld [vmem:[%s6996_s26 + $0x28] sm:$0xff]  ;;  %v755_v5 = vld [vmem:[%s6996_s26 + $0x30] sm:$0xff]  ;;  %s7018_s30 = scalar_lea.vmem %s8694_s4, %s5896_s28 }
  0x1d   : > { %v759_v7 = vpack.c.bf16 %v754_v4, %v753_v3  ;;  %v756_v8 = vld [vmem:[%s6996_s26 + $0x38] sm:$0xff]  ;;  %v749_v9 = vld [vmem:[%s6996_s26] sm:$0xff]  ;;  %v750_v10 = vld [vmem:[%s6996_s26 + $0x8] sm:$0xff] }
  0x1e   : > { %v760_v11 = vpack.c.bf16 %v756_v8, %v755_v5  ;;  %v757_v12 = vpack.c.bf16 %v750_v10, %v749_v9  ;;  %v751_v13 = vld [vmem:[%s6996_s26 + $0x10] sm:$0xff]  ;;  %v752_v14 = vld [vmem:[%s6996_s26 + $0x18] sm:$0xff]  ;;  %v6700_v16 = vld [vmem:[%s7018_s30] sm:$0xff]   ;;  %s7050_s4 = scalar_lea.vmem %s8695_s0, %s5896_s28  ;;  %v6861_v5 = vmov 1966171168   ;;  %s8696_s28 = sld [smem:[#allocation11_spill]] }
  0x1f   : > { %6619 = vmatpush3.bf16.msra.mxu1 %v6697_v1  ;;  %6299 = vmatpush3.bf16.msra.mxu0 %v6697_v1  ;;  %v758_v15 = vpack.c.bf16 %v752_v14, %v751_v13  ;;  %v6701_v18 = vld [vmem:[%s7018_s30 + $0x8] sm:$0xff]   ;;  %v6703_v19 = vld [vmem:[%s7018_s30 + $0x10] sm:$0xff]   ;;  %v6704_v21 = vld [vmem:[%s7018_s30 + $0x18] sm:$0xff]   ;;  %s740_s1 = scalar_lea.vmem %s8710_s23, %s6990_s22 }
  0x20   : > { %6308 = vmatprep.subr.bf16.mxu1 %v6698_v2  ;;  %6304 = vmatprep.mubr.msk.bf16.mxu1 %vm784_vm0, %v759_v7  ;;  %v6705_v22 = vld [vmem:[%s7018_s30 + $0x20] sm:$0xff]   ;;  %v6706_v23 = vld [vmem:[%s7018_s30 + $0x28] sm:$0xff]   ;;  %v6707_v24 = vld [vmem:[%s7018_s30 + $0x30] sm:$0xff]   ;;  %v2124_v7 = vlaneseq }
  0x21   : > { %6300 = vmatprep.mubr.msk.bf16.mxu0 %vm784_vm0, %v757_v12  ;;  %v6708_v25 = vld [vmem:[%s7018_s30 + $0x38] sm:$0xff]   ;;  %v6709_v26 = vld [vmem:[%s7018_s30 + $0x40] sm:$0xff]   ;;  %v6710_v27 = vld [vmem:[%s7018_s30 + $0x48] sm:$0xff]  }
  0x22   : > { %6305 = vmatmul.mubr.msk.bf16.vlgmr.msra.gmra.mrb[0].mxu1 %vm784_vm0, %v760_v11  ;;  %6301 = vmatmul.mubr.msk.bf16.vlgmr.msra.gmra.mrb[0].mxu0 %vm784_vm0, %v758_v15  ;;  %v6711_v28 = vld [vmem:[%s7018_s30 + $0x50] sm:$0xff]   ;;  %v6712_v29 = vld [vmem:[%s7018_s30 + $0x58] sm:$0xff]   ;;  %v6713_v30 = vld [vmem:[%s7018_s30 + $0x60] sm:$0xff]   ;;  %v7140_v11 = vshrl.u32 %v2124_v7, 7 }
  0x23   : > { %6309 = vmatpush3.bf16.msra.mxu1 %v6698_v2  ;;  %6312 = vmatprep.mubr.msk.bf16.mxu1 %vm784_vm0, %v6700_v16  ;;  %v6714_v31 = vld [vmem:[%s7018_s30 + $0x68] sm:$0xff]   ;;  %v6715_v32 = vld [vmem:[%s7018_s30 + $0x70] sm:$0xff]   ;;  %v6716_v33 = vld [vmem:[%s7018_s30 + $0x78] sm:$0xff]  }
  0x24   : > { %6310 = vmatprep.subr.bf16.mxu1 %v6699_v6  ;;  %v6717_v34 = vld [vmem:[%s7018_s30 + $0x80] sm:$0xff]   ;;  %v6718_v35 = vld [vmem:[%s7018_s30 + $0x88] sm:$0xff]   ;;  %v6720_v36 = vld [vmem:[%s7018_s30 + $0x90] sm:$0xff]  }
  0x25   : > { %v6721_v37 = vld [vmem:[%s7018_s30 + $0x98] sm:$0xff]   ;;  %v6722_v38 = vld [vmem:[%s7018_s30 + $0xa0] sm:$0xff]   ;;  %v6723_v39 = vld [vmem:[%s7018_s30 + $0xa8] sm:$0xff]  }
  0x26   : > { %v6724_v40 = vld [vmem:[%s7018_s30 + $0xb0] sm:$0xff]   ;;  %v6725_v41 = vld [vmem:[%s7018_s30 + $0xb8] sm:$0xff]   ;;  %v6726_v42 = vld [vmem:[%s7018_s30 + $0xc0] sm:$0xff]  }
  0x27   : > { %6311 = vmatpush3.bf16.msra.mxu1 %v6699_v6  ;;  %v6727_v43 = vld [vmem:[%s7018_s30 + $0xc8] sm:$0xff]   ;;  %v6728_v44 = vld [vmem:[%s7018_s30 + $0xd0] sm:$0xff]   ;;  %v6729_v45 = vld [vmem:[%s7018_s30 + $0xd8] sm:$0xff]   ;;  %v2122_v6 = vunpack.c.l.s4 %v6861_v5 }
  0x28   : > { %6376 = vmatprep.subr.bf16.mxu1 %v6702_v17  ;;  %v6730_v46 = vld [vmem:[%s7018_s30 + $0xe0] sm:$0xff]   ;;  %v6731_v47 = vld [vmem:[%s7018_s30 + $0xe8] sm:$0xff]   ;;  %v6732_v48 = vld [vmem:[%s7018_s30 + $0xf0] sm:$0xff]  }
  0x29   : > { %v6733_v49 = vld [vmem:[%s7018_s30 + $0xf8] sm:$0xff]   ;;  %v6734_v50 = vld [vmem:[%s7050_s4] sm:$0xff]   ;;  %v6735_v51 = vld [vmem:[%s7050_s4 + $0x8] sm:$0xff]   ;;  %v2123_v10 = vunpack.c.0.s8 %v2122_v6  ;;  %s7437_s30 = scalar_lea.vmem %s8696_s28, %s6990_s22 }
  0x2a   : > { %6313 = vmatmul.mubr.msk.bf16.vlgmr.msra.gmra.mrb[4].mxu1 %vm784_vm0, %v6701_v18  ;;  %v6736_v52 = vld [vmem:[%s7050_s4 + $0x10] sm:$0xff]   ;;  %v6737_v53 = vld [vmem:[%s7050_s4 + $0x18] sm:$0xff]   ;;  %v6738_v54 = vld [vmem:[%s7050_s4 + $0x20] sm:$0xff]  }
  0x2b   : > { %6377 = vmatpush3.bf16.msra.mxu1 %v6702_v17  ;;  %6316 = vmatprep.mubr.msk.bf16.mxu1 %vm784_vm0, %v6703_v19  ;;  %v6739_v55 = vld [vmem:[%s7050_s4 + $0x28] sm:$0xff]   ;;  %v6740_v56 = vld [vmem:[%s7050_s4 + $0x30] sm:$0xff]   ;;  %v6741_v57 = vld [vmem:[%s7050_s4 + $0x38] sm:$0xff]   ;;  %v7150_v13 = vsub.s32 %v2123_v10, %v7140_v11 }
  0x2c   : > { %6378 = vmatprep.subr.bf16.mxu1 %v6719_v20  ;;  %v6742_v58 = vld [vmem:[%s7050_s4 + $0x40] sm:$0xff]   ;;  %v6743_v59 = vld [vmem:[%s7050_s4 + $0x48] sm:$0xff]   ;;  %v6744_v60 = vld [vmem:[%s7050_s4 + $0x50] sm:$0xff]  }
  0x2d   : > { %v6745_v61 = vld [vmem:[%s7050_s4 + $0x58] sm:$0xff]   ;;  %v6746_v62 = vld [vmem:[%s7050_s4 + $0x60] sm:$0xff]   ;;  %v6747_v63 = vld [vmem:[%s7050_s4 + $0x68] sm:$0xff]  }
  0x2e   : > { %v6748_v0 = vld [vmem:[%s7050_s4 + $0x70] sm:$0xff]   ;;  %v6749_v1 = vld [vmem:[%s7050_s4 + $0x78] sm:$0xff]   ;;  %v6750_v2 = vld [vmem:[%s7050_s4 + $0x80] sm:$0xff]  }
  0x2f   : > { %6379 = vmatpush3.bf16.msra.mxu1 %v6719_v20  ;;  %v6751_v3 = vld [vmem:[%s7050_s4 + $0x88] sm:$0xff]   ;;  %v6752_v4 = vld [vmem:[%s7050_s4 + $0x90] sm:$0xff]   ;;  %v6753_v8 = vld [vmem:[%s7050_s4 + $0x98] sm:$0xff]  }
  0x30   : > { %v6754_v9 = vld [vmem:[%s7050_s4 + $0xa0] sm:$0xff]   ;;  %v6755_v17 = vld [vmem:[%s7050_s4 + $0xa8] sm:$0xff]   ;;  %v6765_v7 = vld [vmem:[%s7050_s4 + $0xf8] sm:$0xff]  }
  0x31   : > { %v7146_v12 = vld [vmem:[%s8668_s8] ss:$0 sm:$0xff] }
  0x32   : > { %6317 = vmatmul.mubr.msk.bf16.gmra.mrb[8].mxu1 %vm784_vm0, %v6704_v21  ;;  %v6756_v21 = vld [vmem:[%s7050_s4 + $0xb0] sm:$0xff]  }
  0x33   : > { %6320 = vmatprep.mubr.msk.bf16.mxu1 %vm784_vm0, %v6705_v22 }
  0x3a   : > { %6321 = vmatmul.mubr.msk.bf16.gmra.mrb[12].mxu1 %vm784_vm0, %v6706_v23 }
  0x3b   : > { %6324 = vmatprep.mubr.msk.bf16.mxu1 %vm784_vm0, %v6707_v24 }
  0x42   : > { %6325 = vmatmul.mubr.msk.bf16.gmra.mrb[16].mxu1 %vm784_vm0, %v6708_v25 }
  0x43   : > { %6328 = vmatprep.mubr.msk.bf16.mxu1 %vm784_vm0, %v6709_v26 }
  0x4a   : > { %6329 = vmatmul.mubr.msk.bf16.gmra.mrb[20].mxu1 %vm784_vm0, %v6710_v27 }
  0x4b   : > { %6332 = vmatprep.mubr.msk.bf16.mxu1 %vm784_vm0, %v6711_v28 }
  0x52   : > { %6333 = vmatmul.mubr.msk.bf16.gmra.mrb[24].mxu1 %vm784_vm0, %v6712_v29 }
  0x53   : > { %6336 = vmatprep.mubr.msk.bf16.mxu1 %vm784_vm0, %v6713_v30 }
  0x5a   : > { %6337 = vmatmul.mubr.msk.bf16.gmra.mrb[28].mxu1 %vm784_vm0, %v6714_v31 }
  0x5b   : > { %6340 = vmatprep.mubr.msk.bf16.mxu1 %vm784_vm0, %v6715_v32 }
  0x62   : > { %6341 = vmatmul.mubr.msk.bf16.gmra.mrb[32].mxu1 %vm784_vm0, %v6716_v33 }
  0x63   : > { %6344 = vmatprep.mubr.msk.bf16.mxu1 %vm784_vm0, %v6717_v34 }
  0x6a   : > { %6345 = vmatmul.mubr.msk.bf16.gmra.mrb[36].mxu1 %vm784_vm0, %v6718_v35 }
  0x6b   : > { %6348 = vmatprep.mubr.msk.bf16.mxu1 %vm784_vm0, %v6720_v36 }
  0x72   : > { %6349 = vmatmul.mubr.msk.bf16.gmra.mrb[40].mxu1 %vm784_vm0, %v6721_v37 }
  0x73   : > { %6352 = vmatprep.mubr.msk.bf16.mxu1 %vm784_vm0, %v6722_v38 }
  0x7a   : > { %6353 = vmatmul.mubr.msk.bf16.gmra.mrb[44].mxu1 %vm784_vm0, %v6723_v39 }
  0x7b   : > { %6356 = vmatprep.mubr.msk.bf16.mxu1 %vm784_vm0, %v6724_v40 }
  0x82   : > { %6357 = vmatmul.mubr.msk.bf16.gmra.mrb[48].mxu1 %vm784_vm0, %v6725_v41 }
  0x83   : > { %6360 = vmatprep.mubr.msk.bf16.mxu1 %vm784_vm0, %v6726_v42 }
  0x8a   : > { %6361 = vmatmul.mubr.msk.bf16.gmra.mrb[52].mxu1 %vm784_vm0, %v6727_v43 }
  0x8b   : > { %6364 = vmatprep.mubr.msk.bf16.mxu1 %vm784_vm0, %v6728_v44  ;;  %v6757_v44 = vld [vmem:[%s7050_s4 + $0xb8] sm:$0xff]  }
  0x92   : > { %6365 = vmatmul.mubr.msk.bf16.gmra.mrb[56].mxu1 %vm784_vm0, %v6729_v45  ;;  %v6758_v45 = vld [vmem:[%s7050_s4 + $0xc0] sm:$0xff]  }
  0x93   : > { %6368 = vmatprep.mubr.msk.bf16.mxu1 %vm784_vm0, %v6730_v46  ;;  %v6766_v46 = vld [vmem:[%s8669_s9] sm:$0xff]  }
  0x94   : > { %6444 = vmatprep.subr.bf16.mxu0 %v6766_v46 }
  0x95   : > { %6445 = vmatpush3.bf16.msra.mxu0 %v6766_v46 }
  0x9a   : > { %6369 = vmatmul.mubr.msk.bf16.gmra.mrb[60].mxu1 %vm784_vm0, %v6731_v47  ;;  %v6767_v47 = vld [vmem:[%s8669_s9 + $0x8] sm:$0xff]  }
  0x9b   : > { %6372 = vmatprep.mubr.msk.bf16.mxu1 %vm784_vm0, %v6732_v48  ;;  %6446 = vmatprep.subr.bf16.mxu0 %v6767_v47  ;;  %v6759_v48 = vld [vmem:[%s7050_s4 + $0xc8] sm:$0xff]  }
  0x9c   : > { %6447 = vmatpush3.bf16.msra.mxu0 %v6767_v47 }
  0xa2   : > { %6373 = vmatmul.mubr.msk.bf16.gmra.mrb[64].mxu1 %vm784_vm0, %v6733_v49  ;;  %v6760_v49 = vld [vmem:[%s7050_s4 + $0xd0] sm:$0xff]  }
  0xa3   : > { %6380 = vmatprep.mubr.msk.bf16.mxu1 %vm784_vm0, %v6734_v50  ;;  %v6761_v50 = vld [vmem:[%s7050_s4 + $0xd8] sm:$0xff]  }
  0xaa   : > { %6381 = vmatmul.mubr.msk.bf16.vlgmr.msra.gmra.mrb[4].mxu1 %vm784_vm0, %v6735_v51  ;;  %v6762_v51 = vld [vmem:[%s7050_s4 + $0xe0] sm:$0xff]  }
  0xab   : > { %6384 = vmatprep.mubr.msk.bf16.mxu1 %vm784_vm0, %v6736_v52 }
  0xb2   : > { %6385 = vmatmul.mubr.msk.bf16.gmra.mrb[8].mxu1 %vm784_vm0, %v6737_v53 }
  0xb3   : > { %6388 = vmatprep.mubr.msk.bf16.mxu1 %vm784_vm0, %v6738_v54 }
  0xba   : > { %6389 = vmatmul.mubr.msk.bf16.gmra.mrb[12].mxu1 %vm784_vm0, %v6739_v55 }
  0xbb   : > { %6392 = vmatprep.mubr.msk.bf16.mxu1 %vm784_vm0, %v6740_v56 }
  0xc2   : > { %6393 = vmatmul.mubr.msk.bf16.gmra.mrb[16].mxu1 %vm784_vm0, %v6741_v57 }
  0xc3   : > { %6396 = vmatprep.mubr.msk.bf16.mxu1 %vm784_vm0, %v6742_v58 }
  0xca   : > { %6397 = vmatmul.mubr.msk.bf16.gmra.mrb[20].mxu1 %vm784_vm0, %v6743_v59  ;;  %v6763_v59 = vld [vmem:[%s7050_s4 + $0xe8] sm:$0xff]  }
  0xcb   : > { %6400 = vmatprep.mubr.msk.bf16.mxu1 %vm784_vm0, %v6744_v60  ;;  %v6764_v60 = vld [vmem:[%s7050_s4 + $0xf0] sm:$0xff]   ;;  %s8624_s4 = scalar_lea.vmem %s8681_s21, %s6990_s22 }
  0xd2   : > { %6401 = vmatmul.mubr.msk.bf16.gmra.mrb[24].mxu1 %vm784_vm0, %v6745_v61 }
  0xd3   : > { %6404 = vmatprep.mubr.msk.bf16.mxu1 %vm784_vm0, %v6746_v62 }
  0xda   : > { %6405 = vmatmul.mubr.msk.bf16.gmra.mrb[28].mxu1 %vm784_vm0, %v6747_v63 }
  0xdb   : > { %6408 = vmatprep.mubr.msk.bf16.mxu1 %vm784_vm0, %v6748_v0 }
  0xe2   : > { %6409 = vmatmul.mubr.msk.bf16.gmra.mrb[32].mxu1 %vm784_vm0, %v6749_v1 }
  0xe3   : > { %6412 = vmatprep.mubr.msk.bf16.mxu1 %vm784_vm0, %v6750_v2 }
  0xea   : > { %6413 = vmatmul.mubr.msk.bf16.gmra.mrb[36].mxu1 %vm784_vm0, %v6751_v3 }
  0xeb   : > { %6416 = vmatprep.mubr.msk.bf16.mxu1 %vm784_vm0, %v6752_v4 }
  0xf2   : > { %6417 = vmatmul.mubr.msk.bf16.gmra.mrb[40].mxu1 %vm784_vm0, %v6753_v8 }
  0xf3   : > { %6420 = vmatprep.mubr.msk.bf16.mxu1 %vm784_vm0, %v6754_v9 }
  0xf5   : > { %v6306_v14 = vpop.f32.mrb[0].mxu1  ;;  %v7154_v18 = vpop.f32.mrb[0].mxu0 }
  0xf6   : > { %v856_v15 = vadd.f32 %v6306_v14, %v7146_v12  ;;  %v847_v16 = vpop.f32.mrb[1].mxu1  ;;  %v7158_v22 = vpop.f32.mrb[1].mxu0 }
  0xf7   : > { %v848_v19 = vadd.f32 %v7146_v12, %v847_v16  ;;  %v6307_v20 = vpop.f32.mrb[2].mxu1  ;;  %v7162_v27 = vpop.f32.mrb[2].mxu0  ;;  %v832_v14 = vadd.f32 %v7146_v12, %v7158_v22 }
  0xf8   : > { %v2414_v23 = vcombine.high %v856_v15, %v856_v15  ;;  %v2421_v24 = vrot.slane %v856_v15, %v7150_v13  ;;  %v859_v25 = vadd.f32 %v6307_v20, %v7146_v12  ;;  %v850_v26 = vpop.f32.mrb[3].mxu1  ;;  %v7166_v31 = vpop.f32.mrb[3].mxu0  ;;  %v6768_v15 = vld [vmem:[%s8671_s11] sm:$0xff]  }
  0xf9   : > { %v2316_v28 = vcombine.high %v848_v19, %v848_v19  ;;  %v2323_v29 = vrot.slane %v848_v19, %v7150_v13  ;;  %v851_v30 = vadd.f32 %v7146_v12, %v850_v26  ;;  %6512 = vmatprep.subr.bf16.mxu0 %v6768_v15  ;;  %v2127_v16 = vrot.slane %v832_v14, %v7150_v13 }
  0xfa   : > { %v2428_v32 = vrot.slane %v2414_v23, %v7150_v13  ;;  %v7170_v33 = vrot.slane %v2421_v24, %v7150_v13  ;;  %v2463_v34 = vcombine.high %v859_v25, %v859_v25  ;;  %6421 = vmatmul.mubr.msk.bf16.gmra.mrb[44].mxu1 %vm784_vm0, %v6755_v17  ;;  %v2470_v37 = vrot.slane %v859_v25, %v7150_v13 }
  0xfb   : > { %v2330_v35 = vrot.slane %v2316_v28, %v7150_v13  ;;  %v7175_v36 = vrot.slane %v2323_v29, %v7150_v13  ;;  %6424 = vmatprep.mubr.msk.bf16.mxu1 %vm784_vm0, %v6756_v21  ;;  %v2365_v39 = vcombine.high %v851_v30, %v851_v30  ;;  %v2372_v40 = vrot.slane %v851_v30, %v7150_v13 }
  0xfc   : > { %v2477_v38 = vrot.slane %v2463_v34, %v7150_v13  ;;  %v7182_v41 = vrot.slane %v2470_v37, %v7150_v13  ;;  %v2331_v52 = vcombine.high %v2323_v29, %v2323_v29  ;;  %v2429_v61 = vcombine.high %v2421_v24, %v2421_v24 }
  0xfd   : > { %v2379_v42 = vrot.slane %v2365_v39, %v7150_v13  ;;  %v7186_v43 = vrot.slane %v2372_v40, %v7150_v13  ;;  %v2332_v53 = vcombine.high %v2330_v35, %v2330_v35  ;;  %v2380_v54 = vcombine.high %v2372_v40, %v2372_v40 }
  0xfe   : > { %v7207_v55 = vrot.slane %v2331_v52, %v7150_v13  ;;  %v7210_v57 = vrot.slane %v2330_v35, %v7150_v13  ;;  %v2430_v0 = vcombine.high %v2428_v32, %v2428_v32  ;;  %v2478_v2 = vcombine.high %v2470_v37, %v2470_v37 }
  0xff   : > { %v2381_v56 = vcombine.high %v2379_v42, %v2379_v42  ;;  %v7213_v58 = vrot.slane %v2332_v53, %v7150_v13  ;;  %v7218_v62 = vrot.slane %v2380_v54, %v7150_v13  ;;  %v7221_v63 = vrot.slane %v2379_v42, %v7150_v13 }
 0x100   : > { %v2479_v3 = vcombine.high %v2477_v38, %v2477_v38  ;;  %v7229_v4 = vrot.slane %v2429_v61, %v7150_v13  ;;  %v7232_v5 = vrot.slane %v2428_v32, %v7150_v13  ;;  %v7235_v6 = vrot.slane %v2430_v0, %v7150_v13 }
 0x101   : > { %v7224_v1 = vrot.slane %v2381_v56, %v7150_v13  ;;  %v7239_v8 = vrot.slane %v2478_v2, %v7150_v13  ;;  %v7242_v9 = vrot.slane %v2477_v38, %v7150_v13  ;;  %v2135_v17 = vcombine.high %v2127_v16, %v2127_v16 }
 0x102   : > { %6425 = vmatmul.mubr.msk.bf16.gmra.mrb[48].mxu1 %vm784_vm0, %v6757_v44  ;;  %v7245_v10 = vrot.slane %v2479_v3, %v7150_v13  ;;  %v2120_v19 = vcombine.high %v832_v14, %v832_v14  ;;  %v2143_v20 = vrot.slane %v2127_v16, %v7150_v13  ;;  %v7258_v25 = vsub.s32 0, %v7140_v11 }
 0x103   : > { %6428 = vmatprep.mubr.msk.bf16.mxu1 %vm784_vm0, %v6758_v45  ;;  %v2157_v21 = vrot.slane %v2135_v17, %v7150_v13  ;;  %v835_v28 = vadd.f32 %v7146_v12, %v7166_v31 }
 0x104   : > { %v2134_v23 = vrot.slane %v2120_v19, %v7150_v13  ;;  %v2165_v24 = vcombine.high %v2143_v20, %v2143_v20  ;;  %v2515_v35 = vrot.slane %v2143_v20, %v7258_v25  ;;  %v6769_v20 = vld [vmem:[%s8671_s11 + $0x8] sm:$0xff]  }
 0x105   : > { %v2167_v22 = vcombine.high %v2157_v21, %v2157_v21  ;;  %v2176_v37 = vrot.slane %v835_v28, %v7150_v13  ;;  %v2519_v45 = vrot.slane %v2157_v21, %v7258_v25 }
 0x106   : > { %v2136_v26 = vcombine.high %v2134_v23, %v2134_v23  ;;  %v2523_v29 = vrot.slane %v2165_v24, %v7258_v25  ;;  %v2150_v32 = vrot.slane %v2134_v23, %v7150_v13 }
 0x107   : > { %v2527_v30 = vrot.slane %v2167_v22, %v7258_v25 }
 0x108   : > { %v2164_v40 = vrot.slane %v2136_v26, %v7150_v13  ;;  %v2166_v47 = vcombine.high %v2150_v32, %v2150_v32  ;;  %v2531_v3 = vrot.slane %v2150_v32, %v7258_v25 }
 0x10a   : > { %6429 = vmatmul.mubr.msk.bf16.gmra.mrb[52].mxu1 %vm784_vm0, %v6759_v48  ;;  %v2169_v48 = vcombine.high %v835_v28, %v835_v28  ;;  %v2168_v53 = vcombine.high %v2164_v40, %v2164_v40  ;;  %v2539_v61 = vrot.slane %v2166_v47, %v7258_v25  ;;  %v2535_v24 = vrot.slane %v2164_v40, %v7258_v25 }
 0x10b   : > { %6432 = vmatprep.mubr.msk.bf16.mxu1 %vm784_vm0, %v6760_v49 }
 0x10c   : > { %v2543_v17 = vrot.slane %v2168_v53, %v7258_v25 }
 0x112   : > { %6433 = vmatmul.mubr.msk.bf16.gmra.mrb[56].mxu1 %vm784_vm0, %v6761_v50  ;;  %v2184_v50 = vcombine.high %v2176_v37, %v2176_v37 }
 0x113   : > { %6436 = vmatprep.mubr.msk.bf16.mxu1 %vm784_vm0, %v6762_v51 }
 0x114   : > { %v2206_v19 = vrot.slane %v2184_v50, %v7150_v13 }
 0x11a   : > { %6437 = vmatmul.mubr.msk.bf16.gmra.mrb[60].mxu1 %vm784_vm0, %v6763_v59  ;;  %v2192_v59 = vrot.slane %v2176_v37, %v7150_v13  ;;  %v2216_v37 = vcombine.high %v2206_v19, %v2206_v19 }
 0x11b   : > { %6440 = vmatprep.mubr.msk.bf16.mxu1 %vm784_vm0, %v6764_v60 }
 0x11c   : > { %v2214_v28 = vcombine.high %v2192_v59, %v2192_v59 }
 0x11e   : > { %v2555_v40 = vrot.slane %v2214_v28, %v7258_v25 }
 0x122   : > { %6441 = vmatmul.mubr.msk.bf16.gmra.mrb[64].mxu1 %vm784_vm0, %v6765_v7  ;;  %v2183_v7 = vrot.slane %v2169_v48, %v7150_v13  ;;  %v2559_v48 = vrot.slane %v2216_v37, %v7258_v25 }
 0x124   : > { %v2185_v32 = vcombine.high %v2183_v7, %v2183_v7 }
 0x17d   : > { %v6382_v34 = vpop.f32.mrb[4].mxu1 }
 0x17e   : > { %v2834_v38 = vadd.f32 %v6382_v34, %v2523_v29  ;;  %v1857_v39 = vpop.f32.mrb[5].mxu1  ;;  %v840_v29 = vadd.f32 %v7154_v18, %v7146_v12 }
 0x17f   : > { %v2832_v42 = vadd.f32 %v2515_v35, %v1857_v39  ;;  %v6383_v44 = vpop.f32.mrb[6].mxu1 }
 0x180   : > { %v2835_v31 = vadd.f32 %v6383_v44, %v2527_v30  ;;  %v1860_v46 = vpop.f32.mrb[7].mxu1  ;;  %v2898_v51 = vmax.f32 %v2834_v38, 0.0  ;;  %v2199_v44 = vrot.slane %v2183_v7, %v7150_v13  ;;  %v2225_v18 = vrot.slane %v840_v29, %v7150_v13 }
 0x181   : > { %v2833_v49 = vadd.f32 %v2519_v45, %v1860_v46  ;;  %v2896_v54 = vmax.f32 %v2832_v42, 0.0  ;;  %v2547_v46 = vrot.slane %v2192_v59, %v7258_v25  ;;  %v2218_v59 = vcombine.high %v840_v29, %v840_v29 }
 0x182   : > { %v2899_v52 = vmax.f32 %v2835_v31, 0.0 }
 0x183   : > { %v2897_v56 = vmax.f32 %v2833_v49, 0.0  ;;  %v2213_v49 = vrot.slane %v2185_v32, %v7150_v13 }
 0x184   : > { %v2961_v60 = vpack.c.bf16 %v2899_v52, %v2898_v51  ;;  %v2551_v52 = vrot.slane %v2206_v19, %v7258_v25 }
 0x185   : > { %v2960_v0 = vpack.c.bf16 %v2897_v56, %v2896_v54  ;;  %v6386_v2 = vpop.f32.mrb[8].mxu1  ;;  %v2215_v56 = vcombine.high %v2199_v44, %v2199_v44 }
 0x186   : > { %v2838_v14 = vadd.f32 %v6386_v2, %v2539_v61  ;;  %v1873_v16 = vpop.f32.mrb[9].mxu1  ;;  %v2233_v61 = vcombine.high %v2225_v18, %v2225_v18 }
 0x187   : > { %v2836_v21 = vadd.f32 %v2531_v3, %v1873_v16  ;;  %v6387_v23 = vpop.f32.mrb[10].mxu1  ;;  %6448 = vmatprep.mubr.msk.bf16.mxu0 %vm784_vm0, %v2960_v0  ;;  %v2217_v3 = vcombine.high %v2213_v49, %v2213_v49  ;;  %v2241_v16 = vrot.slane %v2225_v18, %v7150_v13 }
 0x188   : > { %v2839_v22 = vadd.f32 %v6387_v23, %v2543_v17  ;;  %v1876_v26 = vpop.f32.mrb[11].mxu1  ;;  %6449 = vmatmul.mubr.msk.bf16.vlgmr.msra.gmra.mrb[4].mxu0 %vm784_vm0, %v2961_v60  ;;  %v2902_v34 = vmax.f32 %v2838_v14, 0.0  ;;  %v2563_v23 = vrot.slane %v2199_v44, %v7258_v25  ;;  %v2255_v29 = vrot.slane %v2233_v61, %v7150_v13 }
 0x189   : > { %v2837_v30 = vadd.f32 %v2535_v24, %v1876_v26  ;;  %6513 = vmatpush3.bf16.msra.mxu0 %v6768_v15  ;;  %v2900_v38 = vmax.f32 %v2836_v21, 0.0  ;;  %v2232_v24 = vrot.slane %v2218_v59, %v7150_v13  ;;  %v2575_v28 = vrot.slane %v2217_v3, %v7258_v25 }
 0x18a   : > { %v2903_v35 = vmax.f32 %v2839_v22, 0.0  ;;  %6514 = vmatprep.subr.bf16.mxu0 %v6769_v20 }
 0x18b   : > { %v2901_v39 = vmax.f32 %v2837_v30, 0.0 }
 0x18c   : > { %v2963_v42 = vpack.c.bf16 %v2903_v35, %v2902_v34  ;;  %v2567_v34 = vrot.slane %v2213_v49, %v7258_v25 }
 0x18d   : > { %v2962_v45 = vpack.c.bf16 %v2901_v39, %v2900_v38  ;;  %v6390_v31 = vpop.f32.mrb[12].mxu1  ;;  %6515 = vmatpush3.bf16.msra.mxu0 %v6769_v20  ;;  %v2571_v20 = vrot.slane %v2215_v56, %v7258_v25  ;;  %v2263_v38 = vcombine.high %v2241_v16, %v2241_v16  ;;  %v843_v39 = vadd.f32 %v7162_v27, %v7146_v12 }
 0x18e   : > { %v2842_v15 = vadd.f32 %v6390_v31, %v2555_v40  ;;  %v1889_v47 = vpop.f32.mrb[13].mxu1  ;;  %v2234_v40 = vcombine.high %v2232_v24, %v2232_v24  ;;  %v2265_v31 = vcombine.high %v2255_v29, %v2255_v29 }
 0x18f   : > { %v2840_v50 = vadd.f32 %v2547_v46, %v1889_v47  ;;  %v6391_v51 = vpop.f32.mrb[14].mxu1  ;;  %6452 = vmatprep.mubr.msk.bf16.mxu0 %vm784_vm0, %v2962_v45  ;;  %v2587_v47 = vrot.slane %v2263_v38, %v7258_v25  ;;  %v2267_v3 = vcombine.high %v843_v39, %v843_v39 }
 0x190   : > { %v2843_v53 = vadd.f32 %v6391_v51, %v2559_v48  ;;  %v1892_v54 = vpop.f32.mrb[15].mxu1  ;;  %6453 = vmatmul.mubr.msk.bf16.gmra.mrb[8].mxu0 %vm784_vm0, %v2963_v42  ;;  %v2906_v0 = vmax.f32 %v2842_v15, 0.0  ;;  %v2248_v48 = vrot.slane %v2232_v24, %v7150_v13  ;;  %v2579_v51 = vrot.slane %v2241_v16, %v7258_v25 }
 0x191   : > { %v2841_v60 = vadd.f32 %v2551_v52, %v1892_v54  ;;  %v2904_v7 = vmax.f32 %v2840_v50, 0.0  ;;  %v2274_v52 = vrot.slane %v843_v39, %v7150_v13  ;;  %v2591_v27 = vrot.slane %v2265_v31, %v7258_v25 }
 0x192   : > { %v2907_v2 = vmax.f32 %v2843_v53, 0.0  ;;  %v2262_v54 = vrot.slane %v2234_v40, %v7150_v13 }
 0x193   : > { %v2905_v14 = vmax.f32 %v2841_v60, 0.0  ;;  %v2583_v60 = vrot.slane %v2255_v29, %v7258_v25  ;;  %v2595_v29 = vrot.slane %v2248_v48, %v7258_v25 }
 0x194   : > { %v2965_v17 = vpack.c.bf16 %v2907_v2, %v2906_v0  ;;  %v2264_v2 = vcombine.high %v2248_v48, %v2248_v48 }
 0x195   : > { %v2964_v21 = vpack.c.bf16 %v2905_v14, %v2904_v7  ;;  %v6394_v19 = vpop.f32.mrb[16].mxu1  ;;  %v2282_v14 = vcombine.high %v2274_v52, %v2274_v52 }
 0x196   : > { %v2846_v22 = vadd.f32 %v6394_v19, %v2571_v20  ;;  %v1905_v26 = vpop.f32.mrb[17].mxu1  ;;  %v2266_v20 = vcombine.high %v2262_v54, %v2262_v54 }
 0x197   : > { %v2844_v30 = vadd.f32 %v2563_v23, %v1905_v26  ;;  %v6395_v32 = vpop.f32.mrb[18].mxu1  ;;  %6456 = vmatprep.mubr.msk.bf16.mxu0 %vm784_vm0, %v2964_v21  ;;  %v2290_v23 = vrot.slane %v2274_v52, %v7150_v13 }
 0x198   : > { %v2847_v35 = vadd.f32 %v6395_v32, %v2575_v28  ;;  %v1908_v37 = vpop.f32.mrb[19].mxu1  ;;  %6457 = vmatmul.mubr.msk.bf16.gmra.mrb[12].mxu0 %vm784_vm0, %v2965_v17  ;;  %v2910_v44 = vmax.f32 %v2846_v22, 0.0  ;;  %v2603_v22 = vrot.slane %v2264_v2, %v7258_v25 }
 0x199   : > { %v2845_v42 = vadd.f32 %v2567_v34, %v1908_v37  ;;  %v2908_v46 = vmax.f32 %v2844_v30, 0.0  ;;  %v2281_v30 = vrot.slane %v2267_v3, %v7150_v13  ;;  %v2304_v37 = vrot.slane %v2282_v14, %v7150_v13 }
 0x19a   : > { %v2911_v45 = vmax.f32 %v2847_v35, 0.0  ;;  %v2607_v35 = vrot.slane %v2266_v20, %v7258_v25 }
 0x19b   : > { %v2909_v18 = vmax.f32 %v2845_v42, 0.0  ;;  %v2599_v42 = vrot.slane %v2262_v54, %v7258_v25  ;;  %v2297_v52 = vrot.slane %v2281_v30, %v7150_v13  ;;  %v2615_v2 = vrot.slane %v2304_v37, %v7258_v25 }
 0x19c   : > { %v2967_v15 = vpack.c.bf16 %v2911_v45, %v2910_v44  ;;  %v2312_v45 = vcombine.high %v2290_v23, %v2290_v23 }
 0x19d   : > { %v2966_v49 = vpack.c.bf16 %v2909_v18, %v2908_v46  ;;  %v6398_v50 = vpop.f32.mrb[20].mxu1  ;;  %v2283_v46 = vcombine.high %v2281_v30, %v2281_v30  ;;  %v2313_v14 = vcombine.high %v2297_v52, %v2297_v52 }
 0x19e   : > { %v2850_v53 = vadd.f32 %v6398_v50, %v2587_v47  ;;  %v1921_v12 = vpop.f32.mrb[21].mxu1  ;;  %v2314_v47 = vcombine.high %v2304_v37, %v2304_v37 }
 0x19f   : > { %v2848_v56 = vadd.f32 %v2579_v51, %v1921_v12  ;;  %v6399_v59 = vpop.f32.mrb[22].mxu1  ;;  %6460 = vmatprep.mubr.msk.bf16.mxu0 %vm784_vm0, %v2966_v49  ;;  %v2619_v51 = vrot.slane %v2312_v45, %v7258_v25 }
 0x1a0   : > { %v2851_v61 = vadd.f32 %v6399_v59, %v2591_v27  ;;  %v1924_v0 = vpop.f32.mrb[23].mxu1  ;;  %6461 = vmatmul.mubr.msk.bf16.gmra.mrb[16].mxu0 %vm784_vm0, %v2967_v15  ;;  %v2914_v16 = vmax.f32 %v2850_v53, 0.0  ;;  %v2611_v27 = vrot.slane %v2290_v23, %v7258_v25  ;;  %v2623_v59 = vrot.slane %v2314_v47, %v7258_v25 }
 0x1a1   : > { %v2849_v7 = vadd.f32 %v2583_v60, %v1924_v0  ;;  %v2912_v21 = vmax.f32 %v2848_v56, 0.0  ;;  %v2311_v60 = vrot.slane %v2283_v46, %v7150_v13  ;;  %v2635_v13 = vrot.slane %v2313_v14, %v7258_v25 }
 0x1a2   : > { %v2915_v17 = vmax.f32 %v2851_v61, 0.0 }
 0x1a3   : > { %v2913_v19 = vmax.f32 %v2849_v7, 0.0  ;;  %v2631_v37 = vrot.slane %v2311_v60, %v7258_v25 }
 0x1a4   : > { %v2969_v24 = vpack.c.bf16 %v2915_v17, %v2914_v16 }
 0x1a5   : > { %v2968_v26 = vpack.c.bf16 %v2913_v19, %v2912_v21  ;;  %v6402_v28 = vpop.f32.mrb[24].mxu1  ;;  %v2315_v21 = vcombine.high %v2311_v60, %v2311_v60  ;;  %v2362_v60 = vcombine.high %v7210_v57, %v7210_v57 }
 0x1a6   : > { %v2854_v32 = vadd.f32 %v6402_v28, %v2603_v22  ;;  %v1937_v34 = vpop.f32.mrb[25].mxu1  ;;  %v2627_v28 = vrot.slane %v2297_v52, %v7258_v25 }
 0x1a7   : > { %v2852_v38 = vadd.f32 %v2595_v29, %v1937_v34  ;;  %v6403_v39 = vpop.f32.mrb[26].mxu1  ;;  %6464 = vmatprep.mubr.msk.bf16.mxu0 %vm784_vm0, %v2968_v26 }
 0x1a8   : > { %v2855_v40 = vadd.f32 %v6403_v39, %v2607_v35  ;;  %v1940_v44 = vpop.f32.mrb[27].mxu1  ;;  %6465 = vmatmul.mubr.msk.bf16.gmra.mrb[20].mxu0 %vm784_vm0, %v2969_v24  ;;  %v2918_v18 = vmax.f32 %v2854_v32, 0.0  ;;  %v2639_v32 = vrot.slane %v2315_v21, %v7258_v25 }
 0x1a9   : > { %v2853_v31 = vadd.f32 %v2599_v42, %v1940_v44  ;;  %v2916_v48 = vmax.f32 %v2852_v38, 0.0  ;;  %v2361_v42 = vcombine.high %v7175_v36, %v7175_v36 }
 0x1aa   : > { %v2919_v15 = vmax.f32 %v2855_v40, 0.0 }
 0x1ab   : > { %v2917_v49 = vmax.f32 %v2853_v31, 0.0  ;;  %v2363_v31 = vcombine.high %v7207_v55, %v7207_v55  ;;  %v2651_v47 = vrot.slane %v2361_v42, %v7258_v25 }
 0x1ac   : > { %v2971_v50 = vpack.c.bf16 %v2919_v15, %v2918_v18 }
 0x1ad   : > { %v2970_v53 = vpack.c.bf16 %v2917_v49, %v2916_v48  ;;  %v6406_v12 = vpop.f32.mrb[28].mxu1 }
 0x1ae   : > { %v2858_v54 = vadd.f32 %v6406_v12, %v2619_v51  ;;  %v1953_v56 = vpop.f32.mrb[29].mxu1 }
 0x1af   : > { %v2856_v61 = vadd.f32 %v2611_v27, %v1953_v56  ;;  %v6407_v0 = vpop.f32.mrb[30].mxu1  ;;  %6468 = vmatprep.mubr.msk.bf16.mxu0 %vm784_vm0, %v2970_v53  ;;  %v2655_v53 = vrot.slane %v2363_v31, %v7258_v25 }
 0x1b0   : > { %v2859_v3 = vadd.f32 %v6407_v0, %v2623_v59  ;;  %v1956_v7 = vpop.f32.mrb[31].mxu1  ;;  %6469 = vmatmul.mubr.msk.bf16.gmra.mrb[24].mxu0 %vm784_vm0, %v2971_v50  ;;  %v2922_v17 = vmax.f32 %v2858_v54, 0.0  ;;  %v2643_v50 = vrot.slane %v7175_v36, %v7258_v25  ;;  %v2647_v54 = vrot.slane %v7207_v55, %v7258_v25 }
 0x1b1   : > { %v2857_v16 = vadd.f32 %v2615_v2, %v1956_v7  ;;  %v2920_v19 = vmax.f32 %v2856_v61, 0.0  ;;  %v2364_v2 = vcombine.high %v7213_v58, %v7213_v58 }
 0x1b2   : > { %v2923_v20 = vmax.f32 %v2859_v3, 0.0 }
 0x1b3   : > { %v2921_v23 = vmax.f32 %v2857_v16, 0.0  ;;  %v2667_v16 = vrot.slane %v2362_v60, %v7258_v25 }
 0x1b4   : > { %v2973_v24 = vpack.c.bf16 %v2923_v20, %v2922_v17  ;;  %v2659_v20 = vrot.slane %v7210_v57, %v7258_v25 }
 0x1b5   : > { %v2972_v22 = vpack.c.bf16 %v2921_v23, %v2920_v19  ;;  %v6410_v26 = vpop.f32.mrb[32].mxu1  ;;  %v2671_v23 = vrot.slane %v2364_v2, %v7258_v25 }
 0x1b6   : > { %v2862_v29 = vadd.f32 %v6410_v26, %v2635_v13  ;;  %v1969_v30 = vpop.f32.mrb[33].mxu1 }
 0x1b7   : > { %v2860_v34 = vadd.f32 %v2627_v28, %v1969_v30  ;;  %v6411_v35 = vpop.f32.mrb[34].mxu1  ;;  %6472 = vmatprep.mubr.msk.bf16.mxu0 %vm784_vm0, %v2972_v22  ;;  %v2663_v22 = vrot.slane %v7213_v58, %v7258_v25 }
 0x1b8   : > { %v2863_v38 = vadd.f32 %v6411_v35, %v2639_v32  ;;  %v1972_v39 = vpop.f32.mrb[35].mxu1  ;;  %6473 = vmatmul.mubr.msk.bf16.gmra.mrb[28].mxu0 %vm784_vm0, %v2973_v24  ;;  %v2926_v44 = vmax.f32 %v2862_v29, 0.0  ;;  %v2410_v29 = vcombine.high %v7186_v43, %v7186_v43 }
 0x1b9   : > { %v2861_v40 = vadd.f32 %v2631_v37, %v1972_v39  ;;  %v2924_v46 = vmax.f32 %v2860_v34, 0.0  ;;  %v2412_v34 = vcombine.high %v7218_v62, %v7218_v62 }
 0x1ba   : > { %v2927_v45 = vmax.f32 %v2863_v38, 0.0  ;;  %v2683_v39 = vrot.slane %v2410_v29, %v7258_v25 }
 0x1bb   : > { %v2925_v18 = vmax.f32 %v2861_v40, 0.0  ;;  %v2675_v40 = vrot.slane %v7186_v43, %v7258_v25  ;;  %v2687_v31 = vrot.slane %v2412_v34, %v7258_v25 }
 0x1bc   : > { %v2975_v15 = vpack.c.bf16 %v2927_v45, %v2926_v44 }
 0x1bd   : > { %v2974_v48 = vpack.c.bf16 %v2925_v18, %v2924_v46  ;;  %v6414_v49 = vpop.f32.mrb[36].mxu1 }
 0x1be   : > { %v2866_v51 = vadd.f32 %v6414_v49, %v2651_v47  ;;  %v1985_v52 = vpop.f32.mrb[37].mxu1  ;;  %v2411_v49 = vcombine.high %v7221_v63, %v7221_v63 }
 0x1bf   : > { %v2864_v12 = vadd.f32 %v2643_v50, %v1985_v52  ;;  %v6415_v27 = vpop.f32.mrb[38].mxu1  ;;  %6476 = vmatprep.mubr.msk.bf16.mxu0 %vm784_vm0, %v2974_v48  ;;  %v2413_v52 = vcombine.high %v7224_v1, %v7224_v1 }
 0x1c0   : > { %v2867_v56 = vadd.f32 %v6415_v27, %v2655_v53  ;;  %v1988_v59 = vpop.f32.mrb[39].mxu1  ;;  %6477 = vmatmul.mubr.msk.bf16.gmra.mrb[32].mxu0 %vm784_vm0, %v2975_v15  ;;  %v2930_v36 = vmax.f32 %v2866_v51, 0.0  ;;  %v2679_v15 = vrot.slane %v7218_v62, %v7258_v25 }
 0x1c1   : > { %v2865_v61 = vadd.f32 %v2647_v54, %v1988_v59  ;;  %v2928_v3 = vmax.f32 %v2864_v12, 0.0  ;;  %v2699_v54 = vrot.slane %v2411_v49, %v7258_v25  ;;  %v2691_v59 = vrot.slane %v7221_v63, %v7258_v25 }
 0x1c2   : > { %v2931_v0 = vmax.f32 %v2867_v56, 0.0 }
 0x1c3   : > { %v2929_v7 = vmax.f32 %v2865_v61, 0.0 }
 0x1c4   : > { %v2977_v14 = vpack.c.bf16 %v2931_v0, %v2930_v36  ;;  %v2703_v36 = vrot.slane %v2413_v52, %v7258_v25  ;;  %v2508_v52 = vcombine.high %v7182_v41, %v7182_v41 }
 0x1c5   : > { %v2976_v17 = vpack.c.bf16 %v2929_v7, %v2928_v3  ;;  %v6418_v55 = vpop.f32.mrb[40].mxu1  ;;  %v2695_v3 = vrot.slane %v7224_v1, %v7258_v25 }
 0x1c6   : > { %v2870_v21 = vadd.f32 %v6418_v55, %v2667_v16  ;;  %v2001_v19 = vpop.f32.mrb[41].mxu1  ;;  %v2459_v16 = vcombine.high %v7170_v33, %v7170_v33 }
 0x1c7   : > { %v2868_v24 = vadd.f32 %v2659_v20, %v2001_v19  ;;  %v6419_v13 = vpop.f32.mrb[42].mxu1  ;;  %6480 = vmatprep.mubr.msk.bf16.mxu0 %vm784_vm0, %v2976_v17  ;;  %v2461_v20 = vcombine.high %v7229_v4, %v7229_v4 }
 0x1c8   : > { %v2871_v26 = vadd.f32 %v6419_v13, %v2671_v23  ;;  %v2004_v28 = vpop.f32.mrb[43].mxu1  ;;  %6481 = vmatmul.mubr.msk.bf16.gmra.mrb[36].mxu0 %vm784_vm0, %v2977_v14  ;;  %v2934_v57 = vmax.f32 %v2870_v21, 0.0 }
 0x1c9   : > { %v2869_v30 = vadd.f32 %v2663_v22, %v2004_v28  ;;  %v2932_v35 = vmax.f32 %v2868_v24, 0.0  ;;  %v2715_v24 = vrot.slane %v2459_v16, %v7258_v25  ;;  %v2707_v22 = vrot.slane %v7170_v33, %v7258_v25 }
 0x1ca   : > { %v2935_v32 = vmax.f32 %v2871_v26, 0.0  ;;  %v2719_v29 = vrot.slane %v2461_v20, %v7258_v25 }
 0x1cb   : > { %v2933_v37 = vmax.f32 %v2869_v30, 0.0 }
 0x1cc   : > { %v2979_v38 = vpack.c.bf16 %v2935_v32, %v2934_v57  ;;  %v2711_v32 = vrot.slane %v7229_v4, %v7258_v25 }
 0x1cd   : > { %v2978_v42 = vpack.c.bf16 %v2933_v37, %v2932_v35  ;;  %v6422_v58 = vpop.f32.mrb[44].mxu1  ;;  %v2460_v37 = vcombine.high %v7232_v5, %v7232_v5 }
 0x1ce   : > { %v2874_v44 = vadd.f32 %v6422_v58, %v2683_v39  ;;  %v2017_v45 = vpop.f32.mrb[45].mxu1 }
 0x1cf   : > { %v2872_v46 = vadd.f32 %v2675_v40, %v2017_v45  ;;  %v6423_v18 = vpop.f32.mrb[46].mxu1  ;;  %6484 = vmatprep.mubr.msk.bf16.mxu0 %vm784_vm0, %v2978_v42  ;;  %v2462_v42 = vcombine.high %v7235_v6, %v7235_v6  ;;  %v2731_v45 = vrot.slane %v2460_v37, %v7258_v25 }
 0x1d0   : > { %v2875_v47 = vadd.f32 %v6423_v18, %v2687_v31  ;;  %v2020_v48 = vpop.f32.mrb[47].mxu1  ;;  %6485 = vmatmul.mubr.msk.bf16.gmra.mrb[40].mxu0 %vm784_vm0, %v2979_v38  ;;  %v2938_v43 = vmax.f32 %v2874_v44, 0.0 }
 0x1d1   : > { %v2873_v50 = vadd.f32 %v2679_v15, %v2020_v48  ;;  %v2936_v53 = vmax.f32 %v2872_v46, 0.0  ;;  %v2723_v46 = vrot.slane %v7232_v5, %v7258_v25 }
 0x1d2   : > { %v2939_v51 = vmax.f32 %v2875_v47, 0.0  ;;  %v2735_v47 = vrot.slane %v2462_v42, %v7258_v25 }
 0x1d3   : > { %v2937_v12 = vmax.f32 %v2873_v50, 0.0  ;;  %v2727_v50 = vrot.slane %v7235_v6, %v7258_v25 }
 0x1d4   : > { %v2981_v27 = vpack.c.bf16 %v2939_v51, %v2938_v43 }
 0x1d5   : > { %v2980_v56 = vpack.c.bf16 %v2937_v12, %v2936_v53  ;;  %v6426_v62 = vpop.f32.mrb[48].mxu1 }
 0x1d6   : > { %v2878_v60 = vadd.f32 %v6426_v62, %v2699_v54  ;;  %v2033_v61 = vpop.f32.mrb[49].mxu1 }
 0x1d7   : > { %v2876_v0 = vadd.f32 %v2691_v59, %v2033_v61  ;;  %v6427_v2 = vpop.f32.mrb[50].mxu1  ;;  %6488 = vmatprep.mubr.msk.bf16.mxu0 %vm784_vm0, %v2980_v56  ;;  %v2747_v59 = vrot.slane %v2508_v52, %v7258_v25  ;;  %v2739_v61 = vrot.slane %v7182_v41, %v7258_v25 }
 0x1d8   : > { %v2879_v7 = vadd.f32 %v6427_v2, %v2703_v36  ;;  %v2036_v14 = vpop.f32.mrb[51].mxu1  ;;  %6489 = vmatmul.mubr.msk.bf16.gmra.mrb[44].mxu0 %vm784_vm0, %v2981_v27  ;;  %v2942_v63 = vmax.f32 %v2878_v60, 0.0  ;;  %v2510_v27 = vcombine.high %v7239_v8, %v7239_v8 }
 0x1d9   : > { %v2877_v17 = vadd.f32 %v2695_v3, %v2036_v14  ;;  %v2940_v21 = vmax.f32 %v2876_v0, 0.0  ;;  %v2743_v14 = vrot.slane %v7239_v8, %v7258_v25 }
 0x1da   : > { %v2943_v55 = vmax.f32 %v2879_v7, 0.0  ;;  %v2751_v2 = vrot.slane %v2510_v27, %v7258_v25 }
 0x1db   : > { %v2941_v19 = vmax.f32 %v2877_v17, 0.0 }
 0x1dc   : > { %v2983_v23 = vpack.c.bf16 %v2943_v55, %v2942_v63  ;;  %v2509_v63 = vcombine.high %v7242_v9, %v7242_v9 }
 0x1dd   : > { %v2982_v13 = vpack.c.bf16 %v2941_v19, %v2940_v21  ;;  %v6430_v1 = vpop.f32.mrb[52].mxu1  ;;  %v2511_v21 = vcombine.high %v7245_v10, %v7245_v10 }
 0x1de   : > { %v2882_v26 = vadd.f32 %v6430_v1, %v2715_v24  ;;  %v2049_v28 = vpop.f32.mrb[53].mxu1 }
 0x1df   : > { %v2880_v30 = vadd.f32 %v2707_v22, %v2049_v28  ;;  %v6431_v57 = vpop.f32.mrb[54].mxu1  ;;  %6492 = vmatprep.mubr.msk.bf16.mxu0 %vm784_vm0, %v2982_v13  ;;  %v2763_v13 = vrot.slane %v2509_v63, %v7258_v25  ;;  %v2755_v22 = vrot.slane %v7242_v9, %v7258_v25  ;;  %v7513_v63 = vld [vmem:[%s8670_s10] ss:$0 sm:$0xff] }
 0x1e0   : > { %v2883_v34 = vadd.f32 %v6431_v57, %v2719_v29  ;;  %v2052_v35 = vpop.f32.mrb[55].mxu1  ;;  %6493 = vmatmul.mubr.msk.bf16.gmra.mrb[48].mxu0 %vm784_vm0, %v2983_v23  ;;  %v2946_v33 = vmax.f32 %v2882_v26, 0.0  ;;  %v2767_v29 = vrot.slane %v2511_v21, %v7258_v25 }
 0x1e1   : > { %v2881_v38 = vadd.f32 %v2711_v32, %v2052_v35  ;;  %v2944_v58 = vmax.f32 %v2880_v30, 0.0  ;;  %v2759_v32 = vrot.slane %v7245_v10, %v7258_v25  ;;  %v3904_v10 = vld [vmem:[%s7437_s30] sm:$0xff] }
 0x1e2   : > { %v2947_v39 = vmax.f32 %v2883_v34, 0.0 }
 0x1e3   : > { %v2945_v40 = vmax.f32 %v2881_v38, 0.0 }
 0x1e4   : > { %v2985_v44 = vpack.c.bf16 %v2947_v39, %v2946_v33 }
 0x1e5   : > { %v2984_v31 = vpack.c.bf16 %v2945_v40, %v2944_v58  ;;  %v6434_v4 = vpop.f32.mrb[56].mxu1  ;;  %v7441_v40 = vsub.s32 1, %v7140_v11 }
 0x1e6   : > { %v2886_v18 = vadd.f32 %v6434_v4, %v2731_v45  ;;  %v2065_v15 = vpop.f32.mrb[57].mxu1  ;;  %v7449_v4 = vld [vmem:[%s7437_s30 + $0x10] sm:$0xff] }
 0x1e7   : > { %v2884_v48 = vadd.f32 %v2723_v46, %v2065_v15  ;;  %v6435_v49 = vpop.f32.mrb[58].mxu1  ;;  %6496 = vmatprep.mubr.msk.bf16.mxu0 %vm784_vm0, %v2984_v31  ;;  %v3922_v45 = vrot.slane %v3904_v10, %v7441_v40  ;;  %v7446_v31 = vsub.s32 2, %v7140_v11  ;;  %v7455_v15 = vld [vmem:[%s7437_s30 + $0x8] sm:$0xff] }
 0x1e8   : > { %v2887_v43 = vadd.f32 %v6435_v49, %v2735_v47  ;;  %v2068_v51 = vpop.f32.mrb[59].mxu1  ;;  %6497 = vmatmul.mubr.msk.bf16.gmra.mrb[52].mxu0 %vm784_vm0, %v2985_v44  ;;  %v2950_v5 = vmax.f32 %v2886_v18, 0.0  ;;  %v3915_v44 = vrot.slane %v3904_v10, %v7258_v25  ;;  %v4027_v18 = vrot.slane %v7449_v4, %v7258_v25  ;;  %v7458_v47 = vld [vmem:[%s7437_s30 + $0x18] sm:$0xff] }
 0x1e9   : > { %v2885_v53 = vadd.f32 %v2727_v50, %v2068_v51  ;;  %v2948_v54 = vmax.f32 %v2884_v48, 0.0  ;;  %v3929_v46 = vrot.slane %v3904_v10, %v7446_v31  ;;  %v7461_v48 = vsub.s32 3, %v7140_v11 }
 0x1ea   : > { %v2951_v12 = vmax.f32 %v2887_v43, 0.0  ;;  %3917 = vbcast.lane.b32.xlu0 %v3915_v44, 256  ;;  %v3971_v49 = vrot.slane %v7455_v15, %v7258_v25  ;;  %v4083_v50 = vrot.slane %v7458_v47, %v7258_v25  ;;  %v3978_v43 = vrot.slane %v7455_v15, %v7441_v40 }
 0x1eb   : > { %v2949_v56 = vmax.f32 %v2885_v53, 0.0  ;;  %v3936_v51 = vrot.slane %v3904_v10, %v7461_v48  ;;  %v3985_v52 = vrot.slane %v7455_v15, %v7446_v31  ;;  %v4041_v53 = vrot.slane %v7449_v4, %v7446_v31 }
 0x1ec   : > { %v2987_v62 = vpack.c.bf16 %v2951_v12, %v2950_v5  ;;  %3973 = vbcast.lane.b32.xlu1 %v3971_v49, 256  ;;  %v7475_v5 = vsub.s32 4, %v7140_v11  ;;  %v4034_v12 = vrot.slane %v7449_v4, %v7441_v40 }
 0x1ed   : > { %v2986_v60 = vpack.c.bf16 %v2949_v56, %v2948_v54  ;;  %v6438_v6 = vpop.f32.mrb[60].mxu1  ;;  %v4090_v54 = vrot.slane %v7458_v47, %v7441_v40  ;;  %v4048_v56 = vrot.slane %v7449_v4, %v7461_v48 }
 0x1ee   : > { %v2890_v36 = vadd.f32 %v6438_v6, %v2747_v59  ;;  %v2081_v0 = vpop.f32.mrb[61].mxu1  ;;  %3924 = vbcast.lane.b32.xlu0 %v3922_v45, 256  ;;  %v3943_v27 = vrot.slane %v3904_v10, %v7475_v5  ;;  %v3992_v59 = vrot.slane %v7455_v15, %v7461_v48  ;;  %v4097_v6 = vrot.slane %v7458_v47, %v7446_v31 }
 0x1ef   : > { %v2888_v3 = vadd.f32 %v2739_v61, %v2081_v0  ;;  %v6439_v7 = vpop.f32.mrb[62].mxu1  ;;  %6500 = vmatprep.mubr.msk.bf16.mxu0 %vm784_vm0, %v2986_v60  ;;  %v4055_v61 = vrot.slane %v7449_v4, %v7475_v5  ;;  %v3999_v0 = vrot.slane %v7455_v15, %v7475_v5 }
 0x1f0   : > { %v2891_v16 = vadd.f32 %v6439_v7, %v2751_v2  ;;  %v2084_v17 = vpop.f32.mrb[63].mxu1  ;;  %6501 = vmatmul.mubr.msk.bf16.gmra.mrb[56].mxu0 %vm784_vm0, %v2987_v62  ;;  %v2954_v41 = vmax.f32 %v2890_v36, 0.0  ;;  %3980 = vbcast.lane.b32.xlu1 %v3978_v43, 256  ;;  %v7485_v62 = vsub.s32 5, %v7140_v11  ;;  %v7495_v36 = vsub.s32 6, %v7140_v11 }
 0x1f1   : > { %v2889_v55 = vadd.f32 %v2743_v14, %v2084_v17  ;;  %v2952_v19 = vmax.f32 %v2888_v3, 0.0  ;;  %v4104_v3 = vrot.slane %v7458_v47, %v7461_v48  ;;  %v7505_v14 = vsub.s32 7, %v7140_v11 }
 0x1f2   : > { %v2955_v20 = vmax.f32 %v2891_v16, 0.0  ;;  %3931 = vbcast.lane.b32.xlu0 %v3929_v46, 256  ;;  %v3950_v60 = vrot.slane %v3904_v10, %v7485_v62  ;;  %v3957_v2 = vrot.slane %v3904_v10, %v7495_v36  ;;  %v4062_v7 = vrot.slane %v7449_v4, %v7485_v62 }
 0x1f3   : > { %v2953_v23 = vmax.f32 %v2889_v55, 0.0  ;;  %v4006_v16 = vrot.slane %v7455_v15, %v7485_v62  ;;  %v3964_v17 = vrot.slane %v3904_v10, %v7505_v14  ;;  %v4111_v11 = vrot.slane %v7458_v47, %v7475_v5 }
 0x1f4   : > { %v2989_v24 = vpack.c.bf16 %v2955_v20, %v2954_v41  ;;  %3987 = vbcast.lane.b32.xlu1 %v3985_v52, 256  ;;  %v4069_v41 = vrot.slane %v7449_v4, %v7495_v36 }
 0x1f5   : > { %v2988_v1 = vpack.c.bf16 %v2953_v23, %v2952_v19  ;;  %v6442_v8 = vpop.f32.mrb[64].mxu1 }
 0x1f6   : > { %v2894_v26 = vadd.f32 %v6442_v8, %v2763_v13  ;;  %v2097_v28 = vpop.f32.mrb[65].mxu1  ;;  %4029 = vbcast.lane.b32.xlu0 %v4027_v18, 256  ;;  %v7525_v8 = vld [vmem:[%s7437_s30 + $0x20] sm:$0xff] }
 0x1f7   : > { %v2892_v30 = vadd.f32 %v2755_v22, %v2097_v28  ;;  %v6443_v57 = vpop.f32.mrb[66].mxu1  ;;  %6504 = vmatprep.mubr.msk.bf16.mxu0 %vm784_vm0, %v2988_v1  ;;  %v4013_v1 = vrot.slane %v7455_v15, %v7495_v36  ;;  %v4167_v46 = vrot.slane %v7525_v8, %v7475_v5 }
 0x1f8   : > { %v2895_v34 = vadd.f32 %v6443_v57, %v2767_v29  ;;  %v2100_v35 = vpop.f32.mrb[67].mxu1  ;;  %6505 = vmatmul.mubr.msk.bf16.gmra.mrb[60].mxu0 %vm784_vm0, %v2989_v24  ;;  %v2958_v38 = vmax.f32 %v2894_v26, 0.0  ;;  %4036 = vbcast.lane.b32.xlu1 %v4034_v12, 256  ;;  %v4076_v26 = vrot.slane %v7449_v4, %v7505_v14  ;;  %v4153_v57 = vrot.slane %v7525_v8, %v7446_v31 }
 0x1f9   : > { %v2893_v37 = vadd.f32 %v2759_v32, %v2100_v35  ;;  %v2956_v9 = vmax.f32 %v2892_v30, 0.0  ;;  %v4118_v30 = vrot.slane %v7458_v47, %v7485_v62  ;;  %v4139_v35 = vrot.slane %v7525_v8, %v7258_v25 }
 0x1fa   : > { %v2959_v33 = vmax.f32 %v2895_v34, 0.0  ;;  %4085 = vbcast.lane.b32.xlu0 %v4083_v50, 256 }
 0x1fb   : > { %v2957_v39 = vmax.f32 %v2893_v37, 0.0  ;;  %v7537_v37 = vld [vmem:[%s7437_s30 + $0x28] sm:$0xff] }
 0x1fc   : > { %v2991_v42 = vpack.c.bf16 %v2959_v33, %v2958_v38  ;;  %4092 = vbcast.lane.b32.xlu1 %v4090_v54, 256  ;;  %v4146_v38 = vrot.slane %v7525_v8, %v7441_v40  ;;  %v4216_v43 = vrot.slane %v7537_v37, %v7461_v48 }
 0x1fd   : > { %v2990_v58 = vpack.c.bf16 %v2957_v39, %v2956_v9  ;;  %v7542_v9 = vld [vmem:[%s7437_s30 + $0x30] sm:$0xff]  ;;  %v4202_v39 = vrot.slane %v7537_v37, %v7441_v40 }
 0x1fe   : > { %3938 = vbcast.lane.b32.xlu0 %v3936_v51, 256  ;;  %v4265_v45 = vrot.slane %v7542_v9, %v7446_v31  ;;  %v4258_v4 = vrot.slane %v7542_v9, %v7441_v40  ;;  %v4272_v50 = vrot.slane %v7542_v9, %v7461_v48  ;;  %v4279_v12 = vrot.slane %v7542_v9, %v7475_v5 }
 0x1ff   : > { %6508 = vmatprep.mubr.msk.bf16.mxu0 %vm784_vm0, %v2990_v58  ;;  %v4209_v58 = vrot.slane %v7537_v37, %v7446_v31 }
 0x200   : > { %6509 = vmatmul.mubr.msk.bf16.gmra.mrb[64].mxu0 %vm784_vm0, %v2991_v42  ;;  %3994 = vbcast.lane.b32.xlu1 %v3992_v59, 256  ;;  %v4160_v42 = vrot.slane %v7525_v8, %v7461_v48  ;;  %v4223_v59 = vrot.slane %v7537_v37, %v7475_v5 }
 0x202   : > { %4043 = vbcast.lane.b32.xlu0 %v4041_v53, 256  ;;  %v4174_v53 = vrot.slane %v7525_v8, %v7485_v62 }
 0x204   : > { %4099 = vbcast.lane.b32.xlu1 %v4097_v6, 256  ;;  %v4195_v6 = vrot.slane %v7537_v37, %v7258_v25 }
 0x206   : > { %3945 = vbcast.lane.b32.xlu0 %v3943_v27, 256 }
 0x208   : > { %4001 = vbcast.lane.b32.xlu1 %v3999_v0, 256 }
 0x20a   : > { %4050 = vbcast.lane.b32.xlu0 %v4048_v56, 256  ;;  %v4020_v56 = vrot.slane %v7455_v15, %v7505_v14 }
 0x20c   : > { %4106 = vbcast.lane.b32.xlu1 %v4104_v3, 256  ;;  %v4230_v3 = vrot.slane %v7537_v37, %v7485_v62 }
 0x20e   : > { %3952 = vbcast.lane.b32.xlu0 %v3950_v60, 256 }
 0x210   : > { %4008 = vbcast.lane.b32.xlu1 %v4006_v16, 256 }
 0x212   : > { %4057 = vbcast.lane.b32.xlu0 %v4055_v61, 256  ;;  %v4286_v61 = vrot.slane %v7542_v9, %v7485_v62 }
 0x214   : > { %4113 = vbcast.lane.b32.xlu1 %v4111_v11, 256 }
 0x216   : > { %3959 = vbcast.lane.b32.xlu0 %v3957_v2, 256 }
 0x218   : > { %4015 = vbcast.lane.b32.xlu1 %v4013_v1, 256 }
 0x21a   : > { %4064 = vbcast.lane.b32.xlu0 %v4062_v7, 256 }
 0x21c   : > { %4120 = vbcast.lane.b32.xlu1 %v4118_v30, 256 }
 0x21e   : > { %3966 = vbcast.lane.b32.xlu0 %v3964_v17, 256  ;;  %v4125_v17 = vrot.slane %v7458_v47, %v7495_v36 }
 0x220   : > { %4022 = vbcast.lane.b32.xlu1 %v4020_v56, 256 }
 0x222   : > { %4071 = vbcast.lane.b32.xlu0 %v4069_v41, 256 }
 0x224   : > { %4127 = vbcast.lane.b32.xlu1 %v4125_v17, 256 }
 0x226   : > { %4078 = vbcast.lane.b32.xlu0 %v4076_v26, 256 }
 0x22a   : > { %4141 = vbcast.lane.b32.xlu0 %v4139_v35, 256 }
 0x22e   : > { %4197 = vbcast.lane.b32.xlu0 %v4195_v6, 256 }
 0x232   : > { %4155 = vbcast.lane.b32.xlu0 %v4153_v57, 256 }
 0x25b   : > { %v6450_v55 = vpop.f32.mrb[4].mxu0 }
 0x25c   : > { %v3154_v20 = vadd.f32 %v6450_v55, %v7513_v63  ;;  %v3145_v21 = vpop.f32.mrb[5].mxu0 }
 0x25d   : > { %v3146_v19 = vadd.f32 %v7513_v63, %v3145_v21  ;;  %v6451_v23 = vpop.f32.mrb[6].mxu0 }
 0x25e   : > { %v3157_v24 = vadd.f32 %v6451_v23, %v7513_v63  ;;  %v3148_v13 = vpop.f32.mrb[7].mxu0  ;;  %v3402_v28 = vmax.f32 %v3154_v20, 0.0 }
 0x25f   : > { %v3149_v22 = vadd.f32 %v7513_v63, %v3148_v13  ;;  %v3400_v32 = vmax.f32 %v3146_v19, 0.0  ;;  %v4132_v13 = vrot.slane %v7458_v47, %v7505_v14 }
 0x260   : > { %v3403_v29 = vmax.f32 %v3157_v24, 0.0 }
 0x261   : > { %v3401_v34 = vmax.f32 %v3149_v22, 0.0  ;;  %v4251_v22 = vrot.slane %v7542_v9, %v7258_v25  ;;  %4134 = vbcast.lane.b32.xlu1 %v4132_v13, 256 }
 0x262   : > { %v3465_v33 = vpack.c.bf16 %v3403_v29, %v3402_v28  ;;  %v7593_v29 = vld [vmem:[%s7437_s30 + $0x38] sm:$0xff] }
 0x263   : > { %v3464_v10 = vpack.c.bf16 %v3401_v34, %v3400_v32  ;;  %v6454_v44 = vpop.f32.mrb[8].mxu0  ;;  %4253 = vbcast.lane.b32.xlu0 %v4251_v22, 256  ;;  %v4307_v47 = vrot.slane %v7593_v29, %v7258_v25 }
 0x264   : > { %v3170_v18 = vadd.f32 %v6454_v44, %v7513_v63  ;;  %v3161_v49 = vpop.f32.mrb[9].mxu0 }
 0x265   : > { %v3162_v51 = vadd.f32 %v7513_v63, %v3161_v49  ;;  %v6455_v52 = vpop.f32.mrb[10].mxu0  ;;  %6516 = vmatprep.mubr.msk.bf16.mxu0 %vm784_vm0, %v3464_v10  ;;  %4148 = vbcast.lane.b32.xlu1 %v4146_v38, 256 }
 0x266   : > { %v3173_v27 = vadd.f32 %v6455_v52, %v7513_v63  ;;  %v3164_v54 = vpop.f32.mrb[11].mxu0  ;;  %6517 = vmatmul.mubr.msk.bf16.vlgmr.msra.gmra.mrb[68].mxu0 %vm784_vm0, %v3465_v33  ;;  %v3406_v0 = vmax.f32 %v3170_v18, 0.0 }
 0x267   : > { %v3165_v60 = vadd.f32 %v7513_v63, %v3164_v54  ;;  %v3404_v7 = vmax.f32 %v3162_v51, 0.0  ;;  %4309 = vbcast.lane.b32.xlu0 %v4307_v47, 256 }
 0x268   : > { %v3407_v2 = vmax.f32 %v3173_v27, 0.0 }
 0x269   : > { %v3405_v16 = vmax.f32 %v3165_v60, 0.0  ;;  %4204 = vbcast.lane.b32.xlu1 %v4202_v39, 256 }
 0x26a   : > { %v3467_v15 = vpack.c.bf16 %v3407_v2, %v3406_v0 }
 0x26b   : > { %v3466_v55 = vpack.c.bf16 %v3405_v16, %v3404_v7  ;;  %v6458_v11 = vpop.f32.mrb[12].mxu0  ;;  %4162 = vbcast.lane.b32.xlu0 %v4160_v42, 256 }
 0x26c   : > { %v3186_v41 = vadd.f32 %v6458_v11, %v7513_v63  ;;  %v3177_v20 = vpop.f32.mrb[13].mxu0 }
 0x26d   : > { %v3178_v21 = vadd.f32 %v7513_v63, %v3177_v20  ;;  %v6459_v19 = vpop.f32.mrb[14].mxu0  ;;  %6520 = vmatprep.mubr.msk.bf16.mxu0 %vm784_vm0, %v3466_v55  ;;  %4211 = vbcast.lane.b32.xlu1 %v4209_v58, 256 }
 0x26e   : > { %v3189_v23 = vadd.f32 %v6459_v19, %v7513_v63  ;;  %v3180_v24 = vpop.f32.mrb[15].mxu0  ;;  %6521 = vmatmul.mubr.msk.bf16.gmra.mrb[72].mxu0 %vm784_vm0, %v3467_v15  ;;  %v3410_v26 = vmax.f32 %v3186_v41, 0.0 }
 0x26f   : > { %v3181_v1 = vadd.f32 %v7513_v63, %v3180_v24  ;;  %v3408_v30 = vmax.f32 %v3178_v21, 0.0  ;;  %4267 = vbcast.lane.b32.xlu0 %v4265_v45, 256  ;;  %v4314_v21 = vrot.slane %v7593_v29, %v7441_v40 }
 0x270   : > { %v3411_v28 = vmax.f32 %v3189_v23, 0.0 }
 0x271   : > { %v3409_v32 = vmax.f32 %v3181_v1, 0.0  ;;  %4260 = vbcast.lane.b32.xlu1 %v4258_v4, 256 }
 0x272   : > { %v3469_v34 = vpack.c.bf16 %v3411_v28, %v3410_v26 }
 0x273   : > { %v3468_v35 = vpack.c.bf16 %v3409_v32, %v3408_v30  ;;  %v6462_v33 = vpop.f32.mrb[16].mxu0  ;;  %4169 = vbcast.lane.b32.xlu0 %v4167_v46, 256  ;;  %v4321_v32 = vrot.slane %v7593_v29, %v7446_v31 }
 0x274   : > { %v3202_v10 = vadd.f32 %v6462_v33, %v7513_v63  ;;  %v3193_v57 = vpop.f32.mrb[17].mxu0 }
 0x275   : > { %v3194_v44 = vadd.f32 %v7513_v63, %v3193_v57  ;;  %v6463_v18 = vpop.f32.mrb[18].mxu0  ;;  %6524 = vmatprep.mubr.msk.bf16.mxu0 %vm784_vm0, %v3468_v35  ;;  %4316 = vbcast.lane.b32.xlu1 %v4314_v21, 256 }
 0x276   : > { %v3205_v49 = vadd.f32 %v6463_v18, %v7513_v63  ;;  %v3196_v51 = vpop.f32.mrb[19].mxu0  ;;  %6525 = vmatmul.mubr.msk.bf16.gmra.mrb[76].mxu0 %vm784_vm0, %v3469_v34  ;;  %v3414_v25 = vmax.f32 %v3202_v10, 0.0 }
 0x277   : > { %v3197_v52 = vadd.f32 %v7513_v63, %v3196_v51  ;;  %v3412_v54 = vmax.f32 %v3194_v44, 0.0  ;;  %4274 = vbcast.lane.b32.xlu0 %v4272_v50, 256 }
 0x278   : > { %v3415_v27 = vmax.f32 %v3205_v49, 0.0 }
 0x279   : > { %v3413_v56 = vmax.f32 %v3197_v52, 0.0  ;;  %4218 = vbcast.lane.b32.xlu1 %v4216_v43, 256 }
 0x27a   : > { %v3471_v60 = vpack.c.bf16 %v3415_v27, %v3414_v25  ;;  %v4328_v25 = vrot.slane %v7593_v29, %v7461_v48  ;;  %v4188_v48 = vrot.slane %v7525_v8, %v7505_v14 }
 0x27b   : > { %v3470_v6 = vpack.c.bf16 %v3413_v56, %v3412_v54  ;;  %v6466_v0 = vpop.f32.mrb[20].mxu0  ;;  %4176 = vbcast.lane.b32.xlu0 %v4174_v53, 256  ;;  %v4181_v53 = vrot.slane %v7525_v8, %v7495_v36 }
 0x27c   : > { %v3218_v38 = vadd.f32 %v6466_v0, %v7513_v63  ;;  %v3209_v2 = vpop.f32.mrb[21].mxu0 }
 0x27d   : > { %v3210_v7 = vadd.f32 %v7513_v63, %v3209_v2  ;;  %v6467_v16 = vpop.f32.mrb[22].mxu0  ;;  %6528 = vmatprep.mubr.msk.bf16.mxu0 %vm784_vm0, %v3470_v6  ;;  %4323 = vbcast.lane.b32.xlu1 %v4321_v32, 256 }
 0x27e   : > { %v3221_v15 = vadd.f32 %v6467_v16, %v7513_v63  ;;  %v3212_v17 = vpop.f32.mrb[23].mxu0  ;;  %6529 = vmatmul.mubr.msk.bf16.gmra.mrb[80].mxu0 %vm784_vm0, %v3471_v60  ;;  %v3418_v42 = vmax.f32 %v3218_v38, 0.0 }
 0x27f   : > { %v3213_v39 = vadd.f32 %v7513_v63, %v3212_v17  ;;  %v3416_v11 = vmax.f32 %v3210_v7, 0.0  ;;  %4281 = vbcast.lane.b32.xlu0 %v4279_v12, 256 }
 0x280   : > { %v3419_v55 = vmax.f32 %v3221_v15, 0.0 }
 0x281   : > { %v3417_v41 = vmax.f32 %v3213_v39, 0.0  ;;  %4225 = vbcast.lane.b32.xlu1 %v4223_v59, 256  ;;  %v4335_v39 = vrot.slane %v7593_v29, %v7475_v5  ;;  %v4237_v5 = vrot.slane %v7537_v37, %v7495_v36 }
 0x282   : > { %v3473_v20 = vpack.c.bf16 %v3419_v55, %v3418_v42 }
 0x283   : > { %v3472_v19 = vpack.c.bf16 %v3417_v41, %v3416_v11  ;;  %v6470_v58 = vpop.f32.mrb[24].mxu0  ;;  %4183 = vbcast.lane.b32.xlu0 %v4181_v53, 256 }
 0x284   : > { %v3234_v45 = vadd.f32 %v6470_v58, %v7513_v63  ;;  %v3225_v23 = vpop.f32.mrb[25].mxu0  ;;  %v4300_v58 = vrot.slane %v7542_v9, %v7505_v14 }
 0x285   : > { %v3226_v24 = vadd.f32 %v7513_v63, %v3225_v23  ;;  %v6471_v13 = vpop.f32.mrb[26].mxu0  ;;  %6532 = vmatprep.mubr.msk.bf16.mxu0 %vm784_vm0, %v3472_v19  ;;  %4330 = vbcast.lane.b32.xlu1 %v4328_v25, 256 }
 0x286   : > { %v3237_v1 = vadd.f32 %v6471_v13, %v7513_v63  ;;  %v3228_v4 = vpop.f32.mrb[27].mxu0  ;;  %6533 = vmatmul.mubr.msk.bf16.gmra.mrb[84].mxu0 %vm784_vm0, %v3473_v20  ;;  %v3422_v46 = vmax.f32 %v3234_v45, 0.0 }
 0x287   : > { %v3229_v40 = vadd.f32 %v7513_v63, %v3228_v4  ;;  %v3420_v26 = vmax.f32 %v3226_v24, 0.0  ;;  %4288 = vbcast.lane.b32.xlu0 %v4286_v61, 256  ;;  %v4293_v61 = vrot.slane %v7542_v9, %v7495_v36  ;;  %v4342_v4 = vrot.slane %v7593_v29, %v7485_v62 }
 0x288   : > { %v3423_v22 = vmax.f32 %v3237_v1, 0.0  ;;  %v4244_v62 = vrot.slane %v7537_v37, %v7505_v14 }
 0x289   : > { %v3421_v28 = vmax.f32 %v3229_v40, 0.0  ;;  %4232 = vbcast.lane.b32.xlu1 %v4230_v3, 256 }
 0x28a   : > { %v3475_v30 = vpack.c.bf16 %v3423_v22, %v3422_v46 }
 0x28b   : > { %v3474_v34 = vpack.c.bf16 %v3421_v28, %v3420_v26  ;;  %v6474_v35 = vpop.f32.mrb[28].mxu0  ;;  %4190 = vbcast.lane.b32.xlu0 %v4188_v48, 256 }
 0x28c   : > { %v3250_v50 = vadd.f32 %v6474_v35, %v7513_v63  ;;  %v3241_v33 = vpop.f32.mrb[29].mxu0 }
 0x28d   : > { %v3242_v47 = vadd.f32 %v7513_v63, %v3241_v33  ;;  %v6475_v10 = vpop.f32.mrb[30].mxu0  ;;  %6536 = vmatprep.mubr.msk.bf16.mxu0 %vm784_vm0, %v3474_v34  ;;  %4337 = vbcast.lane.b32.xlu1 %v4335_v39, 256 }
 0x28e   : > { %v3253_v57 = vadd.f32 %v6475_v10, %v7513_v63  ;;  %v3244_v43 = vpop.f32.mrb[31].mxu0  ;;  %6537 = vmatmul.mubr.msk.bf16.gmra.mrb[88].mxu0 %vm784_vm0, %v3475_v30  ;;  %v3426_v44 = vmax.f32 %v3250_v50, 0.0 }
 0x28f   : > { %v3245_v31 = vadd.f32 %v7513_v63, %v3244_v43  ;;  %v3424_v49 = vmax.f32 %v3242_v47, 0.0  ;;  %4295 = vbcast.lane.b32.xlu0 %v4293_v61, 256 }
 0x290   : > { %v3427_v18 = vmax.f32 %v3253_v57, 0.0 }
 0x291   : > { %v3425_v51 = vmax.f32 %v3245_v31, 0.0  ;;  %4239 = vbcast.lane.b32.xlu1 %v4237_v5, 256 }
 0x292   : > { %v3477_v52 = vpack.c.bf16 %v3427_v18, %v3426_v44 }
 0x293   : > { %v3476_v27 = vpack.c.bf16 %v3425_v51, %v3424_v49  ;;  %v6478_v54 = vpop.f32.mrb[32].mxu0  ;;  %4302 = vbcast.lane.b32.xlu0 %v4300_v58, 256 }
 0x294   : > { %v3266_v12 = vadd.f32 %v6478_v54, %v7513_v63  ;;  %v3257_v56 = vpop.f32.mrb[33].mxu0 }
 0x295   : > { %v3258_v60 = vadd.f32 %v7513_v63, %v3257_v56  ;;  %v6479_v6 = vpop.f32.mrb[34].mxu0  ;;  %6540 = vmatprep.mubr.msk.bf16.mxu0 %vm784_vm0, %v3476_v27  ;;  %4344 = vbcast.lane.b32.xlu1 %v4342_v4, 256 }
 0x296   : > { %v3269_v0 = vadd.f32 %v6479_v6, %v7513_v63  ;;  %v3260_v38 = vpop.f32.mrb[35].mxu0  ;;  %6541 = vmatmul.mubr.msk.bf16.gmra.mrb[92].mxu0 %vm784_vm0, %v3477_v52  ;;  %v3430_v2 = vmax.f32 %v3266_v12, 0.0 }
 0x297   : > { %v3261_v59 = vadd.f32 %v7513_v63, %v3260_v38  ;;  %v3428_v16 = vmax.f32 %v3258_v60, 0.0 }
 0x298   : > { %v3431_v7 = vmax.f32 %v3269_v0, 0.0 }
 0x299   : > { %v3429_v15 = vmax.f32 %v3261_v59, 0.0  ;;  %4246 = vbcast.lane.b32.xlu1 %v4244_v62, 256 }
 0x29a   : > { %v3479_v17 = vpack.c.bf16 %v3431_v7, %v3430_v2 }
 0x29b   : > { %v3478_v42 = vpack.c.bf16 %v3429_v15, %v3428_v16  ;;  %v6482_v55 = vpop.f32.mrb[36].mxu0 }
 0x29c   : > { %v3282_v8 = vadd.f32 %v6482_v55, %v7513_v63  ;;  %v3273_v11 = vpop.f32.mrb[37].mxu0 }
 0x29d   : > { %v3274_v41 = vadd.f32 %v7513_v63, %v3273_v11  ;;  %v6483_v20 = vpop.f32.mrb[38].mxu0  ;;  %6544 = vmatprep.mubr.msk.bf16.mxu0 %vm784_vm0, %v3478_v42 }
 0x29e   : > { %v3285_v21 = vadd.f32 %v6483_v20, %v7513_v63  ;;  %v3276_v3 = vpop.f32.mrb[39].mxu0  ;;  %6545 = vmatmul.mubr.msk.bf16.gmra.mrb[96].mxu0 %vm784_vm0, %v3479_v17  ;;  %v3434_v45 = vmax.f32 %v3282_v8, 0.0 }
 0x29f   : > { %v3277_v19 = vadd.f32 %v7513_v63, %v3276_v3  ;;  %v3432_v24 = vmax.f32 %v3274_v41, 0.0 }
 0x2a0   : > { %v3435_v23 = vmax.f32 %v3285_v21, 0.0 }
 0x2a1   : > { %v3433_v13 = vmax.f32 %v3277_v19, 0.0 }
 0x2a2   : > { %v3481_v1 = vpack.c.bf16 %v3435_v23, %v3434_v45 }
 0x2a3   : > { %v3480_v40 = vpack.c.bf16 %v3433_v13, %v3432_v24  ;;  %v6486_v46 = vpop.f32.mrb[40].mxu0 }
 0x2a4   : > { %v3298_v22 = vadd.f32 %v6486_v46, %v7513_v63  ;;  %v3289_v26 = vpop.f32.mrb[41].mxu0 }
 0x2a5   : > { %v3290_v28 = vadd.f32 %v7513_v63, %v3289_v26  ;;  %v6487_v30 = vpop.f32.mrb[42].mxu0  ;;  %6548 = vmatprep.mubr.msk.bf16.mxu0 %vm784_vm0, %v3480_v40 }
 0x2a6   : > { %v3301_v9 = vadd.f32 %v6487_v30, %v7513_v63  ;;  %v3292_v32 = vpop.f32.mrb[43].mxu0  ;;  %6549 = vmatmul.mubr.msk.bf16.gmra.mrb[100].mxu0 %vm784_vm0, %v3481_v1  ;;  %v3438_v35 = vmax.f32 %v3298_v22, 0.0 }
 0x2a7   : > { %v3293_v34 = vadd.f32 %v7513_v63, %v3292_v32  ;;  %v3436_v33 = vmax.f32 %v3290_v28, 0.0 }
 0x2a8   : > { %v3439_v50 = vmax.f32 %v3301_v9, 0.0 }
 0x2a9   : > { %v3437_v47 = vmax.f32 %v3293_v34, 0.0 }
 0x2aa   : > { %v3483_v10 = vpack.c.bf16 %v3439_v50, %v3438_v35 }
 0x2ab   : > { %v3482_v57 = vpack.c.bf16 %v3437_v47, %v3436_v33  ;;  %v6490_v43 = vpop.f32.mrb[44].mxu0 }
 0x2ac   : > { %v3314_v31 = vadd.f32 %v6490_v43, %v7513_v63  ;;  %v3305_v53 = vpop.f32.mrb[45].mxu0 }
 0x2ad   : > { %v3306_v44 = vadd.f32 %v7513_v63, %v3305_v53  ;;  %v6491_v18 = vpop.f32.mrb[46].mxu0  ;;  %6552 = vmatprep.mubr.msk.bf16.mxu0 %vm784_vm0, %v3482_v57 }
 0x2ae   : > { %v3317_v37 = vadd.f32 %v6491_v18, %v7513_v63  ;;  %v3308_v49 = vpop.f32.mrb[47].mxu0  ;;  %6553 = vmatmul.mubr.msk.bf16.gmra.mrb[104].mxu0 %vm784_vm0, %v3483_v10  ;;  %v3442_v52 = vmax.f32 %v3314_v31, 0.0 }
 0x2af   : > { %v3309_v51 = vadd.f32 %v7513_v63, %v3308_v49  ;;  %v3440_v27 = vmax.f32 %v3306_v44, 0.0  ;;  %v4349_v49 = vrot.slane %v7593_v29, %v7495_v36 }
 0x2b0   : > { %v3443_v25 = vmax.f32 %v3317_v37, 0.0 }
 0x2b1   : > { %v3441_v54 = vmax.f32 %v3309_v51, 0.0  ;;  %4351 = vbcast.lane.b32.xlu1 %v4349_v49, 256 }
 0x2b2   : > { %v3485_v12 = vpack.c.bf16 %v3443_v25, %v3442_v52 }
 0x2b3   : > { %v3484_v56 = vpack.c.bf16 %v3441_v54, %v3440_v27  ;;  %v6494_v60 = vpop.f32.mrb[48].mxu0 }
 0x2b4   : > { %v3330_v6 = vadd.f32 %v6494_v60, %v7513_v63  ;;  %v3321_v0 = vpop.f32.mrb[49].mxu0  ;;  %v4356_v60 = vrot.slane %v7593_v29, %v7505_v14  ;;  %v3918_v14 = vpop.permute.xlu0 %3917 }
 0x2b5   : > { %v3322_v38 = vadd.f32 %v7513_v63, %v3321_v0  ;;  %v6495_v59 = vpop.f32.mrb[50].mxu0  ;;  %6556 = vmatprep.mubr.msk.bf16.mxu0 %vm784_vm0, %v3484_v56 }
 0x2b6   : > { %v3333_v48 = vadd.f32 %v6495_v59, %v7513_v63  ;;  %v3324_v2 = vpop.f32.mrb[51].mxu0  ;;  %6557 = vmatmul.mubr.msk.bf16.gmra.mrb[108].mxu0 %vm784_vm0, %v3485_v12  ;;  %v3446_v16 = vmax.f32 %v3330_v6, 0.0  ;;  %4358 = vbcast.lane.b32.xlu1 %v4356_v60, 256 }
 0x2b7   : > { %v3325_v7 = vadd.f32 %v7513_v63, %v3324_v2  ;;  %v3444_v17 = vmax.f32 %v3322_v38, 0.0 }
 0x2b8   : > { %v3447_v15 = vmax.f32 %v3333_v48, 0.0  ;;  %v3925_v29 = vpop.permute.xlu0 %3924 }
 0x2b9   : > { %v3445_v39 = vmax.f32 %v3325_v7, 0.0 }
 0x2ba   : > { %v3487_v42 = vpack.c.bf16 %v3447_v15, %v3446_v16 }
 0x2bb   : > { %v3486_v55 = vpack.c.bf16 %v3445_v39, %v3444_v17  ;;  %v6498_v61 = vpop.f32.mrb[52].mxu0 }
 0x2bc   : > { %v3346_v8 = vadd.f32 %v6498_v61, %v7513_v63  ;;  %v3337_v11 = vpop.f32.mrb[53].mxu0  ;;  %v3932_v39 = vpop.permute.xlu0 %3931 }
 0x2bd   : > { %v3338_v41 = vadd.f32 %v7513_v63, %v3337_v11  ;;  %v6499_v20 = vpop.f32.mrb[54].mxu0  ;;  %6560 = vmatprep.mubr.msk.bf16.mxu0 %vm784_vm0, %v3486_v55  ;;  %v7747_v55 = vpop.permute.xlu1 %3973 }
 0x2be   : > { %v3349_v21 = vadd.f32 %v6499_v20, %v7513_v63  ;;  %v3340_v3 = vpop.f32.mrb[55].mxu0  ;;  %6561 = vmatmul.mubr.msk.bf16.gmra.mrb[112].mxu0 %vm784_vm0, %v3487_v42  ;;  %v3450_v19 = vmax.f32 %v3346_v8, 0.0 }
 0x2bf   : > { %v3341_v5 = vadd.f32 %v7513_v63, %v3340_v3  ;;  %v3448_v45 = vmax.f32 %v3338_v41, 0.0 }
 0x2c0   : > { %v3451_v58 = vmax.f32 %v3349_v21, 0.0  ;;  %v7745_v42 = vpop.permute.xlu0 %4029 }
 0x2c1   : > { %v3449_v23 = vmax.f32 %v3341_v5, 0.0 }
 0x2c2   : > { %v3489_v24 = vpack.c.bf16 %v3451_v58, %v3450_v19 }
 0x2c3   : > { %v3488_v13 = vpack.c.bf16 %v3449_v23, %v3448_v45  ;;  %v6502_v1 = vpop.f32.mrb[56].mxu0 }
 0x2c4   : > { %v3362_v4 = vadd.f32 %v6502_v1, %v7513_v63  ;;  %v3353_v40 = vpop.f32.mrb[57].mxu0  ;;  %v7749_v61 = vpop.permute.xlu0 %4085 }
 0x2c5   : > { %v3354_v46 = vadd.f32 %v7513_v63, %v3353_v40  ;;  %v6503_v22 = vpop.f32.mrb[58].mxu0  ;;  %6564 = vmatprep.mubr.msk.bf16.mxu0 %vm784_vm0, %v3488_v13 }
 0x2c6   : > { %v3365_v26 = vadd.f32 %v6503_v22, %v7513_v63  ;;  %v3356_v28 = vpop.f32.mrb[59].mxu0  ;;  %6565 = vmatmul.mubr.msk.bf16.gmra.mrb[116].mxu0 %vm784_vm0, %v3489_v24  ;;  %v3454_v9 = vmax.f32 %v3362_v4, 0.0  ;;  %v7776_v4 = vld [vmem:[%s8672_s12] ss:$0 sm:$0xff] }
 0x2c7   : > { %v3357_v30 = vadd.f32 %v7513_v63, %v3356_v28  ;;  %v3452_v62 = vmax.f32 %v3354_v46, 0.0 }
 0x2c8   : > { %v3455_v32 = vmax.f32 %v3365_v26, 0.0  ;;  %v3939_v8 = vpop.permute.xlu0 %3938 }
 0x2c9   : > { %v3453_v34 = vmax.f32 %v3357_v30, 0.0 }
 0x2ca   : > { %v3491_v35 = vpack.c.bf16 %v3455_v32, %v3454_v9 }
 0x2cb   : > { %v3490_v50 = vpack.c.bf16 %v3453_v34, %v3452_v62  ;;  %v6506_v33 = vpop.f32.mrb[60].mxu0 }
 0x2cc   : > { %v3378_v47 = vadd.f32 %v6506_v33, %v7513_v63  ;;  %v3369_v10 = vpop.f32.mrb[61].mxu0  ;;  %v7755_v41 = vpop.permute.xlu0 %4043 }
 0x2cd   : > { %v3370_v57 = vadd.f32 %v7513_v63, %v3369_v10  ;;  %v6507_v43 = vpop.f32.mrb[62].mxu0  ;;  %6568 = vmatprep.mubr.msk.bf16.mxu0 %vm784_vm0, %v3490_v50 }
 0x2ce   : > { %v3381_v31 = vadd.f32 %v6507_v43, %v7513_v63  ;;  %v3372_v53 = vpop.f32.mrb[63].mxu0  ;;  %6569 = vmatmul.mubr.msk.bf16.gmra.mrb[120].mxu0 %vm784_vm0, %v3491_v35  ;;  %v3458_v18 = vmax.f32 %v3378_v47, 0.0 }
 0x2cf   : > { %v3373_v44 = vadd.f32 %v7513_v63, %v3372_v53  ;;  %v3456_v51 = vmax.f32 %v3370_v57, 0.0 }
 0x2d0   : > { %v3459_v37 = vmax.f32 %v3381_v31, 0.0  ;;  %v3946_v21 = vpop.permute.xlu0 %3945 }
 0x2d1   : > { %v3457_v52 = vmax.f32 %v3373_v44, 0.0 }
 0x2d2   : > { %v3493_v25 = vpack.c.bf16 %v3459_v37, %v3458_v18 }
 0x2d3   : > { %v3492_v27 = vpack.c.bf16 %v3457_v52, %v3456_v51  ;;  %v6510_v54 = vpop.f32.mrb[64].mxu0 }
 0x2d4   : > { %v3394_v12 = vadd.f32 %v6510_v54, %v7513_v63  ;;  %v3385_v56 = vpop.f32.mrb[65].mxu0  ;;  %v7761_v5 = vpop.permute.xlu0 %4050 }
 0x2d5   : > { %v3386_v6 = vadd.f32 %v7513_v63, %v3385_v56  ;;  %v6511_v0 = vpop.f32.mrb[66].mxu0  ;;  %6572 = vmatprep.mubr.msk.bf16.mxu0 %vm784_vm0, %v3492_v27 }
 0x2d6   : > { %v3397_v38 = vadd.f32 %v6511_v0, %v7513_v63  ;;  %v3388_v36 = vpop.f32.mrb[67].mxu0  ;;  %6573 = vmatmul.mubr.msk.bf16.gmra.mrb[124].mxu0 %vm784_vm0, %v3493_v25  ;;  %v3462_v48 = vmax.f32 %v3394_v12, 0.0 }
 0x2d7   : > { %v3389_v59 = vadd.f32 %v7513_v63, %v3388_v36  ;;  %v3460_v7 = vmax.f32 %v3386_v6, 0.0  ;;  %v7751_v63 = vpop.permute.xlu1 %3980 }
 0x2d8   : > { %v3463_v2 = vmax.f32 %v3397_v38, 0.0  ;;  %v3953_v58 = vpop.permute.xlu0 %3952 }
 0x2d9   : > { %v3461_v16 = vmax.f32 %v3389_v59, 0.0 }
 0x2da   : > { %v3495_v15 = vpack.c.bf16 %v3463_v2, %v3462_v48 }
 0x2db   : > { %v3494_v17 = vpack.c.bf16 %v3461_v16, %v3460_v7  ;;  %v7753_v11 = vpop.permute.xlu1 %3987 }
 0x2dc   : > { %v7767_v23 = vpop.permute.xlu0 %4057 }
 0x2dd   : > { %6576 = vmatprep.mubr.msk.bf16.mxu0 %vm784_vm0, %v3494_v17 }
 0x2de   : > { %6577 = vmatmul.mubr.msk.bf16.gmra.mrb[128].mxu0 %vm784_vm0, %v3495_v15 }
 0x2df   : > { %v7757_v20 = vpop.permute.xlu1 %4036 }
 0x2e0   : > { %v3960_v13 = vpop.permute.xlu0 %3959 }
 0x2e3   : > { %v7759_v3 = vpop.permute.xlu1 %4092 }
 0x2e4   : > { %v7778_v40 = vpop.permute.xlu0 %4064 }
 0x2e7   : > { %v7763_v19 = vpop.permute.xlu1 %3994 }
 0x2e8   : > { %v3967_v10 = vpop.permute.xlu0 %3966 }
 0x2eb   : > { %v7765_v45 = vpop.permute.xlu1 %4099 }
 0x2ec   : > { %v7795_v7 = vpop.permute.xlu0 %4071 }
 0x2ef   : > { %v7769_v24 = vpop.permute.xlu1 %4001 }
 0x2f3   : > { %v7771_v1 = vpop.permute.xlu1 %4106 }
 0x2f7   : > { %v7782_v9 = vpop.permute.xlu1 %4008 }
 0x2fb   : > { %v7790_v52 = vpop.permute.xlu1 %4113 }
 0x339   : > { %v6518_v46 = vpop.f32.mrb[68].mxu0 }
 0x33a   : > { %v3658_v22 = vadd.f32 %v6518_v46, %v7776_v4  ;;  %v3649_v26 = vpop.f32.mrb[69].mxu0 }
 0x33b   : > { %v3650_v28 = vadd.f32 %v7776_v4, %v3649_v26  ;;  %v6519_v30 = vpop.f32.mrb[70].mxu0 }
 0x33c   : > { %v4362_v32 = vmul.f32 %v3932_v39, %v3658_v22  ;;  %v3661_v62 = vadd.f32 %v6519_v30, %v7776_v4  ;;  %v3652_v34 = vpop.f32.mrb[71].mxu0  ;;  %v7800_v30 = vpop.permute.xlu1 %4015 }
 0x33d   : > { %v4360_v35 = vmul.f32 %v3918_v14, %v3650_v28  ;;  %v3653_v50 = vadd.f32 %v7776_v4, %v3652_v34 }
 0x33e   : > { %v4438_v33 = vsel %vm784_vm0, %v4362_v32, 0.0  ;;  %v4363_v47 = vmul.f32 %v3939_v8, %v3661_v62 }
 0x33f   : > { %v4439_v57 = vrot.slane %v4438_v33, 4  ;;  %v4424_v43 = vsel %vm784_vm0, %v4360_v35, 0.0  ;;  %v4361_v31 = vmul.f32 %v3925_v29, %v3653_v50 }
 0x340   : > { %v4425_v53 = vrot.slane %v4424_v43, 4  ;;  %v4445_v44 = vsel %vm784_vm0, %v4363_v47, 0.0 }
 0x341   : > { %v4440_v18 = vadd.f32 %v4439_v57, %v4438_v33  ;;  %v4446_v37 = vrot.slane %v4445_v44, 4  ;;  %v4431_v49 = vsel %vm784_vm0, %v4361_v31, 0.0  ;;  %v6522_v51 = vpop.f32.mrb[72].mxu0 }
 0x342   : > { %v4426_v25 = vadd.f32 %v4425_v53, %v4424_v43  ;;  %v4432_v27 = vrot.slane %v4431_v49, 4  ;;  %v3674_v54 = vadd.f32 %v6522_v51, %v7776_v4  ;;  %v3665_v12 = vpop.f32.mrb[73].mxu0  ;;  %v7804_v53 = vpop.permute.xlu0 %4078 }
 0x343   : > { %v4441_v56 = vrot.slane %v4440_v18, 2  ;;  %v4447_v60 = vadd.f32 %v4446_v37, %v4445_v44  ;;  %v3666_v6 = vadd.f32 %v7776_v4, %v3665_v12  ;;  %v6523_v0 = vpop.f32.mrb[74].mxu0 }
 0x344   : > { %v4427_v38 = vrot.slane %v4426_v25, 2  ;;  %v4433_v36 = vadd.f32 %v4432_v27, %v4431_v49  ;;  %v4366_v59 = vmul.f32 %v3960_v13, %v3674_v54  ;;  %v3677_v48 = vadd.f32 %v6523_v0, %v7776_v4  ;;  %v3668_v2 = vpop.f32.mrb[75].mxu0  ;;  %v7807_v0 = vpop.permute.xlu1 %4120 }
 0x345   : > { %v4442_v16 = vadd.f32 %v4441_v56, %v4440_v18  ;;  %v4448_v15 = vrot.slane %v4447_v60, 2  ;;  %v4364_v17 = vmul.f32 %v3946_v21, %v3666_v6  ;;  %v3669_v14 = vadd.f32 %v7776_v4, %v3668_v2 }
 0x346   : > { %v4428_v29 = vadd.f32 %v4427_v38, %v4426_v25  ;;  %v4434_v39 = vrot.slane %v4433_v36, 2  ;;  %v4466_v8 = vsel %vm784_vm0, %v4366_v59, 0.0  ;;  %v4367_v46 = vmul.f32 %v3967_v10, %v3677_v48 }
 0x347   : > { %v4443_v22 = vrot.slane %v4442_v16, 1  ;;  %v4449_v26 = vadd.f32 %v4448_v15, %v4447_v60  ;;  %v4467_v28 = vrot.slane %v4466_v8, 4  ;;  %v4452_v13 = vsel %vm784_vm0, %v4364_v17, 0.0 }
 0x348   : > { %v4429_v32 = vrot.slane %v4428_v29, 1  ;;  %v4435_v62 = vadd.f32 %v4434_v39, %v4433_v36  ;;  %v4453_v34 = vrot.slane %v4452_v13, 4  ;;  %v4365_v35 = vmul.f32 %v3953_v58, %v3669_v14 }
 0x349   : > { %v4468_v50 = vadd.f32 %v4467_v28, %v4466_v8  ;;  %v4473_v21 = vsel %vm784_vm0, %v4367_v46, 0.0  ;;  %v6526_v33 = vpop.f32.mrb[76].mxu0  ;;  %v4444_v44 = vadd.f32 %v4443_v22, %v4442_v16  ;;  %v4450_v51 = vrot.slane %v4449_v26, 1  ;;  %v7816_v46 = vpop.permute.xlu0 %4141 }
 0x34a   : > { %v4430_v47 = vadd.f32 %v4429_v32, %v4428_v29  ;;  %v4436_v57 = vrot.slane %v4435_v62, 1  ;;  %v4454_v43 = vadd.f32 %v4453_v34, %v4452_v13  ;;  %v4459_v10 = vsel %vm784_vm0, %v4365_v35, 0.0  ;;  %v3681_v31 = vpop.f32.mrb[77].mxu0 }
 0x34b   : > { %v4469_v18 = vrot.slane %v4468_v50, 2  ;;  %v4460_v37 = vrot.slane %v4459_v10, 4  ;;  %v6527_v49 = vpop.f32.mrb[78].mxu0  ;;  %v4474_v27 = vrot.slane %v4473_v21, 4  ;;  %v3690_v6 = vadd.f32 %v6526_v33, %v7776_v4 }
 0x34c   : > { %v4437_v25 = vadd.f32 %v4436_v57, %v4435_v62  ;;  %v4455_v58 = vrot.slane %v4454_v43, 2  ;;  %v3684_v54 = vpop.f32.mrb[79].mxu0  ;;  %v4872_v12 = vmul.f32 0.033333335, %v4430_v47  ;;  %v3682_v48 = vadd.f32 %v7776_v4, %v3681_v31  ;;  %v4023_v47 = vpop.permute.xlu1 %4022 }
 0x34d   : > { %v4470_v56 = vadd.f32 %v4469_v18, %v4468_v50  ;;  %v4461_v60 = vadd.f32 %v4460_v37, %v4459_v10  ;;  %v4475_v59 = vadd.f32 %v4474_v27, %v4473_v21  ;;  %v4370_v15 = vmul.f32 %v7753_v11, %v3690_v6 }
 0x34e   : > { %v4873_v38 = vmul.f32 0.033333335, %v4437_v25  ;;  %v4456_v36 = vadd.f32 %v4455_v58, %v4454_v43  ;;  %v3693_v17 = vadd.f32 %v6527_v49, %v7776_v4  ;;  %v4451_v14 = vadd.f32 %v4450_v51, %v4449_v26 }
 0x34f   : > { %v4471_v2 = vrot.slane %v4470_v56, 1  ;;  %v4462_v16 = vrot.slane %v4461_v60, 2  ;;  %v4368_v8 = vmul.f32 %v7747_v55, %v3682_v48  ;;  %v4476_v22 = vrot.slane %v4475_v59, 2 }
 0x350   : > { %v7813_v29 = vsel %vm5000_vm1, %v4873_v38, %v4872_v12  ;;  %v4457_v39 = vrot.slane %v4456_v36, 1  ;;  %v4494_v28 = vsel %vm784_vm0, %v4370_v15, 0.0  ;;  %v4371_v13 = vmul.f32 %v7763_v19, %v3693_v17  ;;  %v7831_v12 = vpop.permute.xlu0 %4197 }
 0x351   : > { %v6530_v32 = vpop.f32.mrb[80].mxu0  ;;  %v4463_v62 = vadd.f32 %v4462_v16, %v4461_v60  ;;  %v4495_v34 = vrot.slane %v4494_v28, 4  ;;  %v4480_v11 = vsel %vm784_vm0, %v4368_v8, 0.0  ;;  %v7821_v26 = vmul.f32 0.033333335, %v4444_v44 }
 0x352   : > { %v3697_v35 = vpop.f32.mrb[81].mxu0  ;;  %v4472_v50 = vadd.f32 %v4471_v2, %v4470_v56  ;;  %v4481_v21 = vrot.slane %v4480_v11, 4  ;;  %v4501_v33 = vsel %vm784_vm0, %v4371_v13, 0.0  ;;  %v7824_v57 = vmul.f32 0.033333335, %v4451_v14  ;;  %v7842_v14 = vpop.permute.xlu1 %4127 }
 0x353   : > { %v6531_v55 = vpop.f32.mrb[82].mxu0  ;;  %v4458_v43 = vadd.f32 %v4457_v39, %v4456_v36  ;;  %v4496_v10 = vadd.f32 %v4495_v34, %v4494_v28  ;;  %v4502_v31 = vrot.slane %v4501_v33, 4  ;;  %v7826_v18 = vadd.f32 %v4476_v22, %v4475_v59 }
 0x354   : > { %v3700_v19 = vpop.f32.mrb[83].mxu0  ;;  %v4482_v37 = vadd.f32 %v4481_v21, %v4480_v11  ;;  %v3685_v49 = vadd.f32 %v7776_v4, %v3684_v54  ;;  %v3706_v44 = vadd.f32 %v6530_v32, %v7776_v4  ;;  %v4464_v51 = vrot.slane %v4463_v62, 1 }
 0x355   : > { %v4497_v25 = vrot.slane %v4496_v10, 2  ;;  %v4503_v58 = vadd.f32 %v4502_v31, %v4501_v33  ;;  %v3698_v27 = vadd.f32 %v7776_v4, %v3697_v35  ;;  %v7833_v56 = vmul.f32 0.033333335, %v4472_v50 }
 0x356   : > { %v4483_v60 = vrot.slane %v4482_v37, 2  ;;  %v4369_v6 = vmul.f32 %v7751_v63, %v3685_v49  ;;  %v4374_v38 = vmul.f32 %v7800_v30, %v3706_v44  ;;  %v3709_v48 = vadd.f32 %v6531_v55, %v7776_v4  ;;  %v7848_v55 = vpop.permute.xlu0 %4155 }
 0x357   : > { %v4498_v36 = vadd.f32 %v4497_v25, %v4496_v10  ;;  %v4504_v59 = vrot.slane %v4503_v58, 2  ;;  %v4372_v54 = vmul.f32 %v7769_v24, %v3698_v27  ;;  %v3701_v17 = vadd.f32 %v7776_v4, %v3700_v19  ;;  %v7855_v27 = vpop.permute.xlu1 %4134 }
 0x358   : > { %v4484_v2 = vadd.f32 %v4483_v60, %v4482_v37  ;;  %v4487_v16 = vsel %vm784_vm0, %v4369_v6, 0.0  ;;  %v4522_v15 = vsel %vm784_vm0, %v4374_v38, 0.0  ;;  %v4465_v8 = vadd.f32 %v4464_v51, %v4463_v62 }
 0x359   : > { %v6534_v39 = vpop.f32.mrb[84].mxu0  ;;  %v4499_v63 = vrot.slane %v4498_v36, 1  ;;  %v4488_v22 = vrot.slane %v4487_v16, 4  ;;  %v4523_v30 = vrot.slane %v4522_v15, 4  ;;  %v4505_v13 = vadd.f32 %v4504_v59, %v4503_v58 }
 0x35a   : > { %v3713_v28 = vpop.f32.mrb[85].mxu0  ;;  %v4508_v24 = vsel %vm784_vm0, %v4372_v54, 0.0  ;;  %v4373_v32 = vmul.f32 %v7782_v9, %v3701_v17  ;;  %v4375_v34 = vmul.f32 %v4023_v47, %v3709_v48  ;;  %v7846_v35 = vmul.f32 0.033333335, %v4458_v43 }
 0x35b   : > { %v6535_v11 = vpop.f32.mrb[86].mxu0  ;;  %v4485_v50 = vrot.slane %v4484_v2, 1  ;;  %v4489_v21 = vadd.f32 %v4488_v22, %v4487_v16  ;;  %v4524_v33 = vadd.f32 %v4523_v30, %v4522_v15  ;;  %v4478_v62 = vrot.slane %v7826_v18, 1  ;;  %v7861_v30 = vpop.permute.xlu0 %4253 }
 0x35c   : > { %v3716_v10 = vpop.f32.mrb[87].mxu0  ;;  %v4509_v31 = vrot.slane %v4508_v24, 4  ;;  %v4515_v19 = vsel %vm784_vm0, %v4373_v32, 0.0  ;;  %v4529_v37 = vsel %vm784_vm0, %v4375_v34, 0.0  ;;  %v7853_v49 = vmul.f32 0.033333335, %v4465_v8 }
 0x35d   : > { %v4500_v9 = vadd.f32 %v4499_v63, %v4498_v36  ;;  %v4490_v47 = vrot.slane %v4489_v21, 2  ;;  %v4525_v44 = vrot.slane %v4524_v33, 2  ;;  %v4506_v43 = vrot.slane %v4505_v13, 1 }
 0x35e   : > { %v4510_v51 = vadd.f32 %v4509_v31, %v4508_v24  ;;  %v4516_v25 = vrot.slane %v4515_v19, 4  ;;  %v4530_v58 = vrot.slane %v4529_v37, 4  ;;  %v4486_v60 = vadd.f32 %v4485_v50, %v4484_v2 }
 0x35f   : > { %v4491_v6 = vadd.f32 %v4490_v47, %v4489_v21  ;;  %v4526_v38 = vadd.f32 %v4525_v44, %v4524_v33  ;;  %v3722_v59 = vadd.f32 %v6534_v39, %v7776_v4  ;;  %v3714_v15 = vadd.f32 %v7776_v4, %v3713_v28  ;;  %v7870_v44 = vpop.permute.xlu1 %4148 }
 0x360   : > { %v4511_v54 = vrot.slane %v4510_v51, 2  ;;  %v4517_v48 = vadd.f32 %v4516_v25, %v4515_v19  ;;  %v4531_v16 = vadd.f32 %v4530_v58, %v4529_v37  ;;  %v3725_v22 = vadd.f32 %v6535_v11, %v7776_v4 }
 0x361   : > { %v6538_v36 = vpop.f32.mrb[88].mxu0  ;;  %v4492_v17 = vrot.slane %v4491_v6, 1  ;;  %v4527_v8 = vrot.slane %v4526_v38, 1  ;;  %v4378_v63 = vmul.f32 %v7755_v41, %v3722_v59  ;;  %v4376_v34 = vmul.f32 %v7745_v42, %v3714_v15  ;;  %v7880_v15 = vpop.permute.xlu0 %4309 }
 0x362   : > { %v3729_v2 = vpop.f32.mrb[89].mxu0  ;;  %v4512_v24 = vadd.f32 %v4511_v54, %v4510_v51  ;;  %v4518_v39 = vrot.slane %v4517_v48, 2  ;;  %v4532_v32 = vrot.slane %v4531_v16, 2  ;;  %v4507_v28 = vadd.f32 %v4506_v43, %v4505_v13  ;;  %8697 = vst [vmem:[#allocation2_spill] sm:$0xff] %v7880_v15 }
 0x363   : > { %v7864_v50 = vpop.f32.mrb[90].mxu0  ;;  %v4493_v21 = vadd.f32 %v4492_v17, %v4491_v6  ;;  %v4550_v33 = vsel %vm784_vm0, %v4378_v63, 0.0  ;;  %v4379_v41 = vmul.f32 %v7761_v5, %v3725_v22  ;;  %v4528_v31 = vadd.f32 %v4527_v8, %v4526_v38 }
 0x364   : > { %v7868_v11 = vpop.f32.mrb[91].mxu0  ;;  %v4513_v19 = vrot.slane %v4512_v24, 1  ;;  %v4519_v37 = vadd.f32 %v4518_v39, %v4517_v48  ;;  %v4551_v47 = vrot.slane %v4550_v33, 4  ;;  %v4880_v42 = vmul.f32 0.033333335, %v4486_v60 }
 0x365   : > { %v4881_v51 = vmul.f32 0.033333335, %v4493_v21  ;;  %v4536_v25 = vsel %vm784_vm0, %v4376_v34, 0.0  ;;  %v4557_v13 = vsel %vm784_vm0, %v4379_v41, 0.0  ;;  %v7874_v43 = vmul.f32 0.033333335, %v4500_v9 }
 0x366   : > { %v4514_v58 = vadd.f32 %v4513_v19, %v4512_v24  ;;  %v4533_v5 = vadd.f32 %v4532_v32, %v4531_v16  ;;  %v4552_v6 = vadd.f32 %v4551_v47, %v4550_v33  ;;  %v4537_v38 = vrot.slane %v4536_v25, 4 }
 0x367   : > { %v7877_v59 = vsel %vm5000_vm1, %v4881_v51, %v4880_v42  ;;  %v4558_v54 = vrot.slane %v4557_v13, 4  ;;  %v3717_v48 = vadd.f32 %v7776_v4, %v3716_v10  ;;  %v4479_v60 = vadd.f32 %v4478_v62, %v7826_v18  ;;  %v7894_v62 = vpop.permute.xlu1 %4204 }
 0x368   : > { %v7883_v17 = vmul.f32 0.033333335, %v4507_v28  ;;  %v7885_v8 = vmul.f32 0.033333335, %v4528_v31  ;;  %v4520_v9 = vrot.slane %v4519_v37, 1  ;;  %v4553_v22 = vrot.slane %v4552_v6, 2 }
 0x369   : > { %v6542_v63 = vpop.f32.mrb[92].mxu0  ;;  %v4538_v16 = vadd.f32 %v4537_v38, %v4536_v25  ;;  %v4559_v24 = vadd.f32 %v4558_v54, %v4557_v13  ;;  %v4377_v39 = vmul.f32 %v7757_v20, %v3717_v48  ;;  %v7888_v34 = vmul.f32 0.033333335, %v4514_v58  ;;  %v7907_v58 = vpop.permute.xlu0 %4162 }
 0x36a   : > { %v3745_v32 = vpop.f32.mrb[93].mxu0  ;;  %v4534_v21 = vrot.slane %v4533_v5, 1  ;;  %v5003_v10 = vsel %vm5002_vm2, %v7821_v26, %v7813_v29  ;;  %v3738_v18 = vadd.f32 %v6538_v36, %v7776_v4  ;;  %v4879_v42 = vmul.f32 0.033333335, %v4479_v60 }
 0x36b   : > { %v6543_v28 = vpop.f32.mrb[94].mxu0  ;;  %v4539_v33 = vrot.slane %v4538_v16, 2  ;;  %v4560_v41 = vrot.slane %v4559_v24, 2  ;;  %v4543_v31 = vsel %vm784_vm0, %v4377_v39, 0.0  ;;  %v5005_v20 = vsel %vm5004_vm3, %v7824_v57, %v5003_v10 }
 0x36c   : > { %v7899_v19 = vpop.f32.mrb[95].mxu0  ;;  %v4544_v47 = vrot.slane %v4543_v31, 4  ;;  %v5007_v51 = vsel %vm5006_vm4, %v7846_v35, %v5005_v20  ;;  %v4382_v29 = vmul.f32 %v7795_v7, %v3738_v18  ;;  %v4554_v26 = vadd.f32 %v4553_v22, %v4552_v6 }
 0x36d   : > { %v4540_v36 = vadd.f32 %v4539_v33, %v4538_v16  ;;  %v5009_v25 = vsel %vm5008_vm5, %v7853_v49, %v5007_v51  ;;  %v3730_v13 = vadd.f32 %v7776_v4, %v3729_v2  ;;  %v7909_v57 = vadd.f32 %v4520_v9, %v4519_v37  ;;  %v6844_v16 = vld [vmem:[%s6996_s26] sm:$0xff]  ;;  %v7921_v9 = vpop.permute.xlu1 %4211 }
 0x36e   : > { %v4545_v38 = vadd.f32 %v4544_v47, %v4543_v31  ;;  %v5011_v54 = vsel %vm5010_vm6, %v7833_v56, %v5009_v25  ;;  %v4578_v35 = vsel %vm784_vm0, %v4382_v29, 0.0  ;;  %v4561_v7 = vadd.f32 %v4560_v41, %v4559_v24  ;;  %v7936_v29 = vpop.permute.xlu0 %4267 }
 0x36f   : > { %v4541_v48 = vrot.slane %v4540_v36, 1  ;;  %v5013_v6 = vsel %vm5012_vm7, %v4879_v42, %v5011_v54  ;;  %v4579_v60 = vrot.slane %v4578_v35, 4  ;;  %v7915_v22 = vadd.f32 %v4534_v21, %v4533_v5 }
 0x370   : > { %v4546_v49 = vrot.slane %v4545_v38, 2  ;;  %v7918_v2 = vadd.f32 %v6844_v16, %v5013_v6  ;;  %v4380_v37 = vmul.f32 %v7767_v23, %v3730_v13  ;;  %v4555_v56 = vrot.slane %v4554_v26, 1 }
 0x371   : > { %v7923_v39 = vpop.f32.mrb[96].mxu0  ;;  %v4542_v10 = vadd.f32 %v4541_v48, %v4540_v36  ;;  %v4580_v18 = vadd.f32 %v4579_v60, %v4578_v35  ;;  %v3741_v24 = vadd.f32 %v7864_v50, %v7776_v4  ;;  %v3733_v23 = vadd.f32 %v7776_v4, %v7868_v11 }
 0x372   : > { %8698 = vst [vmem:[#allocation3_spill] sm:$0xff] %v7918_v2  ;;  %v7927_v33 = vpop.f32.mrb[97].mxu0  ;;  %v4547_v5 = vadd.f32 %v4546_v49, %v4545_v38  ;;  %v5081_v21 = vsel %vm784_vm0, %v7918_v2, 0.0  ;;  %v4564_v41 = vsel %vm784_vm0, %v4380_v37, 0.0  ;;  %v4562_v47 = vrot.slane %v4561_v7, 1 }
 0x373   : > { %v7934_v31 = vpop.f32.mrb[98].mxu0  ;;  %v4888_v20 = vmul.f32 0.033333335, %v4542_v10  ;;  %5082 = vadd.xlane.f32.xlu0 %v5081_v21  ;;  %v4581_v42 = vrot.slane %v4580_v18, 2  ;;  %v4565_v51 = vrot.slane %v4564_v41, 4  ;;  %v4383_v36 = vmul.f32 %v7804_v53, %v3741_v24  ;;  %v7948_v53 = vpop.permute.xlu1 %4260 }
 0x374   : > { %v4548_v50 = vrot.slane %v4547_v5, 1  ;;  %v4381_v25 = vmul.f32 %v7778_v40, %v3733_v23  ;;  %v3754_v13 = vadd.f32 %v6542_v63, %v7776_v4  ;;  %v7941_v38 = vpop.f32.mrb[99].mxu0  ;;  %v3746_v35 = vadd.f32 %v7776_v4, %v3745_v32 }
 0x375   : > { %v4582_v54 = vadd.f32 %v4581_v42, %v4580_v18  ;;  %v4566_v11 = vadd.f32 %v4565_v51, %v4564_v41  ;;  %v3757_v48 = vadd.f32 %v6543_v28, %v7776_v4  ;;  %v4585_v60 = vsel %vm784_vm0, %v4383_v36, 0.0 }
 0x376   : > { %v4549_v6 = vadd.f32 %v4548_v50, %v4547_v5  ;;  %v4571_v49 = vsel %vm784_vm0, %v4381_v25, 0.0  ;;  %v4386_v16 = vmul.f32 %v7765_v45, %v3754_v13  ;;  %v4586_v63 = vrot.slane %v4585_v60, 4  ;;  %v7955_v45 = vpop.permute.xlu0 %4169 }
 0x377   : > { %v4583_v40 = vrot.slane %v4582_v54, 1  ;;  %v4567_v37 = vrot.slane %v4566_v11, 2  ;;  %v4572_v10 = vrot.slane %v4571_v49, 4  ;;  %v4384_v32 = vmul.f32 %v7749_v61, %v3746_v35 }
 0x378   : > { %v4889_v24 = vmul.f32 0.033333335, %v4549_v6  ;;  %v4606_v18 = vsel %vm784_vm0, %v4386_v16, 0.0  ;;  %v4387_v28 = vmul.f32 %v7771_v1, %v3757_v48  ;;  %v4556_v21 = vadd.f32 %v4555_v56, %v4554_v26 }
 0x379   : > { %v7953_v5 = vpop.f32.mrb[100].mxu0  ;;  %v4568_v41 = vadd.f32 %v4567_v37, %v4566_v11  ;;  %v4587_v23 = vadd.f32 %v4586_v63, %v4585_v60  ;;  %v4573_v42 = vadd.f32 %v4572_v10, %v4571_v49  ;;  %v4607_v36 = vrot.slane %v4606_v18, 4  ;;  %v7970_v49 = vpop.permute.xlu1 %4316 }
 0x37a   : > { %v7957_v51 = vpop.f32.mrb[101].mxu0  ;;  %v7960_v50 = vsel %vm5000_vm1, %v4889_v24, %v4888_v20  ;;  %v4592_v25 = vsel %vm784_vm0, %v4384_v32, 0.0  ;;  %v4613_v61 = vsel %vm784_vm0, %v4387_v28, 0.0  ;;  %v4563_v1 = vadd.f32 %v4562_v47, %v4561_v7  ;;  %8699 = vst [vmem:[#allocation4_spill] sm:$0xff] %v7970_v49  ;;  %v7983_v28 = vpop.permute.xlu0 %4274 }
 0x37b   : > { %v7964_v13 = vpop.f32.mrb[102].mxu0  ;;  %v4584_v35 = vadd.f32 %v4583_v40, %v4582_v54  ;;  %v4569_v26 = vrot.slane %v4568_v41, 1  ;;  %v4574_v56 = vrot.slane %v4573_v42, 2  ;;  %v4608_v48 = vadd.f32 %v4607_v36, %v4606_v18 }
 0x37c   : > { %v7966_v11 = vpop.f32.mrb[103].mxu0  ;;  %v4593_v6 = vrot.slane %v4592_v25, 4  ;;  %v4614_v60 = vrot.slane %v4613_v61, 4  ;;  %v3749_v20 = vadd.f32 %v7776_v4, %v7899_v19  ;;  %v4885_v16 = vmul.f32 0.033333335, %v7909_v57 }
 0x37d   : > { %v7973_v37 = vmul.f32 0.033333335, %v4556_v21  ;;  %v4588_v63 = vrot.slane %v4587_v23, 2  ;;  %v4575_v10 = vadd.f32 %v4574_v56, %v4573_v42  ;;  %v4609_v7 = vrot.slane %v4608_v48, 2 }
 0x37e   : > { %v4594_v47 = vadd.f32 %v4593_v6, %v4592_v25  ;;  %v4615_v54 = vadd.f32 %v4614_v60, %v4613_v61  ;;  %v4385_v40 = vmul.f32 %v7759_v3, %v3749_v20  ;;  %v7976_v24 = vmul.f32 0.033333335, %v4563_v1 }
 0x37f   : > { %v7978_v18 = vmul.f32 0.033333335, %v4584_v35  ;;  %v4570_v32 = vadd.f32 %v4569_v26, %v4568_v41  ;;  %v5015_v19 = vsel %vm5002_vm2, %v7874_v43, %v7877_v59  ;;  %v4610_v57 = vadd.f32 %v4609_v7, %v4608_v48  ;;  %v7998_v48 = vpop.permute.xlu1 %4218 }
 0x380   : > { %v4595_v21 = vrot.slane %v4594_v47, 2  ;;  %v4616_v36 = vrot.slane %v4615_v54, 2  ;;  %v4599_v42 = vsel %vm784_vm0, %v4385_v40, 0.0  ;;  %v7988_v61 = vadd.f32 %v4588_v63, %v4587_v23 }
 0x381   : > { %v7986_v25 = vpop.f32.mrb[104].mxu0  ;;  %v4600_v3 = vrot.slane %v4599_v42, 4  ;;  %v5016_v1 = vsel %vm5004_vm3, %v7883_v17, %v5015_v19  ;;  %v3770_v41 = vadd.f32 %v7923_v39, %v7776_v4  ;;  %v4576_v43 = vrot.slane %v4575_v10, 1 }
 0x382   : > { %v7994_v35 = vpop.f32.mrb[105].mxu0  ;;  %v4611_v59 = vrot.slane %v4610_v57, 1  ;;  %v4596_v26 = vadd.f32 %v4595_v21, %v4594_v47  ;;  %v5017_v56 = vsel %vm5006_vm4, %v7888_v34, %v5016_v1  ;;  %v4887_v60 = vmul.f32 0.033333335, %v7915_v22 }
 0x383   : > { %v8000_v6 = vpop.f32.mrb[106].mxu0  ;;  %v4601_v23 = vadd.f32 %v4600_v3, %v4599_v42  ;;  %v5018_v17 = vsel %vm5008_vm5, %v4885_v16, %v5017_v56  ;;  %v4390_v39 = vmul.f32 %v7842_v14, %v3770_v41  ;;  %v8007_v63 = vmul.f32 0.033333335, %v4570_v32  ;;  %v8015_v16 = vpop.permute.xlu0 %4176  ;;  %v6845_v3 = vld [vmem:[%s6996_s26 + $0x8] sm:$0xff] }
 0x384   : > { %v8005_v20 = vpop.f32.mrb[107].mxu0  ;;  %v4597_v7 = vrot.slane %v4596_v26, 1  ;;  %v4617_v47 = vadd.f32 %v4616_v36, %v4615_v54  ;;  %v5019_v34 = vsel %vm5010_vm6, %v7885_v8, %v5018_v17  ;;  %v3762_v22 = vadd.f32 %v7776_v4, %v7927_v33 }
 0x385   : > { %v4602_v40 = vrot.slane %v4601_v23, 2  ;;  %v5020_v19 = vsel %vm5012_vm7, %v4887_v60, %v5019_v34  ;;  %v4634_v21 = vsel %vm784_vm0, %v4390_v39, 0.0  ;;  %v8017_v14 = vadd.f32 %v4576_v43, %v4575_v10 }
 0x386   : > { %v8019_v42 = vadd.f32 %v4611_v59, %v4610_v57  ;;  %v4598_v32 = vadd.f32 %v4597_v7, %v4596_v26  ;;  %v8022_v54 = vadd.f32 %v6845_v3, %v5020_v19  ;;  %v4635_v8 = vrot.slane %v4634_v21, 4  ;;  %v8031_v57 = vpop.permute.xlu1 %4323 }
 0x387   : > { %v4603_v36 = vadd.f32 %v4602_v40, %v4601_v23  ;;  %v4388_v1 = vmul.f32 %v7790_v52, %v3762_v22  ;;  %v3773_v41 = vadd.f32 %v7934_v31, %v7776_v4  ;;  %v4618_v60 = vrot.slane %v4617_v47, 1  ;;  %8701 = vst [vmem:[#allocation6_spill] sm:$0xff] %v8031_v57  ;;  %v8047_v22 = vpop.permute.xlu0 %4281 }
 0x388   : > { %8700 = vst [vmem:[#allocation5_spill] sm:$0xff] %v8022_v54  ;;  %v4896_v56 = vmul.f32 0.033333335, %v4598_v32  ;;  %v5084_v33 = vsel %vm784_vm0, %v8022_v54, 0.0  ;;  %v3765_v10 = vadd.f32 %v7776_v4, %v7941_v38  ;;  %v4636_v26 = vadd.f32 %v4635_v8, %v4634_v21 }
 0x389   : > { %v8033_v43 = vpop.f32.mrb[108].mxu0  ;;  %v4604_v59 = vrot.slane %v4603_v36, 1  ;;  %5085 = vadd.xlane.f32.xlu1 %v5084_v33  ;;  %v4620_v52 = vsel %vm784_vm0, %v4388_v1, 0.0  ;;  %v4391_v23 = vmul.f32 %v7855_v27, %v3773_v41  ;;  %v3786_v7 = vadd.f32 %v7953_v5, %v7776_v4 }
 0x38a   : > { %v8037_v31 = vpop.f32.mrb[109].mxu0  ;;  %v4621_v17 = vrot.slane %v4620_v52, 4  ;;  %v4389_v39 = vmul.f32 %v7807_v0, %v3765_v10  ;;  %v3778_v38 = vadd.f32 %v7776_v4, %v7957_v51  ;;  %v4637_v19 = vrot.slane %v4636_v26, 2 }
 0x38b   : > { %v8044_v34 = vpop.f32.mrb[110].mxu0  ;;  %v4605_v40 = vadd.f32 %v4604_v59, %v4603_v36  ;;  %v4641_v21 = vsel %vm784_vm0, %v4391_v23, 0.0  ;;  %v3789_v27 = vadd.f32 %v7964_v13, %v7776_v4  ;;  %v4394_v8 = vmul.f32 %v7848_v55, %v3786_v7  ;;  %v8058_v13 = vpop.permute.xlu1 %4225 }
 0x38c   : > { %v8051_v32 = vpop.f32.mrb[111].mxu0  ;;  %v4622_v0 = vadd.f32 %v4621_v17, %v4620_v52  ;;  %v4642_v3 = vrot.slane %v4641_v21, 4  ;;  %v4627_v5 = vsel %vm784_vm0, %v4389_v39, 0.0  ;;  %v4638_v1 = vadd.f32 %v4637_v19, %v4636_v26 }
 0x38d   : > { %v4897_v51 = vmul.f32 0.033333335, %v4605_v40  ;;  %v4628_v41 = vrot.slane %v4627_v5, 4  ;;  %v4392_v36 = vmul.f32 %v7816_v46, %v3778_v38  ;;  %v4662_v59 = vsel %vm784_vm0, %v4394_v8, 0.0 }
 0x38e   : > { %v4623_v33 = vrot.slane %v4622_v0, 2  ;;  %v4643_v10 = vadd.f32 %v4642_v3, %v4641_v21  ;;  %v4395_v23 = vmul.f32 %v7907_v58, %v3789_v27  ;;  %v4639_v17 = vrot.slane %v4638_v1, 1  ;;  %v4184_v27 = vpop.permute.xlu0 %4183 }
 0x38f   : > { %v8061_v52 = vsel %vm5000_vm1, %v4897_v51, %v4896_v56  ;;  %v4629_v39 = vadd.f32 %v4628_v41, %v4627_v5  ;;  %v4663_v54 = vrot.slane %v4662_v59, 4  ;;  %v4648_v26 = vsel %vm784_vm0, %v4392_v36, 0.0  ;;  %v8080_v49 = vpop.permute.xlu1 %4330 }
 0x390   : > { %v4624_v55 = vadd.f32 %v4623_v33, %v4622_v0  ;;  %v4644_v7 = vrot.slane %v4643_v10, 2  ;;  %v4669_v46 = vsel %vm784_vm0, %v4395_v23, 0.0  ;;  %v4619_v40 = vadd.f32 %v4618_v60, %v4617_v47 }
 0x391   : > { %v8065_v38 = vpop.f32.mrb[112].mxu0  ;;  %v4630_v19 = vrot.slane %v4629_v39, 2  ;;  %v4664_v21 = vadd.f32 %v4663_v54, %v4662_v59  ;;  %v4649_v58 = vrot.slane %v4648_v26, 4  ;;  %v4590_v56 = vrot.slane %v7988_v61, 1 }
 0x392   : > { %v8067_v3 = vpop.f32.mrb[113].mxu0  ;;  %v4625_v8 = vrot.slane %v4624_v55, 1  ;;  %v4670_v5 = vrot.slane %v4669_v46, 4  ;;  %v3781_v0 = vadd.f32 %v7776_v4, %v7966_v11  ;;  %v4893_v41 = vmul.f32 0.033333335, %v8017_v14 }
 0x393   : > { %v8072_v51 = vpop.f32.mrb[114].mxu0  ;;  %v4640_v36 = vadd.f32 %v4639_v17, %v4638_v1  ;;  %v4631_v33 = vadd.f32 %v4630_v19, %v4629_v39  ;;  %v4650_v47 = vadd.f32 %v4649_v58, %v4648_v26  ;;  %v8077_v54 = vadd.f32 %v4644_v7, %v4643_v10 }
 0x394   : > { %v8075_v60 = vpop.f32.mrb[115].mxu0  ;;  %v4665_v59 = vrot.slane %v4664_v21, 2  ;;  %v4671_v23 = vadd.f32 %v4670_v5, %v4669_v46  ;;  %v4393_v2 = vmul.f32 %v7870_v44, %v3781_v0  ;;  %v8083_v15 = vmul.f32 0.033333335, %v8019_v42  ;;  %v8094_v42 = vpop.permute.xlu0 %4288 }
 0x395   : > { %v8085_v11 = vmul.f32 0.033333335, %v4619_v40  ;;  %v4626_v57 = vadd.f32 %v4625_v8, %v4624_v55  ;;  %v4651_v14 = vrot.slane %v4650_v47, 2  ;;  %v4632_v1 = vrot.slane %v4631_v33, 1 }
 0x396   : > { %v4672_v17 = vrot.slane %v4671_v23, 2  ;;  %v4655_v39 = vsel %vm784_vm0, %v4393_v2, 0.0  ;;  %v5022_v10 = vsel %vm5002_vm2, %v7973_v37, %v7960_v50  ;;  %v8091_v7 = vmul.f32 0.033333335, %v4640_v36 }
 0x397   : > { %v4652_v44 = vadd.f32 %v4651_v14, %v4650_v47  ;;  %v4656_v26 = vrot.slane %v4655_v39, 4  ;;  %v4591_v46 = vadd.f32 %v4590_v56, %v7988_v61  ;;  %v8097_v55 = vadd.f32 %v4665_v59, %v4664_v21 }
 0x398   : > { %v5023_v19 = vsel %vm5004_vm3, %v7976_v24, %v5022_v10  ;;  %v3802_v2 = vadd.f32 %v7986_v25, %v7776_v4  ;;  %v8105_v50 = vmul.f32 0.033333335, %v4626_v57  ;;  %v8107_v8 = vadd.f32 %v4672_v17, %v4671_v23  ;;  %v8117_v25 = vpop.permute.xlu1 %4232 }
 0x399   : > { %v8103_v58 = vpop.f32.mrb[116].mxu0  ;;  %v4653_v37 = vrot.slane %v4652_v44, 1  ;;  %v4657_v61 = vadd.f32 %v4656_v26, %v4655_v39  ;;  %v8111_v5 = vadd.f32 %v4632_v1, %v4631_v33  ;;  %v5024_v21 = vsel %vm5006_vm4, %v8007_v63, %v5023_v19 }
 0x39a   : > { %v8109_v56 = vpop.f32.mrb[117].mxu0  ;;  %v4398_v0 = vmul.f32 %v4184_v27, %v3802_v2  ;;  %v3794_v24 = vadd.f32 %v7776_v4, %v7994_v35  ;;  %v4895_v59 = vmul.f32 0.033333335, %v4591_v46  ;;  %v5025_v23 = vsel %vm5008_vm5, %v4893_v41, %v5024_v21  ;;  %v6846_v41 = vld [vmem:[%s6996_s26 + $0x10] sm:$0xff] }
 0x39b   : > { %v8119_v36 = vpop.f32.mrb[118].mxu0  ;;  %v4654_v57 = vadd.f32 %v4653_v37, %v4652_v44  ;;  %v4658_v47 = vrot.slane %v4657_v61, 2  ;;  %v4667_v33 = vrot.slane %v8097_v55, 1  ;;  %v5026_v63 = vsel %vm5010_vm6, %v7978_v18, %v5025_v23  ;;  %v4191_v44 = vpop.permute.xlu0 %4190 }
 0x39c   : > { %v8122_v14 = vpop.f32.mrb[119].mxu0  ;;  %v4690_v27 = vsel %vm784_vm0, %v4398_v0, 0.0  ;;  %v4396_v35 = vmul.f32 %v7955_v45, %v3794_v24  ;;  %v4674_v1 = vrot.slane %v8107_v8, 1  ;;  %v5027_v39 = vsel %vm5012_vm7, %v4895_v59, %v5026_v63  ;;  %v8141_v24 = vpop.permute.xlu1 %4337 }
 0x39d   : > { %v4659_v17 = vadd.f32 %v4658_v47, %v4657_v61  ;;  %v4691_v10 = vrot.slane %v4690_v27, 4  ;;  %v4904_v26 = vmul.f32 0.033333335, %v4654_v57  ;;  %v8132_v46 = vadd.f32 %v6846_v41, %v5027_v39 }
 0x39e   : > { %v4676_v19 = vsel %vm784_vm0, %v4396_v35, 0.0  ;;  %v3805_v18 = vadd.f32 %v8000_v6, %v7776_v4  ;;  %v3797_v45 = vadd.f32 %v7776_v4, %v8005_v20  ;;  %v3818_v57 = vadd.f32 %v8033_v43, %v7776_v4 }
 0x39f   : > { %8702 = vst [vmem:[#allocation7_spill] sm:$0xff] %v8132_v46  ;;  %v4660_v2 = vrot.slane %v4659_v17, 1  ;;  %v4692_v37 = vadd.f32 %v4691_v10, %v4690_v27  ;;  %v4677_v21 = vrot.slane %v4676_v19, 4  ;;  %v5087_v61 = vsel %vm784_vm0, %v8132_v46, 0.0 }
 0x3a0   : > { %v4399_v0 = vmul.f32 %v4191_v44, %v3805_v18  ;;  %v3810_v47 = vadd.f32 %v7776_v4, %v8037_v31  ;;  %5088 = vadd.xlane.f32.xlu0 %v5087_v61  ;;  %v4397_v20 = vmul.f32 %v8015_v16, %v3797_v45  ;;  %v4402_v39 = vmul.f32 %v7921_v9, %v3818_v57 }
 0x3a1   : > { %v8147_v59 = vpop.f32.mrb[120].mxu0  ;;  %v4661_v6 = vadd.f32 %v4660_v2, %v4659_v17  ;;  %v4693_v23 = vrot.slane %v4692_v37, 2  ;;  %v4678_v63 = vadd.f32 %v4677_v21, %v4676_v19  ;;  %v3821_v43 = vadd.f32 %v8044_v34, %v7776_v4 }
 0x3a2   : > { %v8150_v27 = vpop.f32.mrb[121].mxu0  ;;  %v4697_v35 = vsel %vm784_vm0, %v4399_v0, 0.0  ;;  %v4400_v10 = vmul.f32 %v7831_v12, %v3810_v47  ;;  %v4683_v19 = vsel %vm784_vm0, %v4397_v20, 0.0  ;;  %v4718_v21 = vsel %vm784_vm0, %v4402_v39, 0.0  ;;  %v4240_v47 = vpop.permute.xlu1 %4239  ;;  %v8172_v39 = vld [vmem:[%s8672_s12] ss:$0 sm:$0xff] }
 0x3a3   : > { %v8157_v31 = vpop.f32.mrb[122].mxu0  ;;  %v4905_v44 = vmul.f32 0.033333335, %v4661_v6  ;;  %v4694_v17 = vadd.f32 %v4693_v23, %v4692_v37  ;;  %v4679_v41 = vrot.slane %v4678_v63, 2  ;;  %v4684_v16 = vrot.slane %v4683_v19, 4 }
 0x3a4   : > { %v8160_v18 = vpop.f32.mrb[123].mxu0  ;;  %v4698_v2 = vrot.slane %v4697_v35, 4  ;;  %v4704_v9 = vsel %vm784_vm0, %v4400_v10, 0.0  ;;  %v4719_v34 = vrot.slane %v4718_v21, 4  ;;  %v4403_v57 = vmul.f32 %v7998_v48, %v3821_v43 }
 0x3a5   : > { %v8165_v12 = vsel %vm5000_vm1, %v4905_v44, %v4904_v26  ;;  %v4695_v45 = vrot.slane %v4694_v17, 1  ;;  %v4680_v4 = vadd.f32 %v4679_v41, %v4678_v63  ;;  %v4685_v61 = vadd.f32 %v4684_v16, %v4683_v19 }
 0x3a6   : > { %v4699_v0 = vadd.f32 %v4698_v2, %v4697_v35  ;;  %v4705_v37 = vrot.slane %v4704_v9, 4  ;;  %v4668_v6 = vadd.f32 %v4667_v33, %v8097_v55  ;;  %v4720_v20 = vadd.f32 %v4719_v34, %v4718_v21 }
 0x3a7   : > { %v4681_v23 = vrot.slane %v4680_v4, 1  ;;  %v3813_v26 = vadd.f32 %v8172_v39, %v8051_v32  ;;  %v4686_v63 = vrot.slane %v4685_v61, 2  ;;  %v4725_v35 = vsel %vm784_vm0, %v4403_v57, 0.0 }
 0x3a8   : > { %v4700_v10 = vrot.slane %v4699_v0, 2  ;;  %v4706_v44 = vadd.f32 %v4705_v37, %v4704_v9  ;;  %v4901_v48 = vmul.f32 0.033333335, %v8111_v5  ;;  %v4675_v55 = vadd.f32 %v4674_v1, %v8107_v8 }
 0x3a9   : > { %v8177_v41 = vpop.f32.mrb[124].mxu0  ;;  %v4721_v33 = vrot.slane %v4720_v20, 2  ;;  %v4726_v43 = vrot.slane %v4725_v35, 4  ;;  %v4696_v16 = vadd.f32 %v4695_v45, %v4694_v17  ;;  %v4687_v2 = vadd.f32 %v4686_v63, %v4685_v61  ;;  %v8196_v61 = vpop.permute.xlu1 %4344 }
 0x3aa   : > { %v8181_v19 = vpop.f32.mrb[125].mxu0  ;;  %v4707_v21 = vrot.slane %v4706_v44, 2  ;;  %v4401_v32 = vmul.f32 %v7894_v62, %v3813_v26  ;;  %v8186_v9 = vmul.f32 0.033333335, %v4668_v6  ;;  %v4682_v37 = vadd.f32 %v4681_v23, %v4680_v4 }
 0x3ab   : > { %v8184_v34 = vpop.f32.mrb[126].mxu0  ;;  %v4722_v57 = vadd.f32 %v4721_v33, %v4720_v20  ;;  %v4727_v40 = vadd.f32 %v4726_v43, %v4725_v35  ;;  %v8190_v5 = vadd.f32 %v4700_v10, %v4699_v0  ;;  %v8703_v17 = vrot.slane %v8077_v54, 1 }
 0x3ac   : > { %v8188_v46 = vpop.f32.mrb[127].mxu0  ;;  %v4708_v8 = vadd.f32 %v4707_v21, %v4706_v44  ;;  %v4711_v1 = vsel %vm784_vm0, %v4401_v32, 0.0  ;;  %v8198_v62 = vmul.f32 0.033333335, %v4675_v55  ;;  %v4688_v6 = vrot.slane %v4687_v2, 1 }
 0x3ad   : > { %v4647_v45 = vadd.f32 %v8703_v17, %v8077_v54  ;;  %v4728_v26 = vrot.slane %v4727_v40, 2  ;;  %v4712_v4 = vrot.slane %v4711_v1, 4  ;;  %v8200_v23 = vmul.f32 0.033333335, %v4696_v16  ;;  %v4247_v17 = vpop.permute.xlu1 %4246 }
 0x3ae   : > { %v4723_v20 = vrot.slane %v4722_v57, 1  ;;  %v4709_v63 = vrot.slane %v4708_v8, 1  ;;  %v5029_v0 = vsel %vm5002_vm2, %v8083_v15, %v8061_v52  ;;  %v8205_v10 = vmul.f32 0.033333335, %v4682_v37 }
 0x3af   : > { %v8207_v44 = vadd.f32 %v4728_v26, %v4727_v40  ;;  %v4713_v54 = vadd.f32 %v4712_v4, %v4711_v1  ;;  %v5030_v35 = vsel %vm5004_vm3, %v8085_v11, %v5029_v0  ;;  %v4702_v55 = vrot.slane %v8190_v5, 1  ;;  %v6848_v26 = vld [vmem:[%s6996_s26 + $0x18] sm:$0xff] }
 0x3b0   : > { %v4903_v33 = vmul.f32 0.033333335, %v4647_v45  ;;  %v5031_v43 = vsel %vm5006_vm4, %v8105_v50, %v5030_v35  ;;  %v3834_v16 = vadd.f32 %v8172_v39, %v8065_v38  ;;  %v8218_v15 = vadd.f32 %v4688_v6, %v4687_v2 }
 0x3b1   : > { %v8216_v21 = vpop.f32.mrb[128].mxu0  ;;  %v4710_v52 = vadd.f32 %v4709_v63, %v4708_v8  ;;  %v4714_v40 = vrot.slane %v4713_v54, 2  ;;  %v5032_v32 = vsel %vm5008_vm5, %v4901_v48, %v5031_v43  ;;  %v8223_v11 = vadd.f32 %v4723_v20, %v4722_v57 }
 0x3b2   : > { %v8221_v37 = vpop.f32.mrb[129].mxu0  ;;  %v5033_v1 = vsel %vm5010_vm6, %v8091_v7, %v5032_v32  ;;  %v4406_v50 = vmul.f32 %v4240_v47, %v3834_v16  ;;  %v3826_v38 = vadd.f32 %v8172_v39, %v8067_v3  ;;  %v4730_v2 = vrot.slane %v8207_v44, 1 }
 0x3b3   : > { %v8229_v45 = vpop.f32.mrb[130].mxu0  ;;  %v4715_v8 = vadd.f32 %v4714_v40, %v4713_v54  ;;  %v5034_v6 = vsel %vm5012_vm7, %v4903_v33, %v5033_v1  ;;  %v3837_v48 = vadd.f32 %v8172_v39, %v8072_v51  ;;  %v3829_v47 = vadd.f32 %v8172_v39, %v8075_v60 }
 0x3b4   : > { %v8235_v57 = vpop.f32.mrb[131].mxu0  ;;  %v8238_v4 = vadd.f32 %v6848_v26, %v5034_v6  ;;  %v4746_v7 = vsel %vm784_vm0, %v4406_v50, 0.0  ;;  %v4404_v3 = vmul.f32 %v8058_v13, %v3826_v38  ;;  %v4912_v20 = vmul.f32 0.033333335, %v4710_v52 }
 0x3b5   : > { %v4716_v63 = vrot.slane %v4715_v8, 1  ;;  %v4747_v0 = vrot.slane %v4746_v7, 4  ;;  %v4407_v54 = vmul.f32 %v4247_v17, %v3837_v48  ;;  %v4405_v33 = vmul.f32 %v8117_v25, %v3829_v47 }
 0x3b6   : > { %v5090_v35 = vsel %vm784_vm0, %v8238_v4, 0.0  ;;  %v4732_v51 = vsel %vm784_vm0, %v4404_v3, 0.0  ;;  %v3850_v43 = vadd.f32 %v8172_v39, %v8103_v58  ;;  %v3842_v50 = vadd.f32 %v8172_v39, %v8109_v56 }
 0x3b7   : > { %v4717_v16 = vadd.f32 %v4716_v63, %v4715_v8  ;;  %5091 = vadd.xlane.f32.xlu0 %v5090_v35  ;;  %v4748_v13 = vadd.f32 %v4747_v0, %v4746_v7  ;;  %v4733_v40 = vrot.slane %v4732_v51, 4  ;;  %v4753_v60 = vsel %vm784_vm0, %v4407_v54, 0.0 }
 0x3b8   : > { %v4739_v52 = vsel %vm784_vm0, %v4405_v33, 0.0  ;;  %v4754_v32 = vrot.slane %v4753_v60, 4  ;;  %v4410_v1 = vmul.f32 %v7936_v29, %v3850_v43  ;;  %v4408_v8 = vmul.f32 %v7861_v30, %v3842_v50 }
 0x3b9   : > { %v4913_v38 = vmul.f32 0.033333335, %v4717_v16  ;;  %v4749_v17 = vrot.slane %v4748_v13, 2  ;;  %v4734_v25 = vadd.f32 %v4733_v40, %v4732_v51  ;;  %v4740_v6 = vrot.slane %v4739_v52, 4 }
 0x3ba   : > { %v4755_v48 = vadd.f32 %v4754_v32, %v4753_v60  ;;  %v4774_v58 = vsel %vm784_vm0, %v4410_v1, 0.0  ;;  %v3853_v26 = vadd.f32 %v8172_v39, %v8119_v36  ;;  %v4760_v0 = vsel %vm784_vm0, %v4408_v8, 0.0 }
 0x3bb   : > { %v8260_v7 = vsel %vm5000_vm1, %v4913_v38, %v4912_v20  ;;  %v4750_v3 = vadd.f32 %v4749_v17, %v4748_v13  ;;  %v4735_v29 = vrot.slane %v4734_v25, 2  ;;  %v4741_v47 = vadd.f32 %v4740_v6, %v4739_v52 }
 0x3bc   : > { %v4756_v63 = vrot.slane %v4755_v48, 2  ;;  %v4775_v56 = vrot.slane %v4774_v58, 4  ;;  %v4411_v54 = vmul.f32 %v7983_v28, %v3853_v26  ;;  %v4761_v43 = vrot.slane %v4760_v0, 4 }
 0x3bd   : > { %v4751_v35 = vrot.slane %v4750_v3, 1  ;;  %v4736_v51 = vadd.f32 %v4735_v29, %v4734_v25  ;;  %v4742_v33 = vrot.slane %v4741_v47, 2  ;;  %v3845_v20 = vadd.f32 %v8172_v39, %v8122_v14 }
 0x3be   : > { %v4757_v30 = vadd.f32 %v4756_v63, %v4755_v48  ;;  %v4776_v16 = vadd.f32 %v4775_v56, %v4774_v58  ;;  %v4781_v36 = vsel %vm784_vm0, %v4411_v54, 0.0  ;;  %v4731_v13 = vadd.f32 %v4730_v2, %v8207_v44 }
 0x3bf   : > { %v4752_v40 = vadd.f32 %v4751_v35, %v4750_v3  ;;  %v4737_v60 = vrot.slane %v4736_v51, 1  ;;  %v4762_v52 = vadd.f32 %v4761_v43, %v4760_v0  ;;  %v4743_v32 = vadd.f32 %v4742_v33, %v4741_v47 }
 0x3c0   : > { %v4777_v1 = vrot.slane %v4776_v16, 2  ;;  %v4782_v50 = vrot.slane %v4781_v36, 4  ;;  %v4409_v28 = vmul.f32 %v7948_v53, %v3845_v20  ;;  %v4909_v38 = vmul.f32 0.033333335, %v8218_v15  ;;  %v4296_v15 = vpop.permute.xlu0 %4295 }
 0x3c1   : > { %v4703_v17 = vadd.f32 %v4702_v55, %v8190_v5  ;;  %v8274_v25 = vmul.f32 0.033333335, %v8223_v11  ;;  %v4763_v14 = vrot.slane %v4762_v52, 2  ;;  %v4758_v6 = vrot.slane %v4757_v30, 1 }
 0x3c2   : > { %v4778_v44 = vadd.f32 %v4777_v1, %v4776_v16  ;;  %v4783_v2 = vadd.f32 %v4782_v50, %v4781_v36  ;;  %v4767_v48 = vsel %vm784_vm0, %v4409_v28, 0.0  ;;  %v8277_v58 = vmul.f32 0.033333335, %v4731_v13 }
 0x3c3   : > { %v8279_v8 = vmul.f32 0.033333335, %v4752_v40  ;;  %v4764_v53 = vadd.f32 %v4763_v14, %v4762_v52  ;;  %v4768_v26 = vrot.slane %v4767_v48, 4  ;;  %v8281_v3 = vadd.f32 %v4737_v60, %v4736_v51  ;;  %v6849_v52 = vld [vmem:[%s6996_s26 + $0x20] sm:$0xff] }
 0x3c4   : > { %v4744_v29 = vrot.slane %v4743_v32, 1  ;;  %v4784_v5 = vrot.slane %v4783_v2, 2  ;;  %v5036_v55 = vsel %vm5002_vm2, %v8186_v9, %v8165_v12  ;;  %v4779_v11 = vrot.slane %v4778_v44, 1  ;;  %v4303_v40 = vpop.permute.xlu0 %4302 }
 0x3c5   : > { %v4765_v47 = vrot.slane %v4764_v53, 1  ;;  %v4769_v63 = vadd.f32 %v4768_v26, %v4767_v48  ;;  %v5037_v56 = vsel %vm5004_vm3, %v8198_v62, %v5036_v55  ;;  %v8288_v0 = vadd.f32 %v4758_v6, %v4757_v30 }
 0x3c6   : > { %v8290_v54 = vadd.f32 %v4784_v5, %v4783_v2  ;;  %v5038_v35 = vsel %vm5006_vm4, %v8205_v10, %v5037_v56  ;;  %v3866_v51 = vadd.f32 %v8172_v39, %v8147_v59  ;;  %v4911_v43 = vmul.f32 0.033333335, %v4703_v17 }
 0x3c7   : > { %v4770_v33 = vrot.slane %v4769_v63, 2  ;;  %v5039_v12 = vsel %vm5008_vm5, %v4909_v38, %v5038_v35  ;;  %v3858_v9 = vadd.f32 %v8172_v39, %v8150_v27  ;;  %v8299_v16 = vadd.f32 %v4744_v29, %v4743_v32  ;;  %v8705_v35 = vld [vmem:[#allocation2_spill] sm:$0xff] }
 0x3c8   : > { %v4766_v62 = vadd.f32 %v4765_v47, %v4764_v53  ;;  %v5040_v30 = vsel %vm5010_vm6, %v8200_v23, %v5039_v12  ;;  %v4414_v36 = vmul.f32 %v4296_v15, %v3866_v51  ;;  %v4780_v20 = vadd.f32 %v4779_v11, %v4778_v44 }
 0x3c9   : > { %v4771_v10 = vadd.f32 %v4770_v33, %v4769_v63  ;;  %v5041_v13 = vsel %vm5012_vm7, %v4911_v43, %v5040_v30  ;;  %v4412_v59 = vmul.f32 %v8047_v22, %v3858_v9  ;;  %v4786_v60 = vrot.slane %v8290_v54, 1 }
 0x3ca   : > { %v8307_v1 = vadd.f32 %v6849_v52, %v5041_v13  ;;  %v4802_v27 = vsel %vm784_vm0, %v4414_v36, 0.0  ;;  %v3869_v32 = vadd.f32 %v8172_v39, %v8157_v31  ;;  %v3861_v38 = vadd.f32 %v8172_v39, %v8160_v18 }
 0x3cb   : > { %v4772_v50 = vrot.slane %v4771_v10, 1  ;;  %v4803_v23 = vrot.slane %v4802_v27, 4  ;;  %v4788_v28 = vsel %vm784_vm0, %v4412_v59, 0.0  ;;  %v4920_v17 = vmul.f32 0.033333335, %v4766_v62 }
 0x3cc   : > { %v5093_v22 = vsel %vm784_vm0, %v8307_v1, 0.0  ;;  %v4789_v14 = vrot.slane %v4788_v28, 4  ;;  %v4415_v6 = vmul.f32 %v4303_v40, %v3869_v32  ;;  %v4413_v48 = vmul.f32 %v8094_v42, %v3861_v38  ;;  %v8704_v42 = vld [vmem:[#allocation6_spill] sm:$0xff] }
 0x3cd   : > { %v4773_v44 = vadd.f32 %v4772_v50, %v4771_v10  ;;  %5094 = vadd.xlane.f32.xlu1 %v5093_v22  ;;  %v4804_v2 = vadd.f32 %v4803_v23, %v4802_v27  ;;  %v3882_v31 = vadd.f32 %v8172_v39, %v8177_v41  ;;  %v3874_v18 = vadd.f32 %v8172_v39, %v8181_v19  ;;  %v8706_v22 = vld [vmem:[#allocation4_spill] sm:$0xff] }
 0x3ce   : > { %v4790_v53 = vadd.f32 %v4789_v14, %v4788_v28  ;;  %v4809_v26 = vsel %vm784_vm0, %v4415_v6, 0.0  ;;  %v3885_v15 = vadd.f32 %v8172_v39, %v8184_v34  ;;  %v4795_v55 = vsel %vm784_vm0, %v4413_v48, 0.0 }
 0x3cf   : > { %v4921_v29 = vmul.f32 0.033333335, %v4773_v44  ;;  %v4805_v5 = vrot.slane %v4804_v2, 2  ;;  %v4810_v11 = vrot.slane %v4809_v26, 4  ;;  %v4796_v63 = vrot.slane %v4795_v55, 4 }
 0x3d0   : > { %v4791_v47 = vrot.slane %v4790_v53, 2  ;;  %v4418_v56 = vmul.f32 %v8704_v42, %v3882_v31  ;;  %v4416_v41 = vmul.f32 %v8705_v35, %v3874_v18  ;;  %v4419_v19 = vmul.f32 %v8080_v49, %v3885_v15 }
 0x3d1   : > { %v8329_v51 = vsel %vm5000_vm1, %v4921_v29, %v4920_v17  ;;  %v4806_v33 = vadd.f32 %v4805_v5, %v4804_v2  ;;  %v4811_v43 = vadd.f32 %v4810_v11, %v4809_v26  ;;  %v4797_v34 = vadd.f32 %v4796_v63, %v4795_v55  ;;  %v4352_v63 = vpop.permute.xlu1 %4351 }
 0x3d2   : > { %v4792_v12 = vadd.f32 %v4791_v47, %v4790_v53  ;;  %v4830_v9 = vsel %vm784_vm0, %v4418_v56, 0.0  ;;  %v4816_v62 = vsel %vm784_vm0, %v4416_v41, 0.0  ;;  %v4837_v52 = vsel %vm784_vm0, %v4419_v19, 0.0 }
 0x3d3   : > { %v4807_v30 = vrot.slane %v4806_v33, 1  ;;  %v4812_v36 = vrot.slane %v4811_v43, 2  ;;  %v4831_v10 = vrot.slane %v4830_v9, 4  ;;  %v4817_v13 = vrot.slane %v4816_v62, 4 }
 0x3d4   : > { %v4793_v59 = vrot.slane %v4792_v12, 1  ;;  %v4798_v40 = vrot.slane %v4797_v34, 2  ;;  %v3877_v27 = vadd.f32 %v8172_v39, %v8188_v46  ;;  %v4916_v32 = vmul.f32 0.033333335, %v8281_v3 }
 0x3d5   : > { %v4787_v49 = vadd.f32 %v4786_v60, %v8290_v54  ;;  %v4832_v50 = vadd.f32 %v4831_v10, %v4830_v9  ;;  %v4818_v23 = vadd.f32 %v4817_v13, %v4816_v62  ;;  %v4808_v28 = vadd.f32 %v4807_v30, %v4806_v33  ;;  %v6850_v10 = vld [vmem:[%s6996_s26 + $0x28] sm:$0xff] }
 0x3d6   : > { %v4799_v38 = vadd.f32 %v4798_v40, %v4797_v34  ;;  %v4838_v17 = vrot.slane %v4837_v52, 4  ;;  %v4417_v14 = vmul.f32 %v8706_v22, %v3877_v27  ;;  %v4917_v6 = vmul.f32 0.033333335, %v8299_v16  ;;  %v4359_v27 = vpop.permute.xlu1 %4358 }
 0x3d7   : > { %v4813_v44 = vadd.f32 %v4812_v36, %v4811_v43  ;;  %v4833_v2 = vrot.slane %v4832_v50, 2  ;;  %v4819_v48 = vrot.slane %v4818_v23, 2  ;;  %v4922_v31 = vmul.f32 0.033333335, %v4780_v20 }
 0x3d8   : > { %v4794_v53 = vadd.f32 %v4793_v59, %v4792_v12  ;;  %v4839_v26 = vadd.f32 %v4838_v17, %v4837_v52  ;;  %v4823_v46 = vsel %vm784_vm0, %v4417_v14, 0.0  ;;  %v4923_v3 = vmul.f32 0.033333335, %v4787_v49 }
 0x3d9   : > { %v4800_v18 = vrot.slane %v4799_v38, 1  ;;  %v4820_v54 = vadd.f32 %v4819_v48, %v4818_v23  ;;  %v4824_v60 = vrot.slane %v4823_v46, 4  ;;  %v8342_v15 = vmul.f32 0.033333335, %v4808_v28 }
 0x3da   : > { %v4834_v29 = vadd.f32 %v4833_v2, %v4832_v50  ;;  %v4840_v5 = vrot.slane %v4839_v26, 2  ;;  %v5043_v16 = vsel %vm5002_vm2, %v8274_v25, %v8260_v7  ;;  %v4814_v55 = vrot.slane %v4813_v44, 1 }
 0x3db   : > { %v4821_v11 = vrot.slane %v4820_v54, 1  ;;  %v4825_v47 = vadd.f32 %v4824_v60, %v4823_v46  ;;  %v5044_v20 = vsel %vm5004_vm3, %v8277_v58, %v5043_v16  ;;  %v4924_v42 = vmul.f32 0.033333335, %v4794_v53 }
 0x3dc   : > { %v4841_v56 = vadd.f32 %v4840_v5, %v4839_v26  ;;  %v5045_v35 = vsel %vm5006_vm4, %v4916_v32, %v5044_v20  ;;  %v3898_v41 = vadd.f32 %v8172_v39, %v8216_v21  ;;  %v4801_v33 = vadd.f32 %v4800_v18, %v4799_v38 }
 0x3dd   : > { %v4826_v43 = vrot.slane %v4825_v47, 2  ;;  %v4919_v19 = vmul.f32 0.033333335, %v8288_v0  ;;  %v5046_v7 = vsel %vm5008_vm5, %v4917_v6, %v5045_v35  ;;  %v4835_v25 = vrot.slane %v4834_v29, 1 }
 0x3de   : > { %v5047_v12 = vsel %vm5010_vm6, %v8279_v8, %v5046_v7  ;;  %v4422_v58 = vmul.f32 %v4352_v63, %v3898_v41  ;;  %v3890_v34 = vadd.f32 %v8172_v39, %v8221_v37  ;;  %v4815_v9 = vadd.f32 %v4814_v55, %v4813_v44 }
 0x3df   : > { %v4822_v62 = vadd.f32 %v4821_v11, %v4820_v54  ;;  %v4827_v30 = vadd.f32 %v4826_v43, %v4825_v47  ;;  %v5048_v36 = vsel %vm5012_vm7, %v4919_v19, %v5047_v12  ;;  %v4842_v21 = vrot.slane %v4841_v56, 1 }
 0x3e0   : > { %v8360_v13 = vadd.f32 %v6850_v10, %v5048_v36  ;;  %v4858_v0 = vsel %vm784_vm0, %v4422_v58, 0.0  ;;  %v4420_v59 = vmul.f32 %v8141_v24, %v3890_v34  ;;  %v3901_v8 = vadd.f32 %v8172_v39, %v8229_v45 }
 0x3e1   : > { %v4828_v40 = vrot.slane %v4827_v30, 1  ;;  %v4859_v52 = vrot.slane %v4858_v0, 4  ;;  %v3893_v37 = vadd.f32 %v8172_v39, %v8235_v57  ;;  %v4925_v32 = vmul.f32 0.033333335, %v4801_v33 }
 0x3e2   : > { %v4836_v49 = vadd.f32 %v4835_v25, %v4834_v29  ;;  %v5096_v50 = vsel %vm784_vm0, %v8360_v13, 0.0  ;;  %v4844_v23 = vsel %vm784_vm0, %v4420_v59, 0.0  ;;  %v4928_v22 = vmul.f32 0.033333335, %v4822_v62 }
 0x3e3   : > { %v4829_v28 = vadd.f32 %v4828_v40, %v4827_v30  ;;  %5097 = vadd.xlane.f32.xlu0 %v5096_v50  ;;  %v4860_v38 = vadd.f32 %v4859_v52, %v4858_v0  ;;  %v4845_v24 = vrot.slane %v4844_v23, 4  ;;  %v4421_v17 = vmul.f32 %v8196_v61, %v3893_v37  ;;  %v8707_v50 = vld [vmem:[#allocation3_spill] sm:$0xff] }
 0x3e4   : > { %v4843_v14 = vadd.f32 %v4842_v21, %v4841_v56  ;;  %v4423_v45 = vmul.f32 %v4359_v27, %v3901_v8  ;;  %v5050_v39 = vsel %vm5002_vm2, %v4922_v31, %v8329_v51  ;;  %v4930_v48 = vmul.f32 0.033333335, %v4836_v49  ;;  %v6852_v8 = vld [vmem:[%s6996_s26 + $0x38] sm:$0xff] }
 0x3e5   : > { %v4929_v57 = vmul.f32 0.033333335, %v4829_v28  ;;  %v4861_v6 = vrot.slane %v4860_v38, 2  ;;  %v4846_v44 = vadd.f32 %v4845_v24, %v4844_v23  ;;  %v4851_v2 = vsel %vm784_vm0, %v4421_v17, 0.0 }
 0x3e6   : > { %v4852_v53 = vrot.slane %v4851_v2, 4  ;;  %v4865_v26 = vsel %vm784_vm0, %v4423_v45, 0.0  ;;  %v5051_v46 = vsel %vm5004_vm3, %v4923_v3, %v5050_v39  ;;  %v4931_v29 = vmul.f32 0.033333335, %v4843_v14 }
 0x3e7   : > { %v5056_v18 = vsel %vm5000_vm1, %v4929_v57, %v4928_v22  ;;  %v4862_v61 = vadd.f32 %v4861_v6, %v4860_v38  ;;  %v4847_v54 = vrot.slane %v4846_v44, 2  ;;  %v4866_v60 = vrot.slane %v4865_v26, 4  ;;  %v8708_v22 = vld [vmem:[#allocation5_spill] sm:$0xff]  ;;  %v6770_v57 = vld [vmem:[%s8675_s15] sm:$0xff]  }
 0x3e8   : > { %v4853_v5 = vadd.f32 %v4852_v53, %v4851_v2  ;;  %v5052_v51 = vsel %vm5006_vm4, %v4924_v42, %v5051_v46  ;;  %v5057_v31 = vsel %vm5002_vm2, %v4930_v48, %v5056_v18  ;;  %v4927_v11 = vmul.f32 0.033333335, %v4815_v9  ;;  %v6851_v42 = vld [vmem:[%s6996_s26 + $0x30] sm:$0xff]  ;;  %6580 = vmatprep.subr.bf16.mxu1 %v6770_v57  ;;  %v8709_v2 = vld [vmem:[#allocation7_spill] sm:$0xff] }
 0x3e9   : > { %v4848_v16 = vadd.f32 %v4847_v54, %v4846_v44  ;;  %v4867_v55 = vadd.f32 %v4866_v60, %v4865_v26  ;;  %v5053_v47 = vsel %vm5008_vm5, %v4925_v32, %v5052_v51  ;;  %v5058_v63 = vsel %vm5004_vm3, %v4931_v29, %v5057_v31  ;;  %6581 = vmatpush3.bf16.msra.mxu1 %v6770_v57 }
 0x3ea   : > { %v4854_v20 = vrot.slane %v4853_v5, 2  ;;  %v5054_v3 = vsel %vm5010_vm6, %v8342_v15, %v5053_v47  ;;  %v4863_v56 = vrot.slane %v4862_v61, 1 }
 0x3eb   : > { %v4849_v35 = vrot.slane %v4848_v16, 1  ;;  %v4868_v41 = vrot.slane %v4867_v55, 2  ;;  %v5055_v33 = vsel %vm5012_vm7, %v4927_v11, %v5054_v3 }
 0x3ec   : > { %v4855_v43 = vadd.f32 %v4854_v20, %v4853_v5  ;;  %v8386_v19 = vadd.f32 %v6851_v42, %v5055_v33  ;;  %v4864_v34 = vadd.f32 %v4863_v56, %v4862_v61 }
 0x3ed   : > { %v4850_v7 = vadd.f32 %v4849_v35, %v4848_v16  ;;  %v4869_v25 = vadd.f32 %v4868_v41, %v4867_v55 }
 0x3ee   : > { %v4856_v12 = vrot.slane %v4855_v43, 1  ;;  %v5099_v58 = vsel %vm784_vm0, %v8386_v19, 0.0  ;;  %v4934_v10 = vmul.f32 0.033333335, %v4864_v34 }
 0x3ef   : > { %v4932_v15 = vmul.f32 0.033333335, %v4850_v7  ;;  %v4870_v9 = vrot.slane %v4869_v25, 1  ;;  %5100 = vadd.xlane.f32.xlu1 %v5099_v58 }
 0x3f0   : > { %v4857_v62 = vadd.f32 %v4856_v12, %v4855_v43 }
 0x3f1   : > { %v4871_v30 = vadd.f32 %v4870_v9, %v4869_v25  ;;  %v5059_v36 = vsel %vm5006_vm4, %v4932_v15, %v5058_v63 }
 0x3f2   : > { %v4933_v21 = vmul.f32 0.033333335, %v4857_v62 }
 0x3f3   : > { %v4935_v0 = vmul.f32 0.033333335, %v4871_v30 }
 0x3f4   : > { %v5060_v59 = vsel %vm5008_vm5, %v4933_v21, %v5059_v36 }
 0x3f5   : > { %v5061_v40 = vsel %vm5010_vm6, %v4934_v10, %v5060_v59 }
 0x3f6   : > { %v5062_v52 = vsel %vm5012_vm7, %v4935_v0, %v5061_v40 }
 0x3f7   : > { %v5078_v37 = vadd.f32 %v6852_v8, %v5062_v52  ;;  %v6772_v8 = vld [vmem:[%s8677_s17] sm:$0xff]  }
 0x3f8   : > { %6592 = vmatprep.subr.bf16.mxu0 %v6772_v8 }
 0x3f9   : > { %v5102_v27 = vsel %vm784_vm0, %v5078_v37, 0.0  ;;  %6593 = vmatpush3.bf16.msra.mxu0 %v6772_v8 }
 0x3fa   : > { %5103 = vadd.xlane.f32.xlu0 %v5102_v27  ;;  %v8458_v27 = vld [vmem:[%s8673_s13] ss:$0 sm:$0xff] }
 0x400   : > { %v5083_v32 = vpop.xlane.xlu0 %5082 }
 0x401   : > { %v5106_v49 = vmul.f32 0.03125, %v5083_v32 }
 0x403   : > { %v8397_v23 = vsub.f32 %v8707_v50, %v5106_v49  ;;  %v6774_v49 = vld [vmem:[%s8677_s17 + $0x10] sm:$0xff]  }
 0x405   : > { %v5122_v28 = vmul.f32 %v8397_v23, %v8397_v23  ;;  %v5240_v50 = vmul.f32 %v8458_v27, %v8397_v23 }
 0x407   : > { %v5130_v38 = vsel %vm784_vm0, %v5122_v28, 0.0 }
 0x408   : > { %5131 = vadd.xlane.f32.xlu1 %v5130_v38 }
 0x416   : > { %v5086_v24 = vpop.xlane.xlu1 %5085 }
 0x417   : > { %v5107_v17 = vmul.f32 0.03125, %v5086_v24 }
 0x419   : > { %v8403_v14 = vsub.f32 %v8708_v22, %v5107_v17  ;;  %v8470_v22 = vld [vmem:[%s8674_s14] ss:$0 sm:$0xff] }
 0x41b   : > { %v5123_v45 = vmul.f32 %v8403_v14, %v8403_v14  ;;  %v5241_v38 = vmul.f32 %v8458_v27, %v8403_v14 }
 0x41d   : > { %v5133_v39 = vsel %vm784_vm0, %v5123_v45, 0.0  ;;  %v6775_v45 = vld [vmem:[%s8677_s17 + $0x18] sm:$0xff]  }
 0x41e   : > { %5134 = vadd.xlane.f32.xlu0 %v5133_v39 }
 0x42d   : > { %v5089_v6 = vpop.xlane.xlu0 %5088 }
 0x42e   : > { %v5108_v44 = vmul.f32 0.03125, %v5089_v6  ;;  %v6776_v6 = vld [vmem:[%s8677_s17 + $0x20] sm:$0xff]  }
 0x430   : > { %v8412_v48 = vsub.f32 %v8709_v2, %v5108_v44  ;;  %v6777_v2 = vld [vmem:[%s8677_s17 + $0x28] sm:$0xff]  }
 0x432   : > { %v5124_v53 = vmul.f32 %v8412_v48, %v8412_v48 }
 0x434   : > { %v5136_v26 = vsel %vm784_vm0, %v5124_v53, 0.0 }
 0x435   : > { %5137 = vadd.xlane.f32.xlu1 %v5136_v26 }
 0x444   : > { %v5092_v46 = vpop.xlane.xlu0 %5091 }
 0x445   : > { %v5109_v18 = vmul.f32 0.03125, %v5092_v46 }
 0x447   : > { %v8418_v61 = vsub.f32 %v8238_v4, %v5109_v18 }
 0x449   : > { %v5125_v54 = vmul.f32 %v8418_v61, %v8418_v61 }
 0x44b   : > { %v5139_v60 = vsel %vm784_vm0, %v5125_v54, 0.0 }
 0x44c   : > { %5140 = vadd.xlane.f32.xlu0 %v5139_v60 }
 0x45a   : > { %v5095_v29 = vpop.xlane.xlu1 %5094 }
 0x45b   : > { %v5110_v5 = vmul.f32 0.03125, %v5095_v29 }
 0x45d   : > { %v8424_v51 = vsub.f32 %v8307_v1, %v5110_v5 }
 0x45f   : > { %v5126_v31 = vmul.f32 %v8424_v51, %v8424_v51 }
 0x461   : > { %v5142_v16 = vsel %vm784_vm0, %v5126_v31, 0.0 }
 0x462   : > { %5143 = vadd.xlane.f32.xlu1 %v5142_v16 }
 0x470   : > { %v5098_v55 = vpop.xlane.xlu0 %5097 }
 0x471   : > { %v5111_v4 = vmul.f32 0.03125, %v5098_v55 }
 0x473   : > { %v8430_v11 = vsub.f32 %v8360_v13, %v5111_v4  ;;  %v6771_v13 = vld [vmem:[%s8675_s15 + $0x8] sm:$0xff]  }
 0x474   : > { %6582 = vmatprep.subr.bf16.mxu1 %v6771_v13 }
 0x475   : > { %v5127_v47 = vmul.f32 %v8430_v11, %v8430_v11  ;;  %6583 = vmatpush3.bf16.msra.mxu1 %v6771_v13 }
 0x477   : > { %v5145_v20 = vsel %vm784_vm0, %v5127_v47, 0.0 }
 0x478   : > { %5146 = vadd.xlane.f32.xlu0 %v5145_v20 }
 0x47c   : > { %v5101_v3 = vpop.xlane.xlu1 %5100 }
 0x47d   : > { %v5112_v1 = vmul.f32 0.03125, %v5101_v3 }
 0x47f   : > { %v8436_v63 = vsub.f32 %v8386_v19, %v5112_v1 }
 0x481   : > { %v5128_v56 = vmul.f32 %v8436_v63, %v8436_v63 }
 0x483   : > { %v5148_v35 = vsel %vm784_vm0, %v5128_v56, 0.0  ;;  %v5242_v56 = vmul.f32 %v8458_v27, %v8412_v48 }
 0x484   : > { %5149 = vadd.xlane.f32.xlu1 %v5148_v35  ;;  %v5243_v35 = vmul.f32 %v8458_v27, %v8418_v61 }
 0x487   : > { %v5104_v41 = vpop.xlane.xlu0 %5103 }
 0x488   : > { %v5113_v33 = vmul.f32 0.03125, %v5104_v41 }
 0x48a   : > { %v8444_v43 = vsub.f32 %v5078_v37, %v5113_v33  ;;  %v6773_v37 = vld [vmem:[%s8677_s17 + $0x8] sm:$0xff]  }
 0x48b   : > { %6594 = vmatprep.subr.bf16.mxu0 %v6773_v37 }
 0x48c   : > { %v5129_v42 = vmul.f32 %v8444_v43, %v8444_v43  ;;  %6595 = vmatpush3.bf16.msra.mxu0 %v6773_v37 }
 0x48d   : > { %6596 = vmatprep.subr.bf16.mxu0 %v6774_v49 }
 0x48e   : > { %v5151_v19 = vsel %vm784_vm0, %v5129_v42, 0.0 }
 0x48f   : > { %5152 = vadd.xlane.f32.xlu0 %v5151_v19 }
 0x490   : > { %6597 = vmatpush3.bf16.msra.mxu0 %v6774_v49 }
 0x491   : > { %6598 = vmatprep.subr.bf16.mxu0 %v6775_v45 }
 0x494   : > { %6599 = vmatpush3.bf16.msra.mxu0 %v6775_v45 }
 0x495   : > { %v5132_v7 = vpop.xlane.xlu1 %5131  ;;  %6600 = vmatprep.subr.bf16.mxu0 %v6776_v6 }
 0x496   : > { %v5154_v25 = vmul.f32 0.032258064, %v5132_v7 }
 0x498   : > { %6780 = vrsqrt.f32 %v5154_v25  ;;  %vm5164_vm8 = vcmp.eq.f32.partialorder %v5154_v25, inf  ;;  %v5167_v62 = vand.u32 2147483648, %v5154_v25  ;;  %vm5166_vm9 = vcmp.eq.f32.partialorder %v5154_v25, 0.0  ;;  %6601 = vmatpush3.bf16.msra.mxu0 %v6776_v6 }
 0x499   : > { %6602 = vmatprep.subr.bf16.mxu0 %v6777_v2 }
 0x49c   : > { %6603 = vmatpush3.bf16.msra.mxu0 %v6777_v2 }
 0x4a2   : > { %v6781_v12 = vpop.eup %6780 }
 0x4a3   : > { %v5163_v15 = vmul.f32 %v6781_v12, %v5154_v25 }
 0x4a5   : > { %v5165_v9 = vsel %vm5164_vm8, %v5154_v25, %v5163_v15 }
 0x4a6   : > { %v5168_v30 = vsel %vm5166_vm9, %v5167_v62, %v5165_v9 }
 0x4a7   : > { %v5218_v36 = vadd.f32 1e-06, %v5168_v30 }
 0x4ab   : > { %v5135_v58 = vpop.xlane.xlu0 %5134 }
 0x4ac   : > { %v5155_v34 = vmul.f32 0.032258064, %v5135_v58 }
 0x4ae   : > { %6782 = vrsqrt.f32 %v5155_v34  ;;  %vm5171_vm10 = vcmp.eq.f32.partialorder %v5155_v34, inf  ;;  %v5174_v0 = vand.u32 2147483648, %v5155_v34  ;;  %vm5173_vm11 = vcmp.eq.f32.partialorder %v5155_v34, 0.0 }
 0x4af   : > { %6784 = vrcp.f32 %v5218_v36 }
 0x4b8   : > { %v6783_v21 = vpop.eup %6782 }
 0x4b9   : > { %v5170_v10 = vmul.f32 %v6783_v21, %v5155_v34  ;;  %v6785_v32 = vpop.eup %6784 }
 0x4ba   : > { %v5248_v24 = vmul.f32 %v6785_v32, %v5240_v50 }
 0x4bb   : > { %v5172_v59 = vsel %vm5171_vm10, %v5155_v34, %v5170_v10 }
 0x4bc   : > { %v5175_v40 = vsel %vm5173_vm11, %v5174_v0, %v5172_v59  ;;  %v8476_v23 = vadd.f32 %v8470_v22, %v5248_v24 }
 0x4bd   : > { %v5219_v52 = vadd.f32 1e-06, %v5175_v40 }
 0x4bf   : > { %6786 = vrcp.f32 %v5219_v52 }
 0x4c2   : > { %v5138_v28 = vpop.xlane.xlu1 %5137 }
 0x4c3   : > { %v5156_v39 = vmul.f32 0.032258064, %v5138_v28  ;;  %v5244_v28 = vmul.f32 %v8458_v27, %v8424_v51 }
 0x4c5   : > { %6788 = vrsqrt.f32 %v5156_v39  ;;  %vm5178_vm12 = vcmp.eq.f32.partialorder %v5156_v39, inf  ;;  %v5181_v60 = vand.u32 2147483648, %v5156_v39  ;;  %vm5180_vm13 = vcmp.eq.f32.partialorder %v5156_v39, 0.0 }
 0x4c9   : > { %v6787_v17 = vpop.eup %6786 }
 0x4ca   : > { %v5249_v57 = vmul.f32 %v6787_v17, %v5241_v38  ;;  %v5245_v38 = vmul.f32 %v8458_v27, %v8430_v11 }
 0x4cc   : > { %v8479_v14 = vadd.f32 %v8470_v22, %v5249_v57 }
 0x4ce   : > { %v5270_v44 = vpack.c.bf16 %v8479_v14, %v8476_v23 }
 0x4cf   : > { %v6789_v53 = vpop.eup %6788 }
 0x4d0   : > { %6584 = vmatprep.mubr.msk.bf16.mxu1 %vm784_vm0, %v5270_v44  ;;  %v5177_v18 = vmul.f32 %v6789_v53, %v5156_v39 }
 0x4d2   : > { %v5179_v54 = vsel %vm5178_vm12, %v5156_v39, %v5177_v18 }
 0x4d3   : > { %v5182_v29 = vsel %vm5180_vm13, %v5181_v60, %v5179_v54 }
 0x4d4   : > { %v5220_v5 = vadd.f32 1e-06, %v5182_v29 }
 0x4d9   : > { %v5141_v26 = vpop.xlane.xlu0 %5140 }
 0x4da   : > { %v5157_v46 = vmul.f32 0.032258064, %v5141_v26 }
 0x4dc   : > { %6790 = vrsqrt.f32 %v5157_v46  ;;  %vm5185_vm14 = vcmp.eq.f32.partialorder %v5157_v46, inf  ;;  %v5188_v55 = vand.u32 2147483648, %v5157_v46  ;;  %vm5187_vm15 = vcmp.eq.f32.partialorder %v5157_v46, 0.0 }
 0x4dd   : > { %6792 = vrcp.f32 %v5220_v5  ;;  %v5246_v5 = vmul.f32 %v8458_v27, %v8436_v63  ;;  %v6778_v63 = vld [vmem:[%s8677_s17 + $0x30] sm:$0xff]  }
 0x4de   : > { %6604 = vmatprep.subr.bf16.mxu0 %v6778_v63 }
 0x4df   : > { %6605 = vmatpush3.bf16.msra.mxu0 %v6778_v63 }
 0x4e6   : > { %v6791_v31 = vpop.eup %6790 }
 0x4e7   : > { %v5184_v16 = vmul.f32 %v6791_v31, %v5157_v46  ;;  %v6793_v3 = vpop.eup %6792  ;;  %v5247_v31 = vmul.f32 %v8458_v27, %v8444_v43  ;;  %v6779_v43 = vld [vmem:[%s8677_s17 + $0x38] sm:$0xff]   ;;  %v6116_v27 = vld [vmem:[%s8676_s16] ss:$0 sm:$0xff] }
 0x4e8   : > { %v5250_v41 = vmul.f32 %v6793_v3, %v5242_v56  ;;  %6606 = vmatprep.subr.bf16.mxu0 %v6779_v43 }
 0x4e9   : > { %v5186_v4 = vsel %vm5185_vm14, %v5157_v46, %v5184_v16  ;;  %6607 = vmatpush3.bf16.msra.mxu0 %v6779_v43 }
 0x4ea   : > { %v5189_v47 = vsel %vm5187_vm15, %v5188_v55, %v5186_v4  ;;  %v8495_v19 = vadd.f32 %v8470_v22, %v5250_v41 }
 0x4eb   : > { %v5221_v20 = vadd.f32 1e-06, %v5189_v47 }
 0x4ed   : > { %6794 = vrcp.f32 %v5221_v20 }
 0x4ef   : > { %v5144_v1 = vpop.xlane.xlu1 %5143 }
 0x4f0   : > { %v5158_v13 = vmul.f32 0.032258064, %v5144_v1 }
 0x4f2   : > { %6796 = vrsqrt.f32 %v5158_v13  ;;  %vm5192_vm1 = vcmp.eq.f32.partialorder %v5158_v13, inf  ;;  %v5195_v15 = vand.u32 2147483648, %v5158_v13  ;;  %vm5194_vm2 = vcmp.eq.f32.partialorder %v5158_v13, 0.0 }
 0x4f7   : > { %v6795_v33 = vpop.eup %6794 }
 0x4f8   : > { %v5251_v42 = vmul.f32 %v6795_v33, %v5243_v35 }
 0x4fa   : > { %v8498_v7 = vadd.f32 %v8470_v22, %v5251_v42 }
 0x4fc   : > { %v5271_v25 = vpack.c.bf16 %v8498_v7, %v8495_v19  ;;  %v6797_v48 = vpop.eup %6796 }
 0x4fd   : > { %v5191_v61 = vmul.f32 %v6797_v48, %v5158_v13 }
 0x4fe   : > { %6585 = vmatmul.mubr.msk.bf16.vlgmr.msra.gmra.mrb[68].mxu1 %vm784_vm0, %v5271_v25 }
 0x4ff   : > { %v5193_v34 = vsel %vm5192_vm1, %v5158_v13, %v5191_v61 }
 0x500   : > { %v5196_v9 = vsel %vm5194_vm2, %v5195_v15, %v5193_v34 }
 0x501   : > { %v5222_v62 = vadd.f32 1e-06, %v5196_v9 }
 0x505   : > { %v5147_v12 = vpop.xlane.xlu0 %5146 }
 0x506   : > { %v5159_v58 = vmul.f32 0.032258064, %v5147_v12 }
 0x508   : > { %6798 = vrsqrt.f32 %v5159_v58  ;;  %vm5199_vm3 = vcmp.eq.f32.partialorder %v5159_v58, inf  ;;  %v5202_v0 = vand.u32 2147483648, %v5159_v58  ;;  %vm5201_vm4 = vcmp.eq.f32.partialorder %v5159_v58, 0.0 }
 0x511   : > { %v5150_v30 = vpop.xlane.xlu1 %5149 }
 0x512   : > { %v6799_v36 = vpop.eup %6798  ;;  %v5160_v21 = vmul.f32 0.032258064, %v5150_v30 }
 0x513   : > { %v5198_v10 = vmul.f32 %v6799_v36, %v5159_v58 }
 0x514   : > { %6800 = vrsqrt.f32 %v5160_v21  ;;  %vm5206_vm5 = vcmp.eq.f32.partialorder %v5160_v21, inf  ;;  %v5209_v39 = vand.u32 2147483648, %v5160_v21  ;;  %vm5208_vm6 = vcmp.eq.f32.partialorder %v5160_v21, 0.0 }
 0x515   : > { %6802 = vrcp.f32 %v5222_v62  ;;  %v5200_v59 = vsel %vm5199_vm3, %v5159_v58, %v5198_v10 }
 0x516   : > { %v5203_v40 = vsel %vm5201_vm4, %v5202_v0, %v5200_v59 }
 0x517   : > { %v5223_v52 = vadd.f32 1e-06, %v5203_v40 }
 0x519   : > { %6804 = vrcp.f32 %v5223_v52 }
 0x51c   : > { %v5153_v8 = vpop.xlane.xlu0 %5152 }
 0x51d   : > { %v5161_v37 = vmul.f32 0.032258064, %v5153_v8 }
 0x51e   : > { %v6801_v32 = vpop.eup %6800 }
 0x51f   : > { %v6803_v49 = vpop.eup %6802  ;;  %v5205_v50 = vmul.f32 %v6801_v32, %v5160_v21  ;;  %6806 = vrsqrt.f32 %v5161_v37  ;;  %vm5213_vm7 = vcmp.eq.f32.partialorder %v5161_v37, inf  ;;  %v5216_v11 = vand.u32 2147483648, %v5161_v37 }
 0x520   : > { %v5252_v17 = vmul.f32 %v6803_v49, %v5244_v28  ;;  %vm5215_vm8 = vcmp.eq.f32.partialorder %v5161_v37, 0.0  ;;  %v6123_v49 = vld [vmem:[%s8678_s18] ss:$0 sm:$0xff] }
 0x521   : > { %v5207_v24 = vsel %vm5206_vm5, %v5160_v21, %v5205_v50 }
 0x522   : > { %v5210_v6 = vsel %vm5208_vm6, %v5209_v39, %v5207_v24  ;;  %v8508_v44 = vadd.f32 %v8470_v22, %v5252_v17 }
 0x523   : > { %v6805_v45 = vpop.eup %6804  ;;  %v5224_v53 = vadd.f32 1e-06, %v5210_v6 }
 0x524   : > { %v5253_v57 = vmul.f32 %v6805_v45, %v5245_v38 }
 0x525   : > { %6808 = vrcp.f32 %v5224_v53 }
 0x526   : > { %v8511_v2 = vadd.f32 %v8470_v22, %v5253_v57 }
 0x528   : > { %v5272_v51 = vpack.c.bf16 %v8511_v2, %v8508_v44 }
 0x529   : > { %v6807_v26 = vpop.eup %6806 }
 0x52a   : > { %v5212_v46 = vmul.f32 %v6807_v26, %v5161_v37  ;;  %6588 = vmatprep.mubr.msk.bf16.mxu1 %vm784_vm0, %v5272_v51 }
 0x52c   : > { %v5214_v18 = vsel %vm5213_vm7, %v5161_v37, %v5212_v46 }
 0x52d   : > { %v5217_v54 = vsel %vm5215_vm8, %v5216_v11, %v5214_v18 }
 0x52e   : > { %v5225_v60 = vadd.f32 1e-06, %v5217_v54 }
 0x52f   : > { %v6809_v29 = vpop.eup %6808 }
 0x530   : > { %6810 = vrcp.f32 %v5225_v60  ;;  %v5254_v16 = vmul.f32 %v6809_v29, %v5246_v5 }
 0x532   : > { %v8521_v47 = vadd.f32 %v8470_v22, %v5254_v16 }
 0x53a   : > { %v6811_v55 = vpop.eup %6810 }
 0x53b   : > { %v5255_v4 = vmul.f32 %v6811_v55, %v5247_v31 }
 0x53d   : > { %v8524_v20 = vadd.f32 %v8470_v22, %v5255_v4 }
 0x53f   : > { %v5273_v3 = vpack.c.bf16 %v8524_v20, %v8521_v47 }
 0x541   : > { %6589 = vmatmul.mubr.msk.bf16.gmra.mrb[72].mxu1 %vm784_vm0, %v5273_v3 }
 0x5d1   : > { %v6586_v22 = vpop.f32.mrb[68].mxu1 }
 0x5d2   : > { %v5352_v1 = vadd.f32 %v6586_v22, %v6116_v27  ;;  %v5343_v56 = vpop.f32.mrb[69].mxu1 }
 0x5d3   : > { %v5344_v35 = vadd.f32 %v6116_v27, %v5343_v56  ;;  %v6587_v13 = vpop.f32.mrb[70].mxu1 }
 0x5d4   : > { %v5355_v41 = vadd.f32 %v6587_v13, %v6116_v27  ;;  %v5346_v33 = vpop.f32.mrb[71].mxu1  ;;  %v5376_v25 = vmax.f32 %v5352_v1, 0.0  ;;  %v6862_v1 = vmov 0  }
 0x5d5   : > { %v5347_v42 = vadd.f32 %v6116_v27, %v5346_v33  ;;  %v5374_v12 = vmax.f32 %v5344_v35, 0.0  ;;  %6694 = vset.pattern.permute.xlu1 %v6862_v1  ;;  %6695 = vset.pattern.permute.xlu0 %v6862_v1 }
 0x5d6   : > { %v5377_v48 = vmax.f32 %v5355_v41, 0.0 }
 0x5d7   : > { %v5375_v58 = vmax.f32 %v5347_v42, 0.0 }
 0x5d8   : > { %v5383_v61 = vpack.c.bf16 %v5377_v48, %v5376_v25 }
 0x5d9   : > { %v5382_v34 = vpack.c.bf16 %v5375_v58, %v5374_v12 }
 0x5db   : > { %6608 = vmatprep.mubr.bf16.mxu0 %v5382_v34 }
 0x5dc   : > { %6609 = vmatmul.mubr.bf16.vlgmr.msra.gmra.mrb[132].mxu0 %v5383_v61 }
 0x614   : > { %v6590_v15 = vpop.f32.mrb[72].mxu1 }
 0x615   : > { %v5368_v9 = vadd.f32 %v6590_v15, %v6116_v27  ;;  %v5359_v62 = vpop.f32.mrb[73].mxu1 }
 0x616   : > { %v5360_v30 = vadd.f32 %v6116_v27, %v5359_v62  ;;  %v6591_v36 = vpop.f32.mrb[74].mxu1 }
 0x617   : > { %v5371_v21 = vadd.f32 %v6591_v36, %v6116_v27  ;;  %v5362_v10 = vpop.f32.mrb[75].mxu1  ;;  %v5380_v59 = vmax.f32 %v5368_v9, 0.0 }
 0x618   : > { %v5363_v0 = vadd.f32 %v6116_v27, %v5362_v10  ;;  %v5378_v52 = vmax.f32 %v5360_v30, 0.0 }
 0x619   : > { %v5381_v40 = vmax.f32 %v5371_v21, 0.0 }
 0x61a   : > { %v5379_v8 = vmax.f32 %v5363_v0, 0.0 }
 0x61b   : > { %v5385_v37 = vpack.c.bf16 %v5381_v40, %v5380_v59 }
 0x61c   : > { %v5384_v32 = vpack.c.bf16 %v5379_v8, %v5378_v52 }
 0x61e   : > { %6612 = vmatprep.mubr.bf16.mxu0 %v5384_v32 }
 0x61f   : > { %6613 = vmatmul.mubr.bf16.gmra.mrb[136].mxu0 %v5385_v37 }
 0x6af   : > { %v6610_v50 = vpop.f32.mrb[132].mxu0 }
 0x6b0   : > { %v5500_v28 = vadd.f32 %v6610_v50, %v6123_v49  ;;  %v5491_v38 = vpop.f32.mrb[133].mxu0 }
 0x6b1   : > { %v5492_v24 = vadd.f32 %v6123_v49, %v5491_v38  ;;  %v6611_v17 = vpop.f32.mrb[134].mxu0 }
 0x6b2   : > { %v5503_v45 = vadd.f32 %v6611_v17, %v6123_v49  ;;  %v5494_v39 = vpop.f32.mrb[135].mxu0  ;;  %v5524_v57 = vadd.f32 %v5500_v28, %v8495_v19 }
 0x6b3   : > { %v5495_v6 = vadd.f32 %v6123_v49, %v5494_v39  ;;  %v5522_v26 = vadd.f32 %v5492_v24, %v8476_v23 }
 0x6b4   : > { %v5538_v53 = vsel %vm784_vm0, %v5524_v57, 0.0  ;;  %v5525_v51 = vadd.f32 %v5503_v45, %v8498_v7 }
 0x6b5   : > { %5539 = vadd.xlane.f32.xlu1 %v5538_v53  ;;  %v5523_v11 = vadd.f32 %v5495_v6, %v8479_v14  ;;  %v5532_v18 = vsel %vm784_vm0, %v5522_v26, 0.0  ;;  %v5720_v53 = vld [vmem:[%s740_s1] sm:$0xff] }
 0x6b6   : > { %v5541_v46 = vsel %vm784_vm0, %v5525_v51, 0.0 }
 0x6b7   : > { %5542 = vadd.xlane.f32.xlu0 %v5541_v46  ;;  %v5535_v54 = vsel %vm784_vm0, %v5523_v11, 0.0  ;;  %v5723_v46 = vld [vmem:[%s740_s1 + $0x18] sm:$0xff] }
 0x6b9   : > { %5533 = vadd.xlane.f32.xlu1 %v5532_v18  ;;  %v5725_v18 = vld [vmem:[%s740_s1 + $0x28] sm:$0xff] }
 0x6bb   : > { %5536 = vadd.xlane.f32.xlu0 %v5535_v54  ;;  %v5726_v54 = vld [vmem:[%s740_s1 + $0x30] sm:$0xff] }
 0x6f2   : > { %v6614_v19 = vpop.f32.mrb[136].mxu0 }
 0x6f3   : > { %v5507_v60 = vpop.f32.mrb[137].mxu0  ;;  %v5516_v29 = vadd.f32 %v6614_v19, %v6123_v49  ;;  %v5727_v19 = vld [vmem:[%s740_s1 + $0x38] sm:$0xff] }
 0x6f4   : > { %v5508_v5 = vadd.f32 %v6123_v49, %v5507_v60  ;;  %v6615_v31 = vpop.f32.mrb[138].mxu0 }
 0x6f5   : > { %v5510_v7 = vpop.f32.mrb[139].mxu0  ;;  %v5519_v16 = vadd.f32 %v6615_v31, %v6123_v49  ;;  %v5528_v3 = vadd.f32 %v5516_v29, %v8521_v47 }
 0x6f6   : > { %v5511_v23 = vadd.f32 %v6123_v49, %v5510_v7  ;;  %v5526_v55 = vadd.f32 %v5508_v5, %v8508_v44 }
 0x6f7   : > { %v5529_v43 = vadd.f32 %v5519_v16, %v8524_v20  ;;  %v5550_v27 = vsel %vm784_vm0, %v5528_v3, 0.0 }
 0x6f8   : > { %v5544_v4 = vsel %vm784_vm0, %v5526_v55, 0.0  ;;  %v5527_v14 = vadd.f32 %v5511_v23, %v8511_v2 }
 0x6f9   : > { %5545 = vadd.xlane.f32.xlu1 %v5544_v4  ;;  %v5553_v22 = vsel %vm784_vm0, %v5529_v43, 0.0 }
 0x6fa   : > { %v5547_v63 = vsel %vm784_vm0, %v5527_v14, 0.0 }
 0x6fb   : > { %5548 = vadd.xlane.f32.xlu0 %v5547_v63 }
 0x6fd   : > { %5551 = vadd.xlane.f32.xlu1 %v5550_v27 }
 0x6ff   : > { %5554 = vadd.xlane.f32.xlu0 %v5553_v22 }
 0x742   : > { %v5540_v44 = vpop.xlane.xlu1 %5539 }
 0x743   : > { %v5558_v56 = vmul.f32 0.03125, %v5540_v44 }
 0x744   : > { %v5543_v2 = vpop.xlane.xlu0 %5542 }
 0x745   : > { %v8557_v35 = vsub.f32 %v5524_v57, %v5558_v56  ;;  %v5559_v47 = vmul.f32 0.03125, %v5543_v2 }
 0x746   : > { %v5534_v13 = vpop.xlane.xlu1 %5533 }
 0x747   : > { %v8559_v41 = vsub.f32 %v5525_v51, %v5559_v47  ;;  %v5556_v20 = vmul.f32 0.03125, %v5534_v13  ;;  %v5574_v33 = vmul.f32 %v8557_v35, %v8557_v35  ;;  %v5721_v51 = vld [vmem:[%s740_s1 + $0x8] sm:$0xff] }
 0x748   : > { %v5537_v42 = vpop.xlane.xlu0 %5536 }
 0x749   : > { %v8563_v25 = vsub.f32 %v5522_v26, %v5556_v20  ;;  %v5557_v48 = vmul.f32 0.03125, %v5537_v42  ;;  %v5586_v12 = vsel %vm784_vm0, %v5574_v33, 0.0  ;;  %v5575_v58 = vmul.f32 %v8559_v41, %v8559_v41  ;;  %v5722_v26 = vld [vmem:[%s740_s1 + $0x10] sm:$0xff] }
 0x74a   : > { %5587 = vadd.xlane.f32.xlu1 %v5586_v12 }
 0x74b   : > { %v8568_v61 = vsub.f32 %v5523_v11, %v5557_v48  ;;  %v5572_v34 = vmul.f32 %v8563_v25, %v8563_v25  ;;  %v5589_v15 = vsel %vm784_vm0, %v5575_v58, 0.0  ;;  %v5724_v11 = vld [vmem:[%s740_s1 + $0x20] sm:$0xff] }
 0x74c   : > { %5590 = vadd.xlane.f32.xlu0 %v5589_v15 }
 0x74d   : > { %v5580_v9 = vsel %vm784_vm0, %v5572_v34, 0.0  ;;  %v5573_v62 = vmul.f32 %v8568_v61, %v8568_v61 }
 0x74e   : > { %5581 = vadd.xlane.f32.xlu1 %v5580_v9 }
 0x74f   : > { %v5583_v30 = vsel %vm784_vm0, %v5573_v62, 0.0 }
 0x750   : > { %5584 = vadd.xlane.f32.xlu0 %v5583_v30 }
 0x786   : > { %v5546_v36 = vpop.xlane.xlu1 %5545 }
 0x787   : > { %v5560_v10 = vmul.f32 0.03125, %v5546_v36 }
 0x788   : > { %v5549_v21 = vpop.xlane.xlu0 %5548 }
 0x789   : > { %v5561_v0 = vmul.f32 0.03125, %v5549_v21  ;;  %v8579_v37 = vsub.f32 %v5526_v55, %v5560_v10 }
 0x78a   : > { %v5552_v59 = vpop.xlane.xlu1 %5551 }
 0x78b   : > { %v8577_v40 = vsub.f32 %v5527_v14, %v5561_v0  ;;  %v5562_v52 = vmul.f32 0.03125, %v5552_v59  ;;  %v5576_v39 = vmul.f32 %v8579_v37, %v8579_v37  ;;  %v8604_v0 = vld [vmem:[%s8679_s19] ss:$0 sm:$0xff] }
 0x78c   : > { %v5555_v8 = vpop.xlane.xlu0 %5554 }
 0x78d   : > { %v8581_v32 = vsub.f32 %v5528_v3, %v5562_v52  ;;  %v5563_v49 = vmul.f32 0.03125, %v5555_v8  ;;  %v5577_v50 = vmul.f32 %v8577_v40, %v8577_v40  ;;  %v5592_v6 = vsel %vm784_vm0, %v5576_v39, 0.0 }
 0x78e   : > { %v5690_v52 = vmul.f32 %v8604_v0, %v8563_v25  ;;  %v8615_v25 = vld [vmem:[%s8680_s20] ss:$0 sm:$0xff] }
 0x78f   : > { %v8585_v28 = vsub.f32 %v5529_v43, %v5563_v49  ;;  %v5595_v38 = vsel %vm784_vm0, %v5577_v50, 0.0  ;;  %v5578_v24 = vmul.f32 %v8581_v32, %v8581_v32 }
 0x790   : > { %5596 = vadd.xlane.f32.xlu0 %v5595_v38  ;;  %v5691_v38 = vmul.f32 %v8604_v0, %v8568_v61 }
 0x791   : > { %v5598_v17 = vsel %vm784_vm0, %v5578_v24, 0.0  ;;  %v5579_v45 = vmul.f32 %v8585_v28, %v8585_v28 }
 0x792   : > { %5599 = vadd.xlane.f32.xlu1 %v5598_v17 }
 0x793   : > { %v5601_v57 = vsel %vm784_vm0, %v5579_v45, 0.0 }
 0x794   : > { %5602 = vadd.xlane.f32.xlu0 %v5601_v57  ;;  %v5692_v57 = vmul.f32 %v8604_v0, %v8557_v35 }
 0x796   : > { %5593 = vadd.xlane.f32.xlu1 %v5592_v6 }
 0x7a7   : > { %5730 = vperm.xlu1 %6694, %v5720_v53  }
 0x7aa   : > { %5735 = vperm.xlu0 %6695, %v5721_v51  }
 0x7ab   : > { %5740 = vperm.xlu1 %6694, %v5722_v26  }
 0x7af   : > { %5745 = vperm.xlu1 %6694, %v5723_v46   ;;  %v5693_v46 = vmul.f32 %v8604_v0, %v8559_v41 }
 0x7b3   : > { %5750 = vperm.xlu1 %6694, %v5724_v11  }
 0x7b7   : > { %5755 = vperm.xlu1 %6694, %v5725_v18  }
 0x7bb   : > { %5760 = vperm.xlu1 %6694, %v5726_v54  }
 0x7bf   : > { %5765 = vperm.xlu1 %6694, %v5727_v19  }
 0x7d7   : > { %v5588_v60 = vpop.xlane.xlu1 %5587 }
 0x7d8   : > { %v5606_v23 = vmul.f32 0.032258064, %v5588_v60 }
 0x7d9   : > { %v5591_v29 = vpop.xlane.xlu0 %5590 }
 0x7da   : > { %v5607_v55 = vmul.f32 0.032258064, %v5591_v29  ;;  %vm5628_vm12 = vcmp.eq.f32.partialorder %v5606_v23, inf  ;;  %v5631_v33 = vand.u32 2147483648, %v5606_v23  ;;  %vm5630_vm15 = vcmp.eq.f32.partialorder %v5606_v23, 0.0 }
 0x7db   : > { %v5582_v5 = vpop.xlane.xlu1 %5581 }
 0x7dc   : > { %v5604_v7 = vmul.f32 0.032258064, %v5582_v5  ;;  %vm5635_vm14 = vcmp.eq.f32.partialorder %v5607_v55, inf  ;;  %v5638_v34 = vand.u32 2147483648, %v5607_v55  ;;  %vm5637_vm1 = vcmp.eq.f32.partialorder %v5607_v55, 0.0 }
 0x7dd   : > { %v5585_v31 = vpop.xlane.xlu0 %5584 }
 0x7de   : > { %v5605_v16 = vmul.f32 0.032258064, %v5585_v31  ;;  %6812 = vrsqrt.f32 %v5604_v7  ;;  %vm5614_vm9 = vcmp.eq.f32.partialorder %v5604_v7, inf  ;;  %v5617_v44 = vand.u32 2147483648, %v5604_v7 }
 0x7df   : > { %vm5616_vm11 = vcmp.eq.f32.partialorder %v5604_v7, 0.0 }
 0x7e0   : > { %6814 = vrsqrt.f32 %v5605_v16  ;;  %vm5621_vm10 = vcmp.eq.f32.partialorder %v5605_v16, inf  ;;  %v5624_v47 = vand.u32 2147483648, %v5605_v16  ;;  %vm5623_vm13 = vcmp.eq.f32.partialorder %v5605_v16, 0.0 }
 0x7e1   : > { %6816 = vrsqrt.f32 %v5606_v23 }
 0x7e2   : > { %6818 = vrsqrt.f32 %v5607_v55 }
 0x7e8   : > { %v6813_v4 = vpop.eup %6812 }
 0x7e9   : > { %v5613_v3 = vmul.f32 %v6813_v4, %v5604_v7 }
 0x7ea   : > { %v6815_v14 = vpop.eup %6814 }
 0x7eb   : > { %v6817_v63 = vpop.eup %6816  ;;  %v5620_v43 = vmul.f32 %v6815_v14, %v5605_v16  ;;  %v5615_v1 = vsel %vm5614_vm9, %v5604_v7, %v5613_v3 }
 0x7ec   : > { %v6819_v27 = vpop.eup %6818  ;;  %v5627_v22 = vmul.f32 %v6817_v63, %v5606_v23  ;;  %v5618_v13 = vsel %vm5616_vm11, %v5617_v44, %v5615_v1 }
 0x7ed   : > { %v5622_v56 = vsel %vm5621_vm10, %v5605_v16, %v5620_v43  ;;  %v5634_v2 = vmul.f32 %v6819_v27, %v5607_v55  ;;  %v5668_v48 = vadd.f32 1e-06, %v5618_v13 }
 0x7ee   : > { %v5629_v20 = vsel %vm5628_vm12, %v5606_v23, %v5627_v22  ;;  %v5625_v42 = vsel %vm5623_vm13, %v5624_v47, %v5622_v56 }
 0x7ef   : > { %v5632_v12 = vsel %vm5630_vm15, %v5631_v33, %v5629_v20  ;;  %v5636_v58 = vsel %vm5635_vm14, %v5607_v55, %v5634_v2  ;;  %v5669_v15 = vadd.f32 1e-06, %v5625_v42  ;;  %6820 = vrcp.f32 %v5668_v48 }
 0x7f0   : > { %v5670_v9 = vadd.f32 1e-06, %v5632_v12  ;;  %v5639_v62 = vsel %vm5637_vm1, %v5638_v34, %v5636_v58 }
 0x7f1   : > { %6822 = vrcp.f32 %v5669_v15  ;;  %v5671_v30 = vadd.f32 1e-06, %v5639_v62 }
 0x7f2   : > { %6824 = vrcp.f32 %v5670_v9 }
 0x7f3   : > { %6826 = vrcp.f32 %v5671_v30 }
 0x7f9   : > { %v6821_v10 = vpop.eup %6820 }
 0x7fa   : > { %v5698_v17 = vmul.f32 %v6821_v10, %v5690_v52  ;;  %v5696_v10 = vmul.f32 %v8604_v0, %v8581_v32 }
 0x7fb   : > { %v6823_v49 = vpop.eup %6822 }
 0x7fc   : > { %v6825_v45 = vpop.eup %6824  ;;  %v5699_v53 = vmul.f32 %v6823_v49, %v5691_v38  ;;  %v5712_v61 = vadd.f32 %v8615_v25, %v5698_v17  ;;  %v5697_v49 = vmul.f32 %v8604_v0, %v8585_v28 }
 0x7fd   : > { %v6827_v51 = vpop.eup %6826  ;;  %v5700_v26 = vmul.f32 %v6825_v45, %v5692_v57 }
 0x7fe   : > { %v5713_v18 = vadd.f32 %v8615_v25, %v5699_v53  ;;  %v5701_v19 = vmul.f32 %v6827_v51, %v5693_v46 }
 0x7ff   : > { %v5714_v41 = vadd.f32 %v8615_v25, %v5700_v26 }
 0x800   : > { %v5715_v4 = vadd.f32 %v8615_v25, %v5701_v19 }
 0x81d   : > { %v5597_v36 = vpop.xlane.xlu0 %5596 }
 0x81e   : > { %v5609_v21 = vmul.f32 0.032258064, %v5597_v36  ;;  %v5695_v36 = vmul.f32 %v8604_v0, %v8577_v40  ;;  %v5694_v40 = vmul.f32 %v8604_v0, %v8579_v37 }
 0x81f   : > { %v5600_v59 = vpop.xlane.xlu1 %5599 }
 0x820   : > { %6828 = vrsqrt.f32 %v5609_v21  ;;  %v5610_v8 = vmul.f32 0.032258064, %v5600_v59  ;;  %vm5649_vm2 = vcmp.eq.f32.partialorder %v5609_v21, inf  ;;  %v5652_v16 = vand.u32 2147483648, %v5609_v21 }
 0x821   : > { %v5603_v50 = vpop.xlane.xlu0 %5602  ;;  %vm5651_vm3 = vcmp.eq.f32.partialorder %v5609_v21, 0.0 }
 0x822   : > { %6830 = vrsqrt.f32 %v5610_v8  ;;  %v5611_v24 = vmul.f32 0.032258064, %v5603_v50  ;;  %vm5656_vm4 = vcmp.eq.f32.partialorder %v5610_v8, inf  ;;  %v5659_v63 = vand.u32 2147483648, %v5610_v8 }
 0x823   : > { %v5594_v39 = vpop.xlane.xlu1 %5593  ;;  %vm5658_vm5 = vcmp.eq.f32.partialorder %v5610_v8, 0.0 }
 0x824   : > { %6832 = vrsqrt.f32 %v5611_v24  ;;  %v5608_v6 = vmul.f32 0.032258064, %v5594_v39  ;;  %vm5663_vm6 = vcmp.eq.f32.partialorder %v5611_v24, inf  ;;  %v5666_v2 = vand.u32 2147483648, %v5611_v24 }
 0x825   : > { %vm5665_vm7 = vcmp.eq.f32.partialorder %v5611_v24, 0.0 }
 0x826   : > { %6834 = vrsqrt.f32 %v5608_v6  ;;  %vm5642_vm8 = vcmp.eq.f32.partialorder %v5608_v6, inf  ;;  %v5645_v48 = vand.u32 2147483648, %v5608_v6  ;;  %vm5644_vm9 = vcmp.eq.f32.partialorder %v5608_v6, 0.0 }
 0x827   : > { %v5731_v35 = vpop.permute.xlu1 %5730 }
 0x828   : > { %v5768_v11 = vmul.f32 %v5731_v35, %v5712_v61 }
 0x829   : > { %v5736_v54 = vpop.permute.xlu0 %5735 }
 0x82a   : > { %v6829_v60 = vpop.eup %6828  ;;  %5776 = vst.msk [vmem:[%s8624_s4] sm:$0xff] %vm784_vm0, %v5768_v11  ;;  %v5769_v29 = vmul.f32 %v5736_v54, %v5713_v18 }
 0x82b   : > { %v5648_v5 = vmul.f32 %v6829_v60, %v5609_v21  ;;  %v5741_v31 = vpop.permute.xlu1 %5740 }
 0x82c   : > { %v6831_v7 = vpop.eup %6830  ;;  %5777 = vst.msk [vmem:[%s8624_s4 + $0x8] sm:$0xff] %vm784_vm0, %v5769_v29  ;;  %v5770_v23 = vmul.f32 %v5741_v31, %v5714_v41 }
 0x82d   : > { %v5655_v55 = vmul.f32 %v6831_v7, %v5610_v8  ;;  %v5650_v14 = vsel %vm5649_vm2, %v5609_v21, %v5648_v5 }
 0x82e   : > { %v6833_v3 = vpop.eup %6832  ;;  %5778 = vst.msk [vmem:[%s8624_s4 + $0x10] sm:$0xff] %vm784_vm0, %v5770_v23  ;;  %v5653_v43 = vsel %vm5651_vm3, %v5652_v16, %v5650_v14 }
 0x82f   : > { %v5662_v27 = vmul.f32 %v6833_v3, %v5611_v24  ;;  %v5746_v22 = vpop.permute.xlu1 %5745  ;;  %v5673_v1 = vadd.f32 1e-06, %v5653_v43  ;;  %v5657_v44 = vsel %vm5656_vm4, %v5610_v8, %v5655_v55 }
 0x830   : > { %v6835_v56 = vpop.eup %6834  ;;  %v5771_v47 = vmul.f32 %v5746_v22, %v5715_v4  ;;  %v5660_v13 = vsel %vm5658_vm5, %v5659_v63, %v5657_v44 }
 0x831   : > { %v5641_v20 = vmul.f32 %v6835_v56, %v5608_v6  ;;  %6836 = vrcp.f32 %v5673_v1  ;;  %v5674_v33 = vadd.f32 1e-06, %v5660_v13  ;;  %v5664_v42 = vsel %vm5663_vm6, %v5611_v24, %v5662_v27 }
 0x832   : > { %5779 = vst.msk [vmem:[%s8624_s4 + $0x18] sm:$0xff] %vm784_vm0, %v5771_v47  ;;  %v5667_v12 = vsel %vm5665_vm7, %v5666_v2, %v5664_v42 }
 0x833   : > { %v5643_v58 = vsel %vm5642_vm8, %v5608_v6, %v5641_v20  ;;  %v5751_v34 = vpop.permute.xlu1 %5750  ;;  %6838 = vrcp.f32 %v5674_v33  ;;  %v5675_v15 = vadd.f32 1e-06, %v5667_v12 }
 0x834   : > { %v5646_v9 = vsel %vm5644_vm9, %v5645_v48, %v5643_v58 }
 0x835   : > { %v5672_v62 = vadd.f32 1e-06, %v5646_v9  ;;  %6840 = vrcp.f32 %v5675_v15 }
 0x837   : > { %6842 = vrcp.f32 %v5672_v62  ;;  %v5756_v30 = vpop.permute.xlu1 %5755 }
 0x83b   : > { %v6837_v21 = vpop.eup %6836  ;;  %v5761_v8 = vpop.permute.xlu1 %5760 }
 0x83c   : > { %v5703_v59 = vmul.f32 %v6837_v21, %v5695_v36 }
 0x83d   : > { %v6839_v52 = vpop.eup %6838 }
 0x83e   : > { %v5717_v50 = vadd.f32 %v8615_v25, %v5703_v59  ;;  %v5704_v38 = vmul.f32 %v6839_v52, %v5696_v10 }
 0x83f   : > { %v6841_v24 = vpop.eup %6840  ;;  %v5766_v53 = vpop.permute.xlu1 %5765 }
 0x840   : > { %v5773_v17 = vmul.f32 %v5756_v30, %v5717_v50  ;;  %v5718_v45 = vadd.f32 %v8615_v25, %v5704_v38  ;;  %v5705_v32 = vmul.f32 %v6841_v24, %v5697_v49 }
 0x841   : > { %v6843_v39 = vpop.eup %6842 }
 0x842   : > { %v5702_v57 = vmul.f32 %v6843_v39, %v5694_v40  ;;  %5781 = vst.msk [vmem:[%s8624_s4 + $0x28] sm:$0xff] %vm784_vm0, %v5773_v17  ;;  %v5774_v6 = vmul.f32 %v5761_v8, %v5718_v45  ;;  %v5719_v28 = vadd.f32 %v8615_v25, %v5705_v32 }
 0x844   : > { %v5716_v51 = vadd.f32 %v8615_v25, %v5702_v57  ;;  %5782 = vst.msk [vmem:[%s8624_s4 + $0x30] sm:$0xff] %vm784_vm0, %v5774_v6  ;;  %v5775_v61 = vmul.f32 %v5766_v53, %v5719_v28 }
 0x846   : > { %v5772_v26 = vmul.f32 %v5751_v34, %v5716_v51  ;;  %5783 = vst.msk [vmem:[%s8624_s4 + $0x38] sm:$0xff] %vm784_vm0, %v5775_v61 }
 0x848   : > { %5780 = vst.msk [vmem:[%s8624_s4 + $0x20] sm:$0xff] %vm784_vm0, %v5772_v26 }
 0x849 PF: > { %s31_s2 = sadd.s32 1, %s6859_s2  }
 0x84a   : > { %p28_p5 = scmp.ge.s32.totalorder %s31_s2, 4  }
 0x84c   :  { %30 = sbr.rel (!%p28_p5) target bundleno = 7 (0x7), region = 146 }

// kernel: structgnn_forward.14
= control target key start
LH: loop header
LB: loop body
LE: loop exit
PB: predicated region body
PF: predicated region fallthrough
CT: control target
= control target key end

     0   :  { %s8694_s0 = inlined_call_operand.vmem [shape: f32[128,32], index: 0, kind: input, shape index: {}]   ;;  %s8695_s1 = inlined_call_operand.vmem [shape: bf16[1024,64], index: 1, kind: input, shape index: {}]   ;;  %s8696_s2 = inlined_call_operand.vmem [shape: bf16[1024,32], index: 2, kind: input, shape index: {}]   ;;  %s8697_s3 = inlined_call_operand.vmem [shape: f32[128,8], index: 3, kind: input, shape index: {}]   ;;  %s8698_s4 = inlined_call_operand.vmem [shape: bf16[1024,32], index: 4, kind: input, shape index: {}]   ;;  %s8699_s5 = inlined_call_operand.vmem [shape: f32[128,1], index: 5, kind: input, shape index: {}]   ;;  %s8700_s6 = inlined_call_operand.vmem [shape: bf16[32,32], index: 6, kind: input, shape index: {}]   ;;  %s8701_s7 = inlined_call_operand.vmem [shape: bf16[64,32], index: 7, kind: input, shape index: {}]   ;;  %s8702_s8 = inlined_call_operand.vmem [shape: bf16[32,32], index: 8, kind: input, shape index: {}]   ;;  %s8703_s9 = inlined_call_operand.vmem [shape: f32[1,32], index: 9, kind: input, shape index: {}]   ;;  %s8704_s10 = inlined_call_operand.vmem [shape: bf16[32,32], index: 10, kind: input, shape index: {}]   ;;  %s8705_s11 = inlined_call_operand.vmem [shape: f32[1,32], index: 11, kind: input, shape index: {}]   ;;  %s8706_s12 = inlined_call_operand.vmem [shape: bf16[32,32], index: 12, kind: input, shape index: {}]   ;;  %s8707_s13 = inlined_call_operand.vmem [shape: f32[1,32], index: 13, kind: input, shape index: {}]   ;;  %s8708_s14 = inlined_call_operand.vmem [shape: f32[1,32], index: 14, kind: input, shape index: {}]   ;;  %s8709_s15 = inlined_call_operand.vmem [shape: f32[1,32], index: 15, kind: input, shape index: {}]   ;;  %s8710_s16 = inlined_call_operand.vmem [shape: bf16[32,128], index: 16, kind: input, shape index: {}]   ;;  %s8711_s17 = inlined_call_operand.vmem [shape: f32[1,128], index: 17, kind: input, shape index: {}]   ;;  %s8712_s18 = inlined_call_operand.vmem [shape: bf16[128,32], index: 18, kind: input, shape index: {}]   ;;  %s8713_s19 = inlined_call_operand.vmem [shape: f32[1,32], index: 19, kind: input, shape index: {}]   ;;  %s8714_s20 = inlined_call_operand.vmem [shape: f32[1,32], index: 20, kind: input, shape index: {}]   ;;  %s8715_s21 = inlined_call_operand.vmem [shape: f32[1,32], index: 21, kind: input, shape index: {}]   ;;  %s8716_s22 = inlined_call_operand.vmem [shape: f32[128,32], index: 22, kind: output, shape index: {}]  }
   0x1   :  { %8718 = sst [smem:[#allocation2_spill]] %s8694_s0 }
   0x2   :  { %8719 = sst [smem:[#allocation3_spill]] %s8695_s1 }
   0x3   :  { %8720 = sst [smem:[#allocation4_spill]] %s8696_s2 }
   0x4   :  { %8721 = sst [smem:[#allocation5_spill]] %s8697_s3  ;;  %s7192_s3 = smov 0  }
   0x5   :  { %8722 = sst [smem:[#allocation6_spill]] %s8698_s4 }
   0x6   :  { %8723 = sst [smem:[#allocation7_spill]] %s8699_s5 }
   0x7   :  { %8724 = sst [smem:[#allocation8_spill]] %s8700_s6 }
   0x8 LB: > { %s6122_s28 = sadd.s32 4294967295, %s7073_s3   ;;  %p6126_p0 = scmp.ge.s32.totalorder %s7073_s3, 1  ;;  %s7073_s3 = sphi %s7192_s3, %s32_s3  }
   0x9   : > { %p668_p1 = scmp.lt.s32.totalorder %s7073_s3, 3 }
   0xb   : > { %p669_p2 = pnand %p6126_p0, %p668_p1 }
   0xc   : > { %s6127_s29 = sshll.u32 (!%p669_p2), %s6122_s28, 3  ;;  %v990_v0 = vlaneseq (!%p669_p2)  ;;  %s8725_s0 = sld [smem:[#allocation8_spill]] (!%p669_p2)  ;;  %v7213_v4 = vld [vmem:[%s8702_s8] sm:$0xff] (!%p669_p2)   ;;  %vm833_vm0 = vcmask (!%p669_p2), 261120   ;;  %v6943_v48 = vld [vmem:[%s8702_s8 + $0x8] sm:$0xff] (!%p669_p2)   ;;  %vm2468_vm1 = vcmask (!%p669_p2), 523264  }
   0xd   : > { %672 = sbr.rel (%p669_p2) target bundleno = 2219 (0x8ab), region = 108  ;;  %p756_p3 = scmp.lt.s32.totalorder (!%p669_p2), %s6127_s29, 15  ;;  %v7333_v61 = vld [vmem:[%s8701_s7] sm:$0xff] (!%p669_p2)   ;;  %vm5222_vm2 = vcmask (!%p669_p2), 1041409   ;;  %vm5224_vm3 = vcmask (!%p669_p2), 1042434   ;;  %vm5226_vm4 = vcmask (!%p669_p2), 1043459  }
   0xe   : > { %v7208_v3 = vshrl.u32 (!%p669_p2), %v990_v0, 7  ;;  %s8726_s2 = sld [smem:[#allocation5_spill]] (!%p669_p2)  ;;  %s8727_s4 = sld [smem:[#allocation2_spill]] (!%p669_p2)  ;;  %vm5228_vm5 = vcmask (!%p669_p2), 1044484   ;;  %vm5230_vm6 = vcmask (!%p669_p2), 1045509   ;;  %vm5232_vm7 = vcmask (!%p669_p2), 1046534  }
   0xf   : > { %s6129_s26 = sshll.u32 (!%p669_p2), %s6122_s28, 6  ;;  %s8729_s5 = sld [smem:[#allocation6_spill]] (!%p669_p2)  ;;  %vm5234_vm8 = vcmask (!%p669_p2), 1047559  }
  0x10   : > { %v7226_v8 = vsub.s32 (!%p669_p2), 0, %v7208_v3  ;;  %v7229_v9 = vsub.s32 (!%p669_p2), 1, %v7208_v3  ;;  %v7245_v17 = vsub.s32 (!%p669_p2), 2, %v7208_v3  ;;  %v7254_v23 = vsub.s32 (!%p669_p2), 3, %v7208_v3  ;;  %p762_p4 = scmp.lt.s32.totalorder (!%p669_p2), %s6129_s26, 127  ;;  %s8731_s25 = sld [smem:[#allocation7_spill]] (!%p669_p2) }
  0x11   : > { %v7263_v24 = vsub.s32 (!%p669_p2), 4, %v7208_v3  ;;  %v7268_v27 = vsub.s32 (!%p669_p2), 5, %v7208_v3  ;;  %v7271_v28 = vsub.s32 (!%p669_p2), 6, %v7208_v3  ;;  %v7281_v35 = vsub.s32 (!%p669_p2), 7, %v7208_v3 }
  0x12   : > { %v6940_v1 = vld [vmem:[%s8725_s0] sm:$0xff] (!%p669_p2)   ;;  %v6941_v2 = vld [vmem:[%s8725_s0 + $0x8] sm:$0xff] (!%p669_p2)  }
  0x13   : > { %6860 = vmatprep.subr.bf16.mxu1 (!%p669_p2), %v6940_v1  ;;  %6536 = vmatprep.subr.bf16.mxu0 (!%p669_p2), %v6940_v1 }
  0x14   : > { %s8733_s29 = smov (!%p756_p3, %s6127_s29), 15  ;;  %6862 = vmatpush3.bf16.msra.mxu1 %v6940_v1  ;;  %6537 = vmatpush3.bf16.msra.mxu0 %v6940_v1  ;;  %s8735_s26 = smov (!%p762_p4, %s6129_s26), 127 }
  0x15   : > { %6861 = vmatprep.subr.bf16.mxu1 %v6941_v2  ;;  %6538 = vmatprep.subr.bf16.mxu0 %v6941_v2  ;;  %s7215_s6 = sshll.u32 %s8733_s29, 3  ;;  %s7402_s28 = sshll.u32 %s8735_s26, 2 }
  0x16   : > { %s7221_s27 = scalar_lea.vmem %s8726_s2, %s7215_s6  ;;  %s7260_s23 = scalar_lea.vmem %s8727_s4, %s7215_s6 }
  0x17   : > { %v975_v5 = vld [vmem:[%s7221_s27] sm:$0xff]  ;;  %v976_v6 = vld [vmem:[%s7221_s27 + $0x8] sm:$0xff]  ;;  %v981_v18 = vld [vmem:[%s7221_s27 + $0x30] sm:$0xff]  ;;  %s8728_s29 = sld [smem:[#allocation4_spill]]  ;;  %s7425_s24 = scalar_lea.vmem %s8729_s5, %s7402_s28 }
  0x18   : > { %6863 = vmatpush3.bf16.msra.mxu1 %v6941_v2  ;;  %6539 = vmatpush3.bf16.msra.mxu0 %v6941_v2  ;;  %v983_v7 = vpack.c.bf16 %v976_v6, %v975_v5  ;;  %v982_v19 = vld [vmem:[%s7221_s27 + $0x38] sm:$0xff]  ;;  %v977_v25 = vld [vmem:[%s7221_s27 + $0x10] sm:$0xff]  ;;  %v802_v30 = vld [vmem:[%s7260_s23 + $0x20] sm:$0xff]  ;;  %s8730_s2 = sld [smem:[#allocation3_spill]]  ;;  %s8658_s4 = scalar_lea.vmem %s8716_s22, %s7215_s6 }
  0x19   : > { %6548 = vmatprep.subr.bf16.mxu1 %v7213_v4  ;;  %v986_v20 = vpack.c.bf16 %v982_v19, %v981_v18  ;;  %v978_v26 = vld [vmem:[%s7221_s27 + $0x18] sm:$0xff]  ;;  %v803_v31 = vld [vmem:[%s7260_s23 + $0x28] sm:$0xff]  ;;  %v804_v32 = vld [vmem:[%s7260_s23 + $0x30] sm:$0xff] }
  0x1a   : > { %v7232_v10 = vpack.i.b16 %v983_v7, %v983_v7  ;;  %v997_v11 = vshrl.u32 %v983_v7, 16  ;;  %v805_v36 = vld [vmem:[%s7260_s23 + $0x38] sm:$0xff]  ;;  %v984_v38 = vpack.c.bf16 %v978_v26, %v977_v25  ;;  %v808_v42 = vpack.c.bf16 %v803_v31, %v802_v30  ;;  %v979_v19 = vld [vmem:[%s7221_s27 + $0x20] sm:$0xff] }
  0x1b   : > { %v1351_v29 = vshrl.u32 %v986_v20, 16  ;;  %v7288_v40 = vpack.i.b16 %v986_v20, %v986_v20  ;;  %v809_v43 = vpack.c.bf16 %v805_v36, %v804_v32  ;;  %v980_v20 = vld [vmem:[%s7221_s27 + $0x28] sm:$0xff] }
  0x1c   : > { %v1010_v12 = vrot.slane %v7232_v10, %v7229_v9  ;;  %v993_v13 = vrot.slane %v7232_v10, %v7226_v8  ;;  %v7238_v14 = vpack.i.b16 %v997_v11, %v997_v11  ;;  %v1024_v22 = vrot.slane %v7232_v10, %v7245_v17  ;;  %6544 = vmatprep.mubr.msk.bf16.mxu1 %vm833_vm0, %v808_v42 }
  0x1d   : > { %v1038_v34 = vrot.slane %v7232_v10, %v7254_v23  ;;  %v1052_v37 = vrot.slane %v7232_v10, %v7263_v24  ;;  %v7286_v39 = vpack.i.b16 %v1351_v29, %v1351_v29  ;;  %v1066_v45 = vrot.slane %v7232_v10, %v7268_v27  ;;  %6545 = vmatmul.mubr.msk.bf16.vlgmr.msra.gmra.mrb[0].mxu1 %vm833_vm0, %v809_v43  ;;  %s7410_s30 = scalar_lea.vmem %s8728_s29, %s7402_s28 }
  0x1e   : > { %1012 = vbcast.lane.c.b16.xlu1 %v1010_v12, 256  ;;  %995 = vbcast.lane.c.b16.xlu0 %v993_v13, 256  ;;  %v1017_v15 = vrot.slane %v7238_v14, %v7229_v9  ;;  %v1003_v16 = vrot.slane %v7238_v14, %v7226_v8  ;;  %v1031_v21 = vrot.slane %v7238_v14, %v7245_v17  ;;  %v1115_v62 = vshrl.u32 %v984_v38, 16  ;;  %s7447_s27 = scalar_lea.vmem %s8730_s2, %s7402_s28 }
  0x1f   : > { %v1045_v33 = vrot.slane %v7238_v14, %v7254_v23  ;;  %v1059_v41 = vrot.slane %v7238_v14, %v7263_v24  ;;  %v1073_v44 = vrot.slane %v7238_v14, %v7268_v27  ;;  %v1371_v46 = vrot.slane %v7286_v39, %v7229_v9  ;;  %6549 = vmatpush3.bf16.msra.mxu1 %v7213_v4 }
  0x20   : > { %v1364_v47 = vrot.slane %v7288_v40, %v7229_v9  ;;  %v1385_v49 = vrot.slane %v7286_v39, %v7245_v17  ;;  %v1378_v50 = vrot.slane %v7288_v40, %v7245_v17  ;;  %v1399_v51 = vrot.slane %v7286_v39, %v7254_v23  ;;  %6550 = vmatprep.subr.bf16.mxu1 %v6943_v48 }
  0x21   : > { %v1392_v52 = vrot.slane %v7288_v40, %v7254_v23  ;;  %v1413_v53 = vrot.slane %v7286_v39, %v7263_v24  ;;  %v1406_v54 = vrot.slane %v7288_v40, %v7263_v24  ;;  %v1427_v55 = vrot.slane %v7286_v39, %v7268_v27 }
  0x22   : > { %1019 = vbcast.lane.c.b16.xlu1 %v1017_v15, 256  ;;  %1005 = vbcast.lane.c.b16.xlu0 %v1003_v16, 256  ;;  %v1420_v56 = vrot.slane %v7288_v40, %v7268_v27  ;;  %v1441_v57 = vrot.slane %v7286_v39, %v7271_v28  ;;  %v1434_v58 = vrot.slane %v7288_v40, %v7271_v28 }
  0x23   : > { %v1455_v59 = vrot.slane %v7286_v39, %v7281_v35  ;;  %v1448_v60 = vrot.slane %v7288_v40, %v7281_v35  ;;  %v1087_v63 = vrot.slane %v7238_v14, %v7271_v28  ;;  %v1080_v0 = vrot.slane %v7232_v10, %v7271_v28  ;;  %6551 = vmatpush3.bf16.msra.mxu1 %v6943_v48 }
  0x24   : > { %6616 = vmatprep.subr.bf16.mxu1 %v7333_v61  ;;  %v1106_v1 = vpack.i.b16 %v984_v38, %v984_v38  ;;  %v1101_v2 = vrot.slane %v7238_v14, %v7281_v35  ;;  %v1094_v4 = vrot.slane %v7232_v10, %v7281_v35  ;;  %v1116_v5 = vpack.i.b16 %v1115_v62, %v1115_v62 }
  0x25   : > { %v985_v25 = vpack.c.bf16 %v980_v20, %v979_v19  ;;  %v916_v19 = vld [vmem:[%s7410_s30 + $0x14] sm:$0xf] }
  0x26   : > { %1033 = vbcast.lane.c.b16.xlu1 %v1031_v21, 256  ;;  %1026 = vbcast.lane.c.b16.xlu0 %v1024_v22, 256  ;;  %v1121_v6 = vrot.slane %v1116_v5, %v7226_v8  ;;  %v1111_v7 = vrot.slane %v1106_v1, %v7226_v8  ;;  %v1135_v11 = vrot.slane %v1116_v5, %v7229_v9  ;;  %v1528_v20 = vld [vmem:[%s7425_s24 + $0x14] sm:$0xf] }
  0x27   : > { %v1128_v12 = vrot.slane %v1106_v1, %v7229_v9  ;;  %v1149_v13 = vrot.slane %v1116_v5, %v7245_v17  ;;  %v1142_v10 = vrot.slane %v1106_v1, %v7245_v17  ;;  %v1163_v14 = vrot.slane %v1116_v5, %v7254_v23 }
  0x28   : > { %v1156_v15 = vrot.slane %v1106_v1, %v7254_v23  ;;  %v1177_v16 = vrot.slane %v1116_v5, %v7263_v24  ;;  %v1170_v18 = vrot.slane %v1106_v1, %v7263_v24  ;;  %v1191_v21 = vrot.slane %v1116_v5, %v7268_v27 }
  0x29   : > { %v1184_v22 = vrot.slane %v1106_v1, %v7268_v27  ;;  %v1205_v26 = vrot.slane %v1116_v5, %v7271_v28  ;;  %v1198_v29 = vrot.slane %v1106_v1, %v7271_v28  ;;  %v1233_v30 = vshrl.u32 %v985_v25, 16 }
  0x2a   : > { %1047 = vbcast.lane.c.b16.xlu1 %v1045_v33, 256  ;;  %1040 = vbcast.lane.c.b16.xlu0 %v1038_v34, 256  ;;  %v1224_v31 = vpack.i.b16 %v985_v25, %v985_v25  ;;  %v1219_v32 = vrot.slane %v1116_v5, %v7281_v35  ;;  %v1212_v33 = vrot.slane %v1106_v1, %v7281_v35 }
  0x2b   : > { %v1234_v34 = vpack.i.b16 %v1233_v30, %v1233_v30 }
  0x2c   : > { %v1260_v43 = vrot.slane %v1224_v31, %v7245_v17  ;;  %v1288_v62 = vrot.slane %v1224_v31, %v7263_v24  ;;  %v1330_v5 = vrot.slane %v1224_v31, %v7281_v35 }
  0x2d   : > { %v1239_v36 = vrot.slane %v1234_v34, %v7226_v8  ;;  %v1253_v38 = vrot.slane %v1234_v34, %v7229_v9  ;;  %v1267_v42 = vrot.slane %v1234_v34, %v7245_v17  ;;  %v1295_v48 = vrot.slane %v1234_v34, %v7263_v24 }
  0x2e   : > { %1061 = vbcast.lane.c.b16.xlu1 %v1059_v41, 256  ;;  %1054 = vbcast.lane.c.b16.xlu0 %v1052_v37, 256  ;;  %v1229_v37 = vrot.slane %v1224_v31, %v7226_v8  ;;  %v1246_v41 = vrot.slane %v1224_v31, %v7229_v9  ;;  %v1323_v1 = vrot.slane %v1234_v34, %v7271_v28  ;;  %v798_v9 = vld [vmem:[%s7260_s23] sm:$0xff] }
  0x32   : > { %1075 = vbcast.lane.c.b16.xlu1 %v1073_v44, 256  ;;  %1068 = vbcast.lane.c.b16.xlu0 %v1066_v45, 256  ;;  %v1281_v44 = vrot.slane %v1234_v34, %v7254_v23  ;;  %v1274_v45 = vrot.slane %v1224_v31, %v7254_v23  ;;  %v800_v23 = vld [vmem:[%s7260_s23 + $0x10] sm:$0xff] }
  0x36   : > { %1089 = vbcast.lane.c.b16.xlu1 %v1087_v63, 256  ;;  %1082 = vbcast.lane.c.b16.xlu0 %v1080_v0, 256  ;;  %v1309_v63 = vrot.slane %v1234_v34, %v7268_v27  ;;  %v1302_v0 = vrot.slane %v1224_v31, %v7268_v27 }
  0x3a   : > { %1103 = vbcast.lane.c.b16.xlu1 %v1101_v2, 256  ;;  %1096 = vbcast.lane.c.b16.xlu0 %v1094_v4, 256  ;;  %v1316_v2 = vrot.slane %v1224_v31, %v7271_v28  ;;  %v1337_v4 = vrot.slane %v1234_v34, %v7281_v35 }
  0x3e   : > { %1123 = vbcast.lane.c.b16.xlu1 %v1121_v6, 256  ;;  %1113 = vbcast.lane.c.b16.xlu0 %v1111_v7, 256  ;;  %v1357_v6 = vrot.slane %v7286_v39, %v7226_v8  ;;  %v1347_v7 = vrot.slane %v7288_v40, %v7226_v8  ;;  %v919_v39 = vld [vmem:[%s7410_s30 + $0x20] sm:$0xf] }
  0x42   : > { %1137 = vbcast.lane.c.b16.xlu1 %v1135_v11, 256  ;;  %1130 = vbcast.lane.c.b16.xlu0 %v1128_v12, 256  ;;  %v1525_v11 = vld [vmem:[%s7425_s24 + $0x8] sm:$0xf] }
  0x46   : > { %1151 = vbcast.lane.c.b16.xlu1 %v1149_v13, 256  ;;  %1144 = vbcast.lane.c.b16.xlu0 %v1142_v10, 256  ;;  %v1523_v13 = vld [vmem:[%s7425_s24] sm:$0xf] }
  0x4a   : > { %1165 = vbcast.lane.c.b16.xlu1 %v1163_v14, 256  ;;  %1158 = vbcast.lane.c.b16.xlu0 %v1156_v15, 256  ;;  %v1526_v14 = vld [vmem:[%s7425_s24 + $0xc] sm:$0xf] }
  0x4e   : > { %1179 = vbcast.lane.c.b16.xlu1 %v1177_v16, 256  ;;  %1172 = vbcast.lane.c.b16.xlu0 %v1170_v18, 256  ;;  %v1524_v16 = vld [vmem:[%s7425_s24 + $0x4] sm:$0xf] }
  0x52   : > { %1193 = vbcast.lane.c.b16.xlu1 %v1191_v21, 256  ;;  %1186 = vbcast.lane.c.b16.xlu0 %v1184_v22, 256 }
  0x56   : > { %1207 = vbcast.lane.c.b16.xlu1 %v1205_v26, 256  ;;  %1200 = vbcast.lane.c.b16.xlu0 %v1198_v29, 256  ;;  %v1527_v29 = vld [vmem:[%s7425_s24 + $0x10] sm:$0xf] }
  0x5a   : > { %1221 = vbcast.lane.c.b16.xlu1 %v1219_v32, 256  ;;  %1214 = vbcast.lane.c.b16.xlu0 %v1212_v33, 256  ;;  %v918_v32 = vld [vmem:[%s7410_s30 + $0x1c] sm:$0xf]  ;;  %v917_v33 = vld [vmem:[%s7410_s30 + $0x18] sm:$0xf] }
  0x5e   : > { %1241 = vbcast.lane.c.b16.xlu1 %v1239_v36, 256  ;;  %1231 = vbcast.lane.c.b16.xlu0 %v1229_v37, 256  ;;  %v1530_v37 = vld [vmem:[%s7425_s24 + $0x1c] sm:$0xf] }
  0x62   : > { %1255 = vbcast.lane.c.b16.xlu1 %v1253_v38, 256  ;;  %1248 = vbcast.lane.c.b16.xlu0 %v1246_v41, 256  ;;  %v1529_v38 = vld [vmem:[%s7425_s24 + $0x18] sm:$0xf] }
  0x66   : > { %1269 = vbcast.lane.c.b16.xlu1 %v1267_v42, 256  ;;  %1262 = vbcast.lane.c.b16.xlu0 %v1260_v43, 256 }
  0x6a   : > { %1283 = vbcast.lane.c.b16.xlu1 %v1281_v44, 256  ;;  %1276 = vbcast.lane.c.b16.xlu0 %v1274_v45, 256  ;;  %v920_v45 = vld [vmem:[%s7410_s30 + $0x24] sm:$0xf] }
  0x6e   : > { %1297 = vbcast.lane.c.b16.xlu1 %v1295_v48, 256  ;;  %1290 = vbcast.lane.c.b16.xlu0 %v1288_v62, 256  ;;  %v1532_v48 = vld [vmem:[%s7425_s24 + $0x24] sm:$0xf]  ;;  %v1531_v62 = vld [vmem:[%s7425_s24 + $0x20] sm:$0xf] }
  0x72   : > { %1311 = vbcast.lane.c.b16.xlu1 %v1309_v63, 256  ;;  %1304 = vbcast.lane.c.b16.xlu0 %v1302_v0, 256 }
  0x76   : > { %1325 = vbcast.lane.c.b16.xlu1 %v1323_v1, 256  ;;  %1318 = vbcast.lane.c.b16.xlu0 %v1316_v2, 256 }
  0x7a   : > { %1339 = vbcast.lane.c.b16.xlu1 %v1337_v4, 256  ;;  %1332 = vbcast.lane.c.b16.xlu0 %v1330_v5, 256  ;;  %v922_v4 = vld [vmem:[%s7410_s30 + $0x2c] sm:$0xf]  ;;  %v6947_v5 = vld [vmem:[%s8701_s7 + $0x18] sm:$0xff]  }
  0x7e   : > { %1359 = vbcast.lane.c.b16.xlu1 %v1357_v6, 256  ;;  %1349 = vbcast.lane.c.b16.xlu0 %v1347_v7, 256 }
  0x82   : > { %1373 = vbcast.lane.c.b16.xlu1 %v1371_v46, 256  ;;  %1366 = vbcast.lane.c.b16.xlu0 %v1364_v47, 256  ;;  %v799_v46 = vld [vmem:[%s7260_s23 + $0x8] sm:$0xff]  ;;  %v801_v47 = vld [vmem:[%s7260_s23 + $0x18] sm:$0xff] }
  0x83   : > { %v806_v17 = vpack.c.bf16 %v799_v46, %v798_v9  ;;  %v1534_v46 = vld [vmem:[%s7425_s24 + $0x2c] sm:$0xf] }
  0x85   : > { %6540 = vmatprep.mubr.msk.bf16.mxu0 %vm833_vm0, %v806_v17  ;;  %v1533_v17 = vld [vmem:[%s7425_s24 + $0x28] sm:$0xf] }
  0x86   : > { %1387 = vbcast.lane.c.b16.xlu1 %v1385_v49, 256  ;;  %1380 = vbcast.lane.c.b16.xlu0 %v1378_v50, 256  ;;  %v807_v49 = vpack.c.bf16 %v801_v47, %v800_v23  ;;  %v913_v50 = vld [vmem:[%s7410_s30 + $0x8] sm:$0xf] }
  0x88   : > { %6541 = vmatmul.mubr.msk.bf16.vlgmr.msra.gmra.mrb[0].mxu0 %vm833_vm0, %v807_v49 }
  0x8a   : > { %1401 = vbcast.lane.c.b16.xlu1 %v1399_v51, 256  ;;  %1394 = vbcast.lane.c.b16.xlu0 %v1392_v52, 256  ;;  %v911_v52 = vld [vmem:[%s7410_s30] sm:$0xf] }
  0x8e   : > { %1415 = vbcast.lane.c.b16.xlu1 %v1413_v53, 256  ;;  %1408 = vbcast.lane.c.b16.xlu0 %v1406_v54, 256  ;;  %v914_v53 = vld [vmem:[%s7410_s30 + $0xc] sm:$0xf]  ;;  %v912_v54 = vld [vmem:[%s7410_s30 + $0x4] sm:$0xf] }
  0x90   : > { %v1013_v51 = vpop.permute.xlu1 %1012  ;;  %v996_v24 = vpop.permute.xlu0 %995 }
  0x91   : > { %v1461_v12 = vmul.bf16 %v1013_v51, %v913_v50  ;;  %v1459_v10 = vmul.bf16 %v996_v24, %v911_v52  ;;  %v924_v51 = vld [vmem:[%s7410_s30 + $0x34] sm:$0xf] }
  0x92   : > { %1429 = vbcast.lane.c.b16.xlu1 %v1427_v55, 256  ;;  %1422 = vbcast.lane.c.b16.xlu0 %v1420_v56, 256  ;;  %v915_v56 = vld [vmem:[%s7410_s30 + $0x10] sm:$0xf] }
  0x93   : > { %v1589_v21 = vadd.bf16 %v1525_v11, %v1461_v12  ;;  %v1587_v22 = vadd.bf16 %v1523_v13, %v1459_v10  ;;  %v1536_v11 = vld [vmem:[%s7425_s24 + $0x34] sm:$0xf]  ;;  %v1535_v12 = vld [vmem:[%s7425_s24 + $0x30] sm:$0xf] }
  0x94   : > { %v1020_v15 = vpop.permute.xlu1 %1019  ;;  %v1006_v18 = vpop.permute.xlu0 %1005 }
  0x95   : > { %v1462_v27 = vmul.bf16 %v1020_v15, %v914_v53  ;;  %v1460_v55 = vmul.bf16 %v1006_v18, %v912_v54  ;;  %v923_v54 = vld [vmem:[%s7410_s30 + $0x30] sm:$0xf]  ;;  %v925_v18 = vld [vmem:[%s7410_s30 + $0x38] sm:$0xf] }
  0x96   : > { %1443 = vbcast.lane.c.b16.xlu1 %v1441_v57, 256  ;;  %1436 = vbcast.lane.c.b16.xlu0 %v1434_v58, 256  ;;  %v6945_v57 = vld [vmem:[%s8701_s7 + $0x8] sm:$0xff]  }
  0x97   : > { %v1590_v25 = vadd.bf16 %v1526_v14, %v1462_v27  ;;  %v1588_v26 = vadd.bf16 %v1524_v16, %v1460_v55  ;;  %v926_v16 = vld [vmem:[%s7410_s30 + $0x3c] sm:$0xf] }
  0x98   : > { %v1034_v30 = vpop.permute.xlu1 %1033  ;;  %v1027_v31 = vpop.permute.xlu0 %1026 }
  0x99   : > { %v6149_v28 = vcombine.low %v1589_v21, %v1590_v25  ;;  %v6148_v58 = vcombine.low %v1587_v22, %v1588_v26  ;;  %v1464_v34 = vmul.bf16 %v1034_v30, %v916_v19  ;;  %v1463_v36 = vmul.bf16 %v1027_v31, %v915_v56  ;;  %v1538_v56 = vld [vmem:[%s7425_s24 + $0x3c] sm:$0xf]  ;;  %v1537_v25 = vld [vmem:[%s7425_s24 + $0x38] sm:$0xf] }
  0x9a   : > { %1457 = vbcast.lane.c.b16.xlu1 %v1455_v59, 256  ;;  %1450 = vbcast.lane.c.b16.xlu0 %v1448_v60, 256  ;;  %v6946_v60 = vld [vmem:[%s8701_s7 + $0x10] sm:$0xff]  }
  0x9b   : > { %v1592_v41 = vadd.bf16 %v1528_v20, %v1464_v34  ;;  %v1591_v42 = vadd.bf16 %v1527_v29, %v1463_v36  ;;  %6552 = vmatprep.mubr.msk.bf16.mxu1 %vm833_vm0, %v6148_v58  ;;  %v1540_v58 = vld [vmem:[%s7425_s24 + $0x44] sm:$0xf]  ;;  %v1539_v36 = vld [vmem:[%s7425_s24 + $0x40] sm:$0xf] }
  0x9c   : > { %6553 = vmatmul.mubr.msk.bf16.vlgmr.msra.gmra.mrb[4].mxu1 %vm833_vm0, %v6149_v28  ;;  %v1048_v43 = vpop.permute.xlu1 %1047  ;;  %v1041_v44 = vpop.permute.xlu0 %1040 }
  0x9d   : > { %v6150_v59 = vcombine.low %v1591_v42, %v1592_v41  ;;  %6617 = vmatpush3.bf16.msra.mxu1 %v7333_v61  ;;  %v1466_v35 = vmul.bf16 %v1048_v43, %v918_v32  ;;  %v1465_v40 = vmul.bf16 %v1041_v44, %v917_v33  ;;  %v921_v61 = vld [vmem:[%s7410_s30 + $0x28] sm:$0xf]  ;;  %v928_v32 = vld [vmem:[%s7410_s30 + $0x44] sm:$0xf]  ;;  %v927_v33 = vld [vmem:[%s7410_s30 + $0x40] sm:$0xf] }
  0x9e   : > { %6618 = vmatprep.subr.bf16.mxu1 %v6945_v57  ;;  %v930_v43 = vld [vmem:[%s7410_s30 + $0x4c] sm:$0xf]  ;;  %v929_v44 = vld [vmem:[%s7410_s30 + $0x48] sm:$0xf] }
  0x9f   : > { %v1594_v63 = vadd.bf16 %v1530_v37, %v1466_v35  ;;  %v1593_v0 = vadd.bf16 %v1529_v38, %v1465_v40  ;;  %6556 = vmatprep.mubr.msk.bf16.mxu1 %vm833_vm0, %v6150_v59  ;;  %v1542_v59 = vld [vmem:[%s7425_s24 + $0x4c] sm:$0xf]  ;;  %v1541_v40 = vld [vmem:[%s7425_s24 + $0x48] sm:$0xf] }
  0xa0   : > { %v1062_v1 = vpop.permute.xlu1 %1061  ;;  %v1055_v2 = vpop.permute.xlu0 %1054 }
  0xa1   : > { %v6151_v6 = vcombine.low %v1593_v0, %v1594_v63  ;;  %v1468_v7 = vmul.bf16 %v1062_v1, %v920_v45  ;;  %v1467_v9 = vmul.bf16 %v1055_v2, %v919_v39  ;;  %6619 = vmatpush3.bf16.msra.mxu1 %v6945_v57  ;;  %v932_v0 = vld [vmem:[%s7410_s30 + $0x54] sm:$0xf]  ;;  %v931_v1 = vld [vmem:[%s7410_s30 + $0x50] sm:$0xf] }
  0xa2   : > { %6620 = vmatprep.subr.bf16.mxu1 %v6946_v60 }
  0xa3   : > { %v1596_v23 = vadd.bf16 %v1532_v48, %v1468_v7  ;;  %v1595_v47 = vadd.bf16 %v1531_v62, %v1467_v9 }
  0xa4   : > { %6557 = vmatmul.mubr.msk.bf16.gmra.mrb[8].mxu1 %vm833_vm0, %v6151_v6  ;;  %v1076_v49 = vpop.permute.xlu1 %1075  ;;  %v1069_v50 = vpop.permute.xlu0 %1068  ;;  %v1543_v6 = vld [vmem:[%s7425_s24 + $0x50] sm:$0xf] }
  0xa5   : > { %v6152_v52 = vcombine.low %v1595_v47, %v1596_v23  ;;  %v1470_v24 = vmul.bf16 %v1076_v49, %v922_v4  ;;  %v1469_v53 = vmul.bf16 %v1069_v50, %v921_v61  ;;  %6621 = vmatpush3.bf16.msra.mxu1 %v6946_v60  ;;  %v1544_v61 = vld [vmem:[%s7425_s24 + $0x54] sm:$0xf]  ;;  %v934_v23 = vld [vmem:[%s7410_s30 + $0x5c] sm:$0xf]  ;;  %v933_v47 = vld [vmem:[%s7410_s30 + $0x58] sm:$0xf] }
  0xa6   : > { %6622 = vmatprep.subr.bf16.mxu1 %v6947_v5 }
  0xa7   : > { %v1598_v13 = vadd.bf16 %v1534_v46, %v1470_v24  ;;  %v1597_v10 = vadd.bf16 %v1533_v17, %v1469_v53  ;;  %6560 = vmatprep.mubr.msk.bf16.mxu1 %vm833_vm0, %v6152_v52  ;;  %v1545_v24 = vld [vmem:[%s7425_s24 + $0x58] sm:$0xf] }
  0xa8   : > { %v1090_v14 = vpop.permute.xlu1 %1089  ;;  %v1083_v15 = vpop.permute.xlu0 %1082 }
  0xa9   : > { %v6153_v19 = vcombine.low %v1597_v10, %v1598_v13  ;;  %v1472_v27 = vmul.bf16 %v1090_v14, %v924_v51  ;;  %v1471_v55 = vmul.bf16 %v1083_v15, %v923_v54  ;;  %6623 = vmatpush3.bf16.msra.mxu1 %v6947_v5  ;;  %v1546_v51 = vld [vmem:[%s7425_s24 + $0x5c] sm:$0xf]  ;;  %v936_v13 = vld [vmem:[%s7410_s30 + $0x64] sm:$0xf]  ;;  %v935_v10 = vld [vmem:[%s7410_s30 + $0x60] sm:$0xf] }
  0xab   : > { %v1600_v20 = vadd.bf16 %v1536_v11, %v1472_v27  ;;  %v1599_v21 = vadd.bf16 %v1535_v12, %v1471_v55 }
  0xac   : > { %6561 = vmatmul.mubr.msk.bf16.gmra.mrb[12].mxu1 %vm833_vm0, %v6153_v19  ;;  %v1104_v22 = vpop.permute.xlu1 %1103  ;;  %v1097_v26 = vpop.permute.xlu0 %1096  ;;  %v1547_v19 = vld [vmem:[%s7425_s24 + $0x60] sm:$0xf] }
  0xad   : > { %v6154_v29 = vcombine.low %v1599_v21, %v1600_v20  ;;  %v1474_v30 = vmul.bf16 %v1104_v22, %v926_v16  ;;  %v1473_v31 = vmul.bf16 %v1097_v26, %v925_v18  ;;  %v1548_v16 = vld [vmem:[%s7425_s24 + $0x64] sm:$0xf]  ;;  %v938_v21 = vld [vmem:[%s7410_s30 + $0x6c] sm:$0xf]  ;;  %v937_v22 = vld [vmem:[%s7410_s30 + $0x68] sm:$0xf] }
  0xaf   : > { %v1602_v57 = vadd.bf16 %v1538_v56, %v1474_v30  ;;  %v1601_v28 = vadd.bf16 %v1537_v25, %v1473_v31  ;;  %6564 = vmatprep.mubr.msk.bf16.mxu1 %vm833_vm0, %v6154_v29  ;;  %v1550_v29 = vld [vmem:[%s7425_s24 + $0x6c] sm:$0xf]  ;;  %v1549_v31 = vld [vmem:[%s7425_s24 + $0x68] sm:$0xf] }
  0xb0   : > { %v1124_v34 = vpop.permute.xlu1 %1123  ;;  %v1114_v37 = vpop.permute.xlu0 %1113 }
  0xb1   : > { %v6155_v38 = vcombine.low %v1601_v28, %v1602_v57  ;;  %v1476_v41 = vmul.bf16 %v1124_v34, %v928_v32  ;;  %v1475_v42 = vmul.bf16 %v1114_v37, %v927_v33  ;;  %v939_v34 = vld [vmem:[%s7410_s30 + $0x70] sm:$0xf] }
  0xb3   : > { %v1604_v45 = vadd.bf16 %v1540_v58, %v1476_v41  ;;  %v1603_v39 = vadd.bf16 %v1539_v36, %v1475_v42  ;;  %v940_v58 = vld [vmem:[%s7410_s30 + $0x74] sm:$0xf]  ;;  %v1551_v42 = vld [vmem:[%s7425_s24 + $0x70] sm:$0xf] }
  0xb4   : > { %6565 = vmatmul.mubr.msk.bf16.gmra.mrb[16].mxu1 %vm833_vm0, %v6155_v38  ;;  %v1138_v35 = vpop.permute.xlu1 %1137  ;;  %v1131_v60 = vpop.permute.xlu0 %1130  ;;  %v1552_v38 = vld [vmem:[%s7425_s24 + $0x74] sm:$0xf] }
  0xb5   : > { %v6156_v48 = vcombine.low %v1603_v39, %v1604_v45  ;;  %v1478_v62 = vmul.bf16 %v1138_v35, %v930_v43  ;;  %v1477_v63 = vmul.bf16 %v1131_v60, %v929_v44  ;;  %v941_v35 = vld [vmem:[%s7410_s30 + $0x78] sm:$0xf] }
  0xb7   : > { %v1606_v2 = vadd.bf16 %v1542_v59, %v1478_v62  ;;  %v1605_v4 = vadd.bf16 %v1541_v40, %v1477_v63  ;;  %6568 = vmatprep.mubr.msk.bf16.mxu1 %vm833_vm0, %v6156_v48  ;;  %v942_v59 = vld [vmem:[%s7410_s30 + $0x7c] sm:$0xf]  ;;  %v1553_v63 = vld [vmem:[%s7425_s24 + $0x78] sm:$0xf] }
  0xb8   : > { %v1152_v5 = vpop.permute.xlu1 %1151  ;;  %v1145_v7 = vpop.permute.xlu0 %1144  ;;  %v1554_v48 = vld [vmem:[%s7425_s24 + $0x7c] sm:$0xf] }
  0xb9   : > { %v6157_v9 = vcombine.low %v1605_v4, %v1606_v2  ;;  %v1480_v46 = vmul.bf16 %v1152_v5, %v932_v0  ;;  %v1479_v17 = vmul.bf16 %v1145_v7, %v931_v1  ;;  %v943_v5 = vld [vmem:[%s7410_s30 + $0x80] sm:$0xf] }
  0xbb   : > { %v1608_v49 = vadd.bf16 %v1544_v61, %v1480_v46  ;;  %v1607_v50 = vadd.bf16 %v1543_v6, %v1479_v17  ;;  %v944_v61 = vld [vmem:[%s7410_s30 + $0x84] sm:$0xf]  ;;  %v1555_v17 = vld [vmem:[%s7425_s24 + $0x80] sm:$0xf] }
  0xbc   : > { %6569 = vmatmul.mubr.msk.bf16.gmra.mrb[20].mxu1 %vm833_vm0, %v6157_v9  ;;  %v1166_v52 = vpop.permute.xlu1 %1165  ;;  %v1159_v53 = vpop.permute.xlu0 %1158  ;;  %v1556_v9 = vld [vmem:[%s7425_s24 + $0x84] sm:$0xf] }
  0xbd   : > { %v6158_v54 = vcombine.low %v1607_v50, %v1608_v49  ;;  %v1482_v11 = vmul.bf16 %v1166_v52, %v934_v23  ;;  %v1481_v12 = vmul.bf16 %v1159_v53, %v933_v47  ;;  %v945_v52 = vld [vmem:[%s7410_s30 + $0x88] sm:$0xf] }
  0xbf   : > { %v1610_v14 = vadd.bf16 %v1546_v51, %v1482_v11  ;;  %v1609_v15 = vadd.bf16 %v1545_v24, %v1481_v12  ;;  %6572 = vmatprep.mubr.msk.bf16.mxu1 %vm833_vm0, %v6158_v54  ;;  %v946_v51 = vld [vmem:[%s7410_s30 + $0x8c] sm:$0xf]  ;;  %v1557_v12 = vld [vmem:[%s7425_s24 + $0x88] sm:$0xf] }
  0xc0   : > { %v1180_v18 = vpop.permute.xlu1 %1179  ;;  %v1173_v27 = vpop.permute.xlu0 %1172  ;;  %v1558_v54 = vld [vmem:[%s7425_s24 + $0x8c] sm:$0xf] }
  0xc1   : > { %v6159_v55 = vcombine.low %v1609_v15, %v1610_v14  ;;  %v1484_v56 = vmul.bf16 %v1180_v18, %v936_v13  ;;  %v1483_v20 = vmul.bf16 %v1173_v27, %v935_v10  ;;  %v947_v18 = vld [vmem:[%s7410_s30 + $0x90] sm:$0xf] }
  0xc3   : > { %v1612_v25 = vadd.bf16 %v1548_v16, %v1484_v56  ;;  %v1611_v26 = vadd.bf16 %v1547_v19, %v1483_v20  ;;  %v948_v16 = vld [vmem:[%s7410_s30 + $0x94] sm:$0xf]  ;;  %v1559_v20 = vld [vmem:[%s7425_s24 + $0x90] sm:$0xf] }
  0xc4   : > { %6573 = vmatmul.mubr.msk.bf16.gmra.mrb[24].mxu1 %vm833_vm0, %v6159_v55  ;;  %v1194_v30 = vpop.permute.xlu1 %1193  ;;  %v1187_v32 = vpop.permute.xlu0 %1186  ;;  %v1560_v55 = vld [vmem:[%s7425_s24 + $0x94] sm:$0xf] }
  0xc5   : > { %v6160_v33 = vcombine.low %v1611_v26, %v1612_v25  ;;  %v1486_v57 = vmul.bf16 %v1194_v30, %v938_v21  ;;  %v1485_v28 = vmul.bf16 %v1187_v32, %v937_v22  ;;  %v949_v30 = vld [vmem:[%s7410_s30 + $0x98] sm:$0xf] }
  0xc7   : > { %v1614_v36 = vadd.bf16 %v1550_v29, %v1486_v57  ;;  %v1613_v37 = vadd.bf16 %v1549_v31, %v1485_v28  ;;  %6576 = vmatprep.mubr.msk.bf16.mxu1 %vm833_vm0, %v6160_v33  ;;  %v950_v29 = vld [vmem:[%s7410_s30 + $0x9c] sm:$0xf]  ;;  %v1561_v28 = vld [vmem:[%s7425_s24 + $0x98] sm:$0xf] }
  0xc8   : > { %v1208_v41 = vpop.permute.xlu1 %1207  ;;  %v1201_v43 = vpop.permute.xlu0 %1200  ;;  %v1562_v33 = vld [vmem:[%s7425_s24 + $0x9c] sm:$0xf] }
  0xc9   : > { %v6161_v44 = vcombine.low %v1613_v37, %v1614_v36  ;;  %v1488_v45 = vmul.bf16 %v1208_v41, %v940_v58  ;;  %v1487_v39 = vmul.bf16 %v1201_v43, %v939_v34  ;;  %v951_v41 = vld [vmem:[%s7410_s30 + $0xa0] sm:$0xf] }
  0xcb   : > { %v1616_v40 = vadd.bf16 %v1552_v38, %v1488_v45  ;;  %v1615_v60 = vadd.bf16 %v1551_v42, %v1487_v39  ;;  %v952_v38 = vld [vmem:[%s7410_s30 + $0xa4] sm:$0xf]  ;;  %v1563_v39 = vld [vmem:[%s7425_s24 + $0xa0] sm:$0xf] }
  0xcc   : > { %6577 = vmatmul.mubr.msk.bf16.gmra.mrb[28].mxu1 %vm833_vm0, %v6161_v44  ;;  %v1222_v62 = vpop.permute.xlu1 %1221  ;;  %v1215_v0 = vpop.permute.xlu0 %1214  ;;  %v1564_v44 = vld [vmem:[%s7425_s24 + $0xa4] sm:$0xf] }
  0xcd   : > { %v6162_v1 = vcombine.low %v1615_v60, %v1616_v40  ;;  %v1490_v2 = vmul.bf16 %v1222_v62, %v942_v59  ;;  %v1489_v4 = vmul.bf16 %v1215_v0, %v941_v35  ;;  %v953_v62 = vld [vmem:[%s7410_s30 + $0xa8] sm:$0xf] }
  0xcf   : > { %v1618_v6 = vadd.bf16 %v1554_v48, %v1490_v2  ;;  %v1617_v7 = vadd.bf16 %v1553_v63, %v1489_v4  ;;  %6580 = vmatprep.mubr.msk.bf16.mxu1 %vm833_vm0, %v6162_v1  ;;  %v954_v48 = vld [vmem:[%s7410_s30 + $0xac] sm:$0xf]  ;;  %v1565_v4 = vld [vmem:[%s7425_s24 + $0xa8] sm:$0xf] }
  0xd0   : > { %v1242_v46 = vpop.permute.xlu1 %1241  ;;  %v1232_v23 = vpop.permute.xlu0 %1231  ;;  %v1566_v1 = vld [vmem:[%s7425_s24 + $0xac] sm:$0xf] }
  0xd1   : > { %v6163_v47 = vcombine.low %v1617_v7, %v1618_v6  ;;  %v1492_v49 = vmul.bf16 %v1242_v46, %v944_v61  ;;  %v1491_v50 = vmul.bf16 %v1232_v23, %v943_v5  ;;  %v955_v46 = vld [vmem:[%s7410_s30 + $0xb0] sm:$0xf] }
  0xd3   : > { %v1620_v24 = vadd.bf16 %v1556_v9, %v1492_v49  ;;  %v1619_v53 = vadd.bf16 %v1555_v17, %v1491_v50  ;;  %v956_v9 = vld [vmem:[%s7410_s30 + $0xb4] sm:$0xf]  ;;  %v1567_v50 = vld [vmem:[%s7425_s24 + $0xb0] sm:$0xf] }
  0xd4   : > { %6581 = vmatmul.mubr.msk.bf16.gmra.mrb[32].mxu1 %vm833_vm0, %v6163_v47  ;;  %v1256_v11 = vpop.permute.xlu1 %1255  ;;  %v1249_v13 = vpop.permute.xlu0 %1248  ;;  %v1568_v47 = vld [vmem:[%s7425_s24 + $0xb4] sm:$0xf] }
  0xd5   : > { %v6164_v10 = vcombine.low %v1619_v53, %v1620_v24  ;;  %v1494_v14 = vmul.bf16 %v1256_v11, %v946_v51  ;;  %v1493_v15 = vmul.bf16 %v1249_v13, %v945_v52  ;;  %v957_v11 = vld [vmem:[%s7410_s30 + $0xb8] sm:$0xf] }
  0xd7   : > { %v1622_v19 = vadd.bf16 %v1558_v54, %v1494_v14  ;;  %v1621_v27 = vadd.bf16 %v1557_v12, %v1493_v15  ;;  %6584 = vmatprep.mubr.msk.bf16.mxu1 %vm833_vm0, %v6164_v10  ;;  %v958_v54 = vld [vmem:[%s7410_s30 + $0xbc] sm:$0xf]  ;;  %v1569_v15 = vld [vmem:[%s7425_s24 + $0xb8] sm:$0xf] }
  0xd8   : > { %v1270_v56 = vpop.permute.xlu1 %1269  ;;  %v1263_v21 = vpop.permute.xlu0 %1262  ;;  %v1570_v10 = vld [vmem:[%s7425_s24 + $0xbc] sm:$0xf] }
  0xd9   : > { %v6165_v22 = vcombine.low %v1621_v27, %v1622_v19  ;;  %v1496_v25 = vmul.bf16 %v1270_v56, %v948_v16  ;;  %v1495_v26 = vmul.bf16 %v1263_v21, %v947_v18  ;;  %v959_v56 = vld [vmem:[%s7410_s30 + $0xc0] sm:$0xf] }
  0xdb   : > { %v1624_v31 = vadd.bf16 %v1560_v55, %v1496_v25  ;;  %v1623_v32 = vadd.bf16 %v1559_v20, %v1495_v26  ;;  %v960_v55 = vld [vmem:[%s7410_s30 + $0xc4] sm:$0xf]  ;;  %v1571_v26 = vld [vmem:[%s7425_s24 + $0xc0] sm:$0xf] }
  0xdc   : > { %6585 = vmatmul.mubr.msk.bf16.gmra.mrb[36].mxu1 %vm833_vm0, %v6165_v22  ;;  %v1284_v57 = vpop.permute.xlu1 %1283  ;;  %v1277_v58 = vpop.permute.xlu0 %1276  ;;  %v1572_v22 = vld [vmem:[%s7425_s24 + $0xc4] sm:$0xf] }
  0xdd   : > { %v6166_v34 = vcombine.low %v1623_v32, %v1624_v31  ;;  %v1498_v36 = vmul.bf16 %v1284_v57, %v950_v29  ;;  %v1497_v37 = vmul.bf16 %v1277_v58, %v949_v30  ;;  %v961_v57 = vld [vmem:[%s7410_s30 + $0xc8] sm:$0xf] }
  0xdf   : > { %v1626_v42 = vadd.bf16 %v1562_v33, %v1498_v36  ;;  %v1625_v43 = vadd.bf16 %v1561_v28, %v1497_v37  ;;  %6588 = vmatprep.mubr.msk.bf16.mxu1 %vm833_vm0, %v6166_v34  ;;  %v962_v33 = vld [vmem:[%s7410_s30 + $0xcc] sm:$0xf]  ;;  %v1573_v37 = vld [vmem:[%s7425_s24 + $0xc8] sm:$0xf] }
  0xe0   : > { %v1298_v45 = vpop.permute.xlu1 %1297  ;;  %v1291_v59 = vpop.permute.xlu0 %1290  ;;  %v1574_v34 = vld [vmem:[%s7425_s24 + $0xcc] sm:$0xf] }
  0xe1   : > { %v6167_v35 = vcombine.low %v1625_v43, %v1626_v42  ;;  %v1500_v40 = vmul.bf16 %v1298_v45, %v952_v38  ;;  %v1499_v60 = vmul.bf16 %v1291_v59, %v951_v41  ;;  %v963_v45 = vld [vmem:[%s7410_s30 + $0xd0] sm:$0xf] }
  0xe3   : > { %v1628_v63 = vadd.bf16 %v1564_v44, %v1500_v40  ;;  %v1627_v0 = vadd.bf16 %v1563_v39, %v1499_v60  ;;  %v964_v44 = vld [vmem:[%s7410_s30 + $0xd4] sm:$0xf]  ;;  %v1575_v60 = vld [vmem:[%s7425_s24 + $0xd0] sm:$0xf] }
  0xe4   : > { %6589 = vmatmul.mubr.msk.bf16.gmra.mrb[40].mxu1 %vm833_vm0, %v6167_v35  ;;  %v1312_v2 = vpop.permute.xlu1 %1311  ;;  %v1305_v61 = vpop.permute.xlu0 %1304  ;;  %v1576_v35 = vld [vmem:[%s7425_s24 + $0xd4] sm:$0xf] }
  0xe5   : > { %v6168_v5 = vcombine.low %v1627_v0, %v1628_v63  ;;  %v1502_v6 = vmul.bf16 %v1312_v2, %v954_v48  ;;  %v1501_v7 = vmul.bf16 %v1305_v61, %v953_v62  ;;  %v965_v2 = vld [vmem:[%s7410_s30 + $0xd8] sm:$0xf] }
  0xe7   : > { %v1630_v17 = vadd.bf16 %v1566_v1, %v1502_v6  ;;  %v1629_v23 = vadd.bf16 %v1565_v4, %v1501_v7  ;;  %6592 = vmatprep.mubr.msk.bf16.mxu1 %vm833_vm0, %v6168_v5  ;;  %v966_v1 = vld [vmem:[%s7410_s30 + $0xdc] sm:$0xf]  ;;  %v1577_v7 = vld [vmem:[%s7425_s24 + $0xd8] sm:$0xf] }
  0xe8   : > { %v1326_v49 = vpop.permute.xlu1 %1325  ;;  %v1319_v51 = vpop.permute.xlu0 %1318  ;;  %v1578_v5 = vld [vmem:[%s7425_s24 + $0xdc] sm:$0xf] }
  0xe9   : > { %v6169_v52 = vcombine.low %v1629_v23, %v1630_v17  ;;  %v1504_v24 = vmul.bf16 %v1326_v49, %v956_v9  ;;  %v1503_v53 = vmul.bf16 %v1319_v51, %v955_v46  ;;  %v967_v49 = vld [vmem:[%s7410_s30 + $0xe0] sm:$0xf] }
  0xeb   : > { %v1632_v12 = vadd.bf16 %v1568_v47, %v1504_v24  ;;  %v1631_v13 = vadd.bf16 %v1567_v50, %v1503_v53  ;;  %v968_v47 = vld [vmem:[%s7410_s30 + $0xe4] sm:$0xf]  ;;  %v1579_v53 = vld [vmem:[%s7425_s24 + $0xe0] sm:$0xf] }
  0xec   : > { %6593 = vmatmul.mubr.msk.bf16.gmra.mrb[44].mxu1 %vm833_vm0, %v6169_v52  ;;  %v1340_v14 = vpop.permute.xlu1 %1339  ;;  %v1333_v16 = vpop.permute.xlu0 %1332  ;;  %v1580_v52 = vld [vmem:[%s7425_s24 + $0xe4] sm:$0xf] }
  0xed   : > { %v6170_v18 = vcombine.low %v1631_v13, %v1632_v12  ;;  %v1506_v19 = vmul.bf16 %v1340_v14, %v958_v54  ;;  %v1505_v27 = vmul.bf16 %v1333_v16, %v957_v11  ;;  %v970_v14 = vld [vmem:[%s7410_s30 + $0xec] sm:$0xf] }
  0xef   : > { %v1634_v20 = vadd.bf16 %v1570_v10, %v1506_v19  ;;  %v1633_v21 = vadd.bf16 %v1569_v15, %v1505_v27  ;;  %6596 = vmatprep.mubr.msk.bf16.mxu1 %vm833_vm0, %v6170_v18  ;;  %v969_v15 = vld [vmem:[%s7410_s30 + $0xe8] sm:$0xf] }
  0xf0   : > { %v1360_v25 = vpop.permute.xlu1 %1359  ;;  %v1350_v29 = vpop.permute.xlu0 %1349 }
  0xf1   : > { %v6171_v30 = vcombine.low %v1633_v21, %v1634_v20  ;;  %v1508_v31 = vmul.bf16 %v1360_v25, %v960_v55  ;;  %v1507_v32 = vmul.bf16 %v1350_v29, %v959_v56  ;;  %v7605_v10 = vpop.f32.mrb[0].mxu1  ;;  %v1582_v55 = vld [vmem:[%s7425_s24 + $0xec] sm:$0xf]  ;;  %v1581_v20 = vld [vmem:[%s7425_s24 + $0xe8] sm:$0xf] }
  0xf2   : > { %v7609_v16 = vpop.f32.mrb[1].mxu1 }
  0xf3   : > { %v1636_v28 = vadd.bf16 %v1572_v22, %v1508_v31  ;;  %v1635_v58 = vadd.bf16 %v1571_v26, %v1507_v32  ;;  %v7611_v27 = vpop.f32.mrb[2].mxu1  ;;  %v971_v31 = vld [vmem:[%s7410_s30 + $0xf0] sm:$0xf] }
  0xf4   : > { %6597 = vmatmul.mubr.msk.bf16.gmra.mrb[48].mxu1 %vm833_vm0, %v6171_v30  ;;  %v1374_v36 = vpop.permute.xlu1 %1373  ;;  %v1367_v38 = vpop.permute.xlu0 %1366  ;;  %v972_v30 = vld [vmem:[%s7410_s30 + $0xf4] sm:$0xf] }
  0xf5   : > { %v6172_v41 = vcombine.low %v1635_v58, %v1636_v28  ;;  %v1510_v42 = vmul.bf16 %v1374_v36, %v962_v33  ;;  %v1509_v43 = vmul.bf16 %v1367_v38, %v961_v57  ;;  %v7616_v29 = vpop.f32.mrb[3].mxu1  ;;  %v1584_v57 = vld [vmem:[%s7425_s24 + $0xf4] sm:$0xf]  ;;  %v1583_v58 = vld [vmem:[%s7425_s24 + $0xf0] sm:$0xf] }
  0xf7   : > { %v1638_v39 = vadd.bf16 %v1574_v34, %v1510_v42  ;;  %v1637_v59 = vadd.bf16 %v1573_v37, %v1509_v43  ;;  %6600 = vmatprep.mubr.msk.bf16.mxu1 %vm833_vm0, %v6172_v41  ;;  %v974_v41 = vld [vmem:[%s7410_s30 + $0xfc] sm:$0xf]  ;;  %v973_v42 = vld [vmem:[%s7410_s30 + $0xf8] sm:$0xf]  ;;  %s789_s30 = scalar_lea.vmem %s8731_s25, %s7215_s6 }
  0xf8   : > { %v1388_v40 = vpop.permute.xlu1 %1387  ;;  %v1381_v48 = vpop.permute.xlu0 %1380 }
  0xf9   : > { %v6173_v62 = vcombine.low %v1637_v59, %v1638_v39  ;;  %v1512_v63 = vmul.bf16 %v1388_v40, %v964_v44  ;;  %v1511_v0 = vmul.bf16 %v1381_v48, %v963_v45  ;;  %v1586_v45 = vld [vmem:[%s7425_s24 + $0xfc] sm:$0xf]  ;;  %v1585_v59 = vld [vmem:[%s7425_s24 + $0xf8] sm:$0xf] }
  0xfb   : > { %v1640_v4 = vadd.bf16 %v1576_v35, %v1512_v63  ;;  %v1639_v61 = vadd.bf16 %v1575_v60, %v1511_v0 }
  0xfc   : > { %6601 = vmatmul.mubr.msk.bf16.gmra.mrb[52].mxu1 %vm833_vm0, %v6173_v62  ;;  %v1402_v6 = vpop.permute.xlu1 %1401  ;;  %v1395_v9 = vpop.permute.xlu0 %1394 }
  0xfd   : > { %v6174_v46 = vcombine.low %v1639_v61, %v1640_v4  ;;  %v1514_v17 = vmul.bf16 %v1402_v6, %v966_v1  ;;  %v1513_v23 = vmul.bf16 %v1395_v9, %v965_v2  ;;  %v6948_v1 = vld [vmem:[%s7447_s27] sm:$0xff]   ;;  %v6949_v2 = vld [vmem:[%s7447_s27 + $0x8] sm:$0xff]   ;;  %v6950_v4 = vld [vmem:[%s7447_s27 + $0x10] sm:$0xff]  }
  0xfe   : > { %v6951_v61 = vld [vmem:[%s7447_s27 + $0x18] sm:$0xff]   ;;  %v6953_v6 = vld [vmem:[%s7447_s27 + $0x28] sm:$0xff]  }
  0xff   : > { %v1642_v50 = vadd.bf16 %v1578_v5, %v1514_v17  ;;  %v1641_v51 = vadd.bf16 %v1577_v7, %v1513_v23  ;;  %6604 = vmatprep.mubr.msk.bf16.mxu1 %vm833_vm0, %v6174_v46  ;;  %v6952_v5 = vld [vmem:[%s7447_s27 + $0x20] sm:$0xff]   ;;  %v6954_v7 = vld [vmem:[%s7447_s27 + $0x30] sm:$0xff]   ;;  %v6955_v9 = vld [vmem:[%s7447_s27 + $0x38] sm:$0xff]  }
 0x100   : > { %v1416_v24 = vpop.permute.xlu1 %1415  ;;  %v1409_v54 = vpop.permute.xlu0 %1408  ;;  %v6956_v46 = vld [vmem:[%s7447_s27 + $0x40] sm:$0xff]   ;;  %v6957_v17 = vld [vmem:[%s7447_s27 + $0x48] sm:$0xff]   ;;  %v6958_v23 = vld [vmem:[%s7447_s27 + $0x50] sm:$0xff]  }
 0x101   : > { %v6175_v11 = vcombine.low %v1641_v51, %v1642_v50  ;;  %v1516_v12 = vmul.bf16 %v1416_v24, %v968_v47  ;;  %v1515_v13 = vmul.bf16 %v1409_v54, %v967_v49  ;;  %v6959_v47 = vld [vmem:[%s7447_s27 + $0x58] sm:$0xff]   ;;  %v6960_v49 = vld [vmem:[%s7447_s27 + $0x60] sm:$0xff]   ;;  %v6961_v50 = vld [vmem:[%s7447_s27 + $0x68] sm:$0xff]  }
 0x102   : > { %v6962_v51 = vld [vmem:[%s7447_s27 + $0x70] sm:$0xff]   ;;  %v6964_v24 = vld [vmem:[%s7447_s27 + $0x80] sm:$0xff]  }
 0x103   : > { %v1644_v18 = vadd.bf16 %v1580_v52, %v1516_v12  ;;  %v1643_v19 = vadd.bf16 %v1579_v53, %v1515_v13  ;;  %v6963_v52 = vld [vmem:[%s7447_s27 + $0x78] sm:$0xff]   ;;  %v6965_v53 = vld [vmem:[%s7447_s27 + $0x88] sm:$0xff]   ;;  %v6966_v54 = vld [vmem:[%s7447_s27 + $0x90] sm:$0xff]  }
 0x104   : > { %6605 = vmatmul.mubr.msk.bf16.gmra.mrb[56].mxu1 %vm833_vm0, %v6175_v11  ;;  %v1430_v56 = vpop.permute.xlu1 %1429  ;;  %v1423_v21 = vpop.permute.xlu0 %1422  ;;  %v6967_v11 = vld [vmem:[%s7447_s27 + $0x98] sm:$0xff]   ;;  %v6968_v12 = vld [vmem:[%s7447_s27 + $0xa0] sm:$0xff]  }
 0x105   : > { %v6176_v22 = vcombine.low %v1643_v19, %v1644_v18  ;;  %v1518_v25 = vmul.bf16 %v1430_v56, %v970_v14  ;;  %v1517_v26 = vmul.bf16 %v1423_v21, %v969_v15  ;;  %v6969_v19 = vld [vmem:[%s7447_s27 + $0xa8] sm:$0xff]   ;;  %v6971_v56 = vld [vmem:[%s7447_s27 + $0xb8] sm:$0xff]   ;;  %v6972_v21 = vld [vmem:[%s7447_s27 + $0xc0] sm:$0xff]  }
 0x107   : > { %v1646_v32 = vadd.bf16 %v1582_v55, %v1518_v25  ;;  %v1645_v33 = vadd.bf16 %v1581_v20, %v1517_v26  ;;  %6608 = vmatprep.mubr.msk.bf16.mxu1 %vm833_vm0, %v6176_v22  ;;  %v6970_v55 = vld [vmem:[%s7447_s27 + $0xb0] sm:$0xff]   ;;  %v6980_v20 = vld [vmem:[%s8704_s10] sm:$0xff]   ;;  %v6981_v22 = vld [vmem:[%s8704_s10 + $0x8] sm:$0xff]  }
 0x108   : > { %v1444_v28 = vpop.permute.xlu1 %1443  ;;  %v1437_v34 = vpop.permute.xlu0 %1436  ;;  %6688 = vmatprep.subr.bf16.mxu0 %v6980_v20  ;;  %v6973_v25 = vld [vmem:[%s7447_s27 + $0xc8] sm:$0xff]   ;;  %v6974_v26 = vld [vmem:[%s7447_s27 + $0xd0] sm:$0xff]  }
 0x109   : > { %v6177_v36 = vcombine.low %v1645_v33, %v1646_v32  ;;  %v1520_v37 = vmul.bf16 %v1444_v28, %v972_v30  ;;  %v1519_v38 = vmul.bf16 %v1437_v34, %v971_v31  ;;  %6689 = vmatpush3.bf16.msra.mxu0 %v6980_v20  ;;  %v6975_v30 = vld [vmem:[%s7447_s27 + $0xd8] sm:$0xff]   ;;  %v6976_v31 = vld [vmem:[%s7447_s27 + $0xe0] sm:$0xff]   ;;  %v6977_v32 = vld [vmem:[%s7447_s27 + $0xe8] sm:$0xff]   ;;  %v7075_v28 = vmov 1966171168  }
 0x10a   : > { %6690 = vmatprep.subr.bf16.mxu0 %v6981_v22  ;;  %v6978_v33 = vld [vmem:[%s7447_s27 + $0xf0] sm:$0xff]  }
 0x10b   : > { %v1648_v43 = vadd.bf16 %v1584_v57, %v1520_v37  ;;  %v1647_v44 = vadd.bf16 %v1583_v58, %v1519_v38  ;;  %v6979_v57 = vld [vmem:[%s7447_s27 + $0xf8] sm:$0xff]   ;;  %v2864_v58 = vunpack.c.l.s4 %v7075_v28  ;;  %v6982_v38 = vld [vmem:[%s8706_s12] sm:$0xff]  }
 0x10c   : > { %6609 = vmatmul.mubr.msk.bf16.gmra.mrb[60].mxu1 %vm833_vm0, %v6177_v36  ;;  %v1458_v39 = vpop.permute.xlu1 %1457  ;;  %v1451_v35 = vpop.permute.xlu0 %1450  ;;  %v7707_v36 = vld [vmem:[%s8703_s9] ss:$0 sm:$0xff] }
 0x10d   : > { %v6178_v40 = vcombine.low %v1647_v44, %v1648_v43  ;;  %v1522_v60 = vmul.bf16 %v1458_v39, %v974_v41  ;;  %v1521_v48 = vmul.bf16 %v1451_v35, %v973_v42  ;;  %6691 = vmatpush3.bf16.msra.mxu0 %v6981_v22  ;;  %v2865_v34 = vunpack.c.0.s8 %v2864_v58 }
 0x10e   : > { %6756 = vmatprep.subr.bf16.mxu0 %v6982_v38 }
 0x10f   : > { %v1650_v62 = vadd.bf16 %v1586_v45, %v1522_v60  ;;  %v1649_v63 = vadd.bf16 %v1585_v59, %v1521_v48  ;;  %6612 = vmatprep.mubr.msk.bf16.mxu1 %vm833_vm0, %v6178_v40  ;;  %v7714_v41 = vsub.s32 %v2865_v34, %v7208_v3 }
 0x111   : > { %v6179_v0 = vcombine.low %v1649_v63, %v1650_v62 }
 0x114   : > { %6613 = vmatmul.mubr.msk.bf16.gmra.mrb[64].mxu1 %vm833_vm0, %v6179_v0 }
 0x115   : > { %6624 = vmatprep.mubr.msk.bf16.mxu1 %vm2468_vm1, %v6948_v1 }
 0x11c   : > { %6625 = vmatmul.mubr.msk.bf16.vlgmr.msra.gmra.mrb[4].mxu1 %vm2468_vm1, %v6949_v2 }
 0x11d   : > { %6628 = vmatprep.mubr.msk.bf16.mxu1 %vm2468_vm1, %v6950_v4 }
 0x124   : > { %6629 = vmatmul.mubr.msk.bf16.gmra.mrb[8].mxu1 %vm2468_vm1, %v6951_v61 }
 0x125   : > { %6632 = vmatprep.mubr.msk.bf16.mxu1 %vm2468_vm1, %v6952_v5 }
 0x12c   : > { %6633 = vmatmul.mubr.msk.bf16.gmra.mrb[12].mxu1 %vm2468_vm1, %v6953_v6 }
 0x12d   : > { %6636 = vmatprep.mubr.msk.bf16.mxu1 %vm2468_vm1, %v6954_v7 }
 0x134   : > { %6637 = vmatmul.mubr.msk.bf16.gmra.mrb[16].mxu1 %vm2468_vm1, %v6955_v9 }
 0x135   : > { %6640 = vmatprep.mubr.msk.bf16.mxu1 %vm2468_vm1, %v6956_v46 }
 0x13c   : > { %6641 = vmatmul.mubr.msk.bf16.gmra.mrb[20].mxu1 %vm2468_vm1, %v6957_v17 }
 0x13d   : > { %6644 = vmatprep.mubr.msk.bf16.mxu1 %vm2468_vm1, %v6958_v23 }
 0x144   : > { %6645 = vmatmul.mubr.msk.bf16.gmra.mrb[24].mxu1 %vm2468_vm1, %v6959_v47 }
 0x145   : > { %6648 = vmatprep.mubr.msk.bf16.mxu1 %vm2468_vm1, %v6960_v49 }
 0x14c   : > { %6649 = vmatmul.mubr.msk.bf16.gmra.mrb[28].mxu1 %vm2468_vm1, %v6961_v50 }
 0x14d   : > { %6652 = vmatprep.mubr.msk.bf16.mxu1 %vm2468_vm1, %v6962_v51 }
 0x154   : > { %6653 = vmatmul.mubr.msk.bf16.gmra.mrb[32].mxu1 %vm2468_vm1, %v6963_v52 }
 0x155   : > { %6656 = vmatprep.mubr.msk.bf16.mxu1 %vm2468_vm1, %v6964_v24 }
 0x15b   : > { %v7671_v13 = vpop.f32.mrb[0].mxu0 }
 0x15c   : > { %6657 = vmatmul.mubr.msk.bf16.gmra.mrb[36].mxu1 %vm2468_vm1, %v6965_v53  ;;  %v880_v14 = vpop.f32.mrb[1].mxu0  ;;  %v889_v58 = vadd.f32 %v7671_v13, %v7707_v36 }
 0x15d   : > { %6660 = vmatprep.mubr.msk.bf16.mxu1 %vm2468_vm1, %v6966_v54  ;;  %v7674_v15 = vpop.f32.mrb[2].mxu0  ;;  %v881_v37 = vadd.f32 %v7707_v36, %v880_v14 }
 0x15e   : > { %v883_v18 = vpop.f32.mrb[3].mxu0  ;;  %v2967_v13 = vrot.slane %v889_v58, %v7714_v41 }
 0x15f   : > { %v2869_v42 = vrot.slane %v881_v37, %v7714_v41  ;;  %v2862_v44 = vcombine.high %v881_v37, %v881_v37  ;;  %v884_v48 = vadd.f32 %v7707_v36, %v883_v18 }
 0x161   : > { %v2877_v43 = vcombine.high %v2869_v42, %v2869_v42  ;;  %v2885_v45 = vrot.slane %v2869_v42, %v7714_v41  ;;  %v2876_v59 = vrot.slane %v2862_v44, %v7714_v41  ;;  %v2918_v2 = vrot.slane %v884_v48, %v7714_v41 }
 0x162   : > { %v2911_v47 = vcombine.high %v884_v48, %v884_v48 }
 0x163   : > { %v2899_v39 = vrot.slane %v2877_v43, %v7714_v41  ;;  %v2907_v35 = vcombine.high %v2885_v45, %v2885_v45  ;;  %v2878_v60 = vcombine.high %v2876_v59, %v2876_v59  ;;  %v2892_v63 = vrot.slane %v2876_v59, %v7714_v41 }
 0x164   : > { %6661 = vmatmul.mubr.msk.bf16.gmra.mrb[40].mxu1 %vm2468_vm1, %v6967_v11  ;;  %v3257_v1 = vrot.slane %v2885_v45, %v7226_v8  ;;  %v2926_v50 = vcombine.high %v2918_v2, %v2918_v2  ;;  %v2934_v11 = vrot.slane %v2918_v2, %v7714_v41 }
 0x165   : > { %6664 = vmatprep.mubr.msk.bf16.mxu1 %vm2468_vm1, %v6968_v12  ;;  %v2909_v40 = vcombine.high %v2899_v39, %v2899_v39  ;;  %v3265_v62 = vrot.slane %v2907_v35, %v7226_v8  ;;  %v2906_v5 = vrot.slane %v2878_v60, %v7714_v41  ;;  %v3261_v9 = vrot.slane %v2899_v39, %v7226_v8 }
 0x166   : > { %v2908_v23 = vcombine.high %v2892_v63, %v2892_v63  ;;  %v2956_v28 = vcombine.high %v2934_v11, %v2934_v11 }
 0x167   : > { %v3269_v3 = vrot.slane %v2909_v40, %v7226_v8  ;;  %v2910_v24 = vcombine.high %v2906_v5, %v2906_v5 }
 0x168   : > { %v3281_v14 = vrot.slane %v2908_v23, %v7226_v8  ;;  %v3297_v35 = vrot.slane %v2956_v28, %v7226_v8 }
 0x169   : > { %v3285_v22 = vrot.slane %v2910_v24, %v7226_v8 }
 0x16c   : > { %6665 = vmatmul.mubr.msk.bf16.gmra.mrb[44].mxu1 %vm2468_vm1, %v6969_v19 }
 0x16d   : > { %6668 = vmatprep.mubr.msk.bf16.mxu1 %vm2468_vm1, %v6970_v55  ;;  %v3273_v55 = vrot.slane %v2892_v63, %v7226_v8 }
 0x174   : > { %6669 = vmatmul.mubr.msk.bf16.gmra.mrb[48].mxu1 %vm2468_vm1, %v6971_v56  ;;  %v2925_v56 = vrot.slane %v2911_v47, %v7714_v41 }
 0x175   : > { %6672 = vmatprep.mubr.msk.bf16.mxu1 %vm2468_vm1, %v6972_v21 }
 0x176   : > { %v2927_v37 = vcombine.high %v2925_v56, %v2925_v56  ;;  %v2941_v40 = vrot.slane %v2925_v56, %v7714_v41 }
 0x17c   : > { %6673 = vmatmul.mubr.msk.bf16.gmra.mrb[52].mxu1 %vm2468_vm1, %v6973_v25  ;;  %v2948_v25 = vrot.slane %v2926_v50, %v7714_v41 }
 0x17d   : > { %6676 = vmatprep.mubr.msk.bf16.mxu1 %vm2468_vm1, %v6974_v26  ;;  %v6983_v26 = vld [vmem:[%s8706_s12 + $0x8] sm:$0xff]  }
 0x17e   : > { %v2958_v44 = vcombine.high %v2948_v25, %v2948_v25 }
 0x180   : > { %v3301_v63 = vrot.slane %v2958_v44, %v7226_v8 }
 0x184   : > { %6677 = vmatmul.mubr.msk.bf16.gmra.mrb[56].mxu1 %vm2468_vm1, %v6975_v30 }
 0x185   : > { %6680 = vmatprep.mubr.msk.bf16.mxu1 %vm2468_vm1, %v6976_v31 }
 0x18c   : > { %6681 = vmatmul.mubr.msk.bf16.gmra.mrb[60].mxu1 %vm2468_vm1, %v6977_v32  ;;  %v3277_v32 = vrot.slane %v2906_v5, %v7226_v8 }
 0x18d   : > { %6684 = vmatprep.mubr.msk.bf16.mxu1 %vm2468_vm1, %v6978_v33 }
 0x194   : > { %6685 = vmatmul.mubr.msk.bf16.gmra.mrb[64].mxu1 %vm2468_vm1, %v6979_v57 }
 0x1ef   : > { %v6626_v0 = vpop.f32.mrb[4].mxu1 }
 0x1f0   : > { %v3576_v4 = vadd.f32 %v6626_v0, %v3265_v62  ;;  %v2599_v61 = vpop.f32.mrb[5].mxu1  ;;  %v3289_v62 = vrot.slane %v2934_v11, %v7226_v8  ;;  %v2955_v0 = vrot.slane %v2927_v37, %v7714_v41  ;;  %v3305_v11 = vrot.slane %v2941_v40, %v7226_v8 }
 0x1f1   : > { %v3574_v6 = vadd.f32 %v3257_v1, %v2599_v61  ;;  %v6627_v7 = vpop.f32.mrb[6].mxu1 }
 0x1f2   : > { %v3577_v46 = vadd.f32 %v6627_v7, %v3269_v3  ;;  %v2602_v17 = vpop.f32.mrb[7].mxu1  ;;  %v3640_v51 = vmax.f32 %v3576_v4, 0.0  ;;  %v3293_v4 = vrot.slane %v2948_v25, %v7226_v8  ;;  %v2960_v7 = vcombine.high %v889_v58, %v889_v58 }
 0x1f3   : > { %v3575_v49 = vadd.f32 %v3261_v9, %v2602_v17  ;;  %v3638_v53 = vmax.f32 %v3574_v6, 0.0  ;;  %v2957_v6 = vcombine.high %v2941_v40, %v2941_v40  ;;  %v2959_v47 = vcombine.high %v2955_v0, %v2955_v0 }
 0x1f4   : > { %v3641_v52 = vmax.f32 %v3577_v46, 0.0  ;;  %v2975_v46 = vcombine.high %v2967_v13, %v2967_v13 }
 0x1f5   : > { %v3639_v54 = vmax.f32 %v3575_v49, 0.0  ;;  %v3313_v24 = vrot.slane %v2957_v6, %v7226_v8 }
 0x1f6   : > { %v3703_v12 = vpack.c.bf16 %v3641_v52, %v3640_v51  ;;  %v2983_v51 = vrot.slane %v2967_v13, %v7714_v41 }
 0x1f7   : > { %v3702_v18 = vpack.c.bf16 %v3639_v54, %v3638_v53  ;;  %v6630_v19 = vpop.f32.mrb[8].mxu1 }
 0x1f8   : > { %v3580_v20 = vadd.f32 %v6630_v19, %v3281_v14  ;;  %v2615_v21 = vpop.f32.mrb[9].mxu1  ;;  %v3317_v19 = vrot.slane %v2959_v47, %v7226_v8 }
 0x1f9   : > { %v3578_v30 = vadd.f32 %v3273_v55, %v2615_v21  ;;  %v6631_v31 = vpop.f32.mrb[10].mxu1  ;;  %6692 = vmatprep.mubr.msk.bf16.mxu0 %vm833_vm0, %v3702_v18  ;;  %v2997_v55 = vrot.slane %v2975_v46, %v7714_v41  ;;  %v3309_v21 = vrot.slane %v2955_v0, %v7226_v8 }
 0x1fa   : > { %v3581_v33 = vadd.f32 %v6631_v31, %v3285_v22  ;;  %v2618_v57 = vpop.f32.mrb[11].mxu1  ;;  %6693 = vmatmul.mubr.msk.bf16.vlgmr.msra.gmra.mrb[4].mxu0 %vm833_vm0, %v3703_v12  ;;  %v3644_v42 = vmax.f32 %v3580_v20, 0.0  ;;  %v2974_v12 = vrot.slane %v2960_v7, %v7714_v41 }
 0x1fb   : > { %v3579_v34 = vadd.f32 %v3277_v32, %v2618_v57  ;;  %6757 = vmatpush3.bf16.msra.mxu0 %v6982_v38  ;;  %v3642_v45 = vmax.f32 %v3578_v30, 0.0  ;;  %v892_v30 = vadd.f32 %v7674_v15, %v7707_v36  ;;  %v3007_v28 = vcombine.high %v2997_v55, %v2997_v55 }
 0x1fc   : > { %v3645_v43 = vmax.f32 %v3581_v33, 0.0  ;;  %6758 = vmatprep.subr.bf16.mxu0 %v6983_v26  ;;  %v2976_v32 = vcombine.high %v2974_v12, %v2974_v12  ;;  %v3325_v13 = vrot.slane %v2997_v55, %v7226_v8  ;;  %v897_v55 = vadd.f32 %v7707_v36, %v7609_v16 }
 0x1fd   : > { %v3643_v39 = vmax.f32 %v3579_v34, 0.0  ;;  %v3333_v40 = vrot.slane %v3007_v28, %v7226_v8  ;;  %v3009_v0 = vcombine.high %v892_v30, %v892_v30 }
 0x1fe   : > { %v3705_v59 = vpack.c.bf16 %v3645_v43, %v3644_v42  ;;  %v2990_v43 = vrot.slane %v2974_v12, %v7714_v41 }
 0x1ff   : > { %v3704_v60 = vpack.c.bf16 %v3643_v39, %v3642_v45  ;;  %v6634_v48 = vpop.f32.mrb[12].mxu1  ;;  %6759 = vmatpush3.bf16.msra.mxu0 %v6983_v26  ;;  %v3005_v26 = vcombine.high %v2983_v51, %v2983_v51  ;;  %v3321_v39 = vrot.slane %v2983_v51, %v7226_v8 }
 0x200   : > { %v3584_v38 = vadd.f32 %v6634_v48, %v3297_v35  ;;  %v2631_v3 = vpop.f32.mrb[13].mxu1 }
 0x201   : > { %v3582_v1 = vadd.f32 %v3289_v62, %v2631_v3  ;;  %v6635_v2 = vpop.f32.mrb[14].mxu1  ;;  %6696 = vmatprep.mubr.msk.bf16.mxu0 %vm833_vm0, %v3704_v60  ;;  %v3329_v42 = vrot.slane %v3005_v26, %v7226_v8  ;;  %v3004_v60 = vrot.slane %v2976_v32, %v7714_v41 }
 0x202   : > { %v3585_v61 = vadd.f32 %v6635_v2, %v3301_v63  ;;  %v2634_v5 = vpop.f32.mrb[15].mxu1  ;;  %6697 = vmatmul.mubr.msk.bf16.gmra.mrb[8].mxu0 %vm833_vm0, %v3705_v59  ;;  %v3648_v17 = vmax.f32 %v3584_v38, 0.0  ;;  %v3016_v59 = vrot.slane %v892_v30, %v7714_v41  ;;  %v3006_v63 = vcombine.high %v2990_v43, %v2990_v43 }
 0x203   : > { %v3583_v9 = vadd.f32 %v3293_v4, %v2634_v5  ;;  %v3646_v49 = vmax.f32 %v3582_v1, 0.0  ;;  %v3008_v5 = vcombine.high %v3004_v60, %v3004_v60  ;;  %v3341_v12 = vrot.slane %v3004_v60, %v7226_v8 }
 0x204   : > { %v3649_v23 = vmax.f32 %v3585_v61, 0.0  ;;  %v3024_v2 = vcombine.high %v3016_v59, %v3016_v59 }
 0x205   : > { %v3647_v50 = vmax.f32 %v3583_v9, 0.0  ;;  %v3032_v9 = vrot.slane %v3016_v59, %v7714_v41 }
 0x206   : > { %v3707_v52 = vpack.c.bf16 %v3649_v23, %v3648_v17  ;;  %v3345_v17 = vrot.slane %v3006_v63, %v7226_v8 }
 0x207   : > { %v3706_v53 = vpack.c.bf16 %v3647_v50, %v3646_v49  ;;  %v6638_v54 = vpop.f32.mrb[16].mxu1  ;;  %v3337_v49 = vrot.slane %v2990_v43, %v7226_v8  ;;  %v3023_v50 = vrot.slane %v3009_v0, %v7714_v41 }
 0x208   : > { %v3588_v14 = vadd.f32 %v6638_v54, %v3313_v24  ;;  %v2647_v18 = vpop.f32.mrb[17].mxu1  ;;  %v3349_v24 = vrot.slane %v3008_v5, %v7226_v8 }
 0x209   : > { %v3586_v56 = vadd.f32 %v3305_v11, %v2647_v18  ;;  %v6639_v20 = vpop.f32.mrb[18].mxu1  ;;  %6700 = vmatprep.mubr.msk.bf16.mxu0 %vm833_vm0, %v3706_v53  ;;  %v3046_v53 = vrot.slane %v3024_v2, %v7714_v41 }
 0x20a   : > { %v3589_v22 = vadd.f32 %v6639_v20, %v3317_v19  ;;  %v2650_v25 = vpop.f32.mrb[19].mxu1  ;;  %6701 = vmatmul.mubr.msk.bf16.gmra.mrb[12].mxu0 %vm833_vm0, %v3707_v52  ;;  %v3652_v33 = vmax.f32 %v3588_v14, 0.0  ;;  %v3054_v19 = vcombine.high %v3032_v9, %v3032_v9  ;;  %v3025_v20 = vcombine.high %v3023_v50, %v3023_v50 }
 0x20b   : > { %v3587_v31 = vadd.f32 %v3309_v21, %v2650_v25  ;;  %v3650_v58 = vmax.f32 %v3586_v56, 0.0  ;;  %v3056_v25 = vcombine.high %v3046_v53, %v3046_v53 }
 0x20c   : > { %v3653_v57 = vmax.f32 %v3589_v22, 0.0  ;;  %v3361_v32 = vrot.slane %v3054_v19, %v7226_v8  ;;  %v3053_v43 = vrot.slane %v3025_v20, %v7714_v41 }
 0x20d   : > { %v3651_v34 = vmax.f32 %v3587_v31, 0.0 }
 0x20e   : > { %v3709_v37 = vpack.c.bf16 %v3653_v57, %v3652_v33  ;;  %v3039_v33 = vrot.slane %v3023_v50, %v7714_v41 }
 0x20f   : > { %v3708_v44 = vpack.c.bf16 %v3651_v34, %v3650_v58  ;;  %v6642_v45 = vpop.f32.mrb[20].mxu1  ;;  %v3353_v58 = vrot.slane %v3032_v9, %v7226_v8  ;;  %v3065_v34 = vrot.slane %v897_v55, %v7714_v41 }
 0x210   : > { %v3592_v35 = vadd.f32 %v6642_v45, %v3329_v42  ;;  %v2663_v15 = vpop.f32.mrb[21].mxu1  ;;  %v3365_v42 = vrot.slane %v3056_v25, %v7226_v8 }
 0x211   : > { %v3590_v48 = vadd.f32 %v3321_v39, %v2663_v15  ;;  %v6643_v62 = vpop.f32.mrb[22].mxu1  ;;  %6704 = vmatprep.mubr.msk.bf16.mxu0 %vm833_vm0, %v3708_v44  ;;  %v3357_v39 = vrot.slane %v3046_v53, %v7226_v8  ;;  %v3055_v15 = vcombine.high %v3039_v33, %v3039_v33  ;;  %v3081_v0 = vrot.slane %v3065_v34, %v7714_v41 }
 0x212   : > { %v3593_v38 = vadd.f32 %v6643_v62, %v3333_v40  ;;  %v2666_v3 = vpop.f32.mrb[23].mxu1  ;;  %6705 = vmatmul.mubr.msk.bf16.gmra.mrb[16].mxu0 %vm833_vm0, %v3709_v37  ;;  %v3656_v4 = vmax.f32 %v3592_v35, 0.0  ;;  %v3058_v40 = vcombine.high %v897_v55, %v897_v55 }
 0x213   : > { %v3591_v1 = vadd.f32 %v3325_v13, %v2666_v3  ;;  %v3654_v6 = vmax.f32 %v3590_v48, 0.0  ;;  %v3073_v48 = vcombine.high %v3065_v34, %v3065_v34  ;;  %v3377_v2 = vrot.slane %v3055_v15, %v7226_v8 }
 0x214   : > { %v3657_v61 = vmax.f32 %v3593_v38, 0.0  ;;  %v3057_v38 = vcombine.high %v3053_v43, %v3053_v43  ;;  %v3385_v25 = vrot.slane %v3081_v0, %v7226_v8 }
 0x215   : > { %v3655_v7 = vmax.f32 %v3591_v1, 0.0 }
 0x216   : > { %v3711_v46 = vpack.c.bf16 %v3657_v61, %v3656_v4  ;;  %v3072_v4 = vrot.slane %v3058_v40, %v7714_v41 }
 0x217   : > { %v3710_v23 = vpack.c.bf16 %v3655_v7, %v3654_v6  ;;  %v6646_v47 = vpop.f32.mrb[24].mxu1  ;;  %v3369_v6 = vrot.slane %v3039_v33, %v7226_v8 }
 0x218   : > { %v3596_v51 = vadd.f32 %v6646_v47, %v3345_v17  ;;  %v2679_v52 = vpop.f32.mrb[25].mxu1  ;;  %v3095_v17 = vrot.slane %v3073_v48, %v7714_v41  ;;  %v3088_v20 = vrot.slane %v3072_v4, %v7714_v41 }
 0x219   : > { %v3594_v54 = vadd.f32 %v3337_v49, %v2679_v52  ;;  %v6647_v11 = vpop.f32.mrb[26].mxu1  ;;  %6708 = vmatprep.mubr.msk.bf16.mxu0 %vm833_vm0, %v3710_v23  ;;  %v3373_v49 = vrot.slane %v3053_v43, %v7226_v8  ;;  %v3103_v52 = vcombine.high %v3081_v0, %v3081_v0 }
 0x21a   : > { %v3597_v14 = vadd.f32 %v6647_v11, %v3349_v24  ;;  %v2682_v18 = vpop.f32.mrb[27].mxu1  ;;  %6709 = vmatmul.mubr.msk.bf16.gmra.mrb[20].mxu0 %vm833_vm0, %v3711_v46  ;;  %v3660_v21 = vmax.f32 %v3596_v51, 0.0  ;;  %v3381_v46 = vrot.slane %v3057_v38, %v7226_v8  ;;  %v3074_v24 = vcombine.high %v3072_v4, %v3072_v4 }
 0x21b   : > { %v3595_v56 = vadd.f32 %v3341_v12, %v2682_v18  ;;  %v3658_v26 = vmax.f32 %v3594_v54, 0.0  ;;  %v900_v54 = vadd.f32 %v7707_v36, %v7616_v29 }
 0x21c   : > { %v3661_v22 = vmax.f32 %v3597_v14, 0.0  ;;  %v3105_v14 = vcombine.high %v3095_v17, %v3095_v17 }
 0x21d   : > { %v3659_v30 = vmax.f32 %v3595_v56, 0.0  ;;  %v3393_v56 = vrot.slane %v3103_v52, %v7226_v8 }
 0x21e   : > { %v3713_v31 = vpack.c.bf16 %v3661_v22, %v3660_v21  ;;  %v3397_v29 = vrot.slane %v3105_v14, %v7226_v8 }
 0x21f   : > { %v3712_v57 = vpack.c.bf16 %v3659_v30, %v3658_v26  ;;  %v6650_v28 = vpop.f32.mrb[28].mxu1  ;;  %v3114_v26 = vrot.slane %v900_v54, %v7714_v41 }
 0x220   : > { %v3600_v37 = vadd.f32 %v6650_v28, %v3361_v32  ;;  %v2695_v16 = vpop.f32.mrb[29].mxu1  ;;  %v3102_v32 = vrot.slane %v3074_v24, %v7714_v41  ;;  %v3389_v28 = vrot.slane %v3095_v17, %v7226_v8 }
 0x221   : > { %v3598_v44 = vadd.f32 %v3353_v58, %v2695_v16  ;;  %v6651_v45 = vpop.f32.mrb[30].mxu1  ;;  %6712 = vmatprep.mubr.msk.bf16.mxu0 %vm833_vm0, %v3712_v57  ;;  %v3107_v16 = vcombine.high %v900_v54, %v900_v54  ;;  %v3122_v43 = vcombine.high %v3114_v26, %v3114_v26  ;;  %v3130_v15 = vrot.slane %v3114_v26, %v7714_v41 }
 0x222   : > { %v3601_v59 = vadd.f32 %v6651_v45, %v3365_v42  ;;  %v2698_v35 = vpop.f32.mrb[31].mxu1  ;;  %6713 = vmatmul.mubr.msk.bf16.gmra.mrb[24].mxu0 %vm833_vm0, %v3713_v31  ;;  %v3664_v62 = vmax.f32 %v3600_v37, 0.0  ;;  %v3104_v37 = vcombine.high %v3088_v20, %v3088_v20 }
 0x223   : > { %v3599_v60 = vadd.f32 %v3357_v39, %v2698_v35  ;;  %v3662_v3 = vmax.f32 %v3598_v44, 0.0  ;;  %v3106_v39 = vcombine.high %v3102_v32, %v3102_v32  ;;  %v3121_v38 = vrot.slane %v3107_v16, %v7714_v41 }
 0x224   : > { %v3665_v13 = vmax.f32 %v3601_v59, 0.0 }
 0x225   : > { %v3663_v63 = vmax.f32 %v3599_v60, 0.0  ;;  %v3409_v60 = vrot.slane %v3104_v37, %v7226_v8  ;;  %v3413_v0 = vrot.slane %v3106_v39, %v7226_v8  ;;  %v3123_v17 = vcombine.high %v3121_v38, %v3121_v38 }
 0x226   : > { %v3715_v1 = vpack.c.bf16 %v3665_v13, %v3664_v62  ;;  %v3401_v13 = vrot.slane %v3088_v20, %v7226_v8 }
 0x227   : > { %v3714_v61 = vpack.c.bf16 %v3663_v63, %v3662_v3  ;;  %v6654_v5 = vpop.f32.mrb[32].mxu1 }
 0x228   : > { %v3604_v7 = vadd.f32 %v6654_v5, %v3377_v2  ;;  %v2711_v9 = vpop.f32.mrb[33].mxu1 }
 0x229   : > { %v3602_v23 = vadd.f32 %v3369_v6, %v2711_v9  ;;  %v6655_v47 = vpop.f32.mrb[34].mxu1  ;;  %6716 = vmatprep.mubr.msk.bf16.mxu0 %vm833_vm0, %v3714_v61  ;;  %v3405_v61 = vrot.slane %v3102_v32, %v7226_v8  ;;  %v905_v9 = vadd.f32 %v7605_v10, %v7707_v36 }
 0x22a   : > { %v3605_v50 = vadd.f32 %v6655_v47, %v3381_v46  ;;  %v2714_v51 = vpop.f32.mrb[35].mxu1  ;;  %6717 = vmatmul.mubr.msk.bf16.gmra.mrb[28].mxu0 %vm833_vm0, %v3715_v1  ;;  %v3668_v11 = vmax.f32 %v3604_v7, 0.0  ;;  %v3144_v1 = vrot.slane %v3122_v43, %v7714_v41  ;;  %v3152_v7 = vcombine.high %v3130_v15, %v3130_v15 }
 0x22b   : > { %v3603_v53 = vadd.f32 %v3373_v49, %v2714_v51  ;;  %v3666_v18 = vmax.f32 %v3602_v23, 0.0  ;;  %v3163_v14 = vrot.slane %v905_v9, %v7714_v41 }
 0x22c   : > { %v3669_v12 = vmax.f32 %v3605_v50, 0.0  ;;  %v3154_v49 = vcombine.high %v3144_v1, %v3144_v1  ;;  %v3425_v24 = vrot.slane %v3152_v7, %v7226_v8 }
 0x22d   : > { %v3667_v19 = vmax.f32 %v3603_v53, 0.0  ;;  %v3137_v53 = vrot.slane %v3121_v38, %v7714_v41 }
 0x22e   : > { %v3717_v55 = vpack.c.bf16 %v3669_v12, %v3668_v11  ;;  %v3417_v12 = vrot.slane %v3130_v15, %v7226_v8 }
 0x22f   : > { %v3716_v21 = vpack.c.bf16 %v3667_v19, %v3666_v18  ;;  %v6658_v22 = vpop.f32.mrb[36].mxu1  ;;  %v3429_v19 = vrot.slane %v3154_v49, %v7226_v8  ;;  %v3153_v26 = vcombine.high %v3137_v53, %v3137_v53 }
 0x230   : > { %v3608_v30 = vadd.f32 %v6658_v22, %v3393_v56  ;;  %v2727_v31 = vpop.f32.mrb[37].mxu1 }
 0x231   : > { %v3606_v33 = vadd.f32 %v3385_v25, %v2727_v31  ;;  %v6659_v57 = vpop.f32.mrb[38].mxu1  ;;  %6720 = vmatprep.mubr.msk.bf16.mxu0 %vm833_vm0, %v3716_v21  ;;  %v3421_v21 = vrot.slane %v3144_v1, %v7226_v8  ;;  %v3441_v16 = vrot.slane %v3153_v26, %v7226_v8 }
 0x232   : > { %v3609_v58 = vadd.f32 %v6659_v57, %v3397_v29  ;;  %v2730_v34 = vpop.f32.mrb[39].mxu1  ;;  %6721 = vmatmul.mubr.msk.bf16.gmra.mrb[32].mxu0 %vm833_vm0, %v3717_v55  ;;  %v3672_v44 = vmax.f32 %v3608_v30, 0.0  ;;  %v3151_v55 = vrot.slane %v3123_v17, %v7714_v41  ;;  %v3156_v30 = vcombine.high %v905_v9, %v905_v9 }
 0x233   : > { %v3607_v42 = vadd.f32 %v3389_v28, %v2730_v34  ;;  %v3670_v59 = vmax.f32 %v3606_v33, 0.0  ;;  %v3171_v29 = vcombine.high %v3163_v14, %v3163_v14  ;;  %v3179_v34 = vrot.slane %v3163_v14, %v7714_v41 }
 0x234   : > { %v3673_v45 = vmax.f32 %v3609_v58, 0.0  ;;  %v3155_v57 = vcombine.high %v3151_v55, %v3151_v55 }
 0x235   : > { %v3671_v35 = vmax.f32 %v3607_v42, 0.0  ;;  %v3193_v15 = vrot.slane %v3171_v29, %v7714_v41  ;;  %v3201_v38 = vcombine.high %v3179_v34, %v3179_v34 }
 0x236   : > { %v3719_v40 = vpack.c.bf16 %v3673_v45, %v3672_v44  ;;  %v3433_v44 = vrot.slane %v3137_v53, %v7226_v8  ;;  %v3170_v45 = vrot.slane %v3156_v30, %v7714_v41 }
 0x237   : > { %v3718_v48 = vpack.c.bf16 %v3671_v35, %v3670_v59  ;;  %v6662_v62 = vpop.f32.mrb[40].mxu1  ;;  %v3445_v35 = vrot.slane %v3155_v57, %v7226_v8  ;;  %v3457_v7 = vrot.slane %v3201_v38, %v7226_v8 }
 0x238   : > { %v3612_v3 = vadd.f32 %v6662_v62, %v3409_v60  ;;  %v2743_v63 = vpop.f32.mrb[41].mxu1  ;;  %v3186_v9 = vrot.slane %v3170_v45, %v7714_v41 }
 0x239   : > { %v3610_v2 = vadd.f32 %v3401_v13, %v2743_v63  ;;  %v6663_v4 = vpop.f32.mrb[42].mxu1  ;;  %6724 = vmatprep.mubr.msk.bf16.mxu0 %vm833_vm0, %v3718_v48  ;;  %v3437_v48 = vrot.slane %v3151_v55, %v7226_v8 }
 0x23a   : > { %v3613_v5 = vadd.f32 %v6663_v4, %v3413_v0  ;;  %v2746_v6 = vpop.f32.mrb[43].mxu1  ;;  %6725 = vmatmul.mubr.msk.bf16.gmra.mrb[36].mxu0 %vm833_vm0, %v3719_v40  ;;  %v3676_v23 = vmax.f32 %v3612_v3, 0.0  ;;  %v908_v3 = vadd.f32 %v7611_v27, %v7707_v36  ;;  %v3172_v0 = vcombine.high %v3170_v45, %v3170_v45 }
 0x23b   : > { %v3611_v46 = vadd.f32 %v3405_v61, %v2746_v6  ;;  %v3674_v50 = vmax.f32 %v3610_v2, 0.0  ;;  %v3203_v4 = vcombine.high %v3193_v15, %v3193_v15 }
 0x23c   : > { %v3677_v47 = vmax.f32 %v3613_v5, 0.0 }
 0x23d   : > { %v3675_v51 = vmax.f32 %v3611_v46, 0.0  ;;  %v3461_v36 = vrot.slane %v3203_v4, %v7226_v8 }
 0x23e   : > { %v3721_v52 = vpack.c.bf16 %v3677_v47, %v3676_v23  ;;  %v3449_v23 = vrot.slane %v3179_v34, %v7226_v8  ;;  %v3212_v47 = vrot.slane %v908_v3, %v7714_v41 }
 0x23f   : > { %v3720_v54 = vpack.c.bf16 %v3675_v51, %v3674_v50  ;;  %v6666_v11 = vpop.f32.mrb[44].mxu1  ;;  %v3200_v50 = vrot.slane %v3172_v0, %v7714_v41 }
 0x240   : > { %v3616_v18 = vadd.f32 %v6666_v11, %v3425_v24  ;;  %v2759_v10 = vpop.f32.mrb[45].mxu1  ;;  %v3453_v24 = vrot.slane %v3193_v15, %v7226_v8  ;;  %v3202_v11 = vcombine.high %v3186_v9, %v3186_v9 }
 0x241   : > { %v3614_v56 = vadd.f32 %v3417_v12, %v2759_v10  ;;  %v6667_v20 = vpop.f32.mrb[46].mxu1  ;;  %6728 = vmatprep.mubr.msk.bf16.mxu0 %vm833_vm0, %v3720_v54  ;;  %v3205_v12 = vcombine.high %v908_v3, %v908_v3  ;;  %v3204_v55 = vcombine.high %v3200_v50, %v3200_v50 }
 0x242   : > { %v3617_v22 = vadd.f32 %v6667_v20, %v3429_v19  ;;  %v2762_v25 = vpop.f32.mrb[47].mxu1  ;;  %6729 = vmatmul.mubr.msk.bf16.gmra.mrb[40].mxu0 %vm833_vm0, %v3721_v52  ;;  %v3680_v32 = vmax.f32 %v3616_v18, 0.0  ;;  %v3220_v18 = vcombine.high %v3212_v47, %v3212_v47 }
 0x243   : > { %v3615_v31 = vadd.f32 %v3421_v21, %v2762_v25  ;;  %v3678_v28 = vmax.f32 %v3614_v56, 0.0  ;;  %v3228_v21 = vrot.slane %v3212_v47, %v7714_v41  ;;  %v3473_v25 = vrot.slane %v3202_v11, %v7226_v8 }
 0x244   : > { %v3681_v33 = vmax.f32 %v3617_v22, 0.0  ;;  %v3219_v29 = vrot.slane %v3205_v12, %v7714_v41  ;;  %v3477_v57 = vrot.slane %v3204_v55, %v7226_v8 }
 0x245   : > { %v3679_v58 = vmax.f32 %v3615_v31, 0.0  ;;  %v3465_v31 = vrot.slane %v3186_v9, %v7226_v8  ;;  %v3481_v3 = vrot.slane %v3228_v21, %v7226_v8 }
 0x246   : > { %v3723_v37 = vpack.c.bf16 %v3681_v33, %v3680_v32  ;;  %v3221_v45 = vcombine.high %v3219_v29, %v3219_v29 }
 0x247   : > { %v3722_v42 = vpack.c.bf16 %v3679_v58, %v3678_v28  ;;  %v6670_v43 = vpop.f32.mrb[48].mxu1  ;;  %v3242_v28 = vrot.slane %v3220_v18, %v7714_v41 }
 0x248   : > { %v3620_v39 = vadd.f32 %v6670_v43, %v3441_v16  ;;  %v2775_v59 = vpop.f32.mrb[49].mxu1  ;;  %v3250_v43 = vcombine.high %v3228_v21, %v3228_v21 }
 0x249   : > { %v3618_v40 = vadd.f32 %v3433_v44, %v2775_v59  ;;  %v6671_v60 = vpop.f32.mrb[50].mxu1  ;;  %6732 = vmatprep.mubr.msk.bf16.mxu0 %vm833_vm0, %v3722_v42 }
 0x24a   : > { %v3621_v62 = vadd.f32 %v6671_v60, %v3445_v35  ;;  %v2778_v13 = vpop.f32.mrb[51].mxu1  ;;  %6733 = vmatmul.mubr.msk.bf16.gmra.mrb[44].mxu0 %vm833_vm0, %v3723_v37  ;;  %v3684_v1 = vmax.f32 %v3620_v39, 0.0  ;;  %v3469_v37 = vrot.slane %v3200_v50, %v7226_v8  ;;  %v3252_v35 = vcombine.high %v3242_v28, %v3242_v28 }
 0x24b   : > { %v3619_v63 = vadd.f32 %v3437_v48, %v2778_v13  ;;  %v3682_v61 = vmax.f32 %v3618_v40, 0.0  ;;  %v3489_v48 = vrot.slane %v3250_v43, %v7226_v8 }
 0x24c   : > { %v3685_v2 = vmax.f32 %v3621_v62, 0.0  ;;  %v3235_v62 = vrot.slane %v3219_v29, %v7714_v41 }
 0x24d   : > { %v3683_v5 = vmax.f32 %v3619_v63, 0.0 }
 0x24e   : > { %v3725_v6 = vpack.c.bf16 %v3685_v2, %v3684_v1  ;;  %v3493_v1 = vrot.slane %v3252_v35, %v7226_v8  ;;  %v3249_v2 = vrot.slane %v3221_v45, %v7714_v41  ;;  %v3251_v9 = vcombine.high %v3235_v62, %v3235_v62 }
 0x24f   : > { %v3724_v46 = vpack.c.bf16 %v3683_v5, %v3682_v61  ;;  %v6674_v17 = vpop.f32.mrb[52].mxu1  ;;  %v3485_v5 = vrot.slane %v3242_v28, %v7226_v8 }
 0x250   : > { %v3624_v49 = vadd.f32 %v6674_v17, %v3457_v7  ;;  %v2791_v27 = vpop.f32.mrb[53].mxu1  ;;  %v3253_v47 = vcombine.high %v3249_v2, %v3249_v2  ;;  %v3505_v41 = vrot.slane %v3251_v9, %v7226_v8 }
 0x251   : > { %v3622_v51 = vadd.f32 %v3449_v23, %v2791_v27  ;;  %v6675_v52 = vpop.f32.mrb[54].mxu1  ;;  %6736 = vmatprep.mubr.msk.bf16.mxu0 %vm833_vm0, %v3724_v46 }
 0x252   : > { %v3625_v53 = vadd.f32 %v6675_v52, %v3461_v36  ;;  %v2794_v54 = vpop.f32.mrb[55].mxu1  ;;  %6737 = vmatmul.mubr.msk.bf16.gmra.mrb[48].mxu0 %vm833_vm0, %v3725_v6  ;;  %v3688_v10 = vmax.f32 %v3624_v49, 0.0  ;;  %v3497_v52 = vrot.slane %v3235_v62, %v7226_v8 }
 0x253   : > { %v3623_v14 = vadd.f32 %v3453_v24, %v2794_v54  ;;  %v3686_v56 = vmax.f32 %v3622_v51, 0.0  ;;  %v3509_v54 = vrot.slane %v3253_v47, %v7226_v8 }
 0x254   : > { %v3689_v19 = vmax.f32 %v3625_v53, 0.0 }
 0x255   : > { %v3687_v20 = vmax.f32 %v3623_v14, 0.0  ;;  %v3501_v14 = vrot.slane %v3249_v2, %v7226_v8 }
 0x256   : > { %v3727_v22 = vpack.c.bf16 %v3689_v19, %v3688_v10 }
 0x257   : > { %v3726_v26 = vpack.c.bf16 %v3687_v20, %v3686_v56  ;;  %v6678_v30 = vpop.f32.mrb[56].mxu1 }
 0x258   : > { %v3628_v32 = vadd.f32 %v6678_v30, %v3473_v25  ;;  %v2807_v33 = vpop.f32.mrb[57].mxu1 }
 0x259   : > { %v3626_v58 = vadd.f32 %v3465_v31, %v2807_v33  ;;  %v6679_v34 = vpop.f32.mrb[58].mxu1  ;;  %6740 = vmatprep.mubr.msk.bf16.mxu0 %vm833_vm0, %v3726_v26  ;;  %v7879_v26 = vld [vmem:[%s8705_s11] ss:$0 sm:$0xff] }
 0x25a   : > { %v3629_v16 = vadd.f32 %v6679_v34, %v3477_v57  ;;  %v2810_v42 = vpop.f32.mrb[59].mxu1  ;;  %6741 = vmatmul.mubr.msk.bf16.gmra.mrb[52].mxu0 %vm833_vm0, %v3727_v22  ;;  %v3692_v39 = vmax.f32 %v3628_v32, 0.0 }
 0x25b   : > { %v3627_v44 = vadd.f32 %v3469_v37, %v2810_v42  ;;  %v3690_v15 = vmax.f32 %v3626_v58, 0.0 }
 0x25c   : > { %v3693_v59 = vmax.f32 %v3629_v16, 0.0 }
 0x25d   : > { %v3691_v40 = vmax.f32 %v3627_v44, 0.0 }
 0x25e   : > { %v3729_v60 = vpack.c.bf16 %v3693_v59, %v3692_v39 }
 0x25f   : > { %v3728_v13 = vpack.c.bf16 %v3691_v40, %v3690_v15  ;;  %v6682_v38 = vpop.f32.mrb[60].mxu1 }
 0x260   : > { %v3632_v63 = vadd.f32 %v6682_v38, %v3489_v48  ;;  %v2823_v0 = vpop.f32.mrb[61].mxu1 }
 0x261   : > { %v3630_v4 = vadd.f32 %v3481_v3, %v2823_v0  ;;  %v6683_v61 = vpop.f32.mrb[62].mxu1  ;;  %6744 = vmatprep.mubr.msk.bf16.mxu0 %vm833_vm0, %v3728_v13 }
 0x262   : > { %v3633_v6 = vadd.f32 %v6683_v61, %v3493_v1  ;;  %v2826_v7 = vpop.f32.mrb[63].mxu1  ;;  %6745 = vmatmul.mubr.msk.bf16.gmra.mrb[56].mxu0 %vm833_vm0, %v3729_v60  ;;  %v3696_v17 = vmax.f32 %v3632_v63, 0.0 }
 0x263   : > { %v3631_v46 = vadd.f32 %v3485_v5, %v2826_v7  ;;  %v3694_v49 = vmax.f32 %v3630_v4, 0.0 }
 0x264   : > { %v3697_v23 = vmax.f32 %v3633_v6, 0.0 }
 0x265   : > { %v3695_v27 = vmax.f32 %v3631_v46, 0.0 }
 0x266   : > { %v3731_v36 = vpack.c.bf16 %v3697_v23, %v3696_v17 }
 0x267   : > { %v3730_v50 = vpack.c.bf16 %v3695_v27, %v3694_v49  ;;  %v6686_v51 = vpop.f32.mrb[64].mxu1 }
 0x268   : > { %v3636_v24 = vadd.f32 %v6686_v51, %v3505_v41  ;;  %v2839_v53 = vpop.f32.mrb[65].mxu1 }
 0x269   : > { %v3634_v11 = vadd.f32 %v3497_v52, %v2839_v53  ;;  %v6687_v12 = vpop.f32.mrb[66].mxu1  ;;  %6748 = vmatprep.mubr.msk.bf16.mxu0 %vm833_vm0, %v3730_v50 }
 0x26a   : > { %v3637_v18 = vadd.f32 %v6687_v12, %v3509_v54  ;;  %v2842_v10 = vpop.f32.mrb[67].mxu1  ;;  %6749 = vmatmul.mubr.msk.bf16.gmra.mrb[60].mxu0 %vm833_vm0, %v3731_v36  ;;  %v3700_v55 = vmax.f32 %v3636_v24, 0.0 }
 0x26b   : > { %v3635_v19 = vadd.f32 %v3501_v14, %v2842_v10  ;;  %v3698_v20 = vmax.f32 %v3634_v11, 0.0 }
 0x26c   : > { %v3701_v56 = vmax.f32 %v3637_v18, 0.0 }
 0x26d   : > { %v3699_v21 = vmax.f32 %v3635_v19, 0.0 }
 0x26e   : > { %v3733_v22 = vpack.c.bf16 %v3701_v56, %v3700_v55 }
 0x26f   : > { %v3732_v25 = vpack.c.bf16 %v3699_v21, %v3698_v20 }
 0x271   : > { %6752 = vmatprep.mubr.msk.bf16.mxu0 %vm833_vm0, %v3732_v25 }
 0x272   : > { %6753 = vmatmul.mubr.msk.bf16.gmra.mrb[64].mxu0 %vm833_vm0, %v3733_v22 }
 0x2cd   : > { %v6694_v8 = vpop.f32.mrb[4].mxu0 }
 0x2ce   : > { %v3896_v30 = vadd.f32 %v6694_v8, %v7879_v26  ;;  %v3887_v31 = vpop.f32.mrb[5].mxu0 }
 0x2cf   : > { %v3888_v29 = vadd.f32 %v7879_v26, %v3887_v31  ;;  %v6695_v32 = vpop.f32.mrb[6].mxu0 }
 0x2d0   : > { %v3899_v33 = vadd.f32 %v6695_v32, %v7879_v26  ;;  %v3890_v57 = vpop.f32.mrb[7].mxu0  ;;  %v4144_v58 = vmax.f32 %v3896_v30, 0.0 }
 0x2d1   : > { %v3891_v28 = vadd.f32 %v7879_v26, %v3890_v57  ;;  %v4142_v37 = vmax.f32 %v3888_v29, 0.0 }
 0x2d2   : > { %v4145_v34 = vmax.f32 %v3899_v33, 0.0 }
 0x2d3   : > { %v4143_v16 = vmax.f32 %v3891_v28, 0.0 }
 0x2d4   : > { %v4207_v42 = vpack.c.bf16 %v4145_v34, %v4144_v58 }
 0x2d5   : > { %v4206_v43 = vpack.c.bf16 %v4143_v16, %v4142_v37  ;;  %v6698_v44 = vpop.f32.mrb[8].mxu0 }
 0x2d6   : > { %v3912_v45 = vadd.f32 %v6698_v44, %v7879_v26  ;;  %v3903_v39 = vpop.f32.mrb[9].mxu0 }
 0x2d7   : > { %v3904_v59 = vadd.f32 %v7879_v26, %v3903_v39  ;;  %v6699_v35 = vpop.f32.mrb[10].mxu0  ;;  %6760 = vmatprep.mubr.msk.bf16.mxu0 %vm833_vm0, %v4206_v43 }
 0x2d8   : > { %v3915_v15 = vadd.f32 %v6699_v35, %v7879_v26  ;;  %v3906_v40 = vpop.f32.mrb[11].mxu0  ;;  %6761 = vmatmul.mubr.msk.bf16.vlgmr.msra.gmra.mrb[68].mxu0 %vm833_vm0, %v4207_v42  ;;  %v4148_v48 = vmax.f32 %v3912_v45, 0.0 }
 0x2d9   : > { %v3907_v60 = vadd.f32 %v7879_v26, %v3906_v40  ;;  %v4146_v13 = vmax.f32 %v3904_v59, 0.0 }
 0x2da   : > { %v4149_v62 = vmax.f32 %v3915_v15, 0.0 }
 0x2db   : > { %v4147_v38 = vmax.f32 %v3907_v60, 0.0 }
 0x2dc   : > { %v4209_v3 = vpack.c.bf16 %v4149_v62, %v4148_v48 }
 0x2dd   : > { %v4208_v63 = vpack.c.bf16 %v4147_v38, %v4146_v13  ;;  %v6702_v0 = vpop.f32.mrb[12].mxu0 }
 0x2de   : > { %v3928_v1 = vadd.f32 %v6702_v0, %v7879_v26  ;;  %v3919_v2 = vpop.f32.mrb[13].mxu0 }
 0x2df   : > { %v3920_v4 = vadd.f32 %v7879_v26, %v3919_v2  ;;  %v6703_v61 = vpop.f32.mrb[14].mxu0  ;;  %6764 = vmatprep.mubr.msk.bf16.mxu0 %vm833_vm0, %v4208_v63 }
 0x2e0   : > { %v3931_v5 = vadd.f32 %v6703_v61, %v7879_v26  ;;  %v3922_v6 = vpop.f32.mrb[15].mxu0  ;;  %6765 = vmatmul.mubr.msk.bf16.gmra.mrb[72].mxu0 %vm833_vm0, %v4209_v3  ;;  %v4152_v9 = vmax.f32 %v3928_v1, 0.0 }
 0x2e1   : > { %v3923_v7 = vadd.f32 %v7879_v26, %v3922_v6  ;;  %v4150_v17 = vmax.f32 %v3920_v4, 0.0 }
 0x2e2   : > { %v4153_v46 = vmax.f32 %v3931_v5, 0.0 }
 0x2e3   : > { %v4151_v23 = vmax.f32 %v3923_v7, 0.0 }
 0x2e4   : > { %v4211_v47 = vpack.c.bf16 %v4153_v46, %v4152_v9 }
 0x2e5   : > { %v4210_v49 = vpack.c.bf16 %v4151_v23, %v4150_v17  ;;  %v6706_v27 = vpop.f32.mrb[16].mxu0 }
 0x2e6   : > { %v3944_v36 = vadd.f32 %v6706_v27, %v7879_v26  ;;  %v3935_v41 = vpop.f32.mrb[17].mxu0 }
 0x2e7   : > { %v3936_v50 = vadd.f32 %v7879_v26, %v3935_v41  ;;  %v6707_v51 = vpop.f32.mrb[18].mxu0  ;;  %6768 = vmatprep.mubr.msk.bf16.mxu0 %vm833_vm0, %v4210_v49 }
 0x2e8   : > { %v3947_v52 = vadd.f32 %v6707_v51, %v7879_v26  ;;  %v3938_v24 = vpop.f32.mrb[19].mxu0  ;;  %6769 = vmatmul.mubr.msk.bf16.gmra.mrb[76].mxu0 %vm833_vm0, %v4211_v47  ;;  %v4156_v54 = vmax.f32 %v3944_v36, 0.0 }
 0x2e9   : > { %v3939_v53 = vadd.f32 %v7879_v26, %v3938_v24  ;;  %v4154_v12 = vmax.f32 %v3936_v50, 0.0 }
 0x2ea   : > { %v4157_v11 = vmax.f32 %v3947_v52, 0.0 }
 0x2eb   : > { %v4155_v14 = vmax.f32 %v3939_v53, 0.0 }
 0x2ec   : > { %v4213_v18 = vpack.c.bf16 %v4157_v11, %v4156_v54 }
 0x2ed   : > { %v4212_v10 = vpack.c.bf16 %v4155_v14, %v4154_v12  ;;  %v6710_v19 = vpop.f32.mrb[20].mxu0 }
 0x2ee   : > { %v3960_v55 = vadd.f32 %v6710_v19, %v7879_v26  ;;  %v3951_v56 = vpop.f32.mrb[21].mxu0 }
 0x2ef   : > { %v3952_v20 = vadd.f32 %v7879_v26, %v3951_v56  ;;  %v6711_v21 = vpop.f32.mrb[22].mxu0  ;;  %6772 = vmatprep.mubr.msk.bf16.mxu0 %vm833_vm0, %v4212_v10 }
 0x2f0   : > { %v3963_v22 = vadd.f32 %v6711_v21, %v7879_v26  ;;  %v3954_v25 = vpop.f32.mrb[23].mxu0  ;;  %6773 = vmatmul.mubr.msk.bf16.gmra.mrb[80].mxu0 %vm833_vm0, %v4213_v18  ;;  %v4160_v30 = vmax.f32 %v3960_v55, 0.0 }
 0x2f1   : > { %v3955_v8 = vadd.f32 %v7879_v26, %v3954_v25  ;;  %v4158_v29 = vmax.f32 %v3952_v20, 0.0 }
 0x2f2   : > { %v4161_v31 = vmax.f32 %v3963_v22, 0.0 }
 0x2f3   : > { %v4159_v32 = vmax.f32 %v3955_v8, 0.0 }
 0x2f4   : > { %v4215_v33 = vpack.c.bf16 %v4161_v31, %v4160_v30 }
 0x2f5   : > { %v4214_v57 = vpack.c.bf16 %v4159_v32, %v4158_v29  ;;  %v6714_v28 = vpop.f32.mrb[24].mxu0 }
 0x2f6   : > { %v3976_v58 = vadd.f32 %v6714_v28, %v7879_v26  ;;  %v3967_v34 = vpop.f32.mrb[25].mxu0 }
 0x2f7   : > { %v3968_v37 = vadd.f32 %v7879_v26, %v3967_v34  ;;  %v6715_v16 = vpop.f32.mrb[26].mxu0  ;;  %6776 = vmatprep.mubr.msk.bf16.mxu0 %vm833_vm0, %v4214_v57 }
 0x2f8   : > { %v3979_v42 = vadd.f32 %v6715_v16, %v7879_v26  ;;  %v3970_v43 = vpop.f32.mrb[27].mxu0  ;;  %6777 = vmatmul.mubr.msk.bf16.gmra.mrb[84].mxu0 %vm833_vm0, %v4215_v33  ;;  %v4164_v45 = vmax.f32 %v3976_v58, 0.0 }
 0x2f9   : > { %v3971_v44 = vadd.f32 %v7879_v26, %v3970_v43  ;;  %v4162_v59 = vmax.f32 %v3968_v37, 0.0 }
 0x2fa   : > { %v4165_v39 = vmax.f32 %v3979_v42, 0.0 }
 0x2fb   : > { %v4163_v35 = vmax.f32 %v3971_v44, 0.0 }
 0x2fc   : > { %v4217_v15 = vpack.c.bf16 %v4165_v39, %v4164_v45 }
 0x2fd   : > { %v4216_v40 = vpack.c.bf16 %v4163_v35, %v4162_v59  ;;  %v6718_v60 = vpop.f32.mrb[28].mxu0 }
 0x2fe   : > { %v3992_v48 = vadd.f32 %v6718_v60, %v7879_v26  ;;  %v3983_v62 = vpop.f32.mrb[29].mxu0 }
 0x2ff   : > { %v3984_v13 = vadd.f32 %v7879_v26, %v3983_v62  ;;  %v6719_v38 = vpop.f32.mrb[30].mxu0  ;;  %6780 = vmatprep.mubr.msk.bf16.mxu0 %vm833_vm0, %v4216_v40 }
 0x300   : > { %v3995_v3 = vadd.f32 %v6719_v38, %v7879_v26  ;;  %v3986_v63 = vpop.f32.mrb[31].mxu0  ;;  %6781 = vmatmul.mubr.msk.bf16.gmra.mrb[88].mxu0 %vm833_vm0, %v4217_v15  ;;  %v4168_v1 = vmax.f32 %v3992_v48, 0.0 }
 0x301   : > { %v3987_v0 = vadd.f32 %v7879_v26, %v3986_v63  ;;  %v4166_v4 = vmax.f32 %v3984_v13, 0.0 }
 0x302   : > { %v4169_v2 = vmax.f32 %v3995_v3, 0.0 }
 0x303   : > { %v4167_v61 = vmax.f32 %v3987_v0, 0.0 }
 0x304   : > { %v4219_v5 = vpack.c.bf16 %v4169_v2, %v4168_v1 }
 0x305   : > { %v4218_v6 = vpack.c.bf16 %v4167_v61, %v4166_v4  ;;  %v6722_v7 = vpop.f32.mrb[32].mxu0 }
 0x306   : > { %v4008_v9 = vadd.f32 %v6722_v7, %v7879_v26  ;;  %v3999_v46 = vpop.f32.mrb[33].mxu0 }
 0x307   : > { %v4000_v17 = vadd.f32 %v7879_v26, %v3999_v46  ;;  %v6723_v23 = vpop.f32.mrb[34].mxu0  ;;  %6784 = vmatprep.mubr.msk.bf16.mxu0 %vm833_vm0, %v4218_v6 }
 0x308   : > { %v4011_v47 = vadd.f32 %v6723_v23, %v7879_v26  ;;  %v4002_v49 = vpop.f32.mrb[35].mxu0  ;;  %6785 = vmatmul.mubr.msk.bf16.gmra.mrb[92].mxu0 %vm833_vm0, %v4219_v5  ;;  %v4172_v36 = vmax.f32 %v4008_v9, 0.0 }
 0x309   : > { %v4003_v27 = vadd.f32 %v7879_v26, %v4002_v49  ;;  %v4170_v50 = vmax.f32 %v4000_v17, 0.0 }
 0x30a   : > { %v4173_v41 = vmax.f32 %v4011_v47, 0.0 }
 0x30b   : > { %v4171_v51 = vmax.f32 %v4003_v27, 0.0 }
 0x30c   : > { %v4221_v52 = vpack.c.bf16 %v4173_v41, %v4172_v36 }
 0x30d   : > { %v4220_v24 = vpack.c.bf16 %v4171_v51, %v4170_v50  ;;  %v6726_v53 = vpop.f32.mrb[36].mxu0 }
 0x30e   : > { %v4024_v54 = vadd.f32 %v6726_v53, %v7879_v26  ;;  %v4015_v11 = vpop.f32.mrb[37].mxu0 }
 0x30f   : > { %v4016_v12 = vadd.f32 %v7879_v26, %v4015_v11  ;;  %v6727_v14 = vpop.f32.mrb[38].mxu0  ;;  %6788 = vmatprep.mubr.msk.bf16.mxu0 %vm833_vm0, %v4220_v24 }
 0x310   : > { %v4027_v18 = vadd.f32 %v6727_v14, %v7879_v26  ;;  %v4018_v10 = vpop.f32.mrb[39].mxu0  ;;  %6789 = vmatmul.mubr.msk.bf16.gmra.mrb[96].mxu0 %vm833_vm0, %v4221_v52  ;;  %v4176_v55 = vmax.f32 %v4024_v54, 0.0 }
 0x311   : > { %v4019_v19 = vadd.f32 %v7879_v26, %v4018_v10  ;;  %v4174_v20 = vmax.f32 %v4016_v12, 0.0 }
 0x312   : > { %v4177_v56 = vmax.f32 %v4027_v18, 0.0 }
 0x313   : > { %v4175_v21 = vmax.f32 %v4019_v19, 0.0 }
 0x314   : > { %v4223_v22 = vpack.c.bf16 %v4177_v56, %v4176_v55 }
 0x315   : > { %v4222_v25 = vpack.c.bf16 %v4175_v21, %v4174_v20  ;;  %v6730_v8 = vpop.f32.mrb[40].mxu0 }
 0x316   : > { %v4040_v30 = vadd.f32 %v6730_v8, %v7879_v26  ;;  %v4031_v31 = vpop.f32.mrb[41].mxu0 }
 0x317   : > { %v4032_v29 = vadd.f32 %v7879_v26, %v4031_v31  ;;  %v6731_v32 = vpop.f32.mrb[42].mxu0  ;;  %6792 = vmatprep.mubr.msk.bf16.mxu0 %vm833_vm0, %v4222_v25 }
 0x318   : > { %v4043_v33 = vadd.f32 %v6731_v32, %v7879_v26  ;;  %v4034_v57 = vpop.f32.mrb[43].mxu0  ;;  %6793 = vmatmul.mubr.msk.bf16.gmra.mrb[100].mxu0 %vm833_vm0, %v4223_v22  ;;  %v4180_v58 = vmax.f32 %v4040_v30, 0.0 }
 0x319   : > { %v4035_v28 = vadd.f32 %v7879_v26, %v4034_v57  ;;  %v4178_v37 = vmax.f32 %v4032_v29, 0.0 }
 0x31a   : > { %v4181_v34 = vmax.f32 %v4043_v33, 0.0 }
 0x31b   : > { %v4179_v16 = vmax.f32 %v4035_v28, 0.0 }
 0x31c   : > { %v4225_v42 = vpack.c.bf16 %v4181_v34, %v4180_v58 }
 0x31d   : > { %v4224_v43 = vpack.c.bf16 %v4179_v16, %v4178_v37  ;;  %v6734_v44 = vpop.f32.mrb[44].mxu0 }
 0x31e   : > { %v4056_v45 = vadd.f32 %v6734_v44, %v7879_v26  ;;  %v4047_v39 = vpop.f32.mrb[45].mxu0 }
 0x31f   : > { %v4048_v59 = vadd.f32 %v7879_v26, %v4047_v39  ;;  %v6735_v35 = vpop.f32.mrb[46].mxu0  ;;  %6796 = vmatprep.mubr.msk.bf16.mxu0 %vm833_vm0, %v4224_v43 }
 0x320   : > { %v4059_v15 = vadd.f32 %v6735_v35, %v7879_v26  ;;  %v4050_v40 = vpop.f32.mrb[47].mxu0  ;;  %6797 = vmatmul.mubr.msk.bf16.gmra.mrb[104].mxu0 %vm833_vm0, %v4225_v42  ;;  %v4184_v48 = vmax.f32 %v4056_v45, 0.0 }
 0x321   : > { %v4051_v60 = vadd.f32 %v7879_v26, %v4050_v40  ;;  %v4182_v13 = vmax.f32 %v4048_v59, 0.0 }
 0x322   : > { %v4185_v62 = vmax.f32 %v4059_v15, 0.0 }
 0x323   : > { %v4183_v38 = vmax.f32 %v4051_v60, 0.0 }
 0x324   : > { %v4227_v3 = vpack.c.bf16 %v4185_v62, %v4184_v48 }
 0x325   : > { %v4226_v63 = vpack.c.bf16 %v4183_v38, %v4182_v13  ;;  %v6738_v0 = vpop.f32.mrb[48].mxu0 }
 0x326   : > { %v4072_v1 = vadd.f32 %v6738_v0, %v7879_v26  ;;  %v4063_v2 = vpop.f32.mrb[49].mxu0 }
 0x327   : > { %v4064_v4 = vadd.f32 %v7879_v26, %v4063_v2  ;;  %v6739_v61 = vpop.f32.mrb[50].mxu0  ;;  %6800 = vmatprep.mubr.msk.bf16.mxu0 %vm833_vm0, %v4226_v63 }
 0x328   : > { %v4075_v5 = vadd.f32 %v6739_v61, %v7879_v26  ;;  %v4066_v6 = vpop.f32.mrb[51].mxu0  ;;  %6801 = vmatmul.mubr.msk.bf16.gmra.mrb[108].mxu0 %vm833_vm0, %v4227_v3  ;;  %v4188_v9 = vmax.f32 %v4072_v1, 0.0 }
 0x329   : > { %v4067_v7 = vadd.f32 %v7879_v26, %v4066_v6  ;;  %v4186_v17 = vmax.f32 %v4064_v4, 0.0 }
 0x32a   : > { %v4189_v46 = vmax.f32 %v4075_v5, 0.0 }
 0x32b   : > { %v4187_v23 = vmax.f32 %v4067_v7, 0.0  ;;  %v7980_v7 = vld [vmem:[%s8707_s13] ss:$0 sm:$0xff] }
 0x32c   : > { %v4229_v47 = vpack.c.bf16 %v4189_v46, %v4188_v9 }
 0x32d   : > { %v4228_v49 = vpack.c.bf16 %v4187_v23, %v4186_v17  ;;  %v6742_v27 = vpop.f32.mrb[52].mxu0 }
 0x32e   : > { %v4088_v36 = vadd.f32 %v6742_v27, %v7879_v26  ;;  %v4079_v41 = vpop.f32.mrb[53].mxu0 }
 0x32f   : > { %v4080_v50 = vadd.f32 %v7879_v26, %v4079_v41  ;;  %v6743_v51 = vpop.f32.mrb[54].mxu0  ;;  %6804 = vmatprep.mubr.msk.bf16.mxu0 %vm833_vm0, %v4228_v49 }
 0x330   : > { %v4091_v52 = vadd.f32 %v6743_v51, %v7879_v26  ;;  %v4082_v24 = vpop.f32.mrb[55].mxu0  ;;  %6805 = vmatmul.mubr.msk.bf16.gmra.mrb[112].mxu0 %vm833_vm0, %v4229_v47  ;;  %v4192_v54 = vmax.f32 %v4088_v36, 0.0 }
 0x331   : > { %v4083_v53 = vadd.f32 %v7879_v26, %v4082_v24  ;;  %v4190_v12 = vmax.f32 %v4080_v50, 0.0 }
 0x332   : > { %v4193_v11 = vmax.f32 %v4091_v52, 0.0 }
 0x333   : > { %v4191_v14 = vmax.f32 %v4083_v53, 0.0 }
 0x334   : > { %v4231_v18 = vpack.c.bf16 %v4193_v11, %v4192_v54 }
 0x335   : > { %v4230_v10 = vpack.c.bf16 %v4191_v14, %v4190_v12  ;;  %v6746_v19 = vpop.f32.mrb[56].mxu0 }
 0x336   : > { %v4104_v55 = vadd.f32 %v6746_v19, %v7879_v26  ;;  %v4095_v56 = vpop.f32.mrb[57].mxu0 }
 0x337   : > { %v4096_v20 = vadd.f32 %v7879_v26, %v4095_v56  ;;  %v6747_v21 = vpop.f32.mrb[58].mxu0  ;;  %6808 = vmatprep.mubr.msk.bf16.mxu0 %vm833_vm0, %v4230_v10 }
 0x338   : > { %v4107_v22 = vadd.f32 %v6747_v21, %v7879_v26  ;;  %v4098_v25 = vpop.f32.mrb[59].mxu0  ;;  %6809 = vmatmul.mubr.msk.bf16.gmra.mrb[116].mxu0 %vm833_vm0, %v4231_v18  ;;  %v4196_v30 = vmax.f32 %v4104_v55, 0.0 }
 0x339   : > { %v4099_v8 = vadd.f32 %v7879_v26, %v4098_v25  ;;  %v4194_v29 = vmax.f32 %v4096_v20, 0.0 }
 0x33a   : > { %v4197_v31 = vmax.f32 %v4107_v22, 0.0 }
 0x33b   : > { %v4195_v32 = vmax.f32 %v4099_v8, 0.0 }
 0x33c   : > { %v4233_v33 = vpack.c.bf16 %v4197_v31, %v4196_v30 }
 0x33d   : > { %v4232_v57 = vpack.c.bf16 %v4195_v32, %v4194_v29  ;;  %v6750_v28 = vpop.f32.mrb[60].mxu0 }
 0x33e   : > { %v4120_v58 = vadd.f32 %v6750_v28, %v7879_v26  ;;  %v4111_v34 = vpop.f32.mrb[61].mxu0 }
 0x33f   : > { %v4112_v37 = vadd.f32 %v7879_v26, %v4111_v34  ;;  %v6751_v16 = vpop.f32.mrb[62].mxu0  ;;  %6812 = vmatprep.mubr.msk.bf16.mxu0 %vm833_vm0, %v4232_v57 }
 0x340   : > { %v4123_v42 = vadd.f32 %v6751_v16, %v7879_v26  ;;  %v4114_v43 = vpop.f32.mrb[63].mxu0  ;;  %6813 = vmatmul.mubr.msk.bf16.gmra.mrb[120].mxu0 %vm833_vm0, %v4233_v33  ;;  %v4200_v45 = vmax.f32 %v4120_v58, 0.0 }
 0x341   : > { %v4115_v44 = vadd.f32 %v7879_v26, %v4114_v43  ;;  %v4198_v59 = vmax.f32 %v4112_v37, 0.0 }
 0x342   : > { %v4201_v39 = vmax.f32 %v4123_v42, 0.0 }
 0x343   : > { %v4199_v35 = vmax.f32 %v4115_v44, 0.0 }
 0x344   : > { %v4235_v15 = vpack.c.bf16 %v4201_v39, %v4200_v45 }
 0x345   : > { %v4234_v40 = vpack.c.bf16 %v4199_v35, %v4198_v59  ;;  %v6754_v60 = vpop.f32.mrb[64].mxu0 }
 0x346   : > { %v4136_v48 = vadd.f32 %v6754_v60, %v7879_v26  ;;  %v4127_v62 = vpop.f32.mrb[65].mxu0 }
 0x347   : > { %v4128_v13 = vadd.f32 %v7879_v26, %v4127_v62  ;;  %v6755_v38 = vpop.f32.mrb[66].mxu0  ;;  %6816 = vmatprep.mubr.msk.bf16.mxu0 %vm833_vm0, %v4234_v40 }
 0x348   : > { %v4139_v3 = vadd.f32 %v6755_v38, %v7879_v26  ;;  %v4130_v63 = vpop.f32.mrb[67].mxu0  ;;  %6817 = vmatmul.mubr.msk.bf16.gmra.mrb[124].mxu0 %vm833_vm0, %v4235_v15  ;;  %v4204_v1 = vmax.f32 %v4136_v48, 0.0 }
 0x349   : > { %v4131_v0 = vadd.f32 %v7879_v26, %v4130_v63  ;;  %v4202_v4 = vmax.f32 %v4128_v13, 0.0 }
 0x34a   : > { %v4205_v2 = vmax.f32 %v4139_v3, 0.0 }
 0x34b   : > { %v4203_v61 = vmax.f32 %v4131_v0, 0.0 }
 0x34c   : > { %v4237_v5 = vpack.c.bf16 %v4205_v2, %v4204_v1 }
 0x34d   : > { %v4236_v6 = vpack.c.bf16 %v4203_v61, %v4202_v4 }
 0x34f   : > { %6820 = vmatprep.mubr.msk.bf16.mxu0 %vm833_vm0, %v4236_v6 }
 0x350   : > { %6821 = vmatmul.mubr.msk.bf16.gmra.mrb[128].mxu0 %vm833_vm0, %v4237_v5 }
 0x3ab   : > { %v6762_v9 = vpop.f32.mrb[68].mxu0 }
 0x3ac   : > { %v4400_v46 = vadd.f32 %v6762_v9, %v7980_v7  ;;  %v4391_v17 = vpop.f32.mrb[69].mxu0 }
 0x3ad   : > { %v4392_v26 = vadd.f32 %v7980_v7, %v4391_v17  ;;  %v6763_v23 = vpop.f32.mrb[70].mxu0 }
 0x3ae   : > { %v4660_v47 = vsel %vm833_vm0, %v4400_v46, 0.0  ;;  %v4403_v49 = vadd.f32 %v6763_v23, %v7980_v7  ;;  %v4394_v27 = vpop.f32.mrb[71].mxu0 }
 0x3af   : > { %v4661_v36 = vrot.slane %v4660_v47, 4  ;;  %v4646_v41 = vsel %vm833_vm0, %v4392_v26, 0.0  ;;  %v4395_v50 = vadd.f32 %v7980_v7, %v4394_v27 }
 0x3b0   : > { %v4647_v51 = vrot.slane %v4646_v41, 4  ;;  %v4667_v52 = vsel %vm833_vm0, %v4403_v49, 0.0 }
 0x3b1   : > { %v4662_v24 = vadd.f32 %v4661_v36, %v4660_v47  ;;  %v4668_v53 = vrot.slane %v4667_v52, 4  ;;  %v4653_v54 = vsel %vm833_vm0, %v4395_v50, 0.0 }
 0x3b2   : > { %v4648_v11 = vadd.f32 %v4647_v51, %v4646_v41  ;;  %v4654_v12 = vrot.slane %v4653_v54, 4 }
 0x3b3   : > { %v4663_v14 = vrot.slane %v4662_v24, 2  ;;  %v4669_v18 = vadd.f32 %v4668_v53, %v4667_v52  ;;  %v6766_v10 = vpop.f32.mrb[72].mxu0 }
 0x3b4   : > { %v4649_v19 = vrot.slane %v4648_v11, 2  ;;  %v4655_v55 = vadd.f32 %v4654_v12, %v4653_v54  ;;  %v4416_v56 = vadd.f32 %v6766_v10, %v7980_v7  ;;  %v4407_v20 = vpop.f32.mrb[73].mxu0 }
 0x3b5   : > { %v4664_v21 = vadd.f32 %v4663_v14, %v4662_v24  ;;  %v4670_v22 = vrot.slane %v4669_v18, 2  ;;  %v4408_v25 = vadd.f32 %v7980_v7, %v4407_v20  ;;  %v6767_v8 = vpop.f32.mrb[74].mxu0 }
 0x3b6   : > { %v4650_v30 = vadd.f32 %v4649_v19, %v4648_v11  ;;  %v4656_v31 = vrot.slane %v4655_v55, 2  ;;  %v4688_v29 = vsel %vm833_vm0, %v4416_v56, 0.0  ;;  %v4419_v32 = vadd.f32 %v6767_v8, %v7980_v7  ;;  %v4410_v33 = vpop.f32.mrb[75].mxu0 }
 0x3b7   : > { %v4665_v57 = vrot.slane %v4664_v21, 1  ;;  %v4671_v28 = vadd.f32 %v4670_v22, %v4669_v18  ;;  %v4689_v58 = vrot.slane %v4688_v29, 4  ;;  %v4674_v34 = vsel %vm833_vm0, %v4408_v25, 0.0 }
 0x3b8   : > { %v4651_v37 = vrot.slane %v4650_v30, 1  ;;  %v4657_v16 = vadd.f32 %v4656_v31, %v4655_v55  ;;  %v4675_v42 = vrot.slane %v4674_v34, 4  ;;  %v4695_v43 = vsel %vm833_vm0, %v4419_v32, 0.0 }
 0x3b9   : > { %v4672_v44 = vrot.slane %v4671_v28, 1  ;;  %v4690_v45 = vadd.f32 %v4689_v58, %v4688_v29  ;;  %v4696_v39 = vrot.slane %v4695_v43, 4  ;;  %v4411_v40 = vadd.f32 %v7980_v7, %v4410_v33 }
 0x3ba   : > { %v4652_v59 = vadd.f32 %v4651_v37, %v4650_v30  ;;  %v4658_v35 = vrot.slane %v4657_v16, 1  ;;  %v4676_v15 = vadd.f32 %v4675_v42, %v4674_v34  ;;  %v4666_v60 = vadd.f32 %v4665_v57, %v4664_v21 }
 0x3bb   : > { %v4691_v48 = vrot.slane %v4690_v45, 2  ;;  %v4697_v62 = vadd.f32 %v4696_v39, %v4695_v43  ;;  %v6770_v13 = vpop.f32.mrb[76].mxu0  ;;  %v4673_v38 = vadd.f32 %v4672_v44, %v4671_v28  ;;  %v4681_v0 = vsel %vm833_vm0, %v4411_v40, 0.0 }
 0x3bc   : > { %v4659_v3 = vadd.f32 %v4658_v35, %v4657_v16  ;;  %v4677_v63 = vrot.slane %v4676_v15, 2  ;;  %v4423_v1 = vpop.f32.mrb[77].mxu0  ;;  %v5094_v2 = vmul.f32 0.033333335, %v4652_v59  ;;  %v4682_v5 = vrot.slane %v4681_v0, 4 }
 0x3bd   : > { %v4692_v4 = vadd.f32 %v4691_v48, %v4690_v45  ;;  %v4698_v61 = vrot.slane %v4697_v62, 2  ;;  %v6771_v6 = vpop.f32.mrb[78].mxu0  ;;  %v4432_v17 = vadd.f32 %v6770_v13, %v7980_v7  ;;  %v4424_v26 = vadd.f32 %v7980_v7, %v4423_v1 }
 0x3be   : > { %v5095_v9 = vmul.f32 0.033333335, %v4659_v3  ;;  %v4678_v46 = vadd.f32 %v4677_v63, %v4676_v15  ;;  %v4426_v23 = vpop.f32.mrb[79].mxu0  ;;  %v4683_v27 = vadd.f32 %v4682_v5, %v4681_v0  ;;  %v4435_v36 = vadd.f32 %v6771_v6, %v7980_v7 }
 0x3bf   : > { %v4693_v47 = vrot.slane %v4692_v4, 1  ;;  %v8000_v49 = vadd.f32 %v4698_v61, %v4697_v62  ;;  %v4716_v51 = vsel %vm833_vm0, %v4432_v17, 0.0  ;;  %v4702_v52 = vsel %vm833_vm0, %v4424_v26, 0.0 }
 0x3c0   : > { %v8004_v41 = vsel %vm5222_vm2, %v5095_v9, %v5094_v2  ;;  %v4679_v50 = vrot.slane %v4678_v46, 1  ;;  %v8008_v24 = vmul.f32 0.033333335, %v4666_v60  ;;  %v4684_v53 = vrot.slane %v4683_v27, 2 }
 0x3c1   : > { %v4717_v54 = vrot.slane %v4716_v51, 4  ;;  %v8010_v11 = vmul.f32 0.033333335, %v4673_v38  ;;  %v4703_v12 = vrot.slane %v4702_v52, 4  ;;  %v4723_v14 = vsel %vm833_vm0, %v4435_v36, 0.0 }
 0x3c2   : > { %v4427_v18 = vadd.f32 %v7980_v7, %v4426_v23  ;;  %v4694_v10 = vadd.f32 %v4693_v47, %v4692_v4  ;;  %v4700_v19 = vrot.slane %v8000_v49, 1  ;;  %v4685_v55 = vadd.f32 %v4684_v53, %v4683_v27 }
 0x3c3   : > { %v4718_v56 = vadd.f32 %v4717_v54, %v4716_v51  ;;  %v6774_v20 = vpop.f32.mrb[80].mxu0  ;;  %v4680_v21 = vadd.f32 %v4679_v50, %v4678_v46  ;;  %v4704_v22 = vadd.f32 %v4703_v12, %v4702_v52  ;;  %v4724_v25 = vrot.slane %v4723_v14, 4 }
 0x3c4   : > { %v4709_v8 = vsel %vm833_vm0, %v4427_v18, 0.0  ;;  %v4439_v30 = vpop.f32.mrb[81].mxu0  ;;  %v4686_v31 = vrot.slane %v4685_v55, 1  ;;  %v4448_v33 = vadd.f32 %v6774_v20, %v7980_v7  ;;  %v8019_v42 = vmul.f32 0.033333335, %v4694_v10 }
 0x3c5   : > { %v4719_v29 = vrot.slane %v4718_v56, 2  ;;  %v4710_v32 = vrot.slane %v4709_v8, 4  ;;  %v6775_v57 = vpop.f32.mrb[82].mxu0  ;;  %v4705_v28 = vrot.slane %v4704_v22, 2  ;;  %v4725_v58 = vadd.f32 %v4724_v25, %v4723_v14 }
 0x3c6   : > { %v4440_v34 = vadd.f32 %v7980_v7, %v4439_v30  ;;  %v4451_v37 = vadd.f32 %v6775_v57, %v7980_v7  ;;  %v4442_v16 = vpop.f32.mrb[83].mxu0  ;;  %v4744_v45 = vsel %vm833_vm0, %v4448_v33, 0.0  ;;  %v4687_v40 = vadd.f32 %v4686_v31, %v4685_v55 }
 0x3c7   : > { %v4720_v43 = vadd.f32 %v4719_v29, %v4718_v56  ;;  %v4711_v44 = vadd.f32 %v4710_v32, %v4709_v8  ;;  %v4706_v39 = vadd.f32 %v4705_v28, %v4704_v22  ;;  %v4726_v59 = vrot.slane %v4725_v58, 2 }
 0x3c8   : > { %v4745_v35 = vrot.slane %v4744_v45, 4  ;;  %v4730_v15 = vsel %vm833_vm0, %v4440_v34, 0.0  ;;  %v4751_v63 = vsel %vm833_vm0, %v4451_v37, 0.0  ;;  %v8024_v0 = vmul.f32 0.033333335, %v4680_v21 }
 0x3c9   : > { %v4721_v60 = vrot.slane %v4720_v43, 1  ;;  %v4712_v48 = vrot.slane %v4711_v44, 2  ;;  %v4731_v62 = vrot.slane %v4730_v15, 4  ;;  %v4707_v13 = vrot.slane %v4706_v39, 1 }
 0x3ca   : > { %v4727_v38 = vadd.f32 %v4726_v59, %v4725_v58  ;;  %v4746_v3 = vadd.f32 %v4745_v35, %v4744_v45  ;;  %v4752_v4 = vrot.slane %v4751_v63, 4  ;;  %v4443_v46 = vadd.f32 %v7980_v7, %v4442_v16 }
 0x3cb   : > { %v4713_v1 = vadd.f32 %v4712_v48, %v4711_v44  ;;  %v4732_v2 = vadd.f32 %v4731_v62, %v4730_v15  ;;  %v6778_v61 = vpop.f32.mrb[84].mxu0  ;;  %v4708_v5 = vadd.f32 %v4707_v13, %v4706_v39  ;;  %v8027_v26 = vmul.f32 0.033333335, %v4687_v40 }
 0x3cc   : > { %v4728_v6 = vrot.slane %v4727_v38, 1  ;;  %v4747_v9 = vrot.slane %v4746_v3, 2  ;;  %v4455_v17 = vpop.f32.mrb[85].mxu0  ;;  %v4753_v27 = vadd.f32 %v4752_v4, %v4751_v63  ;;  %v4722_v50 = vadd.f32 %v4721_v60, %v4720_v43 }
 0x3cd   : > { %v4714_v23 = vrot.slane %v4713_v1, 1  ;;  %v4733_v47 = vrot.slane %v4732_v2, 2  ;;  %v6779_v36 = vpop.f32.mrb[86].mxu0  ;;  %v5102_v51 = vmul.f32 0.033333335, %v4708_v5  ;;  %v4737_v53 = vsel %vm833_vm0, %v4443_v46, 0.0 }
 0x3ce   : > { %v4748_v52 = vadd.f32 %v4747_v9, %v4746_v3  ;;  %v4458_v54 = vpop.f32.mrb[87].mxu0  ;;  %v4754_v18 = vrot.slane %v4753_v27, 2  ;;  %v4738_v10 = vrot.slane %v4737_v53, 4  ;;  %v4729_v55 = vadd.f32 %v4728_v6, %v4727_v38 }
 0x3cf   : > { %v4715_v12 = vadd.f32 %v4714_v23, %v4713_v1  ;;  %v4734_v14 = vadd.f32 %v4733_v47, %v4732_v2  ;;  %v4464_v20 = vadd.f32 %v6778_v61, %v7980_v7  ;;  %v4456_v21 = vadd.f32 %v7980_v7, %v4455_v17 }
 0x3d0   : > { %v4749_v56 = vrot.slane %v4748_v52, 1  ;;  %v4755_v8 = vadd.f32 %v4754_v18, %v4753_v27  ;;  %v4739_v30 = vadd.f32 %v4738_v10, %v4737_v53  ;;  %v4467_v33 = vadd.f32 %v6779_v36, %v7980_v7  ;;  %v7058_v10 = vld [vmem:[%s7260_s23] sm:$0xff] }
 0x3d1   : > { %v5103_v22 = vmul.f32 0.033333335, %v4715_v12  ;;  %v4735_v25 = vrot.slane %v4734_v14, 1  ;;  %v4772_v29 = vsel %vm833_vm0, %v4464_v20, 0.0  ;;  %v4758_v32 = vsel %vm833_vm0, %v4456_v21, 0.0 }
 0x3d2   : > { %v4750_v31 = vadd.f32 %v4749_v56, %v4748_v52  ;;  %v8035_v57 = vmul.f32 0.033333335, %v4722_v50  ;;  %v4740_v34 = vrot.slane %v4739_v30, 2  ;;  %v8040_v16 = vmul.f32 0.033333335, %v4729_v55 }
 0x3d3   : > { %v8038_v28 = vsel %vm5222_vm2, %v5103_v22, %v5102_v51  ;;  %v4736_v58 = vadd.f32 %v4735_v25, %v4734_v14  ;;  %v6782_v37 = vpop.f32.mrb[88].mxu0  ;;  %v4773_v43 = vrot.slane %v4772_v29, 4  ;;  %v4759_v44 = vrot.slane %v4758_v32, 4 }
 0x3d4   : > { %v4779_v45 = vsel %vm833_vm0, %v4467_v33, 0.0  ;;  %v4471_v39 = vpop.f32.mrb[89].mxu0  ;;  %v4701_v59 = vadd.f32 %v4700_v19, %v8000_v49  ;;  %v8046_v35 = vmul.f32 0.033333335, %v4750_v31  ;;  %v4756_v15 = vrot.slane %v4755_v8, 1 }
 0x3d5   : > { %v4780_v40 = vrot.slane %v4779_v45, 4  ;;  %v6783_v60 = vpop.f32.mrb[90].mxu0  ;;  %v8048_v48 = vmul.f32 0.033333335, %v4736_v58  ;;  %v4774_v62 = vadd.f32 %v4773_v43, %v4772_v29  ;;  %v4760_v13 = vadd.f32 %v4759_v44, %v4758_v32 }
 0x3d6   : > { %v4459_v38 = vadd.f32 %v7980_v7, %v4458_v54  ;;  %v4474_v3 = vpop.f32.mrb[91].mxu0  ;;  %v4741_v63 = vadd.f32 %v4740_v34, %v4739_v30  ;;  %v5225_v2 = vsel %vm5224_vm3, %v8008_v24, %v8004_v41  ;;  %v4480_v49 = vadd.f32 %v6782_v37, %v7980_v7 }
 0x3d7   : > { %v4781_v1 = vadd.f32 %v4780_v40, %v4779_v45  ;;  %v4775_v19 = vrot.slane %v4774_v62, 2  ;;  %v4761_v4 = vrot.slane %v4760_v13, 2  ;;  %v5227_v5 = vsel %vm5226_vm4, %v8010_v11, %v5225_v2 }
 0x3d8   : > { %v4765_v61 = vsel %vm833_vm0, %v4459_v38, 0.0  ;;  %v5101_v46 = vmul.f32 0.033333335, %v4701_v59  ;;  %v5229_v17 = vsel %vm5228_vm5, %v8024_v0, %v5227_v5  ;;  %v4800_v24 = vsel %vm833_vm0, %v4480_v49, 0.0 }
 0x3d9   : > { %v4782_v6 = vrot.slane %v4781_v1, 2  ;;  %v4766_v9 = vrot.slane %v4765_v61, 4  ;;  %v4776_v23 = vadd.f32 %v4775_v19, %v4774_v62  ;;  %v4762_v47 = vadd.f32 %v4761_v4, %v4760_v13 }
 0x3da   : > { %v5231_v41 = vsel %vm5230_vm6, %v8027_v26, %v5229_v17  ;;  %v4742_v27 = vrot.slane %v4741_v63, 1  ;;  %v4801_v0 = vrot.slane %v4800_v24, 4  ;;  %v4472_v26 = vadd.f32 %v7980_v7, %v4471_v39 }
 0x3db   : > { %v4783_v36 = vadd.f32 %v4782_v6, %v4781_v1  ;;  %v4767_v50 = vadd.f32 %v4766_v9, %v4765_v61  ;;  %v5233_v11 = vsel %vm5232_vm7, %v8019_v42, %v5231_v41  ;;  %v6786_v51 = vpop.f32.mrb[92].mxu0  ;;  %v4777_v52 = vrot.slane %v4776_v23, 1 }
 0x3dc   : > { %v4763_v53 = vrot.slane %v4762_v47, 1  ;;  %v5235_v54 = vsel %vm5234_vm8, %v5101_v46, %v5233_v11  ;;  %v4487_v12 = vpop.f32.mrb[93].mxu0  ;;  %v8070_v20 = vadd.f32 %v4756_v15, %v4755_v8  ;;  %v4802_v22 = vadd.f32 %v4801_v0, %v4800_v24 }
 0x3dd   : > { %v4784_v14 = vrot.slane %v4783_v36, 1  ;;  %v4768_v18 = vrot.slane %v4767_v50, 2  ;;  %v8067_v55 = vadd.f32 %v7058_v10, %v5235_v54  ;;  %v6787_v56 = vpop.f32.mrb[94].mxu0  ;;  %v4483_v42 = vadd.f32 %v6783_v60, %v7980_v7 }
 0x3de   : > { %v4764_v21 = vadd.f32 %v4763_v53, %v4762_v47  ;;  %v4490_v25 = vpop.f32.mrb[95].mxu0  ;;  %v4743_v30 = vadd.f32 %v4742_v27, %v4741_v63  ;;  %v4786_v32 = vsel %vm833_vm0, %v4472_v26, 0.0  ;;  %v4778_v33 = vadd.f32 %v4777_v52, %v4776_v23 }
 0x3df   : > { %v4769_v31 = vadd.f32 %v4768_v18, %v4767_v50  ;;  %v5303_v29 = vsel %vm833_vm0, %v8067_v55, 0.0  ;;  %v4785_v58 = vadd.f32 %v4784_v14, %v4783_v36  ;;  %v4803_v34 = vrot.slane %v4802_v22, 2 }
 0x3e0   : > { %5304 = vadd.xlane.f32.xlu0 %v5303_v29  ;;  %v4787_v37 = vrot.slane %v4786_v32, 4  ;;  %v5110_v43 = vmul.f32 0.033333335, %v4764_v21  ;;  %v4807_v44 = vsel %vm833_vm0, %v4483_v42, 0.0  ;;  %v4475_v45 = vadd.f32 %v7980_v7, %v4474_v3 }
 0x3e1   : > { %v4770_v8 = vrot.slane %v4769_v31, 1  ;;  %v4804_v39 = vadd.f32 %v4803_v34, %v4802_v22  ;;  %v4808_v15 = vrot.slane %v4807_v44, 4  ;;  %v4496_v40 = vadd.f32 %v6786_v51, %v7980_v7 }
 0x3e2   : > { %v4788_v59 = vadd.f32 %v4787_v37, %v4786_v32  ;;  %v4793_v62 = vsel %vm833_vm0, %v4475_v45, 0.0  ;;  %v4488_v13 = vadd.f32 %v7980_v7, %v4487_v12  ;;  %v4499_v38 = vadd.f32 %v6787_v56, %v7980_v7 }
 0x3e3   : > { %v4771_v60 = vadd.f32 %v4770_v8, %v4769_v31  ;;  %v6790_v63 = vpop.f32.mrb[96].mxu0  ;;  %v4805_v1 = vrot.slane %v4804_v39, 1  ;;  %v4809_v49 = vadd.f32 %v4808_v15, %v4807_v44  ;;  %v4794_v19 = vrot.slane %v4793_v62, 4 }
 0x3e4   : > { %v4789_v2 = vrot.slane %v4788_v59, 2  ;;  %v4503_v4 = vpop.f32.mrb[97].mxu0  ;;  %v4828_v3 = vsel %vm833_vm0, %v4496_v40, 0.0  ;;  %v4814_v5 = vsel %vm833_vm0, %v4488_v13, 0.0  ;;  %v4835_v6 = vsel %vm833_vm0, %v4499_v38, 0.0 }
 0x3e5   : > { %v5111_v61 = vmul.f32 0.033333335, %v4771_v60  ;;  %v8085_v9 = vpop.f32.mrb[98].mxu0  ;;  %v4806_v46 = vadd.f32 %v4805_v1, %v4804_v39  ;;  %v4810_v23 = vrot.slane %v4809_v49, 2  ;;  %v4795_v47 = vadd.f32 %v4794_v19, %v4793_v62 }
 0x3e6   : > { %v4790_v17 = vadd.f32 %v4789_v2, %v4788_v59  ;;  %v8087_v41 = vpop.f32.mrb[99].mxu0  ;;  %v4829_v27 = vrot.slane %v4828_v3, 4  ;;  %v4815_v36 = vrot.slane %v4814_v5, 4  ;;  %v4836_v50 = vrot.slane %v4835_v6, 4 }
 0x3e7   : > { %v8090_v24 = vsel %vm5222_vm2, %v5111_v61, %v5110_v43  ;;  %v5107_v11 = vmul.f32 0.033333335, %v4743_v30  ;;  %v4811_v52 = vadd.f32 %v4810_v23, %v4809_v49  ;;  %v4796_v53 = vrot.slane %v4795_v47, 2 }
 0x3e8   : > { %v4791_v51 = vrot.slane %v4790_v17, 1  ;;  %v4830_v54 = vadd.f32 %v4829_v27, %v4828_v3  ;;  %v4816_v0 = vadd.f32 %v4815_v36, %v4814_v5  ;;  %v4837_v12 = vadd.f32 %v4836_v50, %v4835_v6 }
 0x3e9   : > { %v4491_v14 = vadd.f32 %v7980_v7, %v4490_v25  ;;  %v8093_v18 = vmul.f32 0.033333335, %v4778_v33  ;;  %v8095_v10 = vmul.f32 0.033333335, %v4785_v58  ;;  %v8097_v26 = vmul.f32 0.033333335, %v4806_v46 }
 0x3ea   : > { %v4797_v56 = vadd.f32 %v4796_v53, %v4795_v47  ;;  %v4831_v21 = vrot.slane %v4830_v54, 2  ;;  %v4817_v22 = vrot.slane %v4816_v0, 2  ;;  %v4838_v42 = vrot.slane %v4837_v12, 2 }
 0x3eb   : > { %v4821_v30 = vsel %vm833_vm0, %v4491_v14, 0.0  ;;  %v6794_v31 = vpop.f32.mrb[100].mxu0  ;;  %v4792_v29 = vadd.f32 %v4791_v51, %v4790_v17  ;;  %v4812_v32 = vrot.slane %v4811_v52, 1  ;;  %v5237_v58 = vsel %vm5224_vm3, %v8035_v57, %v8038_v28  ;;  %v7059_v17 = vld [vmem:[%s7260_s23 + $0x8] sm:$0xff] }
 0x3ec   : > { %v4798_v34 = vrot.slane %v4797_v56, 1  ;;  %v4822_v37 = vrot.slane %v4821_v30, 4  ;;  %v4519_v43 = vpop.f32.mrb[101].mxu0  ;;  %v4832_v8 = vadd.f32 %v4831_v21, %v4830_v54  ;;  %v4818_v25 = vadd.f32 %v4817_v22, %v4816_v0 }
 0x3ed   : > { %v4839_v33 = vadd.f32 %v4838_v42, %v4837_v12  ;;  %v6795_v44 = vpop.f32.mrb[102].mxu0  ;;  %v5109_v39 = vmul.f32 0.033333335, %v8070_v20  ;;  %v5238_v59 = vsel %vm5226_vm4, %v8040_v16, %v5237_v58  ;;  %v4512_v15 = vadd.f32 %v6790_v63, %v7980_v7 }
 0x3ee   : > { %v4823_v45 = vadd.f32 %v4822_v37, %v4821_v30  ;;  %v8107_v40 = vpop.f32.mrb[103].mxu0  ;;  %v4833_v60 = vrot.slane %v4832_v8, 1  ;;  %v4819_v62 = vrot.slane %v4818_v25, 1  ;;  %v5239_v38 = vsel %vm5228_vm5, %v8048_v48, %v5238_v59 }
 0x3ef   : > { %v4840_v13 = vrot.slane %v4839_v33, 1  ;;  %v8111_v1 = vmul.f32 0.033333335, %v4792_v29  ;;  %v5240_v28 = vsel %vm5230_vm6, %v5107_v11, %v5239_v38  ;;  %v4856_v20 = vsel %vm833_vm0, %v4512_v15, 0.0 }
 0x3f0   : > { %v4824_v57 = vrot.slane %v4823_v45, 2  ;;  %v8115_v2 = vadd.f32 %v4812_v32, %v4811_v52  ;;  %v4799_v16 = vadd.f32 %v4798_v34, %v4797_v56  ;;  %v4820_v63 = vadd.f32 %v4819_v62, %v4818_v25 }
 0x3f1   : > { %v5241_v49 = vsel %vm5232_vm7, %v8046_v35, %v5240_v28  ;;  %v4857_v3 = vrot.slane %v4856_v20, 4  ;;  %v4504_v48 = vadd.f32 %v7980_v7, %v4503_v4  ;;  %v4834_v5 = vadd.f32 %v4833_v60, %v4832_v8 }
 0x3f2   : > { %v4825_v19 = vadd.f32 %v4824_v57, %v4823_v45  ;;  %v5242_v61 = vsel %vm5234_vm8, %v5109_v39, %v5241_v49  ;;  %v5118_v6 = vmul.f32 0.033333335, %v4820_v63  ;;  %v8121_v46 = vadd.f32 %v4840_v13, %v4839_v33 }
 0x3f3   : > { %v8124_v23 = vadd.f32 %v7059_v17, %v5242_v61  ;;  %v4858_v27 = vadd.f32 %v4857_v3, %v4856_v20  ;;  %v4842_v36 = vsel %vm833_vm0, %v4504_v48, 0.0  ;;  %v4515_v35 = vadd.f32 %v8085_v9, %v7980_v7  ;;  %v8129_v50 = vpop.f32.mrb[104].mxu0 }
 0x3f4   : > { %v4826_v47 = vrot.slane %v4825_v19, 1  ;;  %v4843_v4 = vrot.slane %v4842_v36, 4  ;;  %v4507_v51 = vadd.f32 %v7980_v7, %v8087_v41  ;;  %v4528_v52 = vadd.f32 %v6794_v31, %v7980_v7  ;;  %v8136_v53 = vpop.f32.mrb[105].mxu0 }
 0x3f5   : > { %v5306_v11 = vsel %vm833_vm0, %v8124_v23, 0.0  ;;  %v4859_v0 = vrot.slane %v4858_v27, 2  ;;  %v4863_v12 = vsel %vm833_vm0, %v4515_v35, 0.0  ;;  %v4520_v9 = vadd.f32 %v7980_v7, %v4519_v43  ;;  %v8140_v14 = vpop.f32.mrb[106].mxu0 }
 0x3f6   : > { %v4827_v54 = vadd.f32 %v4826_v47, %v4825_v19  ;;  %5307 = vadd.xlane.f32.xlu1 %v5306_v11  ;;  %v4844_v56 = vadd.f32 %v4843_v4, %v4842_v36  ;;  %v4864_v21 = vrot.slane %v4863_v12, 4  ;;  %v4849_v22 = vsel %vm833_vm0, %v4507_v51, 0.0  ;;  %v8144_v41 = vpop.f32.mrb[107].mxu0 }
 0x3f7   : > { %v4884_v42 = vsel %vm833_vm0, %v4528_v52, 0.0  ;;  %v4860_v31 = vadd.f32 %v4859_v0, %v4858_v27  ;;  %v4850_v29 = vrot.slane %v4849_v22, 4  ;;  %v4870_v8 = vsel %vm833_vm0, %v4520_v9, 0.0 }
 0x3f8   : > { %v5119_v30 = vmul.f32 0.033333335, %v4827_v54  ;;  %v4885_v32 = vrot.slane %v4884_v42, 4  ;;  %v4845_v34 = vrot.slane %v4844_v56, 2  ;;  %v4865_v37 = vadd.f32 %v4864_v21, %v4863_v12 }
 0x3f9   : > { %v4531_v43 = vadd.f32 %v6795_v44, %v7980_v7  ;;  %v4861_v33 = vrot.slane %v4860_v31, 1  ;;  %v4851_v58 = vadd.f32 %v4850_v29, %v4849_v22  ;;  %v4871_v15 = vrot.slane %v4870_v8, 4 }
 0x3fa   : > { %v8149_v25 = vsel %vm5222_vm2, %v5119_v30, %v5118_v6  ;;  %v4886_v45 = vadd.f32 %v4885_v32, %v4884_v42  ;;  %v4846_v39 = vadd.f32 %v4845_v34, %v4844_v56  ;;  %v4866_v59 = vrot.slane %v4865_v37, 2 }
 0x3fb   : > { %v4891_v60 = vsel %vm833_vm0, %v4531_v43, 0.0  ;;  %v8152_v62 = vpop.f32.mrb[108].mxu0  ;;  %v4862_v13 = vadd.f32 %v4861_v33, %v4860_v31  ;;  %v4852_v38 = vrot.slane %v4851_v58, 2  ;;  %v4872_v49 = vadd.f32 %v4871_v15, %v4870_v8 }
 0x3fc   : > { %v4887_v57 = vrot.slane %v4886_v45, 2  ;;  %v4892_v28 = vrot.slane %v4891_v60, 4  ;;  %v8154_v20 = vpop.f32.mrb[109].mxu0  ;;  %v4847_v44 = vrot.slane %v4846_v39, 1  ;;  %v4867_v63 = vadd.f32 %v4866_v59, %v4865_v37 }
 0x3fd   : > { %v4523_v19 = vadd.f32 %v7980_v7, %v8107_v40  ;;  %v8158_v61 = vpop.f32.mrb[110].mxu0  ;;  %v5115_v3 = vmul.f32 0.033333335, %v4799_v16  ;;  %v4853_v48 = vadd.f32 %v4852_v38, %v4851_v58  ;;  %v4873_v35 = vrot.slane %v4872_v49, 2 }
 0x3fe   : > { %v4888_v6 = vadd.f32 %v4887_v57, %v4886_v45  ;;  %v4893_v17 = vadd.f32 %v4892_v28, %v4891_v60  ;;  %v8160_v47 = vpop.f32.mrb[111].mxu0  ;;  %v4848_v27 = vadd.f32 %v4847_v44, %v4846_v39  ;;  %v4868_v36 = vrot.slane %v4867_v63, 1 }
 0x3ff   : > { %v4877_v11 = vsel %vm833_vm0, %v4523_v19, 0.0  ;;  %v8163_v4 = vmul.f32 0.033333335, %v4834_v5  ;;  %v4854_v51 = vrot.slane %v4853_v48, 1  ;;  %v8166_v40 = vmul.f32 0.033333335, %v8121_v46 }
 0x400   : > { %v4894_v52 = vrot.slane %v4893_v17, 2  ;;  %v4878_v54 = vrot.slane %v4877_v11, 4  ;;  %v8168_v0 = vmul.f32 0.033333335, %v4862_v13  ;;  %v4889_v16 = vrot.slane %v4888_v6, 1 }
 0x401   : > { %v4874_v12 = vadd.f32 %v4873_v35, %v4872_v49  ;;  %v8170_v9 = vmul.f32 0.033333335, %v4848_v27  ;;  %v8172_v56 = vadd.f32 %v4868_v36, %v4867_v63  ;;  %v5244_v5 = vsel %vm5224_vm3, %v8093_v18, %v8090_v24 }
 0x402   : > { %v4895_v21 = vadd.f32 %v4894_v52, %v4893_v17  ;;  %v4879_v22 = vadd.f32 %v4878_v54, %v4877_v11  ;;  %v4544_v30 = vadd.f32 %v8129_v50, %v7980_v7  ;;  %v4536_v46 = vadd.f32 %v7980_v7, %v8136_v53 }
 0x403   : > { %v4875_v42 = vrot.slane %v4874_v12, 1  ;;  %v8181_v31 = vpop.f32.mrb[112].mxu0  ;;  %v8183_v29 = vadd.f32 %v4854_v51, %v4853_v48  ;;  %v5117_v37 = vmul.f32 0.033333335, %v8115_v2  ;;  %v5245_v43 = vsel %vm5226_vm4, %v8095_v10, %v5244_v5 }
 0x404   : > { %v4896_v32 = vrot.slane %v4895_v21, 1  ;;  %v4880_v34 = vrot.slane %v4879_v22, 2  ;;  %v4912_v24 = vsel %vm833_vm0, %v4544_v30, 0.0  ;;  %v4898_v18 = vsel %vm833_vm0, %v4536_v46, 0.0  ;;  %v8190_v50 = vpop.f32.mrb[113].mxu0 }
 0x405   : > { %v4876_v8 = vadd.f32 %v4875_v42, %v4874_v12  ;;  %v4890_v33 = vadd.f32 %v4889_v16, %v4888_v6  ;;  %v5246_v58 = vsel %vm5228_vm5, %v8111_v1, %v5245_v43  ;;  %v4913_v45 = vrot.slane %v4912_v24, 4  ;;  %v8194_v39 = vpop.f32.mrb[114].mxu0 }
 0x406   : > { %v4881_v53 = vadd.f32 %v4880_v34, %v4879_v22  ;;  %v4897_v2 = vadd.f32 %v4896_v32, %v4895_v21  ;;  %v5247_v59 = vsel %vm5230_vm6, %v5115_v3, %v5246_v58  ;;  %v4899_v15 = vrot.slane %v4898_v18, 4  ;;  %v8199_v60 = vpop.f32.mrb[115].mxu0  ;;  %v7060_v3 = vld [vmem:[%s7260_s23 + $0x10] sm:$0xff] }
 0x407   : > { %v4547_v10 = vadd.f32 %v8140_v14, %v7980_v7  ;;  %v5126_v13 = vmul.f32 0.033333335, %v4876_v8  ;;  %v5248_v57 = vsel %vm5232_vm7, %v8097_v26, %v5247_v59  ;;  %v4914_v28 = vadd.f32 %v4913_v45, %v4912_v24 }
 0x408   : > { %v4882_v38 = vrot.slane %v4881_v53, 1  ;;  %v5249_v1 = vsel %vm5234_vm8, %v5117_v37, %v5248_v57  ;;  %v4900_v44 = vadd.f32 %v4899_v15, %v4898_v18  ;;  %v4539_v49 = vadd.f32 %v7980_v7, %v8144_v41 }
 0x409   : > { %v4919_v63 = vsel %vm833_vm0, %v4547_v10, 0.0  ;;  %v8208_v48 = vadd.f32 %v7060_v3, %v5249_v1  ;;  %v4915_v14 = vrot.slane %v4914_v28, 2  ;;  %v4560_v26 = vadd.f32 %v8152_v62, %v7980_v7 }
 0x40a   : > { %v4883_v19 = vadd.f32 %v4882_v38, %v4881_v53  ;;  %v4920_v6 = vrot.slane %v4919_v63, 4  ;;  %v4901_v17 = vrot.slane %v4900_v44, 2  ;;  %v4905_v27 = vsel %vm833_vm0, %v4539_v49, 0.0 }
 0x40b   : > { %v4552_v36 = vadd.f32 %v7980_v7, %v8154_v20  ;;  %v8215_v35 = vpop.f32.mrb[116].mxu0  ;;  %v5309_v41 = vsel %vm833_vm0, %v8208_v48, 0.0  ;;  %v4916_v51 = vadd.f32 %v4915_v14, %v4914_v28  ;;  %v4906_v12 = vrot.slane %v4905_v27, 4 }
 0x40c   : > { %v5127_v11 = vmul.f32 0.033333335, %v4883_v19  ;;  %v4921_v52 = vadd.f32 %v4920_v6, %v4919_v63  ;;  %v8219_v54 = vpop.f32.mrb[117].mxu0  ;;  %5310 = vadd.xlane.f32.xlu0 %v5309_v41  ;;  %v4902_v16 = vadd.f32 %v4901_v17, %v4900_v44  ;;  %v4940_v21 = vsel %vm833_vm0, %v4560_v26, 0.0 }
 0x40d   : > { %v4926_v62 = vsel %vm833_vm0, %v4552_v36, 0.0  ;;  %v8223_v22 = vpop.f32.mrb[118].mxu0  ;;  %v4917_v42 = vrot.slane %v4916_v51, 1  ;;  %v4941_v30 = vrot.slane %v4940_v21, 4  ;;  %v4907_v34 = vadd.f32 %v4906_v12, %v4905_v27 }
 0x40e   : > { %v8226_v20 = vsel %vm5222_vm2, %v5127_v11, %v5126_v13  ;;  %v4922_v5 = vrot.slane %v4921_v52, 2  ;;  %v8228_v46 = vpop.f32.mrb[119].mxu0  ;;  %v4903_v32 = vrot.slane %v4902_v16, 1  ;;  %v4927_v37 = vrot.slane %v4926_v62, 4 }
 0x40f   : > { %v4563_v8 = vadd.f32 %v8158_v61, %v7980_v7  ;;  %v4918_v43 = vadd.f32 %v4917_v42, %v4916_v51  ;;  %v4942_v18 = vadd.f32 %v4941_v30, %v4940_v21  ;;  %v4555_v53 = vadd.f32 %v7980_v7, %v8160_v47 }
 0x410   : > { %v4923_v24 = vadd.f32 %v4922_v5, %v4921_v52  ;;  %v4904_v58 = vadd.f32 %v4903_v32, %v4902_v16  ;;  %v4908_v45 = vrot.slane %v4907_v34, 2  ;;  %v4928_v59 = vadd.f32 %v4927_v37, %v4926_v62 }
 0x411   : > { %v4947_v15 = vsel %vm833_vm0, %v4563_v8, 0.0  ;;  %v5123_v10 = vmul.f32 0.033333335, %v8183_v29  ;;  %v8236_v13 = vmul.f32 0.033333335, %v4890_v33  ;;  %v4943_v38 = vrot.slane %v4942_v18, 2 }
 0x412   : > { %v4948_v57 = vrot.slane %v4947_v15, 4  ;;  %v8238_v28 = vmul.f32 0.033333335, %v4897_v2  ;;  %v4909_v61 = vadd.f32 %v4908_v45, %v4907_v34  ;;  %v4929_v1 = vrot.slane %v4928_v59, 2  ;;  %v7061_v8 = vld [vmem:[%s7260_s23 + $0x18] sm:$0xff] }
 0x413   : > { %v4933_v44 = vsel %vm833_vm0, %v4555_v53, 0.0  ;;  %v8241_v63 = vpop.f32.mrb[120].mxu0  ;;  %v8243_v47 = vmul.f32 0.033333335, %v4918_v43  ;;  %v4944_v49 = vadd.f32 %v4943_v38, %v4942_v18  ;;  %v8247_v29 = vmul.f32 0.033333335, %v4904_v58 }
 0x414   : > { %v4949_v19 = vadd.f32 %v4948_v57, %v4947_v15  ;;  %v4934_v3 = vrot.slane %v4933_v44, 4  ;;  %v8245_v14 = vpop.f32.mrb[121].mxu0  ;;  %v4924_v33 = vrot.slane %v4923_v24, 1  ;;  %v4930_v6 = vadd.f32 %v4929_v1, %v4928_v59 }
 0x415   : > { %v5251_v2 = vsel %vm5224_vm3, %v8163_v4, %v8149_v25  ;;  %v8252_v17 = vpop.f32.mrb[122].mxu0  ;;  %v4910_v27 = vrot.slane %v4909_v61, 1  ;;  %v4945_v51 = vrot.slane %v4944_v49, 1  ;;  %v4576_v12 = vadd.f32 %v8181_v31, %v7980_v7 }
 0x416   : > { %v4950_v26 = vrot.slane %v4949_v19, 2  ;;  %v4935_v36 = vadd.f32 %v4934_v3, %v4933_v44  ;;  %v5252_v11 = vsel %vm5226_vm4, %v8166_v40, %v5251_v2  ;;  %v8256_v41 = vpop.f32.mrb[123].mxu0  ;;  %v4931_v52 = vrot.slane %v4930_v6, 1 }
 0x417   : > { %v5253_v16 = vsel %vm5228_vm5, %v8170_v9, %v5252_v11  ;;  %v5125_v21 = vmul.f32 0.033333335, %v8172_v56  ;;  %v8264_v42 = vadd.f32 %v4924_v33, %v4923_v24  ;;  %v4968_v30 = vsel %vm833_vm0, %v4576_v12, 0.0 }
 0x418   : > { %v4951_v25 = vadd.f32 %v4950_v26, %v4949_v19  ;;  %v4936_v4 = vrot.slane %v4935_v36, 2  ;;  %v5254_v62 = vsel %vm5230_vm6, %v5123_v10, %v5253_v16  ;;  %v4932_v40 = vadd.f32 %v4931_v52, %v4930_v6 }
 0x419   : > { %v5255_v5 = vsel %vm5232_vm7, %v8168_v0, %v5254_v62  ;;  %v4911_v32 = vadd.f32 %v4910_v27, %v4909_v61  ;;  %v8270_v31 = vadd.f32 %v4945_v51, %v4944_v49  ;;  %v4969_v56 = vrot.slane %v4968_v30, 4 }
 0x41a   : > { %v4952_v34 = vrot.slane %v4951_v25, 1  ;;  %v4937_v9 = vadd.f32 %v4936_v4, %v4935_v36  ;;  %v5256_v37 = vsel %vm5234_vm8, %v5125_v21, %v5255_v5  ;;  %v4568_v24 = vadd.f32 %v7980_v7, %v8190_v50  ;;  %v8300_v36 = vld [vmem:[%s8707_s13] ss:$0 sm:$0xff] }
 0x41b   : > { %v8273_v43 = vadd.f32 %v7061_v8, %v5256_v37  ;;  %v8277_v18 = vpop.f32.mrb[124].mxu0  ;;  %v5134_v53 = vmul.f32 0.033333335, %v4932_v40  ;;  %v4579_v58 = vadd.f32 %v8194_v39, %v7980_v7  ;;  %v4571_v45 = vadd.f32 %v7980_v7, %v8199_v60 }
 0x41c   : > { %v4938_v0 = vrot.slane %v4937_v9, 1  ;;  %v8283_v59 = vpop.f32.mrb[125].mxu0  ;;  %v4970_v10 = vadd.f32 %v4969_v56, %v4968_v30  ;;  %v4954_v38 = vsel %vm833_vm0, %v4568_v24, 0.0  ;;  %v4592_v50 = vadd.f32 %v8215_v35, %v7980_v7 }
 0x41d   : > { %v5312_v15 = vsel %vm833_vm0, %v8273_v43, 0.0  ;;  %v8290_v57 = vpop.f32.mrb[126].mxu0  ;;  %v4953_v61 = vadd.f32 %v4952_v34, %v4951_v25  ;;  %v4955_v39 = vrot.slane %v4954_v38, 4  ;;  %v4975_v44 = vsel %vm833_vm0, %v4579_v58, 0.0 }
 0x41e   : > { %v4939_v1 = vadd.f32 %v4938_v0, %v4937_v9  ;;  %5313 = vadd.xlane.f32.xlu0 %v5312_v15  ;;  %v8293_v60 = vpop.f32.mrb[127].mxu0  ;;  %v4971_v49 = vrot.slane %v4970_v10, 2  ;;  %v4976_v19 = vrot.slane %v4975_v44, 4  ;;  %v4961_v3 = vsel %vm833_vm0, %v4571_v45, 0.0 }
 0x41f   : > { %v4996_v33 = vsel %vm833_vm0, %v4592_v50, 0.0  ;;  %v4956_v2 = vadd.f32 %v4955_v39, %v4954_v38  ;;  %v4962_v27 = vrot.slane %v4961_v3, 4  ;;  %v4584_v11 = vadd.f32 %v8300_v36, %v8219_v54 }
 0x420   : > { %v5135_v6 = vmul.f32 0.033333335, %v4939_v1  ;;  %v4997_v7 = vrot.slane %v4996_v33, 4  ;;  %v4972_v35 = vadd.f32 %v4971_v49, %v4970_v10  ;;  %v4977_v26 = vadd.f32 %v4976_v19, %v4975_v44 }
 0x421   : > { %v4595_v51 = vadd.f32 %v8300_v36, %v8223_v22  ;;  %v4957_v16 = vrot.slane %v4956_v2, 2  ;;  %v4963_v12 = vadd.f32 %v4962_v27, %v4961_v3  ;;  %v4982_v62 = vsel %vm833_vm0, %v4584_v11, 0.0 }
 0x422   : > { %v8307_v52 = vsel %vm5222_vm2, %v5135_v6, %v5134_v53  ;;  %v4998_v25 = vadd.f32 %v4997_v7, %v4996_v33  ;;  %v4973_v4 = vrot.slane %v4972_v35, 1  ;;  %v4978_v21 = vrot.slane %v4977_v26, 2 }
 0x423   : > { %v5003_v40 = vsel %vm833_vm0, %v4595_v51, 0.0  ;;  %v8311_v5 = vpop.f32.mrb[128].mxu0  ;;  %v4958_v30 = vadd.f32 %v4957_v16, %v4956_v2  ;;  %v4964_v34 = vrot.slane %v4963_v12, 2  ;;  %v4983_v9 = vrot.slane %v4982_v62, 4 }
 0x424   : > { %v4999_v54 = vrot.slane %v4998_v25, 2  ;;  %v8313_v37 = vpop.f32.mrb[129].mxu0  ;;  %v4974_v22 = vadd.f32 %v4973_v4, %v4972_v35  ;;  %v4979_v8 = vadd.f32 %v4978_v21, %v4977_v26  ;;  %v5004_v56 = vrot.slane %v5003_v40, 4 }
 0x425   : > { %v4587_v24 = vadd.f32 %v8300_v36, %v8228_v46  ;;  %v8317_v53 = vpop.f32.mrb[130].mxu0  ;;  %v4959_v0 = vrot.slane %v4958_v30, 1  ;;  %v4965_v58 = vadd.f32 %v4964_v34, %v4963_v12  ;;  %v4984_v15 = vadd.f32 %v4983_v9, %v4982_v62 }
 0x426   : > { %v5000_v45 = vadd.f32 %v4999_v54, %v4998_v25  ;;  %v8319_v10 = vpop.f32.mrb[131].mxu0  ;;  %v5131_v38 = vmul.f32 0.033333335, %v4911_v32  ;;  %v4980_v50 = vrot.slane %v4979_v8, 1  ;;  %v5005_v1 = vadd.f32 %v5004_v56, %v5003_v40 }
 0x427   : > { %v4989_v39 = vsel %vm833_vm0, %v4587_v24, 0.0  ;;  %v8323_v44 = vmul.f32 0.033333335, %v8270_v31  ;;  %v4960_v49 = vadd.f32 %v4959_v0, %v4958_v30  ;;  %v4966_v19 = vrot.slane %v4965_v58, 1  ;;  %v7063_v0 = vld [vmem:[%s7260_s23 + $0x20] sm:$0xff] }
 0x428   : > { %v4985_v3 = vrot.slane %v4984_v15, 2  ;;  %v8325_v46 = vmul.f32 0.033333335, %v4953_v61  ;;  %v8327_v33 = vmul.f32 0.033333335, %v4974_v22  ;;  %v5006_v6 = vrot.slane %v5005_v1, 2 }
 0x429   : > { %v4990_v2 = vrot.slane %v4989_v39, 4  ;;  %v8329_v27 = vadd.f32 %v4980_v50, %v4979_v8  ;;  %v5001_v7 = vrot.slane %v5000_v45, 1  ;;  %v5133_v35 = vmul.f32 0.033333335, %v8264_v42 }
 0x42a   : > { %v4986_v32 = vadd.f32 %v4985_v3, %v4984_v15  ;;  %v5007_v26 = vadd.f32 %v5006_v6, %v5005_v1  ;;  %v5258_v31 = vsel %vm5224_vm3, %v8236_v13, %v8226_v20  ;;  %v4608_v61 = vadd.f32 %v8300_v36, %v8241_v63 }
 0x42b   : > { %v4991_v11 = vadd.f32 %v4990_v2, %v4989_v39  ;;  %v8337_v51 = vmul.f32 0.033333335, %v4960_v49  ;;  %v4967_v16 = vadd.f32 %v4966_v19, %v4965_v58  ;;  %v5259_v25 = vsel %vm5226_vm4, %v8238_v28, %v5258_v31 }
 0x42c   : > { %v4987_v12 = vrot.slane %v4986_v32, 1  ;;  %v5008_v4 = vrot.slane %v5007_v26, 1  ;;  %v5260_v42 = vsel %vm5228_vm5, %v8247_v29, %v5259_v25  ;;  %v5024_v62 = vsel %vm833_vm0, %v4608_v61, 0.0 }
 0x42d   : > { %v4992_v21 = vrot.slane %v4991_v11, 2  ;;  %v5261_v20 = vsel %vm5230_vm6, %v5131_v38, %v5260_v42  ;;  %v5025_v13 = vrot.slane %v5024_v62, 4  ;;  %v4600_v63 = vadd.f32 %v8300_v36, %v8245_v14 }
 0x42e   : > { %v4988_v40 = vadd.f32 %v4987_v12, %v4986_v32  ;;  %v5002_v30 = vadd.f32 %v5001_v7, %v5000_v45  ;;  %v5262_v28 = vsel %vm5232_vm7, %v8243_v47, %v5261_v20  ;;  %v4611_v54 = vadd.f32 %v8300_v36, %v8252_v17 }
 0x42f   : > { %v4993_v34 = vadd.f32 %v4992_v21, %v4991_v11  ;;  %v5009_v9 = vadd.f32 %v5008_v4, %v5007_v26  ;;  %v5263_v29 = vsel %vm5234_vm8, %v5133_v35, %v5262_v28  ;;  %v5026_v22 = vadd.f32 %v5025_v13, %v5024_v62 }
 0x430   : > { %v5010_v8 = vsel %vm833_vm0, %v4600_v63, 0.0  ;;  %v5142_v56 = vmul.f32 0.033333335, %v4988_v40  ;;  %v8354_v58 = vadd.f32 %v7063_v0, %v5263_v29  ;;  %v5031_v15 = vsel %vm833_vm0, %v4611_v54, 0.0 }
 0x431   : > { %v4994_v24 = vrot.slane %v4993_v34, 1  ;;  %v5011_v14 = vrot.slane %v5010_v8, 4  ;;  %v5027_v45 = vrot.slane %v5026_v22, 2  ;;  %v4603_v47 = vadd.f32 %v8300_v36, %v8256_v41 }
 0x432   : > { %v4624_v17 = vadd.f32 %v8300_v36, %v8277_v18  ;;  %v5315_v50 = vsel %vm833_vm0, %v8354_v58, 0.0  ;;  %v5032_v39 = vrot.slane %v5031_v15, 4  ;;  %v4616_v6 = vadd.f32 %v8300_v36, %v8283_v59 }
 0x433   : > { %v4995_v38 = vadd.f32 %v4994_v24, %v4993_v34  ;;  %v5012_v1 = vadd.f32 %v5011_v14, %v5010_v8  ;;  %5316 = vadd.xlane.f32.xlu1 %v5315_v50  ;;  %v5028_v49 = vadd.f32 %v5027_v45, %v5026_v22  ;;  %v5017_v19 = vsel %vm833_vm0, %v4603_v47, 0.0 }
 0x434   : > { %v5052_v3 = vsel %vm833_vm0, %v4624_v17, 0.0  ;;  %v5033_v7 = vadd.f32 %v5032_v39, %v5031_v15  ;;  %v5018_v32 = vrot.slane %v5017_v19, 4  ;;  %v5038_v26 = vsel %vm833_vm0, %v4616_v6, 0.0 }
 0x435   : > { %v5143_v2 = vmul.f32 0.033333335, %v4995_v38  ;;  %v5013_v41 = vrot.slane %v5012_v1, 2  ;;  %v5029_v18 = vrot.slane %v5028_v49, 1  ;;  %v5053_v35 = vrot.slane %v5052_v3, 4 }
 0x436   : > { %v4627_v11 = vadd.f32 %v8300_v36, %v8290_v57  ;;  %v5034_v12 = vrot.slane %v5033_v7, 2  ;;  %v5019_v25 = vadd.f32 %v5018_v32, %v5017_v19  ;;  %v5039_v59 = vrot.slane %v5038_v26, 4 }
 0x437   : > { %v8371_v31 = vsel %vm5222_vm2, %v5143_v2, %v5142_v56  ;;  %v5014_v61 = vadd.f32 %v5013_v41, %v5012_v1  ;;  %v5030_v4 = vadd.f32 %v5029_v18, %v5028_v49  ;;  %v5054_v21 = vadd.f32 %v5053_v35, %v5052_v3 }
 0x438   : > { %v5059_v42 = vsel %vm833_vm0, %v4627_v11, 0.0  ;;  %v5035_v40 = vadd.f32 %v5034_v12, %v5033_v7  ;;  %v5020_v20 = vrot.slane %v5019_v25, 2  ;;  %v5139_v63 = vmul.f32 0.033333335, %v4967_v16 }
 0x439   : > { %v5015_v62 = vrot.slane %v5014_v61, 1  ;;  %v5060_v13 = vrot.slane %v5059_v42, 4  ;;  %v5055_v34 = vrot.slane %v5054_v21, 2  ;;  %v5040_v28 = vadd.f32 %v5039_v59, %v5038_v26 }
 0x43a   : > { %v4619_v57 = vadd.f32 %v8300_v36, %v8293_v60  ;;  %v5144_v54 = vmul.f32 0.033333335, %v5002_v30  ;;  %v5145_v29 = vmul.f32 0.033333335, %v5009_v9  ;;  %v5021_v22 = vadd.f32 %v5020_v20, %v5019_v25 }
 0x43b   : > { %v5061_v8 = vadd.f32 %v5060_v13, %v5059_v42  ;;  %v8376_v56 = vmul.f32 0.033333335, %v5030_v4  ;;  %v5056_v24 = vadd.f32 %v5055_v34, %v5054_v21  ;;  %v5041_v0 = vrot.slane %v5040_v28, 2 }
 0x43c   : > { %v5045_v14 = vsel %vm833_vm0, %v4619_v57, 0.0  ;;  %v5016_v45 = vadd.f32 %v5015_v62, %v5014_v61  ;;  %v5036_v15 = vrot.slane %v5035_v40, 1  ;;  %v5022_v47 = vrot.slane %v5021_v22, 1  ;;  %v7064_v61 = vld [vmem:[%s7260_s23 + $0x28] sm:$0xff] }
 0x43d   : > { %v5062_v17 = vrot.slane %v5061_v8, 2  ;;  %v5057_v16 = vrot.slane %v5056_v24, 1  ;;  %v5042_v38 = vadd.f32 %v5041_v0, %v5040_v28  ;;  %v5046_v50 = vrot.slane %v5045_v14, 4 }
 0x43e   : > { %v5265_v60 = vsel %vm5224_vm3, %v8323_v44, %v8307_v52  ;;  %v5023_v30 = vadd.f32 %v5022_v47, %v5021_v22  ;;  %v4640_v39 = vadd.f32 %v8300_v36, %v8311_v5  ;;  %v5141_v3 = vmul.f32 0.033333335, %v8329_v27 }
 0x43f   : > { %v5063_v9 = vadd.f32 %v5062_v17, %v5061_v8  ;;  %v5266_v1 = vsel %vm5226_vm4, %v8325_v46, %v5265_v60  ;;  %v5058_v49 = vadd.f32 %v5057_v16, %v5056_v24  ;;  %v5047_v19 = vadd.f32 %v5046_v50, %v5045_v14 }
 0x440   : > { %v5267_v6 = vsel %vm5228_vm5, %v8337_v51, %v5266_v1  ;;  %v5146_v2 = vmul.f32 0.033333335, %v5016_v45  ;;  %v5043_v41 = vrot.slane %v5042_v38, 1  ;;  %v5080_v44 = vsel %vm833_vm0, %v4640_v39, 0.0 }
 0x441   : > { %v5268_v52 = vsel %vm5230_vm6, %v5139_v63, %v5267_v6  ;;  %v5037_v7 = vadd.f32 %v5036_v15, %v5035_v40  ;;  %v5147_v32 = vmul.f32 0.033333335, %v5023_v30  ;;  %v5048_v46 = vrot.slane %v5047_v19, 2 }
 0x442   : > { %v5269_v5 = vsel %vm5232_vm7, %v8327_v33, %v5268_v52  ;;  %v5064_v18 = vrot.slane %v5063_v9, 1  ;;  %v5081_v27 = vrot.slane %v5080_v44, 4  ;;  %v4632_v26 = vadd.f32 %v8300_v36, %v8313_v37 }
 0x443   : > { %v5270_v35 = vsel %vm5234_vm8, %v5141_v3, %v5269_v5  ;;  %v5152_v51 = vmul.f32 0.033333335, %v5058_v49  ;;  %v5049_v11 = vadd.f32 %v5048_v46, %v5047_v19  ;;  %v4643_v25 = vadd.f32 %v8300_v36, %v8317_v53  ;;  %v7065_v19 = vld [vmem:[%s7260_s23 + $0x30] sm:$0xff] }
 0x444   : > { %v8397_v12 = vadd.f32 %v7064_v61, %v5270_v35  ;;  %v5044_v4 = vadd.f32 %v5043_v41, %v5042_v38  ;;  %v5082_v21 = vadd.f32 %v5081_v27, %v5080_v44  ;;  %v5066_v59 = vsel %vm833_vm0, %v4632_v26, 0.0  ;;  %v7066_v61 = vld [vmem:[%s7260_s23 + $0x38] sm:$0xff] }
 0x445   : > { %v4635_v33 = vadd.f32 %v8300_v36, %v8319_v10  ;;  %v5050_v42 = vrot.slane %v5049_v11, 1  ;;  %v5067_v37 = vrot.slane %v5066_v59, 4  ;;  %v5087_v40 = vsel %vm833_vm0, %v4643_v25, 0.0 }
 0x446   : > { %v5318_v62 = vsel %vm833_vm0, %v8397_v12, 0.0  ;;  %v5065_v20 = vadd.f32 %v5064_v18, %v5063_v9  ;;  %v5083_v13 = vrot.slane %v5082_v21, 2  ;;  %v5088_v63 = vrot.slane %v5087_v40, 4 }
 0x447   : > { %5319 = vadd.xlane.f32.xlu0 %v5318_v62  ;;  %v5073_v53 = vsel %vm833_vm0, %v4635_v33, 0.0  ;;  %v5051_v34 = vadd.f32 %v5050_v42, %v5049_v11  ;;  %v5068_v28 = vadd.f32 %v5067_v37, %v5066_v59  ;;  %v5272_v22 = vsel %vm5224_vm3, %v5144_v54, %v8371_v31 }
 0x448   : > { %v5074_v57 = vrot.slane %v5073_v53, 4  ;;  %v5150_v36 = vmul.f32 0.033333335, %v5044_v4  ;;  %v5084_v10 = vadd.f32 %v5083_v13, %v5082_v21  ;;  %v5089_v8 = vadd.f32 %v5088_v63, %v5087_v40 }
 0x449   : > { %v5273_v24 = vsel %vm5226_vm4, %v5145_v29, %v5272_v22  ;;  %v5151_v0 = vmul.f32 0.033333335, %v5051_v34  ;;  %v5069_v14 = vrot.slane %v5068_v28, 2  ;;  %v5153_v47 = vmul.f32 0.033333335, %v5065_v20 }
 0x44a   : > { %v5075_v45 = vadd.f32 %v5074_v57, %v5073_v53  ;;  %v5274_v15 = vsel %vm5228_vm5, %v5146_v2, %v5273_v24  ;;  %v5090_v17 = vrot.slane %v5089_v8, 2  ;;  %v5149_v16 = vmul.f32 0.033333335, %v5037_v7 }
 0x44b   : > { %v5275_v38 = vsel %vm5230_vm6, %v5147_v32, %v5274_v15  ;;  %v5278_v50 = vsel %vm5222_vm2, %v5151_v0, %v5150_v36  ;;  %v5070_v60 = vadd.f32 %v5069_v14, %v5068_v28  ;;  %v5085_v30 = vrot.slane %v5084_v10, 1 }
 0x44c   : > { %v5076_v31 = vrot.slane %v5075_v45, 2  ;;  %v5276_v54 = vsel %vm5232_vm7, %v8376_v56, %v5275_v38  ;;  %v5091_v29 = vadd.f32 %v5090_v17, %v5089_v8  ;;  %v5279_v1 = vsel %vm5224_vm3, %v5152_v51, %v5278_v50 }
 0x44d   : > { %v5277_v9 = vsel %vm5234_vm8, %v5149_v16, %v5276_v54  ;;  %v5071_v39 = vrot.slane %v5070_v60, 1  ;;  %v5280_v6 = vsel %vm5226_vm4, %v5153_v47, %v5279_v1  ;;  %v5086_v44 = vadd.f32 %v5085_v30, %v5084_v10 }
 0x44e   : > { %v5077_v49 = vadd.f32 %v5076_v31, %v5075_v45  ;;  %v8419_v3 = vadd.f32 %v7065_v19, %v5277_v9  ;;  %v5092_v2 = vrot.slane %v5091_v29, 1 }
 0x44f   : > { %v5072_v41 = vadd.f32 %v5071_v39, %v5070_v60  ;;  %v5156_v35 = vmul.f32 0.033333335, %v5086_v44 }
 0x450   : > { %v5078_v52 = vrot.slane %v5077_v49, 1  ;;  %v5321_v56 = vsel %vm833_vm0, %v8419_v3, 0.0  ;;  %v5093_v32 = vadd.f32 %v5092_v2, %v5091_v29  ;;  %v6985_v29 = vld [vmem:[%s8710_s16 + $0x8] sm:$0xff]  }
 0x451   : > { %5322 = vadd.xlane.f32.xlu1 %v5321_v56  ;;  %v5154_v7 = vmul.f32 0.033333335, %v5072_v41 }
 0x452   : > { %v5079_v46 = vadd.f32 %v5078_v52, %v5077_v49  ;;  %v5157_v27 = vmul.f32 0.033333335, %v5093_v32  ;;  %v6987_v32 = vld [vmem:[%s8712_s18 + $0x8] sm:$0xff]  }
 0x453   : > { %v5281_v18 = vsel %vm5228_vm5, %v5154_v7, %v5280_v6  ;;  %v6986_v7 = vld [vmem:[%s8712_s18] sm:$0xff]  }
 0x454   : > { %v5155_v5 = vmul.f32 0.033333335, %v5079_v46  ;;  %6836 = vmatprep.subr.bf16.mxu0 %v6986_v7 }
 0x455   : > { %6837 = vmatpush3.bf16.msra.mxu0 %v6986_v7 }
 0x456   : > { %v5282_v26 = vsel %vm5230_vm6, %v5155_v5, %v5281_v18  ;;  %6838 = vmatprep.subr.bf16.mxu0 %v6987_v32 }
 0x457   : > { %v5283_v51 = vsel %vm5232_vm7, %v5156_v35, %v5282_v26 }
 0x458   : > { %v5284_v11 = vsel %vm5234_vm8, %v5157_v27, %v5283_v51  ;;  %v6988_v27 = vld [vmem:[%s8712_s18 + $0x10] sm:$0xff]  }
 0x459   : > { %v5300_v25 = vadd.f32 %v7066_v61, %v5284_v11  ;;  %6839 = vmatpush3.bf16.msra.mxu0 %v6987_v32  ;;  %v6989_v61 = vld [vmem:[%s8712_s18 + $0x18] sm:$0xff]  }
 0x45a   : > { %6840 = vmatprep.subr.bf16.mxu0 %v6988_v27 }
 0x45b   : > { %v5324_v4 = vsel %vm833_vm0, %v5300_v25, 0.0 }
 0x45c   : > { %5325 = vadd.xlane.f32.xlu0 %v5324_v4  ;;  %v6990_v4 = vld [vmem:[%s8712_s18 + $0x20] sm:$0xff]  }
 0x45d   : > { %6841 = vmatpush3.bf16.msra.mxu0 %v6988_v27 }
 0x45e   : > { %6842 = vmatprep.subr.bf16.mxu0 %v6989_v61 }
 0x461   : > { %6843 = vmatpush3.bf16.msra.mxu0 %v6989_v61 }
 0x462   : > { %6844 = vmatprep.subr.bf16.mxu0 %v6990_v4 }
 0x465   : > { %6845 = vmatpush3.bf16.msra.mxu0 %v6990_v4 }
 0x46d   : > { %v5305_v21 = vpop.xlane.xlu0 %5304 }
 0x46e   : > { %v5328_v59 = vmul.f32 0.03125, %v5305_v21  ;;  %v8501_v21 = vld [vmem:[%s8708_s14] ss:$0 sm:$0xff] }
 0x470   : > { %v8431_v33 = vsub.f32 %v8067_v55, %v5328_v59  ;;  %v6984_v55 = vld [vmem:[%s8710_s16] sm:$0xff]  }
 0x471   : > { %6824 = vmatprep.subr.bf16.mxu1 %v6984_v55 }
 0x472   : > { %v5344_v42 = vmul.f32 %v8431_v33, %v8431_v33  ;;  %6825 = vmatpush3.bf16.msra.mxu1 %v6984_v55  ;;  %v8513_v55 = vld [vmem:[%s8709_s15] ss:$0 sm:$0xff] }
 0x473   : > { %6826 = vmatprep.subr.bf16.mxu1 %v6985_v29 }
 0x474   : > { %v5352_v62 = vsel %vm833_vm0, %v5344_v42, 0.0 }
 0x475   : > { %5353 = vadd.xlane.f32.xlu1 %v5352_v62  ;;  %v5462_v62 = vmul.f32 %v8501_v21, %v8431_v33 }
 0x476   : > { %6827 = vmatpush3.bf16.msra.mxu1 %v6985_v29 }
 0x483   : > { %v5308_v37 = vpop.xlane.xlu1 %5307 }
 0x484   : > { %v5329_v40 = vmul.f32 0.03125, %v5308_v37  ;;  %v6991_v37 = vld [vmem:[%s8712_s18 + $0x28] sm:$0xff]  }
 0x485   : > { %6846 = vmatprep.subr.bf16.mxu0 %v6991_v37 }
 0x486   : > { %v8437_v20 = vsub.f32 %v8124_v23, %v5329_v40  ;;  %6847 = vmatpush3.bf16.msra.mxu0 %v6991_v37 }
 0x488   : > { %v5345_v13 = vmul.f32 %v8437_v20, %v8437_v20  ;;  %v5463_v40 = vmul.f32 %v8501_v21, %v8437_v20 }
 0x48a   : > { %v5355_v63 = vsel %vm833_vm0, %v5345_v13, 0.0 }
 0x48b   : > { %5356 = vadd.xlane.f32.xlu0 %v5355_v63 }
 0x499   : > { %v5311_v53 = vpop.xlane.xlu0 %5310 }
 0x49a   : > { %v5330_v34 = vmul.f32 0.03125, %v5311_v53 }
 0x49c   : > { %v8446_v28 = vsub.f32 %v8208_v48, %v5330_v34 }
 0x49e   : > { %v5346_v23 = vmul.f32 %v8446_v28, %v8446_v28 }
 0x4a0   : > { %v5358_v57 = vsel %vm833_vm0, %v5346_v23, 0.0 }
 0x4a1   : > { %5359 = vadd.xlane.f32.xlu1 %v5358_v57 }
 0x4ab   : > { %v5314_v22 = vpop.xlane.xlu0 %5313 }
 0x4ac   : > { %v5331_v36 = vmul.f32 0.03125, %v5314_v22 }
 0x4ae   : > { %v8452_v10 = vsub.f32 %v8273_v43, %v5331_v36 }
 0x4b0   : > { %v5347_v8 = vmul.f32 %v8452_v10, %v8452_v10 }
 0x4b2   : > { %v5361_v24 = vsel %vm833_vm0, %v5347_v8, 0.0 }
 0x4b3   : > { %5362 = vadd.xlane.f32.xlu0 %v5361_v24 }
 0x4c0   : > { %v5317_v0 = vpop.xlane.xlu1 %5316 }
 0x4c1   : > { %v5332_v48 = vmul.f32 0.03125, %v5317_v0 }
 0x4c3   : > { %v8458_v14 = vsub.f32 %v8354_v58, %v5332_v48 }
 0x4c5   : > { %v5348_v45 = vmul.f32 %v8458_v14, %v8458_v14  ;;  %v5466_v4 = vmul.f32 %v8501_v21, %v8458_v14 }
 0x4c7   : > { %v5364_v15 = vsel %vm833_vm0, %v5348_v45, 0.0 }
 0x4c8   : > { %5365 = vadd.xlane.f32.xlu1 %v5364_v15 }
 0x4d4   : > { %v5320_v47 = vpop.xlane.xlu0 %5319 }
 0x4d5   : > { %v5333_v43 = vmul.f32 0.03125, %v5320_v47 }
 0x4d7   : > { %v8464_v17 = vsub.f32 %v8397_v12, %v5333_v43 }
 0x4d9   : > { %v5349_v16 = vmul.f32 %v8464_v17, %v8464_v17 }
 0x4db   : > { %v5367_v38 = vsel %vm833_vm0, %v5349_v16, 0.0 }
 0x4dc   : > { %5368 = vadd.xlane.f32.xlu0 %v5367_v38 }
 0x4de   : > { %v5323_v50 = vpop.xlane.xlu1 %5322 }
 0x4df   : > { %v5334_v58 = vmul.f32 0.03125, %v5323_v50 }
 0x4e1   : > { %v8470_v60 = vsub.f32 %v8419_v3, %v5334_v58 }
 0x4e3   : > { %v5350_v31 = vmul.f32 %v8470_v60, %v8470_v60 }
 0x4e5   : > { %v5370_v54 = vsel %vm833_vm0, %v5350_v31, 0.0 }
 0x4e6   : > { %5371 = vadd.xlane.f32.xlu1 %v5370_v54  ;;  %v5464_v54 = vmul.f32 %v8501_v21, %v8446_v28 }
 0x4e9   : > { %v5326_v30 = vpop.xlane.xlu0 %5325 }
 0x4ea   : > { %v5335_v12 = vmul.f32 0.03125, %v5326_v30  ;;  %v5465_v30 = vmul.f32 %v8501_v21, %v8452_v10 }
 0x4ec   : > { %v8478_v9 = vsub.f32 %v5300_v25, %v5335_v12 }
 0x4ee   : > { %v5351_v1 = vmul.f32 %v8478_v9, %v8478_v9 }
 0x4f0   : > { %v5373_v39 = vsel %vm833_vm0, %v5351_v1, 0.0 }
 0x4f1   : > { %5374 = vadd.xlane.f32.xlu0 %v5373_v39 }
 0x502   : > { %v5354_v49 = vpop.xlane.xlu1 %5353 }
 0x503   : > { %v5376_v19 = vmul.f32 0.032258064, %v5354_v49 }
 0x505   : > { %6994 = vrsqrt.f32 %v5376_v19  ;;  %vm5386_vm9 = vcmp.eq.f32.partialorder %v5376_v19, inf  ;;  %v5389_v56 = vand.u32 2147483648, %v5376_v19  ;;  %vm5388_vm10 = vcmp.eq.f32.partialorder %v5376_v19, 0.0 }
 0x50f   : > { %v6995_v3 = vpop.eup %6994 }
 0x510   : > { %v5385_v41 = vmul.f32 %v6995_v3, %v5376_v19 }
 0x512   : > { %v5387_v52 = vsel %vm5386_vm9, %v5376_v19, %v5385_v41 }
 0x513   : > { %v5390_v44 = vsel %vm5388_vm10, %v5389_v56, %v5387_v52 }
 0x514   : > { %v5440_v46 = vadd.f32 1e-06, %v5390_v44 }
 0x518   : > { %v5357_v6 = vpop.xlane.xlu0 %5356 }
 0x519   : > { %v5377_v2 = vmul.f32 0.032258064, %v5357_v6 }
 0x51b   : > { %6996 = vrsqrt.f32 %v5377_v2  ;;  %vm5393_vm11 = vcmp.eq.f32.partialorder %v5377_v2, inf  ;;  %v5396_v35 = vand.u32 2147483648, %v5377_v2  ;;  %vm5395_vm12 = vcmp.eq.f32.partialorder %v5377_v2, 0.0 }
 0x51c   : > { %6998 = vrcp.f32 %v5440_v46 }
 0x525   : > { %v6997_v5 = vpop.eup %6996 }
 0x526   : > { %v5392_v18 = vmul.f32 %v6997_v5, %v5377_v2  ;;  %v6999_v59 = vpop.eup %6998 }
 0x527   : > { %v5470_v13 = vmul.f32 %v6999_v59, %v5462_v62  ;;  %v5467_v62 = vmul.f32 %v8501_v21, %v8464_v17 }
 0x528   : > { %v5394_v26 = vsel %vm5393_vm11, %v5377_v2, %v5392_v18 }
 0x529   : > { %v5397_v51 = vsel %vm5395_vm12, %v5396_v35, %v5394_v26  ;;  %v8516_v33 = vadd.f32 %v8513_v55, %v5470_v13 }
 0x52a   : > { %v5441_v11 = vadd.f32 1e-06, %v5397_v51 }
 0x52c   : > { %7000 = vrcp.f32 %v5441_v11 }
 0x52e   : > { %v5360_v25 = vpop.xlane.xlu1 %5359 }
 0x52f   : > { %v5378_v42 = vmul.f32 0.032258064, %v5360_v25 }
 0x531   : > { %7002 = vrsqrt.f32 %v5378_v42  ;;  %vm5400_vm13 = vcmp.eq.f32.partialorder %v5378_v42, inf  ;;  %v5403_v24 = vand.u32 2147483648, %v5378_v42  ;;  %vm5402_vm14 = vcmp.eq.f32.partialorder %v5378_v42, 0.0 }
 0x536   : > { %v7001_v63 = vpop.eup %7000 }
 0x537   : > { %v5471_v53 = vmul.f32 %v7001_v63, %v5463_v40 }
 0x539   : > { %v8519_v34 = vadd.f32 %v8513_v55, %v5471_v53 }
 0x53b   : > { %v5492_v20 = vpack.c.bf16 %v8519_v34, %v8516_v33  ;;  %v7003_v23 = vpop.eup %7002 }
 0x53c   : > { %v5399_v36 = vmul.f32 %v7003_v23, %v5378_v42 }
 0x53d   : > { %6828 = vmatprep.mubr.msk.bf16.mxu1 %vm833_vm0, %v5492_v20 }
 0x53e   : > { %v5401_v8 = vsel %vm5400_vm13, %v5378_v42, %v5399_v36 }
 0x53f   : > { %v5404_v0 = vsel %vm5402_vm14, %v5403_v24, %v5401_v8 }
 0x540   : > { %v5363_v57 = vpop.xlane.xlu0 %5362  ;;  %v5442_v48 = vadd.f32 1e-06, %v5404_v0 }
 0x541   : > { %v5379_v22 = vmul.f32 0.032258064, %v5363_v57 }
 0x543   : > { %7004 = vrsqrt.f32 %v5379_v22  ;;  %vm5407_vm15 = vcmp.eq.f32.partialorder %v5379_v22, inf  ;;  %v5410_v47 = vand.u32 2147483648, %v5379_v22  ;;  %vm5409_vm1 = vcmp.eq.f32.partialorder %v5379_v22, 0.0 }
 0x544   : > { %7006 = vrcp.f32 %v5442_v48  ;;  %v5468_v48 = vmul.f32 %v8501_v21, %v8470_v60  ;;  %v6992_v60 = vld [vmem:[%s8712_s18 + $0x30] sm:$0xff]  }
 0x545   : > { %6848 = vmatprep.subr.bf16.mxu0 %v6992_v60 }
 0x546   : > { %6849 = vmatpush3.bf16.msra.mxu0 %v6992_v60 }
 0x54d   : > { %v7005_v45 = vpop.eup %7004 }
 0x54e   : > { %v5406_v15 = vmul.f32 %v7005_v45, %v5379_v22  ;;  %v7007_v31 = vpop.eup %7006  ;;  %v5469_v45 = vmul.f32 %v8501_v21, %v8478_v9  ;;  %v6993_v9 = vld [vmem:[%s8712_s18 + $0x38] sm:$0xff]   ;;  %v6354_v21 = vld [vmem:[%s8711_s17] ss:$0 sm:$0xff] }
 0x54f   : > { %v5472_v12 = vmul.f32 %v7007_v31, %v5464_v54  ;;  %6850 = vmatprep.subr.bf16.mxu0 %v6993_v9 }
 0x550   : > { %v5408_v43 = vsel %vm5407_vm15, %v5379_v22, %v5406_v15  ;;  %6851 = vmatpush3.bf16.msra.mxu0 %v6993_v9 }
 0x551   : > { %v5411_v16 = vsel %vm5409_vm1, %v5410_v47, %v5408_v43  ;;  %v8529_v39 = vadd.f32 %v8513_v55, %v5472_v12 }
 0x552   : > { %v5443_v38 = vadd.f32 1e-06, %v5411_v16 }
 0x554   : > { %7008 = vrcp.f32 %v5443_v38 }
 0x555   : > { %v5366_v50 = vpop.xlane.xlu1 %5365 }
 0x556   : > { %v5380_v58 = vmul.f32 0.032258064, %v5366_v50 }
 0x558   : > { %7010 = vrsqrt.f32 %v5380_v58  ;;  %vm5414_vm2 = vcmp.eq.f32.partialorder %v5380_v58, inf  ;;  %v5417_v41 = vand.u32 2147483648, %v5380_v58  ;;  %vm5416_vm3 = vcmp.eq.f32.partialorder %v5380_v58, 0.0 }
 0x55e   : > { %v7009_v29 = vpop.eup %7008 }
 0x55f   : > { %v5473_v1 = vmul.f32 %v7009_v29, %v5465_v30 }
 0x561   : > { %v8532_v49 = vadd.f32 %v8513_v55, %v5473_v1 }
 0x562   : > { %v7011_v3 = vpop.eup %7010 }
 0x563   : > { %v5493_v19 = vpack.c.bf16 %v8532_v49, %v8529_v39  ;;  %v5413_v2 = vmul.f32 %v7011_v3, %v5380_v58 }
 0x565   : > { %6829 = vmatmul.mubr.msk.bf16.vlgmr.msra.gmra.mrb[68].mxu1 %vm833_vm0, %v5493_v19  ;;  %v5415_v10 = vsel %vm5414_vm2, %v5380_v58, %v5413_v2 }
 0x566   : > { %v5418_v52 = vsel %vm5416_vm3, %v5417_v41, %v5415_v10 }
 0x567   : > { %v5444_v7 = vadd.f32 1e-06, %v5418_v52 }
 0x569   : > { %v5369_v28 = vpop.xlane.xlu0 %5368 }
 0x56a   : > { %v5381_v6 = vmul.f32 0.032258064, %v5369_v28 }
 0x56c   : > { %7012 = vrsqrt.f32 %v5381_v6  ;;  %vm5421_vm4 = vcmp.eq.f32.partialorder %v5381_v6, inf  ;;  %v5424_v5 = vand.u32 2147483648, %v5381_v6  ;;  %vm5423_vm5 = vcmp.eq.f32.partialorder %v5381_v6, 0.0 }
 0x573   : > { %v5372_v56 = vpop.xlane.xlu1 %5371 }
 0x574   : > { %v5382_v44 = vmul.f32 0.032258064, %v5372_v56 }
 0x576   : > { %v7013_v32 = vpop.eup %7012  ;;  %7014 = vrsqrt.f32 %v5382_v44  ;;  %vm5428_vm6 = vcmp.eq.f32.partialorder %v5382_v44, inf  ;;  %v5431_v42 = vand.u32 2147483648, %v5382_v44  ;;  %vm5430_vm7 = vcmp.eq.f32.partialorder %v5382_v44, 0.0 }
 0x577   : > { %v5420_v46 = vmul.f32 %v7013_v32, %v5381_v6  ;;  %7016 = vrcp.f32 %v5444_v7 }
 0x579   : > { %v5422_v18 = vsel %vm5421_vm4, %v5381_v6, %v5420_v46 }
 0x57a   : > { %v5425_v35 = vsel %vm5423_vm5, %v5424_v5, %v5422_v18 }
 0x57b   : > { %v5445_v27 = vadd.f32 1e-06, %v5425_v35 }
 0x57d   : > { %7018 = vrcp.f32 %v5445_v27 }
 0x57e   : > { %v5375_v26 = vpop.xlane.xlu0 %5374 }
 0x57f   : > { %v5383_v51 = vmul.f32 0.032258064, %v5375_v26 }
 0x580   : > { %v7015_v11 = vpop.eup %7014 }
 0x581   : > { %v5427_v61 = vmul.f32 %v7015_v11, %v5382_v44  ;;  %7020 = vrsqrt.f32 %v5383_v51  ;;  %v7017_v25 = vpop.eup %7016  ;;  %vm5435_vm8 = vcmp.eq.f32.partialorder %v5383_v51, inf  ;;  %v5438_v36 = vand.u32 2147483648, %v5383_v51 }
 0x582   : > { %v5474_v37 = vmul.f32 %v7017_v25, %v5466_v4  ;;  %vm5437_vm9 = vcmp.eq.f32.partialorder %v5383_v51, 0.0 }
 0x583   : > { %v5429_v59 = vsel %vm5428_vm6, %v5382_v44, %v5427_v61  ;;  %v6361_v61 = vld [vmem:[%s8713_s19] ss:$0 sm:$0xff] }
 0x584   : > { %v5432_v13 = vsel %vm5430_vm7, %v5431_v42, %v5429_v59  ;;  %v8542_v20 = vadd.f32 %v8513_v55, %v5474_v37 }
 0x585   : > { %v5446_v53 = vadd.f32 1e-06, %v5432_v13 }
 0x587   : > { %v7019_v40 = vpop.eup %7018  ;;  %7022 = vrcp.f32 %v5446_v53 }
 0x588   : > { %v5475_v63 = vmul.f32 %v7019_v40, %v5467_v62 }
 0x58a   : > { %v8545_v23 = vadd.f32 %v8513_v55, %v5475_v63 }
 0x58b   : > { %v7021_v57 = vpop.eup %7020 }
 0x58c   : > { %v5434_v22 = vmul.f32 %v7021_v57, %v5383_v51  ;;  %v5494_v14 = vpack.c.bf16 %v8545_v23, %v8542_v20 }
 0x58e   : > { %v5436_v17 = vsel %vm5435_vm8, %v5383_v51, %v5434_v22  ;;  %6832 = vmatprep.mubr.msk.bf16.mxu1 %vm833_vm0, %v5494_v14 }
 0x58f   : > { %v5439_v8 = vsel %vm5437_vm9, %v5438_v36, %v5436_v17 }
 0x590   : > { %v5447_v24 = vadd.f32 1e-06, %v5439_v8 }
 0x591   : > { %v7023_v0 = vpop.eup %7022 }
 0x592   : > { %7024 = vrcp.f32 %v5447_v24  ;;  %v5476_v15 = vmul.f32 %v7023_v0, %v5468_v48 }
 0x594   : > { %v8555_v16 = vadd.f32 %v8513_v55, %v5476_v15 }
 0x59c   : > { %v7025_v47 = vpop.eup %7024 }
 0x59d   : > { %v5477_v43 = vmul.f32 %v7025_v47, %v5469_v45 }
 0x59f   : > { %v8558_v38 = vadd.f32 %v8513_v55, %v5477_v43 }
 0x5a1   : > { %v5495_v50 = vpack.c.bf16 %v8558_v38, %v8555_v16 }
 0x5a3   : > { %6833 = vmatmul.mubr.msk.bf16.gmra.mrb[72].mxu1 %vm833_vm0, %v5495_v50 }
 0x638   : > { %v6830_v55 = vpop.f32.mrb[68].mxu1 }
 0x639   : > { %v5574_v58 = vadd.f32 %v6830_v55, %v6354_v21  ;;  %v5565_v31 = vpop.f32.mrb[69].mxu1 }
 0x63a   : > { %v5566_v54 = vadd.f32 %v6354_v21, %v5565_v31  ;;  %v6831_v30 = vpop.f32.mrb[70].mxu1 }
 0x63b   : > { %v5577_v12 = vadd.f32 %v6831_v30, %v6354_v21  ;;  %v5568_v29 = vpop.f32.mrb[71].mxu1  ;;  %v5598_v19 = vmax.f32 %v5574_v58, 0.0  ;;  %v7076_v58 = vmov 0  }
 0x63c   : > { %v5569_v1 = vadd.f32 %v6354_v21, %v5568_v29  ;;  %v5596_v28 = vmax.f32 %v5566_v54, 0.0  ;;  %6938 = vset.pattern.permute.xlu1 %v7076_v58  ;;  %6939 = vset.pattern.permute.xlu0 %v7076_v58 }
 0x63d   : > { %v5599_v3 = vmax.f32 %v5577_v12, 0.0 }
 0x63e   : > { %v5597_v6 = vmax.f32 %v5569_v1, 0.0 }
 0x63f   : > { %v5605_v2 = vpack.c.bf16 %v5599_v3, %v5598_v19 }
 0x640   : > { %v5604_v10 = vpack.c.bf16 %v5597_v6, %v5596_v28 }
 0x642   : > { %6852 = vmatprep.mubr.bf16.mxu0 %v5604_v10 }
 0x643   : > { %6853 = vmatmul.mubr.bf16.vlgmr.msra.gmra.mrb[132].mxu0 %v5605_v2 }
 0x676   : > { %v6834_v41 = vpop.f32.mrb[72].mxu1 }
 0x677   : > { %v5590_v52 = vadd.f32 %v6834_v41, %v6354_v21  ;;  %v5581_v56 = vpop.f32.mrb[73].mxu1 }
 0x678   : > { %v5582_v44 = vadd.f32 %v6354_v21, %v5581_v56  ;;  %v6835_v7 = vpop.f32.mrb[74].mxu1 }
 0x679   : > { %v5593_v32 = vadd.f32 %v6835_v7, %v6354_v21  ;;  %v5584_v46 = vpop.f32.mrb[75].mxu1  ;;  %v5602_v18 = vmax.f32 %v5590_v52, 0.0 }
 0x67a   : > { %v5585_v5 = vadd.f32 %v6354_v21, %v5584_v46  ;;  %v5600_v27 = vmax.f32 %v5582_v44, 0.0 }
 0x67b   : > { %v5603_v35 = vmax.f32 %v5593_v32, 0.0 }
 0x67c   : > { %v5601_v26 = vmax.f32 %v5585_v5, 0.0 }
 0x67d   : > { %v5607_v51 = vpack.c.bf16 %v5603_v35, %v5602_v18 }
 0x67e   : > { %v5606_v11 = vpack.c.bf16 %v5601_v26, %v5600_v27 }
 0x680   : > { %6856 = vmatprep.mubr.bf16.mxu0 %v5606_v11 }
 0x681   : > { %6857 = vmatmul.mubr.bf16.gmra.mrb[136].mxu0 %v5607_v51 }
 0x716   : > { %v6854_v25 = vpop.f32.mrb[132].mxu0 }
 0x717   : > { %v5722_v4 = vadd.f32 %v6854_v25, %v6361_v61  ;;  %v5713_v59 = vpop.f32.mrb[133].mxu0 }
 0x718   : > { %v5714_v42 = vadd.f32 %v6361_v61, %v5713_v59  ;;  %v6855_v62 = vpop.f32.mrb[134].mxu0 }
 0x719   : > { %v5725_v37 = vadd.f32 %v6855_v62, %v6361_v61  ;;  %v5716_v40 = vpop.f32.mrb[135].mxu0  ;;  %v5746_v13 = vadd.f32 %v5722_v4, %v8529_v39 }
 0x71a   : > { %v5717_v63 = vadd.f32 %v6361_v61, %v5716_v40  ;;  %v5744_v22 = vadd.f32 %v5714_v42, %v8516_v33 }
 0x71b   : > { %v5760_v53 = vsel %vm833_vm0, %v5746_v13, 0.0  ;;  %v5747_v57 = vadd.f32 %v5725_v37, %v8532_v49 }
 0x71c   : > { %5761 = vadd.xlane.f32.xlu1 %v5760_v53  ;;  %v5745_v36 = vadd.f32 %v5717_v63, %v8519_v34  ;;  %v5754_v17 = vsel %vm833_vm0, %v5744_v22, 0.0  ;;  %v5942_v53 = vld [vmem:[%s789_s30] sm:$0xff] }
 0x71d   : > { %v5763_v14 = vsel %vm833_vm0, %v5747_v57, 0.0 }
 0x71e   : > { %5764 = vadd.xlane.f32.xlu0 %v5763_v14  ;;  %v5757_v8 = vsel %vm833_vm0, %v5745_v36, 0.0  ;;  %v5945_v14 = vld [vmem:[%s789_s30 + $0x18] sm:$0xff] }
 0x720   : > { %5755 = vadd.xlane.f32.xlu1 %v5754_v17  ;;  %v5947_v17 = vld [vmem:[%s789_s30 + $0x28] sm:$0xff] }
 0x722   : > { %5758 = vadd.xlane.f32.xlu0 %v5757_v8  ;;  %v5948_v8 = vld [vmem:[%s789_s30 + $0x30] sm:$0xff] }
 0x754   : > { %v6858_v39 = vpop.f32.mrb[136].mxu0 }
 0x755   : > { %v5738_v24 = vadd.f32 %v6858_v39, %v6361_v61  ;;  %v5729_v0 = vpop.f32.mrb[137].mxu0  ;;  %v5949_v39 = vld [vmem:[%s789_s30 + $0x38] sm:$0xff] }
 0x756   : > { %v5730_v48 = vadd.f32 %v6361_v61, %v5729_v0  ;;  %v6859_v45 = vpop.f32.mrb[138].mxu0 }
 0x757   : > { %v5741_v49 = vadd.f32 %v6859_v45, %v6361_v61  ;;  %v5732_v15 = vpop.f32.mrb[139].mxu0  ;;  %v5750_v50 = vadd.f32 %v5738_v24, %v8555_v16 }
 0x758   : > { %v5733_v33 = vadd.f32 %v6361_v61, %v5732_v15  ;;  %v5748_v47 = vadd.f32 %v5730_v48, %v8542_v20 }
 0x759   : > { %v5751_v9 = vadd.f32 %v5741_v49, %v8558_v38  ;;  %v5772_v21 = vsel %vm833_vm0, %v5750_v50, 0.0 }
 0x75a   : > { %v5766_v43 = vsel %vm833_vm0, %v5748_v47, 0.0  ;;  %v5749_v34 = vadd.f32 %v5733_v33, %v8545_v23 }
 0x75b   : > { %5767 = vadd.xlane.f32.xlu1 %v5766_v43  ;;  %v5775_v55 = vsel %vm833_vm0, %v5751_v9, 0.0 }
 0x75c   : > { %v5769_v60 = vsel %vm833_vm0, %v5749_v34, 0.0 }
 0x75d   : > { %5770 = vadd.xlane.f32.xlu0 %v5769_v60 }
 0x75f   : > { %5773 = vadd.xlane.f32.xlu1 %v5772_v21 }
 0x761   : > { %5776 = vadd.xlane.f32.xlu0 %v5775_v55 }
 0x7a9   : > { %v5762_v20 = vpop.xlane.xlu1 %5761 }
 0x7aa   : > { %v5780_v31 = vmul.f32 0.03125, %v5762_v20 }
 0x7ab   : > { %v5765_v23 = vpop.xlane.xlu0 %5764 }
 0x7ac   : > { %v8591_v54 = vsub.f32 %v5746_v13, %v5780_v31  ;;  %v5781_v16 = vmul.f32 0.03125, %v5765_v23 }
 0x7ad   : > { %v5756_v30 = vpop.xlane.xlu1 %5755 }
 0x7ae   : > { %v8593_v12 = vsub.f32 %v5747_v57, %v5781_v16  ;;  %v5778_v38 = vmul.f32 0.03125, %v5756_v30  ;;  %v5796_v29 = vmul.f32 %v8591_v54, %v8591_v54  ;;  %v5943_v57 = vld [vmem:[%s789_s30 + $0x8] sm:$0xff] }
 0x7af   : > { %v5759_v1 = vpop.xlane.xlu0 %5758 }
 0x7b0   : > { %v8597_v19 = vsub.f32 %v5744_v22, %v5778_v38  ;;  %v5779_v3 = vmul.f32 0.03125, %v5759_v1  ;;  %v5808_v28 = vsel %vm833_vm0, %v5796_v29, 0.0  ;;  %v5797_v6 = vmul.f32 %v8593_v12, %v8593_v12  ;;  %v5944_v22 = vld [vmem:[%s789_s30 + $0x10] sm:$0xff] }
 0x7b1   : > { %5809 = vadd.xlane.f32.xlu1 %v5808_v28 }
 0x7b2   : > { %v8602_v2 = vsub.f32 %v5745_v36, %v5779_v3  ;;  %v5794_v10 = vmul.f32 %v8597_v19, %v8597_v19  ;;  %v5811_v41 = vsel %vm833_vm0, %v5797_v6, 0.0  ;;  %v5946_v36 = vld [vmem:[%s789_s30 + $0x20] sm:$0xff] }
 0x7b3   : > { %5812 = vadd.xlane.f32.xlu0 %v5811_v41 }
 0x7b4   : > { %v5802_v52 = vsel %vm833_vm0, %v5794_v10, 0.0  ;;  %v5795_v56 = vmul.f32 %v8602_v2, %v8602_v2 }
 0x7b5   : > { %5803 = vadd.xlane.f32.xlu1 %v5802_v52 }
 0x7b6   : > { %v5805_v44 = vsel %vm833_vm0, %v5795_v56, 0.0 }
 0x7b7   : > { %5806 = vadd.xlane.f32.xlu0 %v5805_v44 }
 0x7e8   : > { %v5768_v7 = vpop.xlane.xlu1 %5767 }
 0x7e9   : > { %v5782_v46 = vmul.f32 0.03125, %v5768_v7 }
 0x7ea   : > { %v5771_v32 = vpop.xlane.xlu0 %5770 }
 0x7eb   : > { %v5783_v5 = vmul.f32 0.03125, %v5771_v32  ;;  %v8613_v51 = vsub.f32 %v5748_v47, %v5782_v46 }
 0x7ec   : > { %v5774_v18 = vpop.xlane.xlu1 %5773 }
 0x7ed   : > { %v8611_v35 = vsub.f32 %v5749_v34, %v5783_v5  ;;  %v5784_v27 = vmul.f32 0.03125, %v5774_v18  ;;  %v5798_v40 = vmul.f32 %v8613_v51, %v8613_v51  ;;  %v8638_v5 = vld [vmem:[%s8714_s20] ss:$0 sm:$0xff] }
 0x7ee   : > { %v5777_v26 = vpop.xlane.xlu0 %5776 }
 0x7ef   : > { %v8615_v11 = vsub.f32 %v5750_v50, %v5784_v27  ;;  %v5785_v61 = vmul.f32 0.03125, %v5777_v26  ;;  %v5799_v25 = vmul.f32 %v8611_v35, %v8611_v35  ;;  %v5814_v63 = vsel %vm833_vm0, %v5798_v40, 0.0 }
 0x7f0   : > { %v5912_v27 = vmul.f32 %v8638_v5, %v8597_v19  ;;  %v8649_v19 = vld [vmem:[%s8715_s21] ss:$0 sm:$0xff] }
 0x7f1   : > { %v8619_v4 = vsub.f32 %v5751_v9, %v5785_v61  ;;  %v5817_v59 = vsel %vm833_vm0, %v5799_v25, 0.0  ;;  %v5800_v42 = vmul.f32 %v8615_v11, %v8615_v11 }
 0x7f2   : > { %5818 = vadd.xlane.f32.xlu0 %v5817_v59  ;;  %v5913_v59 = vmul.f32 %v8638_v5, %v8602_v2 }
 0x7f3   : > { %v5820_v62 = vsel %vm833_vm0, %v5800_v42, 0.0  ;;  %v5801_v37 = vmul.f32 %v8619_v4, %v8619_v4 }
 0x7f4   : > { %5821 = vadd.xlane.f32.xlu1 %v5820_v62 }
 0x7f5   : > { %v5823_v13 = vsel %vm833_vm0, %v5801_v37, 0.0 }
 0x7f6   : > { %5824 = vadd.xlane.f32.xlu0 %v5823_v13  ;;  %v5914_v13 = vmul.f32 %v8638_v5, %v8591_v54 }
 0x7f8   : > { %5815 = vadd.xlane.f32.xlu1 %v5814_v63 }
 0x809   : > { %5952 = vperm.xlu1 %6938, %v5942_v53  }
 0x80c   : > { %5957 = vperm.xlu0 %6939, %v5943_v57  }
 0x80d   : > { %5962 = vperm.xlu1 %6938, %v5944_v22  }
 0x811   : > { %5967 = vperm.xlu1 %6938, %v5945_v14   ;;  %v5915_v14 = vmul.f32 %v8638_v5, %v8593_v12 }
 0x815   : > { %5972 = vperm.xlu1 %6938, %v5946_v36  }
 0x819   : > { %5977 = vperm.xlu1 %6938, %v5947_v17  }
 0x81d   : > { %5982 = vperm.xlu1 %6938, %v5948_v8  }
 0x821   : > { %5987 = vperm.xlu1 %6938, %v5949_v39  }
 0x83e   : > { %v5810_v24 = vpop.xlane.xlu1 %5809 }
 0x83f   : > { %v5828_v33 = vmul.f32 0.032258064, %v5810_v24 }
 0x840   : > { %v5813_v0 = vpop.xlane.xlu0 %5812 }
 0x841   : > { %v5829_v47 = vmul.f32 0.032258064, %v5813_v0  ;;  %vm5850_vm13 = vcmp.eq.f32.partialorder %v5828_v33, inf  ;;  %v5853_v29 = vand.u32 2147483648, %v5828_v33  ;;  %vm5852_vm1 = vcmp.eq.f32.partialorder %v5828_v33, 0.0 }
 0x842   : > { %v5804_v48 = vpop.xlane.xlu1 %5803 }
 0x843   : > { %v5826_v49 = vmul.f32 0.032258064, %v5804_v48  ;;  %vm5857_vm15 = vcmp.eq.f32.partialorder %v5829_v47, inf  ;;  %v5860_v10 = vand.u32 2147483648, %v5829_v47  ;;  %vm5859_vm2 = vcmp.eq.f32.partialorder %v5829_v47, 0.0 }
 0x844   : > { %v5807_v45 = vpop.xlane.xlu0 %5806 }
 0x845   : > { %v5827_v15 = vmul.f32 0.032258064, %v5807_v45  ;;  %7026 = vrsqrt.f32 %v5826_v49  ;;  %vm5836_vm10 = vcmp.eq.f32.partialorder %v5826_v49, inf  ;;  %v5839_v20 = vand.u32 2147483648, %v5826_v49 }
 0x846   : > { %vm5838_vm12 = vcmp.eq.f32.partialorder %v5826_v49, 0.0 }
 0x847   : > { %7028 = vrsqrt.f32 %v5827_v15  ;;  %vm5843_vm11 = vcmp.eq.f32.partialorder %v5827_v15, inf  ;;  %v5846_v16 = vand.u32 2147483648, %v5827_v15  ;;  %vm5845_vm14 = vcmp.eq.f32.partialorder %v5827_v15, 0.0 }
 0x848   : > { %7030 = vrsqrt.f32 %v5828_v33 }
 0x849   : > { %7032 = vrsqrt.f32 %v5829_v47 }
 0x84f   : > { %v7027_v43 = vpop.eup %7026 }
 0x850   : > { %v5835_v50 = vmul.f32 %v7027_v43, %v5826_v49 }
 0x851   : > { %v7029_v34 = vpop.eup %7028 }
 0x852   : > { %v7031_v60 = vpop.eup %7030  ;;  %v5842_v9 = vmul.f32 %v7029_v34, %v5827_v15  ;;  %v5837_v58 = vsel %vm5836_vm10, %v5826_v49, %v5835_v50 }
 0x853   : > { %v7033_v21 = vpop.eup %7032  ;;  %v5849_v55 = vmul.f32 %v7031_v60, %v5828_v33  ;;  %v5840_v30 = vsel %vm5838_vm12, %v5839_v20, %v5837_v58 }
 0x854   : > { %v5844_v31 = vsel %vm5843_vm11, %v5827_v15, %v5842_v9  ;;  %v5856_v23 = vmul.f32 %v7033_v21, %v5829_v47  ;;  %v5890_v3 = vadd.f32 1e-06, %v5840_v30 }
 0x855   : > { %v5851_v38 = vsel %vm5850_vm13, %v5828_v33, %v5849_v55  ;;  %v5847_v1 = vsel %vm5845_vm14, %v5846_v16, %v5844_v31 }
 0x856   : > { %v5854_v28 = vsel %vm5852_vm1, %v5853_v29, %v5851_v38  ;;  %v5858_v6 = vsel %vm5857_vm15, %v5829_v47, %v5856_v23  ;;  %v5891_v41 = vadd.f32 1e-06, %v5847_v1  ;;  %7034 = vrcp.f32 %v5890_v3 }
 0x857   : > { %v5892_v52 = vadd.f32 1e-06, %v5854_v28  ;;  %v5861_v56 = vsel %vm5859_vm2, %v5860_v10, %v5858_v6 }
 0x858   : > { %7036 = vrcp.f32 %v5891_v41  ;;  %v5893_v44 = vadd.f32 1e-06, %v5861_v56 }
 0x859   : > { %7038 = vrcp.f32 %v5892_v52 }
 0x85a   : > { %7040 = vrcp.f32 %v5893_v44 }
 0x860   : > { %v7035_v46 = vpop.eup %7034 }
 0x861   : > { %v5920_v62 = vmul.f32 %v7035_v46, %v5912_v27  ;;  %v5918_v46 = vmul.f32 %v8638_v5, %v8615_v11 }
 0x862   : > { %v7037_v61 = vpop.eup %7036 }
 0x863   : > { %v7039_v37 = vpop.eup %7038  ;;  %v5921_v53 = vmul.f32 %v7037_v61, %v5913_v59  ;;  %v5934_v2 = vadd.f32 %v8649_v19, %v5920_v62  ;;  %v5919_v61 = vmul.f32 %v8638_v5, %v8619_v4 }
 0x864   : > { %v7041_v57 = vpop.eup %7040  ;;  %v5922_v22 = vmul.f32 %v7039_v37, %v5914_v13 }
 0x865   : > { %v5935_v17 = vadd.f32 %v8649_v19, %v5921_v53  ;;  %v5923_v39 = vmul.f32 %v7041_v57, %v5915_v14 }
 0x866   : > { %v5936_v12 = vadd.f32 %v8649_v19, %v5922_v22 }
 0x867   : > { %v5937_v43 = vadd.f32 %v8649_v19, %v5923_v39 }
 0x87f   : > { %v5819_v7 = vpop.xlane.xlu0 %5818 }
 0x880   : > { %v5831_v32 = vmul.f32 0.032258064, %v5819_v7  ;;  %v5917_v7 = vmul.f32 %v8638_v5, %v8611_v35  ;;  %v5916_v35 = vmul.f32 %v8638_v5, %v8613_v51 }
 0x881   : > { %v5822_v18 = vpop.xlane.xlu1 %5821 }
 0x882   : > { %7042 = vrsqrt.f32 %v5831_v32  ;;  %v5832_v26 = vmul.f32 0.032258064, %v5822_v18  ;;  %vm5871_vm3 = vcmp.eq.f32.partialorder %v5831_v32, inf  ;;  %v5874_v15 = vand.u32 2147483648, %v5831_v32 }
 0x883   : > { %v5825_v25 = vpop.xlane.xlu0 %5824  ;;  %vm5873_vm4 = vcmp.eq.f32.partialorder %v5831_v32, 0.0 }
 0x884   : > { %7044 = vrsqrt.f32 %v5832_v26  ;;  %v5833_v42 = vmul.f32 0.032258064, %v5825_v25  ;;  %vm5878_vm5 = vcmp.eq.f32.partialorder %v5832_v26, inf  ;;  %v5881_v60 = vand.u32 2147483648, %v5832_v26 }
 0x885   : > { %v5816_v40 = vpop.xlane.xlu1 %5815  ;;  %vm5880_vm6 = vcmp.eq.f32.partialorder %v5832_v26, 0.0 }
 0x886   : > { %7046 = vrsqrt.f32 %v5833_v42  ;;  %v5830_v63 = vmul.f32 0.032258064, %v5816_v40  ;;  %vm5885_vm7 = vcmp.eq.f32.partialorder %v5833_v42, inf  ;;  %v5888_v23 = vand.u32 2147483648, %v5833_v42 }
 0x887   : > { %vm5887_vm8 = vcmp.eq.f32.partialorder %v5833_v42, 0.0 }
 0x888   : > { %7048 = vrsqrt.f32 %v5830_v63  ;;  %vm5864_vm9 = vcmp.eq.f32.partialorder %v5830_v63, inf  ;;  %v5867_v3 = vand.u32 2147483648, %v5830_v63  ;;  %vm5866_vm10 = vcmp.eq.f32.partialorder %v5830_v63, 0.0 }
 0x889   : > { %v5953_v54 = vpop.permute.xlu1 %5952 }
 0x88a   : > { %v5990_v36 = vmul.f32 %v5953_v54, %v5934_v2 }
 0x88b   : > { %v5958_v8 = vpop.permute.xlu0 %5957 }
 0x88c   : > { %v7043_v24 = vpop.eup %7042  ;;  %5998 = vst.msk [vmem:[%s8658_s4] sm:$0xff] %vm833_vm0, %v5990_v36  ;;  %v5991_v0 = vmul.f32 %v5958_v8, %v5935_v17 }
 0x88d   : > { %v5870_v48 = vmul.f32 %v7043_v24, %v5831_v32  ;;  %v5963_v45 = vpop.permute.xlu1 %5962 }
 0x88e   : > { %v7045_v49 = vpop.eup %7044  ;;  %5999 = vst.msk [vmem:[%s8658_s4 + $0x8] sm:$0xff] %vm833_vm0, %v5991_v0  ;;  %v5992_v33 = vmul.f32 %v5963_v45, %v5936_v12 }
 0x88f   : > { %v5877_v47 = vmul.f32 %v7045_v49, %v5832_v26  ;;  %v5872_v34 = vsel %vm5871_vm3, %v5831_v32, %v5870_v48 }
 0x890   : > { %v7047_v50 = vpop.eup %7046  ;;  %6000 = vst.msk [vmem:[%s8658_s4 + $0x10] sm:$0xff] %vm833_vm0, %v5992_v33  ;;  %v5875_v9 = vsel %vm5873_vm4, %v5874_v15, %v5872_v34 }
 0x891   : > { %v5884_v21 = vmul.f32 %v7047_v50, %v5833_v42  ;;  %v5968_v55 = vpop.permute.xlu1 %5967  ;;  %v5895_v58 = vadd.f32 1e-06, %v5875_v9  ;;  %v5879_v20 = vsel %vm5878_vm5, %v5832_v26, %v5877_v47 }
 0x892   : > { %v7049_v31 = vpop.eup %7048  ;;  %v5993_v16 = vmul.f32 %v5968_v55, %v5937_v43  ;;  %v5882_v30 = vsel %vm5880_vm6, %v5881_v60, %v5879_v20 }
 0x893   : > { %v5863_v38 = vmul.f32 %v7049_v31, %v5830_v63  ;;  %7050 = vrcp.f32 %v5895_v58  ;;  %v5896_v29 = vadd.f32 1e-06, %v5882_v30  ;;  %v5886_v1 = vsel %vm5885_vm7, %v5833_v42, %v5884_v21 }
 0x894   : > { %6001 = vst.msk [vmem:[%s8658_s4 + $0x18] sm:$0xff] %vm833_vm0, %v5993_v16  ;;  %v5889_v28 = vsel %vm5887_vm8, %v5888_v23, %v5886_v1 }
 0x895   : > { %v5865_v6 = vsel %vm5864_vm9, %v5830_v63, %v5863_v38  ;;  %v5973_v10 = vpop.permute.xlu1 %5972  ;;  %7052 = vrcp.f32 %v5896_v29  ;;  %v5897_v41 = vadd.f32 1e-06, %v5889_v28 }
 0x896   : > { %v5868_v52 = vsel %vm5866_vm10, %v5867_v3, %v5865_v6 }
 0x897   : > { %v5894_v56 = vadd.f32 1e-06, %v5868_v52  ;;  %7054 = vrcp.f32 %v5897_v41 }
 0x899   : > { %7056 = vrcp.f32 %v5894_v56  ;;  %v5978_v44 = vpop.permute.xlu1 %5977 }
 0x89d   : > { %v7051_v32 = vpop.eup %7050  ;;  %v5983_v26 = vpop.permute.xlu1 %5982 }
 0x89e   : > { %v5925_v18 = vmul.f32 %v7051_v32, %v5917_v7 }
 0x89f   : > { %v7053_v27 = vpop.eup %7052 }
 0x8a0   : > { %v5939_v25 = vadd.f32 %v8649_v19, %v5925_v18  ;;  %v5926_v59 = vmul.f32 %v7053_v27, %v5918_v46 }
 0x8a1   : > { %v7055_v42 = vpop.eup %7054  ;;  %v5988_v53 = vpop.permute.xlu1 %5987 }
 0x8a2   : > { %v5995_v62 = vmul.f32 %v5978_v44, %v5939_v25  ;;  %v5940_v37 = vadd.f32 %v8649_v19, %v5926_v59  ;;  %v5927_v11 = vmul.f32 %v7055_v42, %v5919_v61 }
 0x8a3   : > { %v7057_v40 = vpop.eup %7056 }
 0x8a4   : > { %v5924_v13 = vmul.f32 %v7057_v40, %v5916_v35  ;;  %6003 = vst.msk [vmem:[%s8658_s4 + $0x28] sm:$0xff] %vm833_vm0, %v5995_v62  ;;  %v5996_v63 = vmul.f32 %v5983_v26, %v5940_v37  ;;  %v5941_v4 = vadd.f32 %v8649_v19, %v5927_v11 }
 0x8a6   : > { %v5938_v57 = vadd.f32 %v8649_v19, %v5924_v13  ;;  %6004 = vst.msk [vmem:[%s8658_s4 + $0x30] sm:$0xff] %vm833_vm0, %v5996_v63  ;;  %v5997_v2 = vmul.f32 %v5988_v53, %v5941_v4 }
 0x8a8   : > { %v5994_v22 = vmul.f32 %v5973_v10, %v5938_v57  ;;  %6005 = vst.msk [vmem:[%s8658_s4 + $0x38] sm:$0xff] %vm833_vm0, %v5997_v2 }
 0x8aa   : > { %6002 = vst.msk [vmem:[%s8658_s4 + $0x20] sm:$0xff] %vm833_vm0, %v5994_v22 }
 0x8ab PF: > { %s32_s3 = sadd.s32 1, %s7073_s3  }
 0x8ac   : > { %p29_p5 = scmp.ge.s32.totalorder %s32_s3, 4  }
 0x8ae   :  { %31 = sbr.rel (!%p29_p5) target bundleno = 8 (0x8), region = 153 }

</bundles_post_ra>
